<compile_context>
chip_gen: v6e
topology: v6e:2x2x1
jax: 0.10.0
libtpu: 0.0.40
codegen_flags: <defaults>
</compile_context>

<pallas_src>
import jax
import jax.numpy as jnp
from jax.experimental import pallas as pl
from jax.experimental.pallas import tpu as pltpu

LANE = 128      # vreg lane width (last-dim tiling unit)
SUBLANE = 8     # vreg sublane height (second-to-last-dim tiling unit)


def _round_up(v, m):
    return (v + m - 1) // m * m


def fold_bn(gamma, beta, running_mean, running_var, eps=1e-5):
    """Fold eval-mode BatchNorm into a per-channel scale/bias."""
    scale = gamma / jnp.sqrt(running_var + eps)
    bias = beta - running_mean * scale
    return scale, bias


def _pick_batch_tile(n, hw):
    """Batch several images per grid step when H*W is small (amortizes the
    ~0.35us/step overhead and per-step DMA) while keeping >=2 grid blocks so
    both TensorCores can run on v7x."""
    bt = 1
    for cand in (2, 4, 8):
        if n % cand == 0 and n // cand >= 2 and bt * hw < 256:
            bt = cand
    return bt


def _fused_basic_block_kernel(x_ref, w1_ref, w2_ref, s1_ref, b1_ref,
                              s2_ref, b2_ref, out_ref, xs_ref, hs_ref):
    """Fused conv1+bn1+relu+conv2+bn2+add+relu for one block of Bt images.

    x_ref  : (Bt, H, W, C)       f32   un-padded NHWC input
    w*_ref : (3, 3, Cp, Cp)      bf16  conv weights (kh, kw, Cin, Cout), padded
    s*/b*  : (1, Cp)             f32   folded BN scale / bias
    out_ref: (Bt, H, W, Cp)      f32
    xs_ref : (Bt, H+2, Ws, Cp)   bf16  VMEM scratch: padded conv1 input
    hs_ref : (Bt, H+2, Ws, Cp)   bf16  VMEM scratch: padded conv2 input
    """
    Bt, H, W, C = x_ref.shape
    _, _, Ws, Cp = xs_ref.shape

    def conv3x3(src_ref, b, w_ref):
        # 9 shifted matmuls with K=Cp over the full padded width (no im2col
        # concatenate).  Ws % 8 == 0, so the (H, Ws, Cp) -> (H*Ws, Cp) reshape
        # is layout-preserving and the matmul rows are sublane-aligned.
        acc = [None, None, None]
        for kh in range(3):
            rows = src_ref[b, kh:kh + H].reshape(H * Ws, Cp)
            for kw in range(3):
                d = jnp.dot(rows, w_ref[kh, kw],
                            preferred_element_type=jnp.float32)
                acc[kw] = d if acc[kw] is None else acc[kw] + d
        # Align the kw taps by windowing the full-width accumulators once each.
        a0 = acc[0].reshape(H, Ws, Cp)[:, 0:W]
        a1 = acc[1].reshape(H, Ws, Cp)[:, 1:W + 1]
        a2 = acc[2].reshape(H, Ws, Cp)[:, 2:W + 2]
        return a0 + a1 + a2                                  # (H, W, Cp) f32

    for b in range(Bt):                 # static loop over the batch tile
        xb = x_ref[b]                                        # (H, W, C) f32
        # Lane-pad once; reused for the exact-f32 residual add.
        res = jnp.pad(xb, ((0, 0), (0, 0), (0, Cp - C))) if Cp > C else xb
        # One full-width, lane-dense store per step supplies both the conv
        # zero-padding halo and the image; no cross-step scratch state, so the
        # kernel stays correct when the parallel axis is split across cores.
        xs_ref[b] = jnp.pad(
            res, ((1, 1), (1, Ws - W - 1), (0, 0))).astype(jnp.bfloat16)

        # ---- conv1 + bn1 + relu -> padded intermediate kept in VMEM ----
        h = conv3x3(xs_ref, b, w1_ref)
        h = jnp.maximum(h * s1_ref[...] + b1_ref[...], 0.0)
        hs_ref[b] = jnp.pad(
            h, ((1, 1), (1, Ws - W - 1), (0, 0))).astype(jnp.bfloat16)

        # ---- conv2 + bn2 + residual add + relu ----
        y = conv3x3(hs_ref, b, w2_ref)
        y = y * s2_ref[...] + b2_ref[...]
        out_ref[b] = jnp.maximum(y + res, 0.0)


def basic_block_forward(x_nchw, params, eps=1e-5):
    """BasicBlock forward (stride=1, downsample=None).  NCHW in / NCHW out."""
    x = jnp.transpose(x_nchw, (0, 2, 3, 1)).astype(jnp.float32)   # -> NHWC
    N, H, W, C = x.shape
    w1, w2 = params["w1"], params["w2"]
    planes = w1.shape[-1]
    assert w1.shape == (3, 3, C, planes) and w2.shape == (3, 3, planes, planes)
    assert planes == C, "stride=1 / downsample=None requires inplanes == planes"

    Cp = _round_up(C, LANE)                 # lane-dense channel dimension
    Ws = _round_up(W + 2, SUBLANE)          # sublane-aligned padded width
    pc = Cp - C

    s1, b1 = fold_bn(params["g1"], params["b1"], params["m1"], params["v1"], eps)
    s2, b2 = fold_bn(params["g2"], params["b2"], params["m2"], params["v2"], eps)
    s1 = jnp.pad(s1, (0, pc)).reshape(1, Cp)
    b1 = jnp.pad(b1, (0, pc)).reshape(1, Cp)
    s2 = jnp.pad(s2, (0, pc)).reshape(1, Cp)
    b2 = jnp.pad(b2, (0, pc)).reshape(1, Cp)

    # Weights: zero-pad channels, keep (kh, kw, Cin, Cout), cast to bf16.
    w1f = jnp.pad(w1, ((0, 0), (0, 0), (0, pc), (0, pc))).astype(jnp.bfloat16)
    w2f = jnp.pad(w2, ((0, 0), (0, 0), (0, pc), (0, pc))).astype(jnp.bfloat16)

    Bt = _pick_batch_tile(N, H * W)
    grid = (N // Bt,)

    # ---- VMEM budget: pipelined blocks + scratches + live temporaries ----
    blk_in = Bt * H * W * C * 4
    blk_out = Bt * H * W * Cp * 4
    blk_w = 2 * 3 * 3 * Cp * Cp * 2
    blk_sb = 4 * Cp * 4
    scratch = 2 * Bt * (H + 2) * Ws * Cp * 2
    temps = Bt * (4 * H * Ws * Cp * 4            # f32 accumulators + rows
                  + (H + 2) * Ws * Cp * 4        # padded image value
                  + 3 * H * W * Cp * 4)          # epilogue temporaries
    vmem_est = 2 * (blk_in + blk_out + blk_w + blk_sb) + scratch + temps

    vmem_cap = 64 * 2 ** 20
    try:   # size from the actual part (128 MiB on v5e/v6e, 64 MiB on v7x)
        vmem_cap = int(getattr(pltpu.get_tpu_info(), "vmem_capacity_bytes",
                               vmem_cap))
    except Exception:
        pass
    vmem_limit = int(min(int(0.85 * vmem_cap),   # leave compiler headroom
                         max(32 * 2 ** 20, 2 * vmem_est)))

    flops = N * 2 * 2 * 9 * H * Ws * Cp * Cp     # 2 convs, 2 flops per MAC
    bytes_accessed = (x.size * 4 + N * H * W * Cp * 4
                      + (w1f.size + w2f.size) * 2 + 4 * Cp * 4)

    grid_spec = pltpu.PrefetchScalarGridSpec(
        num_scalar_prefetch=0,
        grid=grid,
        in_specs=[
            pl.BlockSpec((Bt, H, W, C), lambda n: (n, 0, 0, 0)),
            pl.BlockSpec((3, 3, Cp, Cp), lambda n: (0, 0, 0, 0)),
            pl.BlockSpec((3, 3, Cp, Cp), lambda n: (0, 0, 0, 0)),
            pl.BlockSpec((1, Cp), lambda n: (0, 0)),
            pl.BlockSpec((1, Cp), lambda n: (0, 0)),
            pl.BlockSpec((1, Cp), lambda n: (0, 0)),
            pl.BlockSpec((1, Cp), lambda n: (0, 0)),
        ],
        out_specs=pl.BlockSpec((Bt, H, W, Cp), lambda n: (n, 0, 0, 0)),
        scratch_shapes=[
            pltpu.VMEM((Bt, H + 2, Ws, Cp), jnp.bfloat16),   # padded x
            pltpu.VMEM((Bt, H + 2, Ws, Cp), jnp.bfloat16),   # padded h
        ],
    )

    out = pl.pallas_call(
        _fused_basic_block_kernel,
        out_shape=jax.ShapeDtypeStruct((N, H, W, Cp), jnp.float32),
        grid_spec=grid_spec,
        compiler_params=pltpu.CompilerParams(
            dimension_semantics=("parallel",),
            vmem_limit_bytes=vmem_limit),
        cost_estimate=pl.CostEstimate(
            flops=flops, transcendentals=0, bytes_accessed=bytes_accessed),
    )(x, w1f, w2f, s1, b1, s2, b2)

    # TODO(synk): emit bf16 / exactly-`planes` channels when the consumer
    #             allows it; f32 + slice is kept here for PyTorch parity.
    out = out[..., :planes]                      # drop lane padding
    return jnp.transpose(out, (0, 3, 1, 2))      # back to NCHW


def _reference_forward(x_nchw, params, eps=1e-5):
    """Pure-JAX reference mirroring the kernel's bf16 quantization points."""
    x = x_nchw.astype(jnp.float32)

    def conv(z, w):   # z: NCHW f32, w: (3, 3, Cin, Cout) = HWIO
        zb = z.astype(jnp.bfloat16).astype(jnp.float32)
        wb = w.astype(jnp.bfloat16).astype(jnp.float32)
        return jax.lax.conv_general_dilated(
            zb, wb, window_strides=(1, 1), padding=((1, 1), (1, 1)),
            dimension_numbers=("NCHW", "HWIO", "NCHW"))

    s1, b1 = fold_bn(params["g1"], params["b1"], params["m1"], params["v1"], eps)
    s2, b2 = fold_bn(params["g2"], params["b2"], params["m2"], params["v2"], eps)
    h = jnp.maximum(conv(x, params["w1"]) * s1[None, :, None, None]
                    + b1[None, :, None, None], 0.0)
    h = h.astype(jnp.bfloat16).astype(jnp.float32)
    y = conv(h, params["w2"]) * s2[None, :, None, None] + b2[None, :, None, None]
    return jnp.maximum(y + x, 0.0)


def init_params(key, inplanes, planes):
    ks = jax.random.split(key, 10)
    return {
        "w1": 0.1 * jax.random.normal(ks[0], (3, 3, inplanes, planes), jnp.float32),
        "w2": 0.1 * jax.random.normal(ks[1], (3, 3, planes, planes), jnp.float32),
        "g1": jax.random.uniform(ks[2], (planes,), jnp.float32, 0.5, 1.5),
        "b1": 0.1 * jax.random.normal(ks[3], (planes,), jnp.float32),
        "m1": 0.1 * jax.random.normal(ks[4], (planes,), jnp.float32),
        "v1": jax.random.uniform(ks[5], (planes,), jnp.float32, 0.5, 1.5),
        "g2": jax.random.uniform(ks[6], (planes,), jnp.float32, 0.5, 1.5),
        "b2": 0.1 * jax.random.normal(ks[7], (planes,), jnp.float32),
        "m2": 0.1 * jax.random.normal(ks[8], (planes,), jnp.float32),
        "v2": jax.random.uniform(ks[9], (planes,), jnp.float32, 0.5, 1.5),
    }


if __name__ == "__main__":
    key = jax.random.PRNGKey(0)
    k_x, k_p = jax.random.split(key)

    N, C, H, W = 2, 4, 16, 16            # inplanes = planes = 4, stride = 1
    x = jax.random.normal(k_x, (N, C, H, W), jnp.float32)    # NCHW like PyTorch
    params = init_params(k_p, inplanes=C, planes=C)

    out = jax.block_until_ready(basic_block_forward(x, params))
    assert out.shape == (N, C, H, W), out.shape

    ref = jax.block_until_ready(_reference_forward(x, params))
    max_err = float(jnp.max(jnp.abs(out - ref)))
    assert max_err < 3e-2, f"max abs error vs reference: {max_err}"

    print("KERNEL_OK")
</pallas_src>

<mosaic_0001>
module attributes {stable_mosaic.version = 11 : i64} {
  func.func @_fused_basic_block_kernel(%arg0: i32, %arg1: memref<1x16x16x4xf32, #tpu.memory_space<vmem>>, %arg2: memref<3x3x128x128xbf16, #tpu.memory_space<vmem>>, %arg3: memref<3x3x128x128xbf16, #tpu.memory_space<vmem>>, %arg4: memref<1x128xf32, #tpu.memory_space<vmem>>, %arg5: memref<1x128xf32, #tpu.memory_space<vmem>>, %arg6: memref<1x128xf32, #tpu.memory_space<vmem>>, %arg7: memref<1x128xf32, #tpu.memory_space<vmem>>, %arg8: memref<1x16x16x128xf32, #tpu.memory_space<vmem>>, %arg9: memref<1x18x24x128xbf16, #tpu.memory_space<vmem>>, %arg10: memref<1x18x24x128xbf16, #tpu.memory_space<vmem>>) attributes {dimension_semantics = [#tpu.dimension_semantics<parallel>], iteration_bounds = array<i64: 2>, scalar_prefetch = 0 : i64, scratch_operands = 2 : i64, tpu.core_type = #tpu.core_type<tc>, window_params = [{transform_indices = @transform_0, window_bounds = array<i64: 1, 16, 16, 4>}, {pipeline_mode = #tpu.pipeline_mode<synchronous>, transform_indices = @transform_1, window_bounds = array<i64: 3, 3, 128, 128>}, {pipeline_mode = #tpu.pipeline_mode<synchronous>, transform_indices = @transform_2, window_bounds = array<i64: 3, 3, 128, 128>}, {pipeline_mode = #tpu.pipeline_mode<synchronous>, transform_indices = @transform_3, window_bounds = array<i64: 1, 128>}, {pipeline_mode = #tpu.pipeline_mode<synchronous>, transform_indices = @transform_4, window_bounds = array<i64: 1, 128>}, {pipeline_mode = #tpu.pipeline_mode<synchronous>, transform_indices = @transform_5, window_bounds = array<i64: 1, 128>}, {pipeline_mode = #tpu.pipeline_mode<synchronous>, transform_indices = @transform_6, window_bounds = array<i64: 1, 128>}, {transform_indices = @transform_7, window_bounds = array<i64: 1, 16, 16, 128>}]} {
    %c0 = arith.constant 0 : index
    %c0_0 = arith.constant 0 : index
    %c0_1 = arith.constant 0 : index
    %c0_2 = arith.constant 0 : index
    %0 = vector.load %arg1[%c0, %c0_0, %c0_1, %c0_2] : memref<1x16x16x4xf32, #tpu.memory_space<vmem>>, vector<1x16x16x4xf32>
    %1 = vector.shape_cast %0 : vector<1x16x16x4xf32> to vector<16x16x4xf32>
    %c0_i32 = arith.constant 0 : i32
    %2 = arith.sitofp %c0_i32 : i32 to f32
    %3 = vector.broadcast %2 : f32 to vector<16x16x124xf32>
    %4 = tpu.concatenate %1, %3 in 2 : vector<16x16x4xf32>, vector<16x16x124xf32> -> vector<16x16x128xf32>
    %c0_i32_3 = arith.constant 0 : i32
    %5 = arith.sitofp %c0_i32_3 : i32 to f32
    %6 = vector.broadcast %5 : f32 to vector<1x16x128xf32>
    %7 = tpu.concatenate %6, %4 in 0 : vector<1x16x128xf32>, vector<16x16x128xf32> -> vector<17x16x128xf32>
    %8 = vector.broadcast %5 : f32 to vector<1x16x128xf32>
    %9 = tpu.concatenate %7, %8 in 0 : vector<17x16x128xf32>, vector<1x16x128xf32> -> vector<18x16x128xf32>
    %10 = vector.broadcast %5 : f32 to vector<18x1x128xf32>
    %11 = tpu.concatenate %10, %9 in 1 : vector<18x1x128xf32>, vector<18x16x128xf32> -> vector<18x17x128xf32>
    %12 = vector.broadcast %5 : f32 to vector<18x7x128xf32>
    %13 = tpu.concatenate %11, %12 in 1 : vector<18x17x128xf32>, vector<18x7x128xf32> -> vector<18x24x128xf32>
    %14 = arith.truncf %13 : vector<18x24x128xf32> to vector<18x24x128xbf16>
    %c0_4 = arith.constant 0 : index
    %c0_5 = arith.constant 0 : index
    %c0_6 = arith.constant 0 : index
    %c0_7 = arith.constant 0 : index
    %15 = vector.load %arg9[%c0_4, %c0_5, %c0_6, %c0_7] : memref<1x18x24x128xbf16, #tpu.memory_space<vmem>>, vector<1x18x24x128xbf16>
    %16 = vector.shape_cast %15 : vector<1x18x24x128xbf16> to vector<18x24x128xbf16>
    %17 = vector.shape_cast %14 : vector<18x24x128xbf16> to vector<1x18x24x128xbf16>
    tpu.vector_store %arg9[%c0_4, %c0_5, %c0_6, %c0_7], %17 {strides = array<i32>} : memref<1x18x24x128xbf16, #tpu.memory_space<vmem>>, vector<1x18x24x128xbf16>,
    %c0_8 = arith.constant 0 : index
    %c0_9 = arith.constant 0 : index
    %c0_10 = arith.constant 0 : index
    %c0_11 = arith.constant 0 : index
    %18 = vector.load %arg9[%c0_8, %c0_9, %c0_10, %c0_11] : memref<1x18x24x128xbf16, #tpu.memory_space<vmem>>, vector<1x16x24x128xbf16>
    %19 = vector.shape_cast %18 : vector<1x16x24x128xbf16> to vector<16x24x128xbf16>
    %20 = vector.shape_cast %19 : vector<16x24x128xbf16> to vector<384x128xbf16>
    %c0_12 = arith.constant 0 : index
    %c0_13 = arith.constant 0 : index
    %c0_14 = arith.constant 0 : index
    %c0_15 = arith.constant 0 : index
    %21 = vector.load %arg2[%c0_12, %c0_13, %c0_14, %c0_15] : memref<3x3x128x128xbf16, #tpu.memory_space<vmem>>, vector<1x1x128x128xbf16>
    %22 = vector.shape_cast %21 : vector<1x1x128x128xbf16> to vector<128x128xbf16>
    %cst = arith.constant dense<0.000000e+00> : vector<384x128xf32>
    %23 = tpu.matmul %20, %22, %cst {dimension_numbers = #tpu.dot_dimension_numbers<[1], [0], [0], [1], [0, 0, 1, 1], [], []>} : vector<384x128xbf16>, vector<128x128xbf16>, vector<384x128xf32> -> vector<384x128xf32>
    %c0_16 = arith.constant 0 : index
    %c1 = arith.constant 1 : index
    %c0_17 = arith.constant 0 : index
    %c0_18 = arith.constant 0 : index
    %24 = vector.load %arg2[%c0_16, %c1, %c0_17, %c0_18] : memref<3x3x128x128xbf16, #tpu.memory_space<vmem>>, vector<1x1x128x128xbf16>
    %25 = vector.shape_cast %24 : vector<1x1x128x128xbf16> to vector<128x128xbf16>
    %cst_19 = arith.constant dense<0.000000e+00> : vector<384x128xf32>
    %26 = tpu.matmul %20, %25, %cst_19 {dimension_numbers = #tpu.dot_dimension_numbers<[1], [0], [0], [1], [0, 0, 1, 1], [], []>} : vector<384x128xbf16>, vector<128x128xbf16>, vector<384x128xf32> -> vector<384x128xf32>
    %c0_20 = arith.constant 0 : index
    %c2 = arith.constant 2 : index
    %c0_21 = arith.constant 0 : index
    %c0_22 = arith.constant 0 : index
    %27 = vector.load %arg2[%c0_20, %c2, %c0_21, %c0_22] : memref<3x3x128x128xbf16, #tpu.memory_space<vmem>>, vector<1x1x128x128xbf16>
    %28 = vector.shape_cast %27 : vector<1x1x128x128xbf16> to vector<128x128xbf16>
    %cst_23 = arith.constant dense<0.000000e+00> : vector<384x128xf32>
    %29 = tpu.matmul %20, %28, %cst_23 {dimension_numbers = #tpu.dot_dimension_numbers<[1], [0], [0], [1], [0, 0, 1, 1], [], []>} : vector<384x128xbf16>, vector<128x128xbf16>, vector<384x128xf32> -> vector<384x128xf32>
    %c0_24 = arith.constant 0 : index
    %c1_25 = arith.constant 1 : index
    %c0_26 = arith.constant 0 : index
    %c0_27 = arith.constant 0 : index
    %30 = vector.load %arg9[%c0_24, %c1_25, %c0_26, %c0_27] : memref<1x18x24x128xbf16, #tpu.memory_space<vmem>>, vector<1x16x24x128xbf16>
    %31 = vector.shape_cast %30 : vector<1x16x24x128xbf16> to vector<16x24x128xbf16>
    %32 = vector.shape_cast %31 : vector<16x24x128xbf16> to vector<384x128xbf16>
    %c1_28 = arith.constant 1 : index
    %c0_29 = arith.constant 0 : index
    %c0_30 = arith.constant 0 : index
    %c0_31 = arith.constant 0 : index
    %33 = vector.load %arg2[%c1_28, %c0_29, %c0_30, %c0_31] : memref<3x3x128x128xbf16, #tpu.memory_space<vmem>>, vector<1x1x128x128xbf16>
    %34 = vector.shape_cast %33 : vector<1x1x128x128xbf16> to vector<128x128xbf16>
    %cst_32 = arith.constant dense<0.000000e+00> : vector<384x128xf32>
    %35 = tpu.matmul %32, %34, %cst_32 {dimension_numbers = #tpu.dot_dimension_numbers<[1], [0], [0], [1], [0, 0, 1, 1], [], []>} : vector<384x128xbf16>, vector<128x128xbf16>, vector<384x128xf32> -> vector<384x128xf32>
    %36 = arith.addf %23, %35 : vector<384x128xf32>
    %c1_33 = arith.constant 1 : index
    %c1_34 = arith.constant 1 : index
    %c0_35 = arith.constant 0 : index
    %c0_36 = arith.constant 0 : index
    %37 = vector.load %arg2[%c1_33, %c1_34, %c0_35, %c0_36] : memref<3x3x128x128xbf16, #tpu.memory_space<vmem>>, vector<1x1x128x128xbf16>
    %38 = vector.shape_cast %37 : vector<1x1x128x128xbf16> to vector<128x128xbf16>
    %cst_37 = arith.constant dense<0.000000e+00> : vector<384x128xf32>
    %39 = tpu.matmul %32, %38, %cst_37 {dimension_numbers = #tpu.dot_dimension_numbers<[1], [0], [0], [1], [0, 0, 1, 1], [], []>} : vector<384x128xbf16>, vector<128x128xbf16>, vector<384x128xf32> -> vector<384x128xf32>
    %40 = arith.addf %26, %39 : vector<384x128xf32>
    %c1_38 = arith.constant 1 : index
    %c2_39 = arith.constant 2 : index
    %c0_40 = arith.constant 0 : index
    %c0_41 = arith.constant 0 : index
    %41 = vector.load %arg2[%c1_38, %c2_39, %c0_40, %c0_41] : memref<3x3x128x128xbf16, #tpu.memory_space<vmem>>, vector<1x1x128x128xbf16>
    %42 = vector.shape_cast %41 : vector<1x1x128x128xbf16> to vector<128x128xbf16>
    %cst_42 = arith.constant dense<0.000000e+00> : vector<384x128xf32>
    %43 = tpu.matmul %32, %42, %cst_42 {dimension_numbers = #tpu.dot_dimension_numbers<[1], [0], [0], [1], [0, 0, 1, 1], [], []>} : vector<384x128xbf16>, vector<128x128xbf16>, vector<384x128xf32> -> vector<384x128xf32>
    %44 = arith.addf %29, %43 : vector<384x128xf32>
    %c0_43 = arith.constant 0 : index
    %c2_44 = arith.constant 2 : index
    %c0_45 = arith.constant 0 : index
    %c0_46 = arith.constant 0 : index
    %45 = vector.load %arg9[%c0_43, %c2_44, %c0_45, %c0_46] : memref<1x18x24x128xbf16, #tpu.memory_space<vmem>>, vector<1x16x24x128xbf16>
    %46 = vector.shape_cast %45 : vector<1x16x24x128xbf16> to vector<16x24x128xbf16>
    %47 = vector.shape_cast %46 : vector<16x24x128xbf16> to vector<384x128xbf16>
    %c2_47 = arith.constant 2 : index
    %c0_48 = arith.constant 0 : index
    %c0_49 = arith.constant 0 : index
    %c0_50 = arith.constant 0 : index
    %48 = vector.load %arg2[%c2_47, %c0_48, %c0_49, %c0_50] : memref<3x3x128x128xbf16, #tpu.memory_space<vmem>>, vector<1x1x128x128xbf16>
    %49 = vector.shape_cast %48 : vector<1x1x128x128xbf16> to vector<128x128xbf16>
    %cst_51 = arith.constant dense<0.000000e+00> : vector<384x128xf32>
    %50 = tpu.matmul %47, %49, %cst_51 {dimension_numbers = #tpu.dot_dimension_numbers<[1], [0], [0], [1], [0, 0, 1, 1], [], []>} : vector<384x128xbf16>, vector<128x128xbf16>, vector<384x128xf32> -> vector<384x128xf32>
    %51 = arith.addf %36, %50 : vector<384x128xf32>
    %c2_52 = arith.constant 2 : index
    %c1_53 = arith.constant 1 : index
    %c0_54 = arith.constant 0 : index
    %c0_55 = arith.constant 0 : index
    %52 = vector.load %arg2[%c2_52, %c1_53, %c0_54, %c0_55] : memref<3x3x128x128xbf16, #tpu.memory_space<vmem>>, vector<1x1x128x128xbf16>
    %53 = vector.shape_cast %52 : vector<1x1x128x128xbf16> to vector<128x128xbf16>
    %cst_56 = arith.constant dense<0.000000e+00> : vector<384x128xf32>
    %54 = tpu.matmul %47, %53, %cst_56 {dimension_numbers = #tpu.dot_dimension_numbers<[1], [0], [0], [1], [0, 0, 1, 1], [], []>} : vector<384x128xbf16>, vector<128x128xbf16>, vector<384x128xf32> -> vector<384x128xf32>
    %55 = arith.addf %40, %54 : vector<384x128xf32>
    %c2_57 = arith.constant 2 : index
    %c2_58 = arith.constant 2 : index
    %c0_59 = arith.constant 0 : index
    %c0_60 = arith.constant 0 : index
    %56 = vector.load %arg2[%c2_57, %c2_58, %c0_59, %c0_60] : memref<3x3x128x128xbf16, #tpu.memory_space<vmem>>, vector<1x1x128x128xbf16>
    %57 = vector.shape_cast %56 : vector<1x1x128x128xbf16> to vector<128x128xbf16>
    %cst_61 = arith.constant dense<0.000000e+00> : vector<384x128xf32>
    %58 = tpu.matmul %47, %57, %cst_61 {dimension_numbers = #tpu.dot_dimension_numbers<[1], [0], [0], [1], [0, 0, 1, 1], [], []>} : vector<384x128xbf16>, vector<128x128xbf16>, vector<384x128xf32> -> vector<384x128xf32>
    %59 = arith.addf %44, %58 : vector<384x128xf32>
    %60 = vector.shape_cast %51 : vector<384x128xf32> to vector<16x24x128xf32>
    %61 = vector.extract_strided_slice %60 {offsets = [0, 0, 0], sizes = [16, 16, 128], strides = [1, 1, 1]} : vector<16x24x128xf32> to vector<16x16x128xf32>
    %62 = vector.shape_cast %55 : vector<384x128xf32> to vector<16x24x128xf32>
    %63 = vector.extract_strided_slice %62 {offsets = [0, 1, 0], sizes = [16, 16, 128], strides = [1, 1, 1]} : vector<16x24x128xf32> to vector<16x16x128xf32>
    %64 = vector.shape_cast %59 : vector<384x128xf32> to vector<16x24x128xf32>
    %65 = vector.extract_strided_slice %64 {offsets = [0, 2, 0], sizes = [16, 16, 128], strides = [1, 1, 1]} : vector<16x24x128xf32> to vector<16x16x128xf32>
    %66 = arith.addf %61, %63 : vector<16x16x128xf32>
    %67 = arith.addf %66, %65 : vector<16x16x128xf32>
    %c0_62 = arith.constant 0 : index
    %c0_63 = arith.constant 0 : index
    %68 = vector.load %arg4[%c0_62, %c0_63] : memref<1x128xf32, #tpu.memory_space<vmem>>, vector<1x128xf32>
    %69 = vector.shape_cast %68 : vector<1x128xf32> to vector<1x1x128xf32>
    %70 = vector.broadcast %69 : vector<1x1x128xf32> to vector<16x16x128xf32>
    %71 = arith.mulf %67, %70 : vector<16x16x128xf32>
    %c0_64 = arith.constant 0 : index
    %c0_65 = arith.constant 0 : index
    %72 = vector.load %arg5[%c0_64, %c0_65] : memref<1x128xf32, #tpu.memory_space<vmem>>, vector<1x128xf32>
    %73 = vector.shape_cast %72 : vector<1x128xf32> to vector<1x1x128xf32>
    %74 = vector.broadcast %73 : vector<1x1x128xf32> to vector<16x16x128xf32>
    %75 = arith.addf %71, %74 : vector<16x16x128xf32>
    %cst_66 = arith.constant 0.000000e+00 : f32
    %76 = vector.broadcast %cst_66 : f32 to vector<16x16x128xf32>
    %77 = arith.maximumf %75, %76 : vector<16x16x128xf32>
    %c0_i32_67 = arith.constant 0 : i32
    %78 = arith.sitofp %c0_i32_67 : i32 to f32
    %79 = vector.broadcast %78 : f32 to vector<1x16x128xf32>
    %80 = tpu.concatenate %79, %77 in 0 : vector<1x16x128xf32>, vector<16x16x128xf32> -> vector<17x16x128xf32>
    %81 = vector.broadcast %78 : f32 to vector<1x16x128xf32>
    %82 = tpu.concatenate %80, %81 in 0 : vector<17x16x128xf32>, vector<1x16x128xf32> -> vector<18x16x128xf32>
    %83 = vector.broadcast %78 : f32 to vector<18x1x128xf32>
    %84 = tpu.concatenate %83, %82 in 1 : vector<18x1x128xf32>, vector<18x16x128xf32> -> vector<18x17x128xf32>
    %85 = vector.broadcast %78 : f32 to vector<18x7x128xf32>
    %86 = tpu.concatenate %84, %85 in 1 : vector<18x17x128xf32>, vector<18x7x128xf32> -> vector<18x24x128xf32>
    %87 = arith.truncf %86 : vector<18x24x128xf32> to vector<18x24x128xbf16>
    %c0_68 = arith.constant 0 : index
    %c0_69 = arith.constant 0 : index
    %c0_70 = arith.constant 0 : index
    %c0_71 = arith.constant 0 : index
    %88 = vector.load %arg10[%c0_68, %c0_69, %c0_70, %c0_71] : memref<1x18x24x128xbf16, #tpu.memory_space<vmem>>, vector<1x18x24x128xbf16>
    %89 = vector.shape_cast %88 : vector<1x18x24x128xbf16> to vector<18x24x128xbf16>
    %90 = vector.shape_cast %87 : vector<18x24x128xbf16> to vector<1x18x24x128xbf16>
    tpu.vector_store %arg10[%c0_68, %c0_69, %c0_70, %c0_71], %90 {strides = array<i32>} : memref<1x18x24x128xbf16, #tpu.memory_space<vmem>>, vector<1x18x24x128xbf16>,
    %c0_72 = arith.constant 0 : index
    %c0_73 = arith.constant 0 : index
    %c0_74 = arith.constant 0 : index
    %c0_75 = arith.constant 0 : index
    %91 = vector.load %arg10[%c0_72, %c0_73, %c0_74, %c0_75] : memref<1x18x24x128xbf16, #tpu.memory_space<vmem>>, vector<1x16x24x128xbf16>
    %92 = vector.shape_cast %91 : vector<1x16x24x128xbf16> to vector<16x24x128xbf16>
    %93 = vector.shape_cast %92 : vector<16x24x128xbf16> to vector<384x128xbf16>
    %c0_76 = arith.constant 0 : index
    %c0_77 = arith.constant 0 : index
    %c0_78 = arith.constant 0 : index
    %c0_79 = arith.constant 0 : index
    %94 = vector.load %arg3[%c0_76, %c0_77, %c0_78, %c0_79] : memref<3x3x128x128xbf16, #tpu.memory_space<vmem>>, vector<1x1x128x128xbf16>
    %95 = vector.shape_cast %94 : vector<1x1x128x128xbf16> to vector<128x128xbf16>
    %cst_80 = arith.constant dense<0.000000e+00> : vector<384x128xf32>
    %96 = tpu.matmul %93, %95, %cst_80 {dimension_numbers = #tpu.dot_dimension_numbers<[1], [0], [0], [1], [0, 0, 1, 1], [], []>} : vector<384x128xbf16>, vector<128x128xbf16>, vector<384x128xf32> -> vector<384x128xf32>
    %c0_81 = arith.constant 0 : index
    %c1_82 = arith.constant 1 : index
    %c0_83 = arith.constant 0 : index
    %c0_84 = arith.constant 0 : index
    %97 = vector.load %arg3[%c0_81, %c1_82, %c0_83, %c0_84] : memref<3x3x128x128xbf16, #tpu.memory_space<vmem>>, vector<1x1x128x128xbf16>
    %98 = vector.shape_cast %97 : vector<1x1x128x128xbf16> to vector<128x128xbf16>
    %cst_85 = arith.constant dense<0.000000e+00> : vector<384x128xf32>
    %99 = tpu.matmul %93, %98, %cst_85 {dimension_numbers = #tpu.dot_dimension_numbers<[1], [0], [0], [1], [0, 0, 1, 1], [], []>} : vector<384x128xbf16>, vector<128x128xbf16>, vector<384x128xf32> -> vector<384x128xf32>
    %c0_86 = arith.constant 0 : index
    %c2_87 = arith.constant 2 : index
    %c0_88 = arith.constant 0 : index
    %c0_89 = arith.constant 0 : index
    %100 = vector.load %arg3[%c0_86, %c2_87, %c0_88, %c0_89] : memref<3x3x128x128xbf16, #tpu.memory_space<vmem>>, vector<1x1x128x128xbf16>
    %101 = vector.shape_cast %100 : vector<1x1x128x128xbf16> to vector<128x128xbf16>
    %cst_90 = arith.constant dense<0.000000e+00> : vector<384x128xf32>
    %102 = tpu.matmul %93, %101, %cst_90 {dimension_numbers = #tpu.dot_dimension_numbers<[1], [0], [0], [1], [0, 0, 1, 1], [], []>} : vector<384x128xbf16>, vector<128x128xbf16>, vector<384x128xf32> -> vector<384x128xf32>
    %c0_91 = arith.constant 0 : index
    %c1_92 = arith.constant 1 : index
    %c0_93 = arith.constant 0 : index
    %c0_94 = arith.constant 0 : index
    %103 = vector.load %arg10[%c0_91, %c1_92, %c0_93, %c0_94] : memref<1x18x24x128xbf16, #tpu.memory_space<vmem>>, vector<1x16x24x128xbf16>
    %104 = vector.shape_cast %103 : vector<1x16x24x128xbf16> to vector<16x24x128xbf16>
    %105 = vector.shape_cast %104 : vector<16x24x128xbf16> to vector<384x128xbf16>
    %c1_95 = arith.constant 1 : index
    %c0_96 = arith.constant 0 : index
    %c0_97 = arith.constant 0 : index
    %c0_98 = arith.constant 0 : index
    %106 = vector.load %arg3[%c1_95, %c0_96, %c0_97, %c0_98] : memref<3x3x128x128xbf16, #tpu.memory_space<vmem>>, vector<1x1x128x128xbf16>
    %107 = vector.shape_cast %106 : vector<1x1x128x128xbf16> to vector<128x128xbf16>
    %cst_99 = arith.constant dense<0.000000e+00> : vector<384x128xf32>
    %108 = tpu.matmul %105, %107, %cst_99 {dimension_numbers = #tpu.dot_dimension_numbers<[1], [0], [0], [1], [0, 0, 1, 1], [], []>} : vector<384x128xbf16>, vector<128x128xbf16>, vector<384x128xf32> -> vector<384x128xf32>
    %109 = arith.addf %96, %108 : vector<384x128xf32>
    %c1_100 = arith.constant 1 : index
    %c1_101 = arith.constant 1 : index
    %c0_102 = arith.constant 0 : index
    %c0_103 = arith.constant 0 : index
    %110 = vector.load %arg3[%c1_100, %c1_101, %c0_102, %c0_103] : memref<3x3x128x128xbf16, #tpu.memory_space<vmem>>, vector<1x1x128x128xbf16>
    %111 = vector.shape_cast %110 : vector<1x1x128x128xbf16> to vector<128x128xbf16>
    %cst_104 = arith.constant dense<0.000000e+00> : vector<384x128xf32>
    %112 = tpu.matmul %105, %111, %cst_104 {dimension_numbers = #tpu.dot_dimension_numbers<[1], [0], [0], [1], [0, 0, 1, 1], [], []>} : vector<384x128xbf16>, vector<128x128xbf16>, vector<384x128xf32> -> vector<384x128xf32>
    %113 = arith.addf %99, %112 : vector<384x128xf32>
    %c1_105 = arith.constant 1 : index
    %c2_106 = arith.constant 2 : index
    %c0_107 = arith.constant 0 : index
    %c0_108 = arith.constant 0 : index
    %114 = vector.load %arg3[%c1_105, %c2_106, %c0_107, %c0_108] : memref<3x3x128x128xbf16, #tpu.memory_space<vmem>>, vector<1x1x128x128xbf16>
    %115 = vector.shape_cast %114 : vector<1x1x128x128xbf16> to vector<128x128xbf16>
    %cst_109 = arith.constant dense<0.000000e+00> : vector<384x128xf32>
    %116 = tpu.matmul %105, %115, %cst_109 {dimension_numbers = #tpu.dot_dimension_numbers<[1], [0], [0], [1], [0, 0, 1, 1], [], []>} : vector<384x128xbf16>, vector<128x128xbf16>, vector<384x128xf32> -> vector<384x128xf32>
    %117 = arith.addf %102, %116 : vector<384x128xf32>
    %c0_110 = arith.constant 0 : index
    %c2_111 = arith.constant 2 : index
    %c0_112 = arith.constant 0 : index
    %c0_113 = arith.constant 0 : index
    %118 = vector.load %arg10[%c0_110, %c2_111, %c0_112, %c0_113] : memref<1x18x24x128xbf16, #tpu.memory_space<vmem>>, vector<1x16x24x128xbf16>
    %119 = vector.shape_cast %118 : vector<1x16x24x128xbf16> to vector<16x24x128xbf16>
    %120 = vector.shape_cast %119 : vector<16x24x128xbf16> to vector<384x128xbf16>
    %c2_114 = arith.constant 2 : index
    %c0_115 = arith.constant 0 : index
    %c0_116 = arith.constant 0 : index
    %c0_117 = arith.constant 0 : index
    %121 = vector.load %arg3[%c2_114, %c0_115, %c0_116, %c0_117] : memref<3x3x128x128xbf16, #tpu.memory_space<vmem>>, vector<1x1x128x128xbf16>
    %122 = vector.shape_cast %121 : vector<1x1x128x128xbf16> to vector<128x128xbf16>
    %cst_118 = arith.constant dense<0.000000e+00> : vector<384x128xf32>
    %123 = tpu.matmul %120, %122, %cst_118 {dimension_numbers = #tpu.dot_dimension_numbers<[1], [0], [0], [1], [0, 0, 1, 1], [], []>} : vector<384x128xbf16>, vector<128x128xbf16>, vector<384x128xf32> -> vector<384x128xf32>
    %124 = arith.addf %109, %123 : vector<384x128xf32>
    %c2_119 = arith.constant 2 : index
    %c1_120 = arith.constant 1 : index
    %c0_121 = arith.constant 0 : index
    %c0_122 = arith.constant 0 : index
    %125 = vector.load %arg3[%c2_119, %c1_120, %c0_121, %c0_122] : memref<3x3x128x128xbf16, #tpu.memory_space<vmem>>, vector<1x1x128x128xbf16>
    %126 = vector.shape_cast %125 : vector<1x1x128x128xbf16> to vector<128x128xbf16>
    %cst_123 = arith.constant dense<0.000000e+00> : vector<384x128xf32>
    %127 = tpu.matmul %120, %126, %cst_123 {dimension_numbers = #tpu.dot_dimension_numbers<[1], [0], [0], [1], [0, 0, 1, 1], [], []>} : vector<384x128xbf16>, vector<128x128xbf16>, vector<384x128xf32> -> vector<384x128xf32>
    %128 = arith.addf %113, %127 : vector<384x128xf32>
    %c2_124 = arith.constant 2 : index
    %c2_125 = arith.constant 2 : index
    %c0_126 = arith.constant 0 : index
    %c0_127 = arith.constant 0 : index
    %129 = vector.load %arg3[%c2_124, %c2_125, %c0_126, %c0_127] : memref<3x3x128x128xbf16, #tpu.memory_space<vmem>>, vector<1x1x128x128xbf16>
    %130 = vector.shape_cast %129 : vector<1x1x128x128xbf16> to vector<128x128xbf16>
    %cst_128 = arith.constant dense<0.000000e+00> : vector<384x128xf32>
    %131 = tpu.matmul %120, %130, %cst_128 {dimension_numbers = #tpu.dot_dimension_numbers<[1], [0], [0], [1], [0, 0, 1, 1], [], []>} : vector<384x128xbf16>, vector<128x128xbf16>, vector<384x128xf32> -> vector<384x128xf32>
    %132 = arith.addf %117, %131 : vector<384x128xf32>
    %133 = vector.shape_cast %124 : vector<384x128xf32> to vector<16x24x128xf32>
    %134 = vector.extract_strided_slice %133 {offsets = [0, 0, 0], sizes = [16, 16, 128], strides = [1, 1, 1]} : vector<16x24x128xf32> to vector<16x16x128xf32>
    %135 = vector.shape_cast %128 : vector<384x128xf32> to vector<16x24x128xf32>
    %136 = vector.extract_strided_slice %135 {offsets = [0, 1, 0], sizes = [16, 16, 128], strides = [1, 1, 1]} : vector<16x24x128xf32> to vector<16x16x128xf32>
    %137 = vector.shape_cast %132 : vector<384x128xf32> to vector<16x24x128xf32>
    %138 = vector.extract_strided_slice %137 {offsets = [0, 2, 0], sizes = [16, 16, 128], strides = [1, 1, 1]} : vector<16x24x128xf32> to vector<16x16x128xf32>
    %139 = arith.addf %134, %136 : vector<16x16x128xf32>
    %140 = arith.addf %139, %138 : vector<16x16x128xf32>
    %c0_129 = arith.constant 0 : index
    %c0_130 = arith.constant 0 : index
    %141 = vector.load %arg6[%c0_129, %c0_130] : memref<1x128xf32, #tpu.memory_space<vmem>>, vector<1x128xf32>
    %142 = vector.shape_cast %141 : vector<1x128xf32> to vector<1x1x128xf32>
    %143 = vector.broadcast %142 : vector<1x1x128xf32> to vector<16x16x128xf32>
    %144 = arith.mulf %140, %143 : vector<16x16x128xf32>
    %c0_131 = arith.constant 0 : index
    %c0_132 = arith.constant 0 : index
    %145 = vector.load %arg7[%c0_131, %c0_132] : memref<1x128xf32, #tpu.memory_space<vmem>>, vector<1x128xf32>
    %146 = vector.shape_cast %145 : vector<1x128xf32> to vector<1x1x128xf32>
    %147 = vector.broadcast %146 : vector<1x1x128xf32> to vector<16x16x128xf32>
    %148 = arith.addf %144, %147 : vector<16x16x128xf32>
    %149 = arith.addf %148, %4 : vector<16x16x128xf32>
    %cst_133 = arith.constant 0.000000e+00 : f32
    %150 = vector.broadcast %cst_133 : f32 to vector<16x16x128xf32>
    %151 = arith.maximumf %149, %150 : vector<16x16x128xf32>
    %c0_134 = arith.constant 0 : index
    %c0_135 = arith.constant 0 : index
    %c0_136 = arith.constant 0 : index
    %c0_137 = arith.constant 0 : index
    %152 = vector.load %arg8[%c0_134, %c0_135, %c0_136, %c0_137] : memref<1x16x16x128xf32, #tpu.memory_space<vmem>>, vector<1x16x16x128xf32>
    %153 = vector.shape_cast %152 : vector<1x16x16x128xf32> to vector<16x16x128xf32>
    %154 = vector.shape_cast %151 : vector<16x16x128xf32> to vector<1x16x16x128xf32>
    tpu.vector_store %arg8[%c0_134, %c0_135, %c0_136, %c0_137], %154 {strides = array<i32>} : memref<1x16x16x128xf32, #tpu.memory_space<vmem>>, vector<1x16x16x128xf32>,
    return
  }
  func.func @transform_0(%arg0: i32) -> (i32, i32, i32, i32) {
    %c0_i32 = arith.constant 0 : i32
    %c0_i32_0 = arith.constant 0 : i32
    %c0_i32_1 = arith.constant 0 : i32
    %c0_i32_2 = arith.constant 0 : i32
    return %arg0, %c0_i32, %c0_i32_0, %c0_i32_1 : i32, i32, i32, i32
  }
  func.func @transform_1(%arg0: i32) -> (i32, i32, i32, i32) {
    %c0_i32 = arith.constant 0 : i32
    %c0_i32_0 = arith.constant 0 : i32
    %c0_i32_1 = arith.constant 0 : i32
    %c0_i32_2 = arith.constant 0 : i32
    %c0_i32_3 = arith.constant 0 : i32
    return %c0_i32, %c0_i32_0, %c0_i32_1, %c0_i32_2 : i32, i32, i32, i32
  }
  func.func @transform_2(%arg0: i32) -> (i32, i32, i32, i32) {
    %c0_i32 = arith.constant 0 : i32
    %c0_i32_0 = arith.constant 0 : i32
    %c0_i32_1 = arith.constant 0 : i32
    %c0_i32_2 = arith.constant 0 : i32
    %c0_i32_3 = arith.constant 0 : i32
    return %c0_i32, %c0_i32_0, %c0_i32_1, %c0_i32_2 : i32, i32, i32, i32
  }
  func.func @transform_3(%arg0: i32) -> (i32, i32) {
    %c0_i32 = arith.constant 0 : i32
    %c0_i32_0 = arith.constant 0 : i32
    %c0_i32_1 = arith.constant 0 : i32
    return %c0_i32, %c0_i32_0 : i32, i32
  }
  func.func @transform_4(%arg0: i32) -> (i32, i32) {
    %c0_i32 = arith.constant 0 : i32
    %c0_i32_0 = arith.constant 0 : i32
    %c0_i32_1 = arith.constant 0 : i32
    return %c0_i32, %c0_i32_0 : i32, i32
  }
  func.func @transform_5(%arg0: i32) -> (i32, i32) {
    %c0_i32 = arith.constant 0 : i32
    %c0_i32_0 = arith.constant 0 : i32
    %c0_i32_1 = arith.constant 0 : i32
    return %c0_i32, %c0_i32_0 : i32, i32
  }
  func.func @transform_6(%arg0: i32) -> (i32, i32) {
    %c0_i32 = arith.constant 0 : i32
    %c0_i32_0 = arith.constant 0 : i32
    %c0_i32_1 = arith.constant 0 : i32
    return %c0_i32, %c0_i32_0 : i32, i32
  }
  func.func @transform_7(%arg0: i32) -> (i32, i32, i32, i32) {
    %c0_i32 = arith.constant 0 : i32
    %c0_i32_0 = arith.constant 0 : i32
    %c0_i32_1 = arith.constant 0 : i32
    %c0_i32_2 = arith.constant 0 : i32
    return %arg0, %c0_i32, %c0_i32_0, %c0_i32_1 : i32, i32, i32, i32
  }
}

</mosaic_0001>

<bundles_post_ra>
// kernel: tpu_custom_call.1
= control target key start
LH: loop header
LB: loop body
LE: loop exit
PB: predicated region body
PF: predicated region fallthrough
CT: control target
= control target key end

     0   :  { %12 = vsyncpa [#allocation5], 0  ;;  %s14819_s0 = inlined_call_operand.vmem [shape: f32[2,16,16,4], index: 0, kind: input, shape index: {}]   ;;  %s14820_s1 = inlined_call_operand.vmem [shape: bf16[3,3,128,128], index: 1, kind: input, shape index: {}]   ;;  %s14821_s2 = inlined_call_operand.hbm [shape: bf16[3,3,128,128], index: 2, kind: input, shape index: {}]   ;;  %s14822_s3 = inlined_call_operand.vmem [shape: f32[1,128], index: 3, kind: input, shape index: {}]   ;;  %s14823_s4 = inlined_call_operand.vmem [shape: f32[1,128], index: 4, kind: input, shape index: {}]   ;;  %s14824_s5 = inlined_call_operand.vmem [shape: f32[1,128], index: 5, kind: input, shape index: {}]   ;;  %s14825_s6 = inlined_call_operand.vmem [shape: f32[1,128], index: 6, kind: input, shape index: {}]   ;;  %s14826_s7 = inlined_call_operand.hbm [shape: f32[2,16,16,128], index: 7, kind: output, shape index: {}]  }
   0x1   :  { %13 = vsyncpa [#allocation6], 0 }
   0x2   :  { %15 = vsyncpa [#allocation6 + $0x1], 0  ;;  %s12135_s24 = smov 0   ;;  %s12137_s25 = smov 0  }
   0x3   :  { %s12139_s26 = smov 0   ;;  %s12141_s27 = smov 0  }
   0x4 LB: > { %s12156_s28 = sadd.s32 4294967295, %s12086_s27   ;;  %s8899_s29 = sadd.s32 4294967294, %s12086_s27   ;;  %s12086_s27 = sphi %s12141_s27, %s15338_s27   ;;  %s12082_s26 = sphi %s12139_s26, %s15337_s26   ;;  %s12078_s25 = sphi %s12137_s25, %s15336_s25   ;;  %s12074_s24 = sphi %s12135_s24, %s15335_s24  }
   0x5   : > { %s12160_s30 = sadd.s32 1, %s12086_s27   ;;  %s180_s8 = sadd.s32 1, %s12082_s26 }
   0x6   : > { %s177_s9 = ssub.s32 %s12086_s27, %s12160_s30  ;;  %p190_p0 = scmp.ne.s32.totalorder %s12082_s26, %s12078_s25 }
   0x7   : > { %p178_p1 = scmp.eq.s32.totalorder %s177_s9, 0  ;;  %p191_p2 = scmp.eq.s32.totalorder %s12156_s28, 1 }
   0x8   : > { %p196_p3 = scmp.ne.s32.totalorder %s12078_s25, %s12074_s24  ;;  %p197_p4 = scmp.eq.s32.totalorder %s8899_s29, 1 }
   0x9   : > { %s12171_s10 = scalar_select %p178_p1, %s12082_s26, %s180_s8  }
   0xa   : > { %p12173_p5 = por %p191_p2, %p190_p0  ;;  %p12177_p6 = por %p197_p4, %p196_p3 }
   0xb   : > { %p8900_p7 = scmp.ge.s32.totalorder %s12086_s27, 1  ;;  %p204_p8 = scmp.lt.s32.totalorder %s12086_s27, 3 }
   0xc   : > { %s14862_s12 = scalar_select %p12177_p6, 1, 0 }
   0xd   : > { %p11597_p9 = scmp.eq.s32.totalorder %s12156_s28, 0  ;;  %p12184_p10 = pnand %p8900_p7, %p204_p8 }
   0xe   : > { %s12088_s14 = smov [#allocation4]  }
   0xf   : > { %s219_s15 = sshll.u32 %s12088_s14, 4  ;;  %p11589_p11 = pneg %p12184_p10  ;;  %s220_s15 = int_to_ptr.vmem [resolvable:$true] %s219_s15 }
  0x10   : > { %s12007_s16 = scalar_lea.vmem %s220_s15, 9216  ;;  %p12015_p3 = scmp.lt.s32.totalorder %s220_s15, %s220_s15 }
  0x11   : > { %p11590_p12 = pnand %p11597_p9, %p11589_p11  ;;  %p12008_p0 = scmp.ne.s32.totalorder %s220_s15, %s12007_s16 }
  0x12   : > { %p12016_p4 = scmp.lt.s32.totalorder %s12007_s16, %s12007_s16 }
  0x13   : > { %p11998_p13 = pneg %p11590_p12 }
  0x14   : > { %p12017_p6 = por %p12016_p4, %p12015_p3 }
  0x15   : > { %p12010_p1 = pnand %p12008_p0, %p11998_p13 }
  0x17   : > { %p12011_p2 = pneg %p12010_p1 }
  0x19   : > { %p12018_p7 = pnand %p12017_p6, %p12011_p2 }
  0x1b   : > { %12021 = shalt.err (!%p12018_p7)
}
  0x1c   : > { %s12089_s17 = smov 64   ;;  %s12090_s18 = smov 4  }
  0x1d   : > { %11592 = dma.hbm_to_vmem [thread:$0]  (!%p11590_p12), %s14821_s2, 9216, %s220_s15, [#allocation5], %s12089_s17, %s12089_s17, %s12090_s18  }
  0x1e   : > { %255 = sbr.rel (%p12184_p10) target bundleno = 1388 (0x56c), region = 48 }
  0x23   : > { %12065 = dma.done.wait (%p11597_p9), [#allocation5], 9216  }
  0x24   : > { %12067 = vsyncadd (%p11597_p9), [#allocation5], 4294958080  ;;  %vm391_vm0 = vcmask 1040384   ;;  %v12091_v0 = vmov 0.0   ;;  %v11638_v4 = vld [vmem:[%s14820_s1 + $0xf8] sm:$0xff]   ;;  %v11640_v6 = vld [vmem:[%s14820_s1 + $0xf0] sm:$0xff]  }
  0x25   : > { %v12201_v1 = vrot.slane %v12091_v0, 7  ;;  %v11639_v5 = vld [vmem:[%s14820_s1 + $0x38] sm:$0xff]   ;;  %10431 = vmatprep.subr.bf16.mxu0 %v11638_v4  ;;  %p287_p6 = scmp.lt.s32.totalorder %s12156_s28, 1  ;;  %v11641_v7 = vld [vmem:[%s14820_s1 + $0x30] sm:$0xff]   ;;  %v11642_v8 = vld [vmem:[%s14820_s1 + $0xe8] sm:$0xff]   ;;  %vm325_vm1 = vcmask 31744  }
  0x26   : > { %10495 = vmatprep.subr.bf16.mxu1 %v11639_v5  ;;  %10432 = vmatpush3.bf16.msra.mxu0 %v11638_v4  ;;  %v11643_v9 = vld [vmem:[%s14820_s1 + $0x28] sm:$0xff]   ;;  %v11644_v10 = vld [vmem:[%s14820_s1 + $0xe0] sm:$0xff]   ;;  %v11646_v12 = vld [vmem:[%s14820_s1 + $0xd8] sm:$0xff]   ;;  %vm4116_vm2 = vcmask 1046528   ;;  %vm4309_vm3 = vcmask 1045504   ;;  %s284_s14 = sand.u32 1, %s12078_s25  }
  0x27   : > { %v12205_v2 = vsel %vm391_vm0, 0.0, %v12201_v1  ;;  %10496 = vmatpush3.bf16.msra.mxu1 %v11639_v5  ;;  %10433 = vmatprep.subr.bf16.mxu0 %v11640_v6  ;;  %s288_s19 = scalar_select %p287_p6, %s12156_s28, 1  ;;  %v11645_v11 = vld [vmem:[%s14820_s1 + $0x20] sm:$0xff]   ;;  %v11647_v13 = vld [vmem:[%s14820_s1 + $0x18] sm:$0xff]   ;;  %v11648_v14 = vld [vmem:[%s14820_s1 + $0xd0] sm:$0xff]   ;;  %v12256_v18 = vsel %vm391_vm0, %v12201_v1, 0.0 }
  0x28   : > { %14864 = vst [vmem:[#allocation10_spill] sm:$0xff] %v12205_v2  ;;  %v9536_v3 = vpack.c.bf16 %v12201_v1, %v12205_v2  ;;  %10497 = vmatprep.subr.bf16.mxu1 %v11641_v7  ;;  %v11649_v15 = vld [vmem:[%s14820_s1 + $0x10] sm:$0xff]   ;;  %14865 = vst [vmem:[#allocation11_spill] sm:$0xff] %v12256_v18  ;;  %v11650_v27 = vld [vmem:[%s14820_s1 + $0xc8] sm:$0xff]   ;;  %s8905_s18 = sshll.u32 %s284_s14, 8  ;;  %s12092_s8 = smov [#allocation7]  }
  0x29   : > { %s9432_s29 = sshll.u32 %s288_s19, 8  ;;  %v11651_v36 = vld [vmem:[%s14820_s1 + $0x8] sm:$0xff]   ;;  %v11652_v42 = vld [vmem:[%s14820_s1 + $0xc0] sm:$0xff]   ;;  %s14556_s20 = scalar_lea.vmem [#allocation7], %s8905_s18 }
  0x2a   : > { %9537 = vst [vmem:[#allocation2] sm:$0xff] %v9536_v3   ;;  %9672 = vst [vmem:[#allocation3] sm:$0xff] %v9536_v3   ;;  %10434 = vmatpush3.bf16.msra.mxu0 %v11640_v6  ;;  %s12244_s17 = scalar_lea.vmem %s14819_s0, %s9432_s29  ;;  %v11653_v49 = vld [vmem:[%s14820_s1] sm:$0xff]   ;;  %s9532_s19 = sshll.u32 %s12156_s28, 12 }
  0x2b   : > { %10498 = vmatpush3.bf16.msra.mxu1 %v11641_v7  ;;  %10435 = vmatprep.subr.bf16.mxu0 %v11642_v8  ;;  %v293_v16 = vld [vmem:[%s12244_s17] sm:$0xff]  ;;  %v294_v17 = vld [vmem:[%s12244_s17 + $0x8] sm:$0xff]  ;;  %v295_v22 = vld [vmem:[%s12244_s17 + $0x10] sm:$0xff]  ;;  %s14771_s23 = scalar_lea.hbm %s14826_s7, %s9532_s19  ;;  %s14779_s28 = scalar_lea.sflag [#allocation6], %s284_s14 }
  0x2c   : > { %10499 = vmatprep.subr.bf16.mxu1 %v11643_v9  ;;  %v12259_v19 = vsel %vm325_vm1, %v293_v16, 0.0  ;;  %v12262_v20 = vsel %vm325_vm1, %v294_v17, 0.0  ;;  %v296_v25 = vld [vmem:[%s12244_s17 + $0x18] sm:$0xff]  ;;  %v12269_v26 = vsel %vm325_vm1, %v295_v22, 0.0  ;;  %v297_v30 = vld [vmem:[%s12244_s17 + $0x20] sm:$0xff]  ;;  %v298_v35 = vld [vmem:[%s12244_s17 + $0x28] sm:$0xff] }
  0x2d   : > { %14866 = vst [vmem:[#allocation12_spill] sm:$0xff] %v12259_v19  ;;  %14867 = vst [vmem:[#allocation13_spill] sm:$0xff] %v12262_v20  ;;  %v394_v23 = vrot.slane %v12259_v19, 7  ;;  %v395_v24 = vrot.slane %v12262_v20, 7  ;;  %v12275_v28 = vsel %vm325_vm1, %v296_v25, 0.0  ;;  %v397_v29 = vrot.slane %v12269_v26, 7 }
  0x2e   : > { %10436 = vmatpush3.bf16.msra.mxu0 %v11642_v8  ;;  %14868 = vst [vmem:[#allocation14_spill] sm:$0xff] %v12269_v26  ;;  %14869 = vst [vmem:[#allocation15_spill] sm:$0xff] %v12275_v28  ;;  %v398_v34 = vrot.slane %v12275_v28, 7  ;;  %v12290_v40 = vsel %vm325_vm1, %v297_v30, 0.0  ;;  %v299_v41 = vld [vmem:[%s12244_s17 + $0x30] sm:$0xff]  ;;  %v12300_v46 = vsel %vm325_vm1, %v298_v35, 0.0 }
  0x2f   : > { %10500 = vmatpush3.bf16.msra.mxu1 %v11643_v9  ;;  %10437 = vmatprep.subr.bf16.mxu0 %v11644_v10  ;;  %v396_v31 = vsel %vm391_vm0, %v394_v23, %v395_v24  ;;  %v493_v32 = vsel %vm391_vm0, 0.0, %v394_v23  ;;  %v510_v33 = vsel %vm391_vm0, %v395_v24, 0.0  ;;  %v494_v39 = vsel %vm391_vm0, 0.0, %v397_v29  ;;  %14870 = vst [vmem:[#allocation16_spill] sm:$0xff] %v12290_v40  ;;  %14871 = vst [vmem:[#allocation17_spill] sm:$0xff] %v12300_v46  ;;  %v300_v47 = vld [vmem:[%s12244_s17 + $0x38] sm:$0xff] }
  0x30   : > { %10501 = vmatprep.subr.bf16.mxu1 %v11645_v11  ;;  %v9541_v37 = vpack.c.bf16 %v493_v32, %v12256_v18  ;;  %v9546_v38 = vpack.c.bf16 %v510_v33, %v396_v31  ;;  %v399_v43 = vsel %vm391_vm0, %v397_v29, %v398_v34  ;;  %v400_v44 = vrot.slane %v12290_v40, 7  ;;  %v301_v48 = vld [vmem:[%s12244_s17 + $0x40] sm:$0xff]  ;;  %v302_v54 = vld [vmem:[%s12244_s17 + $0x48] sm:$0xff]  ;;  %v303_v55 = vld [vmem:[%s12244_s17 + $0x50] sm:$0xff]  ;;  %s12026_s9 = sshll.u32 %s12092_s8, 4  ;;  %s12027_s9 = int_to_ptr.vmem [resolvable:$false] %s12026_s9 }
  0x31   : > { %v11655_v21 = vld [vmem:[#allocation2] sm:$0xff]   ;;  %v511_v45 = vsel %vm391_vm0, %v398_v34, 0.0  ;;  %v9551_v50 = vpack.c.bf16 %v399_v43, %v494_v39  ;;  %v401_v51 = vrot.slane %v12300_v46, 7  ;;  %v12309_v52 = vsel %vm325_vm1, %v299_v41, 0.0  ;;  %v304_v56 = vld [vmem:[%s12244_s17 + $0x58] sm:$0xff]  ;;  %v306_v4 = vld [vmem:[%s12244_s17 + $0x68] sm:$0xff] }
  0x32   : > { %10438 = vmatpush3.bf16.msra.mxu0 %v11644_v10  ;;  %10511 = vmatprep.mubr.bf16.mxu1 %v11655_v21  ;;  %9803 = vst [vmem:[#allocation2 + $0x8] sm:$0xff] %v9541_v37   ;;  %9804 = vst [vmem:[#allocation2 + $0x10] sm:$0xff] %v9546_v38   ;;  %v12312_v53 = vsel %vm325_vm1, %v300_v47, 0.0  ;;  %v495_v57 = vsel %vm391_vm0, 0.0, %v400_v44  ;;  %v403_v58 = vrot.slane %v12309_v52, 7  ;;  %v12321_v60 = vsel %vm325_vm1, %v301_v48, 0.0 }
  0x33   : > { %10502 = vmatpush3.bf16.msra.mxu1 %v11645_v11  ;;  %10439 = vmatprep.subr.bf16.mxu0 %v11646_v12  ;;  %14872 = vst [vmem:[#allocation18_spill] sm:$0xff] %v12309_v52  ;;  %14873 = vst [vmem:[#allocation19_spill] sm:$0xff] %v12312_v53  ;;  %v404_v59 = vrot.slane %v12312_v53, 7  ;;  %v9556_v61 = vpack.c.bf16 %v495_v57, %v511_v45  ;;  %v402_v62 = vsel %vm391_vm0, %v400_v44, %v401_v51  ;;  %v305_v3 = vld [vmem:[%s12244_s17 + $0x60] sm:$0xff]  ;;  %v11658_v17 = vld [vmem:[%s14820_s1 + $0x138] sm:$0xff]   ;;  %s12028_s13 = scalar_lea.vmem %s12027_s9, 8192 }
  0x34   : > { %10503 = vmatprep.subr.bf16.mxu1 %v11647_v13  ;;  %14874 = vst [vmem:[#allocation20_spill] sm:$0xff] %v12321_v60  ;;  %9805 = vst [vmem:[#allocation2 + $0x18] sm:$0xff] %v9551_v50   ;;  %v512_v63 = vsel %vm391_vm0, %v401_v51, 0.0  ;;  %v406_v0 = vrot.slane %v12321_v60, 7  ;;  %v496_v7 = vsel %vm391_vm0, 0.0, %v403_v58  ;;  %v12333_v11 = vsel %vm325_vm1, %v302_v54, 0.0 }
  0x35   : > { %v9561_v5 = vpack.c.bf16 %v512_v63, %v402_v62  ;;  %v405_v6 = vsel %vm391_vm0, %v403_v58, %v404_v59  ;;  %v513_v8 = vsel %vm391_vm0, %v404_v59, 0.0  ;;  %9806 = vst [vmem:[#allocation2 + $0x20] sm:$0xff] %v9556_v61   ;;  %14875 = vst [vmem:[#allocation21_spill] sm:$0xff] %v12333_v11  ;;  %v12348_v22 = vsel %vm325_vm1, %v305_v3, 0.0  ;;  %v307_v29 = vld [vmem:[%s12244_s17 + $0x70] sm:$0xff]  ;;  %v308_v33 = vld [vmem:[%s12244_s17 + $0x78] sm:$0xff] }
  0x36   : > { %10440 = vmatpush3.bf16.msra.mxu0 %v11646_v12  ;;  %v9566_v9 = vpack.c.bf16 %v405_v6, %v496_v7  ;;  %v497_v10 = vsel %vm391_vm0, 0.0, %v406_v0  ;;  %v12336_v12 = vsel %vm325_vm1, %v303_v55, 0.0  ;;  %14878 = vst [vmem:[#allocation24_spill] sm:$0xff] %v12348_v22  ;;  %v12351_v23 = vsel %vm325_vm1, %v306_v4, 0.0  ;;  %v11663_v30 = vld [vmem:[%s14820_s1 + $0x130] sm:$0xff]   ;;  %v309_v50 = vld [vmem:[%s12244_s17 + $0x80] sm:$0xff] }
  0x37   : > { %10504 = vmatpush3.bf16.msra.mxu1 %v11647_v13  ;;  %10441 = vmatprep.subr.bf16.mxu0 %v11648_v14  ;;  %14876 = vst [vmem:[#allocation22_spill] sm:$0xff] %v12336_v12  ;;  %9807 = vst [vmem:[#allocation2 + $0x28] sm:$0xff] %v9561_v5   ;;  %v9571_v13 = vpack.c.bf16 %v497_v10, %v513_v8  ;;  %v409_v16 = vrot.slane %v12336_v12, 7  ;;  %v412_v37 = vrot.slane %v12348_v22, 7  ;;  %v413_v47 = vrot.slane %v12351_v23, 7  ;;  %v310_v7 = vld [vmem:[%s12244_s17 + $0x88] sm:$0xff] }
  0x38   : > { %10505 = vmatprep.subr.bf16.mxu1 %v11649_v15  ;;  %9808 = vst [vmem:[#allocation2 + $0x30] sm:$0xff] %v9566_v9   ;;  %14879 = vst [vmem:[#allocation25_spill] sm:$0xff] %v12351_v23  ;;  %v12383_v48 = vsel %vm325_vm1, %v307_v29, 0.0  ;;  %v12409_v4 = vsel %vm325_vm1, %v309_v50, 0.0  ;;  %v311_v9 = vld [vmem:[%s12244_s17 + $0x90] sm:$0xff]  ;;  %v11686_v10 = vld [vmem:[%s14820_s1 + $0x118] sm:$0xff]  }
  0x39   : > { %v12353_v24 = vld [vmem:[#allocation2 + $0xc] sm:$0xff]   ;;  %9809 = vst [vmem:[#allocation2 + $0x38] sm:$0xff] %v9571_v13   ;;  %v499_v43 = vsel %vm391_vm0, 0.0, %v412_v37  ;;  %14880 = vst [vmem:[#allocation26_spill] sm:$0xff] %v12383_v48  ;;  %v414_v54 = vsel %vm391_vm0, %v412_v37, %v413_v47  ;;  %v516_v55 = vsel %vm391_vm0, %v413_v47, 0.0  ;;  %v415_v58 = vrot.slane %v12383_v48, 7 }
  0x3a   : > { %10442 = vmatpush3.bf16.msra.mxu0 %v11648_v14  ;;  %v407_v14 = vrot.slane %v12333_v11, 7  ;;  %10447 = vmatprep.mubr.bf16.mxu0 %v12353_v24  ;;  %v12366_v35 = vld [vmem:[#allocation2 + $0x8] sm:$0xff]   ;;  %v12373_v41 = vld [vmem:[#allocation2 + $0x10] sm:$0xff]   ;;  %v9591_v57 = vpack.c.bf16 %v516_v55, %v414_v54  ;;  %14882 = vst [vmem:[#allocation28_spill] sm:$0xff] %v12409_v4  ;;  %v418_v6 = vrot.slane %v12409_v4, 7  ;;  %v12674_v22 = vld [vmem:[#allocation2] sm:$0xff]  }
  0x3b   : > { %10506 = vmatpush3.bf16.msra.mxu1 %v11649_v15  ;;  %10443 = vmatprep.subr.bf16.mxu0 %v11650_v27  ;;  %v12340_v15 = vsel %vm325_vm1, %v304_v56, 0.0  ;;  %v12364_v34 = vld [vmem:[#allocation2 + $0x14] sm:$0xff]   ;;  %v500_v63 = vsel %vm391_vm0, 0.0, %v415_v58  ;;  %v11720_v60 = vld [vmem:[%s14820_s1 + $0x168] sm:$0xff]  }
  0x3c   : > { %10507 = vmatprep.subr.bf16.mxu1 %v11651_v36  ;;  %14877 = vst [vmem:[#allocation23_spill] sm:$0xff] %v12340_v15  ;;  %v410_v21 = vrot.slane %v12340_v15, 7  ;;  %v408_v25 = vsel %vm391_vm0, %v406_v0, %v407_v14  ;;  %v12371_v39 = vld [vmem:[#allocation2 + $0x1c] sm:$0xff]   ;;  %9813 = vst [vmem:[#allocation2 + $0x58] sm:$0xff] %v9591_v57   ;;  %v11719_v12 = vld [vmem:[%s14820_s1 + $0x170] sm:$0xff]  }
  0x3d   : > { %v12395_v56 = vld [vmem:[#allocation2 + $0x18] sm:$0xff]   ;;  %v12401_v62 = vld [vmem:[#allocation2 + $0x20] sm:$0xff]   ;;  %v11725_v11 = vld [vmem:[%s14820_s1 + $0xb0] sm:$0xff]  }
  0x3e   : > { %10444 = vmatpush3.bf16.msra.mxu0 %v11650_v27  ;;  %v514_v27 = vsel %vm391_vm0, %v407_v14, 0.0  ;;  %v411_v32 = vsel %vm391_vm0, %v409_v16, %v410_v21  ;;  %v515_v44 = vsel %vm391_vm0, %v410_v21, 0.0  ;;  %v12391_v51 = vld [vmem:[#allocation2 + $0x24] sm:$0xff]   ;;  %v501_v14 = vsel %vm391_vm0, 0.0, %v418_v6 }
  0x3f   : > { %10508 = vmatpush3.bf16.msra.mxu1 %v11651_v36  ;;  %10445 = vmatprep.subr.bf16.mxu0 %v11652_v42  ;;  %v9576_v31 = vpack.c.bf16 %v514_v27, %v408_v25  ;;  %v498_v36 = vsel %vm391_vm0, 0.0, %v409_v16  ;;  %v9586_v45 = vpack.c.bf16 %v499_v43, %v515_v44  ;;  %v12398_v59 = vld [vmem:[#allocation2 + $0x2c] sm:$0xff]   ;;  %v11677_v0 = vld [vmem:[%s14820_s1 + $0x120] sm:$0xff]   ;;  %v12428_v21 = vsel %vm325_vm1, %v310_v7, 0.0  ;;  %v312_v25 = vld [vmem:[%s12244_s17 + $0x98] sm:$0xff] }
  0x40   : > { %10509 = vmatprep.subr.bf16.mxu1 %v11653_v49  ;;  %v9581_v38 = vpack.c.bf16 %v411_v32, %v498_v36  ;;  %v12422_v13 = vld [vmem:[#allocation2 + $0x34] sm:$0xff]   ;;  %v12425_v16 = vld [vmem:[#allocation2 + $0x28] sm:$0xff]   ;;  %14883 = vst [vmem:[#allocation29_spill] sm:$0xff] %v12428_v21  ;;  %v419_v29 = vrot.slane %v12428_v21, 7  ;;  %v12443_v37 = vsel %vm325_vm1, %v312_v25, 0.0  ;;  %v313_v57 = vld [vmem:[%s12244_s17 + $0xa0] sm:$0xff] }
  0x41   : > { %9810 = vst [vmem:[#allocation2 + $0x40] sm:$0xff] %v9576_v31   ;;  %9812 = vst [vmem:[#allocation2 + $0x50] sm:$0xff] %v9586_v45   ;;  %v422_v43 = vrot.slane %v12443_v37, 7  ;;  %v12452_v44 = vld [vmem:[#allocation2 + $0x38] sm:$0xff]  }
  0x42   : > { %10446 = vmatpush3.bf16.msra.mxu0 %v11652_v42  ;;  %v11672_v42 = vld [vmem:[%s14820_s1 + $0x128] sm:$0xff]   ;;  %9811 = vst [vmem:[#allocation2 + $0x48] sm:$0xff] %v9581_v38   ;;  %v420_v31 = vsel %vm391_vm0, %v418_v6, %v419_v29  ;;  %v518_v32 = vsel %vm391_vm0, %v419_v29, 0.0  ;;  %14885 = vst [vmem:[#allocation31_spill] sm:$0xff] %v12443_v37  ;;  %v323_v37 = vld [vmem:[%s12244_s17 + $0xf0] sm:$0xff] }
  0x43   : > { %10510 = vmatpush3.bf16.msra.mxu1 %v11653_v49  ;;  %10559 = vmatprep.subr.bf16.mxu0 %v11658_v17  ;;  %v12388_v49 = vsel %vm325_vm1, %v308_v33, 0.0  ;;  %v12439_v33 = vsel %vm325_vm1, %v311_v9, 0.0  ;;  %v9606_v36 = vpack.c.bf16 %v518_v32, %v420_v31  ;;  %v519_v6 = vsel %vm391_vm0, %v422_v43, 0.0  ;;  %v12955_v26 = vld [vmem:[#allocation2 + $0x58] sm:$0xff]  }
  0x44   : > { %14881 = vst [vmem:[#allocation27_spill] sm:$0xff] %v12388_v49  ;;  %v416_v61 = vrot.slane %v12388_v49, 7  ;;  %14884 = vst [vmem:[#allocation30_spill] sm:$0xff] %v12439_v33  ;;  %v421_v38 = vrot.slane %v12439_v33, 7  ;;  %v12602_v33 = vsel %vm325_vm1, %v323_v37, 0.0 }
  0x45   : > { %10448 = vmatmul.mubr.bf16.vlgmr.msra.gmra.mxu0 %v12364_v34  ;;  %9816 = vst [vmem:[#allocation2 + $0x70] sm:$0xff] %v9606_v36   ;;  %14896 = vst [vmem:[#allocation42_spill] sm:$0xff] %v12602_v33 }
  0x46   : > { %10512 = vmatmul.mubr.bf16.vlgmr.msra.gmra.mxu1 %v12366_v35  ;;  %10560 = vmatpush3.bf16.msra.mxu0 %v11658_v17  ;;  %v417_v3 = vsel %vm391_vm0, %v415_v58, %v416_v61  ;;  %v517_v8 = vsel %vm391_vm0, %v416_v61, 0.0  ;;  %v502_v45 = vsel %vm391_vm0, 0.0, %v421_v38  ;;  %v423_v50 = vsel %vm391_vm0, %v421_v38, %v422_v43  ;;  %v314_v58 = vld [vmem:[%s12244_s17 + $0xa8] sm:$0xff]  ;;  %v11696_v43 = vld [vmem:[%s14820_s1 + $0x78] sm:$0xff]  }
  0x47   : > { %10451 = vmatprep.mubr.bf16.mxu0 %v12371_v39  ;;  %10515 = vmatprep.mubr.bf16.mxu1 %v12373_v41  ;;  %v9596_v5 = vpack.c.bf16 %v417_v3, %v500_v63  ;;  %v9601_v17 = vpack.c.bf16 %v501_v14, %v517_v8  ;;  %v9611_v55 = vpack.c.bf16 %v423_v50, %v502_v45  ;;  %v12463_v61 = vsel %vm325_vm1, %v313_v57, 0.0  ;;  %v315_v3 = vld [vmem:[%s12244_s17 + $0xb0] sm:$0xff] }
  0x48   : > { %10561 = vmatprep.subr.bf16.mxu0 %v11663_v30  ;;  %v12431_v27 = vld [vmem:[#allocation2 + $0x3c] sm:$0xff]   ;;  %14886 = vst [vmem:[#allocation32_spill] sm:$0xff] %v12463_v61  ;;  %v12466_v63 = vsel %vm325_vm1, %v314_v58, 0.0  ;;  %v12479_v8 = vld [vmem:[#allocation2 + $0x54] sm:$0xff]   ;;  %v12484_v14 = vsel %vm325_vm1, %v315_v3, 0.0  ;;  %10623 = vmatprep.subr.bf16.mxu1 %v11696_v43 }
  0x49   : > { %9814 = vst [vmem:[#allocation2 + $0x60] sm:$0xff] %v9596_v5   ;;  %9815 = vst [vmem:[#allocation2 + $0x68] sm:$0xff] %v9601_v17   ;;  %v12455_v47 = vld [vmem:[#allocation2 + $0x4c] sm:$0xff]   ;;  %v12458_v54 = vld [vmem:[#allocation2 + $0x40] sm:$0xff]   ;;  %v424_v5 = vrot.slane %v12463_v61, 7  ;;  %v425_v7 = vrot.slane %v12466_v63, 7  ;;  %10624 = vmatpush3.bf16.msra.mxu1 %v11696_v43 }
  0x4a   : > { %10562 = vmatpush3.bf16.msra.mxu0 %v11663_v30  ;;  %v12434_v30 = vld [vmem:[#allocation2 + $0x30] sm:$0xff]   ;;  %9817 = vst [vmem:[#allocation2 + $0x78] sm:$0xff] %v9611_v55   ;;  %14887 = vst [vmem:[#allocation33_spill] sm:$0xff] %v12466_v63  ;;  %v317_v17 = vld [vmem:[%s12244_s17 + $0xc0] sm:$0xff]  ;;  %v427_v55 = vrot.slane %v12484_v14, 7 }
  0x4b   : > { %10563 = vmatprep.subr.bf16.mxu0 %v11672_v42  ;;  %v503_v9 = vsel %vm391_vm0, 0.0, %v424_v5  ;;  %14888 = vst [vmem:[#allocation34_spill] sm:$0xff] %v12484_v14  ;;  %v12487_v25 = vld [vmem:[#allocation2 + $0x48] sm:$0xff]   ;;  %v426_v32 = vsel %vm391_vm0, %v424_v5, %v425_v7  ;;  %v520_v36 = vsel %vm391_vm0, %v425_v7, 0.0  ;;  %v11697_v45 = vld [vmem:[%s14820_s1 + $0x70] sm:$0xff]   ;;  %v12505_v58 = vsel %vm325_vm1, %v317_v17, 0.0 }
  0x4c   : > { %v9616_v31 = vpack.c.bf16 %v503_v9, %v519_v6  ;;  %v9621_v50 = vpack.c.bf16 %v520_v36, %v426_v32  ;;  %14890 = vst [vmem:[#allocation36_spill] sm:$0xff] %v12505_v58  ;;  %v430_v3 = vrot.slane %v12505_v58, 7  ;;  %v319_v6 = vld [vmem:[%s12244_s17 + $0xd0] sm:$0xff]  ;;  %v320_v7 = vld [vmem:[%s12244_s17 + $0xd8] sm:$0xff]  ;;  %v504_v32 = vsel %vm391_vm0, 0.0, %v427_v55  ;;  %10625 = vmatprep.subr.bf16.mxu1 %v11697_v45 }
  0x4d   : > { %10452 = vmatmul.mubr.bf16.gmra.mxu0 %v12391_v51  ;;  %v12514_v9 = vld [vmem:[#allocation2 + $0x50] sm:$0xff]   ;;  %v12523_v58 = vsel %vm325_vm1, %v319_v6, 0.0  ;;  %v11703_v6 = vld [vmem:[%s14820_s1 + $0x68] sm:$0xff]   ;;  %10626 = vmatpush3.bf16.msra.mxu1 %v11697_v45  ;;  %v324_v61 = vld [vmem:[%s12244_s17 + $0xf8] sm:$0xff] }
  0x4e   : > { %10516 = vmatmul.mubr.bf16.gmra.mxu1 %v12395_v56  ;;  %10455 = vmatprep.mubr.bf16.mxu0 %v12398_v59  ;;  %9818 = vst [vmem:[#allocation2 + $0x80] sm:$0xff] %v9616_v31   ;;  %9819 = vst [vmem:[#allocation2 + $0x88] sm:$0xff] %v9621_v50   ;;  %v505_v36 = vsel %vm391_vm0, 0.0, %v430_v3  ;;  %v12526_v50 = vsel %vm325_vm1, %v320_v7, 0.0  ;;  %v11711_v63 = vld [vmem:[%s14820_s1 + $0x50] sm:$0xff]  }
  0x4f   : > { %10519 = vmatprep.mubr.bf16.mxu1 %v12401_v62  ;;  %10564 = vmatpush3.bf16.msra.mxu0 %v11672_v42  ;;  %v12449_v42 = vld [vmem:[#allocation2 + $0x44] sm:$0xff]   ;;  %14892 = vst [vmem:[#allocation38_spill] sm:$0xff] %v12523_v58  ;;  %14893 = vst [vmem:[#allocation39_spill] sm:$0xff] %v12526_v50  ;;  %v12953_v28 = vld [vmem:[#allocation2 + $0x50] sm:$0xff]  }
  0x50   : > { %10565 = vmatprep.subr.bf16.mxu0 %v11677_v0  ;;  %v12489_v29 = vld [vmem:[#allocation2 + $0x5c] sm:$0xff]   ;;  %10627 = vmatprep.subr.bf16.mxu1 %v11703_v6  ;;  %v12549_v45 = vld [vmem:[#allocation2 + $0x64] sm:$0xff]   ;;  %v12554_v14 = vld [vmem:[#allocation2 + $0x6c] sm:$0xff]  }
  0x51   : > { %10628 = vmatpush3.bf16.msra.mxu1 %v11703_v6  ;;  %v322_v6 = vld [vmem:[%s12244_s17 + $0xe8] sm:$0xff] }
  0x53   : > { %10566 = vmatpush3.bf16.msra.mxu0 %v11677_v0  ;;  %v11691_v0 = vld [vmem:[%s14820_s1 + $0x110] sm:$0xff]  }
  0x54   : > { %10567 = vmatprep.subr.bf16.mxu0 %v11686_v10 }
  0x55   : > { %10456 = vmatmul.mubr.bf16.gmra.mxu0 %v12422_v13 }
  0x56   : > { %10520 = vmatmul.mubr.bf16.gmra.mxu1 %v12425_v16  ;;  %10459 = vmatprep.mubr.bf16.mxu0 %v12431_v27 }
  0x57   : > { %10523 = vmatprep.mubr.bf16.mxu1 %v12434_v30  ;;  %10568 = vmatpush3.bf16.msra.mxu0 %v11686_v10  ;;  %v316_v10 = vld [vmem:[%s12244_s17 + $0xb8] sm:$0xff] }
  0x58   : > { %10569 = vmatprep.subr.bf16.mxu0 %v11691_v0  ;;  %v12494_v38 = vsel %vm325_vm1, %v316_v10, 0.0 }
  0x59   : > { %14889 = vst [vmem:[#allocation35_spill] sm:$0xff] %v12494_v38  ;;  %v428_v57 = vrot.slane %v12494_v38, 7 }
  0x5b   : > { %10570 = vmatpush3.bf16.msra.mxu0 %v11691_v0  ;;  %v318_v0 = vld [vmem:[%s12244_s17 + $0xc8] sm:$0xff]  ;;  %v429_v10 = vsel %vm391_vm0, %v427_v55, %v428_v57  ;;  %v521_v31 = vsel %vm391_vm0, %v428_v57, 0.0  ;;  %v433_v55 = vrot.slane %v12523_v58, 7 }
  0x5c   : > { %v12510_v5 = vsel %vm325_vm1, %v318_v0, 0.0  ;;  %v9626_v17 = vpack.c.bf16 %v429_v10, %v504_v32  ;;  %v9631_v43 = vpack.c.bf16 %v505_v36, %v521_v31  ;;  %v434_v10 = vrot.slane %v12526_v50, 7  ;;  %v11702_v57 = vld [vmem:[%s14820_s1 + $0x108] sm:$0xff]   ;;  %v12544_v36 = vld [vmem:[#allocation2 + $0x58] sm:$0xff]  }
  0x5d   : > { %10460 = vmatmul.mubr.bf16.gmra.mxu0 %v12449_v42  ;;  %14891 = vst [vmem:[#allocation37_spill] sm:$0xff] %v12510_v5  ;;  %v431_v0 = vrot.slane %v12510_v5, 7  ;;  %v506_v58 = vsel %vm391_vm0, 0.0, %v433_v55  ;;  %10571 = vmatprep.subr.bf16.mxu0 %v11702_v57  ;;  %v321_v5 = vld [vmem:[%s12244_s17 + $0xe0] sm:$0xff]  ;;  %s8825_s17 = sshll.u32 %s14556_s20, 4  ;;  %s14773_s17 = int_to_ptr.vmem [resolvable:$true] %s8825_s17 }
  0x5e   : > { %10524 = vmatmul.mubr.bf16.gmra.mxu1 %v12452_v44  ;;  %10463 = vmatprep.mubr.bf16.mxu0 %v12455_v47  ;;  %9820 = vst [vmem:[#allocation2 + $0x90] sm:$0xff] %v9626_v17   ;;  %v11704_v17 = vld [vmem:[%s14820_s1 + $0x60] sm:$0xff]   ;;  %9821 = vst [vmem:[#allocation2 + $0x98] sm:$0xff] %v9631_v43   ;;  %v435_v50 = vsel %vm391_vm0, %v433_v55, %v434_v10  ;;  %v523_v55 = vsel %vm391_vm0, %v434_v10, 0.0  ;;  %v12571_v10 = vld [vmem:[#allocation2 + $0x70] sm:$0xff]   ;;  %s12022_s29 = scalar_lea.vmem %s14773_s17, 4096  ;;  %p12029_p11 = scmp.lt.s32.totalorder %s14773_s17, %s12027_s9 }
  0x5f   : > { %10527 = vmatprep.mubr.bf16.mxu1 %v12458_v54  ;;  %v432_v7 = vsel %vm391_vm0, %v430_v3, %v431_v0  ;;  %v522_v32 = vsel %vm391_vm0, %v431_v0, 0.0  ;;  %v9641_v3 = vpack.c.bf16 %v435_v50, %v506_v58  ;;  %10572 = vmatpush3.bf16.msra.mxu0 %v11702_v57  ;;  %v12552_v0 = vsel %vm325_vm1, %v321_v5, 0.0  ;;  %v12565_v5 = vld [vmem:[#allocation2 + $0x68] sm:$0xff]   ;;  %v12567_v50 = vld [vmem:[#allocation2 + $0x74] sm:$0xff]   ;;  %v12569_v57 = vld [vmem:[#allocation2 + $0x7c] sm:$0xff]   ;;  %p12023_p8 = scmp.ne.s32.totalorder %s14773_s17, %s12022_s29  ;;  %p12030_p12 = scmp.lt.s32.totalorder %s12028_s13, %s12022_s29 }
  0x60   : > { %v9636_v31 = vpack.c.bf16 %v522_v32, %v432_v7  ;;  %14894 = vst [vmem:[#allocation40_spill] sm:$0xff] %v12552_v0  ;;  %v436_v43 = vrot.slane %v12552_v0, 7  ;;  %v12557_v7 = vld [vmem:[#allocation2 + $0x60] sm:$0xff]   ;;  %10629 = vmatprep.subr.bf16.mxu1 %v11704_v17 }
  0x61   : > { %9823 = vst [vmem:[#allocation2 + $0xa8] sm:$0xff] %v9641_v3   ;;  %10630 = vmatpush3.bf16.msra.mxu1 %v11704_v17  ;;  %v12582_v3 = vld [vmem:[#allocation2 + $0x84] sm:$0xff]   ;;  %p12024_p9 = pnand %p12023_p8, %p12173_p5  ;;  %p12031_p13 = por %p12030_p12, %p12029_p11 }
  0x62   : > { %9822 = vst [vmem:[#allocation2 + $0xa0] sm:$0xff] %v9636_v31   ;;  %v507_v32 = vsel %vm391_vm0, 0.0, %v436_v43  ;;  %v12576_v31 = vsel %vm325_vm1, %v322_v6, 0.0 }
  0x63   : > { %v9646_v58 = vpack.c.bf16 %v507_v32, %v523_v55  ;;  %14895 = vst [vmem:[#allocation41_spill] sm:$0xff] %v12576_v31  ;;  %v437_v17 = vrot.slane %v12576_v31, 7  ;;  %v11709_v55 = vld [vmem:[%s14820_s1 + $0x58] sm:$0xff]   ;;  %v11710_v31 = vld [vmem:[%s14820_s1 + $0x100] sm:$0xff]   ;;  %p12025_p10 = pneg %p12024_p9 }
  0x64   : > { %v12587_v32 = vld [vmem:[#allocation2 + $0x78] sm:$0xff]   ;;  %10631 = vmatprep.subr.bf16.mxu1 %v11709_v55  ;;  %10573 = vmatprep.subr.bf16.mxu0 %v11710_v31 }
  0x65   : > { %10464 = vmatmul.mubr.bf16.gmra.mxu0 %v12479_v8  ;;  %9824 = vst [vmem:[#allocation2 + $0xb0] sm:$0xff] %v9646_v58   ;;  %v12589_v58 = vld [vmem:[#allocation2 + $0x8c] sm:$0xff]   ;;  %v438_v6 = vsel %vm391_vm0, %v436_v43, %v437_v17  ;;  %v524_v0 = vsel %vm391_vm0, %v437_v17, 0.0  ;;  %10632 = vmatpush3.bf16.msra.mxu1 %v11709_v55  ;;  %v12605_v43 = vsel %vm325_vm1, %v324_v61, 0.0  ;;  %v12607_v17 = vld [vmem:[#allocation2 + $0x80] sm:$0xff]   ;;  %p12032_p0 = pnand %p12031_p13, %p12025_p10 }
  0x66   : > { %10528 = vmatmul.mubr.bf16.gmra.mxu1 %v12487_v25  ;;  %10467 = vmatprep.mubr.bf16.mxu0 %v12489_v29  ;;  %v9651_v38 = vpack.c.bf16 %v524_v0, %v438_v6  ;;  %14897 = vst [vmem:[#allocation43_spill] sm:$0xff] %v12605_v43  ;;  %v439_v0 = vrot.slane %v12602_v33, 7  ;;  %v440_v6 = vrot.slane %v12605_v43, 7  ;;  %v11716_v55 = vld [vmem:[%s14820_s1 + $0x48] sm:$0xff]  }
  0x67   : > { %10531 = vmatprep.mubr.bf16.mxu1 %v12514_v9  ;;  %10633 = vmatprep.subr.bf16.mxu1 %v11711_v63  ;;  %v12625_v43 = vld [vmem:[#allocation2 + $0x88] sm:$0xff]  }
  0x68   : > { %9825 = vst [vmem:[#allocation2 + $0xb8] sm:$0xff] %v9651_v38   ;;  %10574 = vmatpush3.bf16.msra.mxu0 %v11710_v31  ;;  %v441_v37 = vsel %vm391_vm0, %v439_v0, %v440_v6  ;;  %v508_v61 = vsel %vm391_vm0, 0.0, %v439_v0  ;;  %v525_v21 = vsel %vm391_vm0, %v440_v6, 0.0  ;;  %v11718_v38 = vld [vmem:[%s14820_s1 + $0x178] sm:$0xff]   ;;  %v11717_v0 = vld [vmem:[%s14820_s1 + $0x40] sm:$0xff]  }
  0x69   : > { %v9656_v31 = vpack.c.bf16 %v441_v37, %v508_v61  ;;  %v9661_v33 = vpack.c.bf16 %v12205_v2, %v525_v21  ;;  %10634 = vmatpush3.bf16.msra.mxu1 %v11711_v63  ;;  %10687 = vmatprep.subr.bf16.mxu0 %v11718_v38  ;;  %v12630_v6 = vld [vmem:[#allocation2 + $0x94] sm:$0xff]   ;;  %v12632_v4 = vld [vmem:[#allocation2 + $0x9c] sm:$0xff]   ;;  %v12645_v63 = vld [vmem:[#allocation2 + $0xa4] sm:$0xff]  }
  0x6a   : > { %10635 = vmatprep.subr.bf16.mxu1 %v11716_v55  ;;  %v12634_v37 = vld [vmem:[#allocation2 + $0x90] sm:$0xff]   ;;  %v11724_v21 = vld [vmem:[%s14820_s1 + $0xb8] sm:$0xff]   ;;  %v12649_v61 = vld [vmem:[#allocation2 + $0xa0] sm:$0xff]  }
  0x6b   : > { %9826 = vst [vmem:[#allocation2 + $0xc0] sm:$0xff] %v9656_v31   ;;  %9827 = vst [vmem:[#allocation2 + $0xc8] sm:$0xff] %v9661_v33   ;;  %v12643_v33 = vld [vmem:[#allocation2 + $0x98] sm:$0xff]  }
  0x6c   : > { %v12661_v49 = vld [vmem:[#allocation2 + $0xb0] sm:$0xff]  }
  0x6d   : > { %10468 = vmatmul.mubr.bf16.gmra.mxu0 %v12549_v45  ;;  %10636 = vmatpush3.bf16.msra.mxu1 %v11716_v55  ;;  %v12647_v55 = vld [vmem:[#allocation2 + $0xac] sm:$0xff]  }
  0x6e   : > { %10532 = vmatmul.mubr.bf16.gmra.mxu1 %v12544_v36  ;;  %10471 = vmatprep.mubr.bf16.mxu0 %v12554_v14 }
  0x6f   : > { %10535 = vmatprep.mubr.bf16.mxu1 %v12557_v7  ;;  %10637 = vmatprep.subr.bf16.mxu1 %v11717_v0  ;;  %v12655_v31 = vld [vmem:[#allocation2 + $0xb4] sm:$0xff]  }
  0x70   : > { %v12669_v15 = vld [vmem:[#allocation2 + $0xb8] sm:$0xff]  }
  0x71   : > { %10638 = vmatpush3.bf16.msra.mxu1 %v11717_v0  ;;  %v12657_v0 = vld [vmem:[#allocation2 + $0xa8] sm:$0xff]  }
  0x72   : > { %10751 = vmatprep.subr.bf16.mxu1 %v11724_v21  ;;  %v12659_v48 = vld [vmem:[#allocation2 + $0xbc] sm:$0xff]   ;;  %v12667_v23 = vld [vmem:[#allocation2 + $0xc4] sm:$0xff]  }
  0x75   : > { %10472 = vmatmul.mubr.bf16.gmra.mxu0 %v12567_v50 }
  0x76   : > { %10536 = vmatmul.mubr.bf16.gmra.mxu1 %v12565_v5  ;;  %10475 = vmatprep.mubr.bf16.mxu0 %v12569_v57 }
  0x77   : > { %10539 = vmatprep.mubr.bf16.mxu1 %v12571_v10 }
  0x7d   : > { %10476 = vmatmul.mubr.bf16.gmra.mxu0 %v12582_v3 }
  0x7e   : > { %10540 = vmatmul.mubr.bf16.gmra.mxu1 %v12587_v32  ;;  %10479 = vmatprep.mubr.bf16.mxu0 %v12589_v58 }
  0x7f   : > { %10543 = vmatprep.mubr.bf16.mxu1 %v12607_v17 }
  0x85   : > { %10480 = vmatmul.mubr.bf16.gmra.mxu0 %v12630_v6 }
  0x86   : > { %10544 = vmatmul.mubr.bf16.gmra.mxu1 %v12625_v43  ;;  %10483 = vmatprep.mubr.bf16.mxu0 %v12632_v4 }
  0x87   : > { %10547 = vmatprep.mubr.bf16.mxu1 %v12634_v37 }
  0x8d   : > { %10484 = vmatmul.mubr.bf16.gmra.mxu0 %v12645_v63 }
  0x8e   : > { %10548 = vmatmul.mubr.bf16.gmra.mxu1 %v12643_v33  ;;  %10487 = vmatprep.mubr.bf16.mxu0 %v12647_v55 }
  0x8f   : > { %10551 = vmatprep.mubr.bf16.mxu1 %v12649_v61 }
  0x95   : > { %10488 = vmatmul.mubr.bf16.gmra.mxu0 %v12655_v31 }
  0x96   : > { %10552 = vmatmul.mubr.bf16.gmra.mxu1 %v12657_v0  ;;  %10491 = vmatprep.mubr.bf16.mxu0 %v12659_v48 }
  0x97   : > { %10555 = vmatprep.mubr.bf16.mxu1 %v12661_v49 }
  0x9d   : > { %10492 = vmatmul.mubr.bf16.gmra.mxu0 %v12667_v23 }
  0x9e   : > { %10556 = vmatmul.mubr.bf16.gmra.mxu1 %v12669_v15  ;;  %10575 = vmatprep.mubr.bf16.mxu0 %v12353_v24  ;;  %v11727_v24 = vld [vmem:[%s14820_s1 + $0xa8] sm:$0xff]  }
  0x9f   : > { %10639 = vmatprep.mubr.bf16.mxu1 %v12674_v22 }
  0xa5   : > { %10576 = vmatmul.mubr.bf16.vlgmr.msra.gmra.mxu0 %v12364_v34  ;;  %v11721_v34 = vld [vmem:[%s14820_s1 + $0x160] sm:$0xff]  }
  0xa6   : > { %10640 = vmatmul.mubr.bf16.vlgmr.msra.gmra.mxu1 %v12366_v35  ;;  %10688 = vmatpush3.bf16.msra.mxu0 %v11718_v38  ;;  %v11728_v35 = vld [vmem:[%s14820_s1 + $0xa0] sm:$0xff]  }
  0xa7   : > { %10579 = vmatprep.mubr.bf16.mxu0 %v12371_v39  ;;  %10643 = vmatprep.mubr.bf16.mxu1 %v12373_v41  ;;  %v11729_v39 = vld [vmem:[%s14820_s1 + $0x98] sm:$0xff]   ;;  %v11731_v41 = vld [vmem:[%s14820_s1 + $0x90] sm:$0xff]  }
  0xa8   : > { %10689 = vmatprep.subr.bf16.mxu0 %v11719_v12  ;;  %10752 = vmatpush3.bf16.msra.mxu1 %v11724_v21 }
  0xa9   : > { %10753 = vmatprep.subr.bf16.mxu1 %v11725_v11 }
  0xaa   : > { %10690 = vmatpush3.bf16.msra.mxu0 %v11719_v12  ;;  %v11722_v12 = vld [vmem:[%s14820_s1 + $0x158] sm:$0xff]  }
  0xab   : > { %10691 = vmatprep.subr.bf16.mxu0 %v11720_v60 }
  0xac   : > { %10754 = vmatpush3.bf16.msra.mxu1 %v11725_v11  ;;  %v11723_v11 = vld [vmem:[%s14820_s1 + $0x150] sm:$0xff]  }
  0xad   : > { %10580 = vmatmul.mubr.bf16.gmra.mxu0 %v12391_v51  ;;  %10755 = vmatprep.subr.bf16.mxu1 %v11727_v24  ;;  %v11732_v51 = vld [vmem:[%s14820_s1 + $0x88] sm:$0xff]  }
  0xae   : > { %10644 = vmatmul.mubr.bf16.gmra.mxu1 %v12395_v56  ;;  %10583 = vmatprep.mubr.bf16.mxu0 %v12398_v59  ;;  %v11730_v56 = vld [vmem:[%s14820_s1 + $0x140] sm:$0xff]  }
  0xaf   : > { %10647 = vmatprep.mubr.bf16.mxu1 %v12401_v62  ;;  %10692 = vmatpush3.bf16.msra.mxu0 %v11720_v60  ;;  %v11726_v60 = vld [vmem:[%s14820_s1 + $0x148] sm:$0xff]   ;;  %v11733_v59 = vld [vmem:[%s14820_s1 + $0x80] sm:$0xff]   ;;  %v11734_v62 = vld [vmem:[%s14820_s1 + $0x1b8] sm:$0xff]  }
  0xb0   : > { %10693 = vmatprep.subr.bf16.mxu0 %v11721_v34  ;;  %10756 = vmatpush3.bf16.msra.mxu1 %v11727_v24 }
  0xb1   : > { %10757 = vmatprep.subr.bf16.mxu1 %v11728_v35 }
  0xb3   : > { %10694 = vmatpush3.bf16.msra.mxu0 %v11721_v34  ;;  %v11936_v34 = vld [vmem:[#allocation2 + $0x34] sm:$0xff]  }
  0xb4   : > { %10695 = vmatprep.subr.bf16.mxu0 %v11722_v12  ;;  %10758 = vmatpush3.bf16.msra.mxu1 %v11728_v35  ;;  %v11747_v35 = vld [vmem:[%s14820_s1 + $0x1d0] sm:$0xff]  }
  0xb5   : > { %10584 = vmatmul.mubr.bf16.gmra.mxu0 %v12422_v13  ;;  %10759 = vmatprep.subr.bf16.mxu1 %v11729_v39  ;;  %v11740_v13 = vld [vmem:[%s14820_s1 + $0x1f8] sm:$0xff]  }
  0xb6   : > { %10648 = vmatmul.mubr.bf16.gmra.mxu1 %v12425_v16  ;;  %10587 = vmatprep.mubr.bf16.mxu0 %v12431_v27  ;;  %v11735_v16 = vld [vmem:[%s14820_s1 + $0x1b0] sm:$0xff]  }
  0xb7   : > { %10651 = vmatprep.mubr.bf16.mxu1 %v12434_v30  ;;  %10696 = vmatpush3.bf16.msra.mxu0 %v11722_v12  ;;  %v11928_v30 = vld [vmem:[#allocation2 + $0x14] sm:$0xff]  }
  0xb8   : > { %10697 = vmatprep.subr.bf16.mxu0 %v11723_v11  ;;  %10760 = vmatpush3.bf16.msra.mxu1 %v11729_v39  ;;  %v11937_v39 = vld [vmem:[#allocation2 + $0x28] sm:$0xff]  }
  0xb9   : > { %10761 = vmatprep.subr.bf16.mxu1 %v11731_v41 }
  0xbb   : > { %10698 = vmatpush3.bf16.msra.mxu0 %v11723_v11  ;;  %v11938_v11 = vld [vmem:[#allocation2 + $0x3c] sm:$0xff]  }
  0xbc   : > { %10699 = vmatprep.subr.bf16.mxu0 %v11726_v60  ;;  %10762 = vmatpush3.bf16.msra.mxu1 %v11731_v41 }
  0xbd   : > { %10588 = vmatmul.mubr.bf16.gmra.mxu0 %v12449_v42  ;;  %10763 = vmatprep.subr.bf16.mxu1 %v11732_v51  ;;  %v11929_v42 = vld [vmem:[#allocation2 + $0x8] sm:$0xff]  }
  0xbe   : > { %10652 = vmatmul.mubr.bf16.gmra.mxu1 %v12452_v44  ;;  %10591 = vmatprep.mubr.bf16.mxu0 %v12455_v47  ;;  %v11931_v44 = vld [vmem:[#allocation2 + $0x10] sm:$0xff]  }
  0xbf   : > { %10655 = vmatprep.mubr.bf16.mxu1 %v12458_v54  ;;  %10700 = vmatpush3.bf16.msra.mxu0 %v11726_v60 }
  0xc0   : > { %10701 = vmatprep.subr.bf16.mxu0 %v11730_v56  ;;  %10764 = vmatpush3.bf16.msra.mxu1 %v11732_v51  ;;  %v11939_v51 = vld [vmem:[#allocation2 + $0x30] sm:$0xff]  }
  0xc1   : > { %10765 = vmatprep.subr.bf16.mxu1 %v11733_v59 }
  0xc3   : > { %10702 = vmatpush3.bf16.msra.mxu0 %v11730_v56 }
  0xc4   : > { %10766 = vmatpush3.bf16.msra.mxu1 %v11733_v59  ;;  %10815 = vmatprep.subr.bf16.mxu0 %v11734_v62  ;;  %v11742_v59 = vld [vmem:[%s14820_s1 + $0x188] sm:$0xff]  }
  0xc5   : > { %10592 = vmatmul.mubr.bf16.gmra.mxu0 %v12479_v8  ;;  %10879 = vmatprep.subr.bf16.mxu1 %v11740_v13 }
  0xc6   : > { %10656 = vmatmul.mubr.bf16.gmra.mxu1 %v12487_v25  ;;  %10595 = vmatprep.mubr.bf16.mxu0 %v12489_v29 }
  0xc7   : > { %10659 = vmatprep.mubr.bf16.mxu1 %v12514_v9 }
  0xcd   : > { %10596 = vmatmul.mubr.bf16.gmra.mxu0 %v12549_v45  ;;  %v11737_v45 = vld [vmem:[%s14820_s1 + $0x1a0] sm:$0xff]  }
  0xce   : > { %10660 = vmatmul.mubr.bf16.gmra.mxu1 %v12544_v36  ;;  %10599 = vmatprep.mubr.bf16.mxu0 %v12554_v14  ;;  %v11743_v14 = vld [vmem:[%s14820_s1 + $0x1e8] sm:$0xff]  }
  0xcf   : > { %10663 = vmatprep.mubr.bf16.mxu1 %v12557_v7 }
  0xd5   : > { %10600 = vmatmul.mubr.bf16.gmra.mxu0 %v12567_v50  ;;  %v11932_v50 = vld [vmem:[#allocation2 + $0x24] sm:$0xff]  }
  0xd6   : > { %10664 = vmatmul.mubr.bf16.gmra.mxu1 %v12565_v5  ;;  %10603 = vmatprep.mubr.bf16.mxu0 %v12569_v57  ;;  %v11744_v57 = vld [vmem:[%s14820_s1 + $0x1e0] sm:$0xff]  }
  0xd7   : > { %10667 = vmatprep.mubr.bf16.mxu1 %v12571_v10 }
  0xdd   : > { %10604 = vmatmul.mubr.bf16.gmra.mxu0 %v12582_v3  ;;  %v11933_v3 = vld [vmem:[#allocation2 + $0x18] sm:$0xff]  }
  0xde   : > { %10668 = vmatmul.mubr.bf16.gmra.mxu1 %v12587_v32  ;;  %10607 = vmatprep.mubr.bf16.mxu0 %v12589_v58  ;;  %v11934_v32 = vld [vmem:[#allocation2 + $0x2c] sm:$0xff]  }
  0xdf   : > { %10671 = vmatprep.mubr.bf16.mxu1 %v12607_v17  ;;  %v11935_v17 = vld [vmem:[#allocation2 + $0x20] sm:$0xff]  }
  0xe5   : > { %10608 = vmatmul.mubr.bf16.gmra.mxu0 %v12630_v6  ;;  %v11738_v6 = vld [vmem:[%s14820_s1 + $0x198] sm:$0xff]  }
  0xe6   : > { %10672 = vmatmul.mubr.bf16.gmra.mxu1 %v12625_v43  ;;  %10611 = vmatprep.mubr.bf16.mxu0 %v12632_v4  ;;  %v11927_v4 = vld [vmem:[#allocation2 + $0xc] sm:$0xff]  }
  0xe7   : > { %10675 = vmatprep.mubr.bf16.mxu1 %v12634_v37 }
  0xed   : > { %10612 = vmatmul.mubr.bf16.gmra.mxu0 %v12645_v63 }
  0xee   : > { %10676 = vmatmul.mubr.bf16.gmra.mxu1 %v12643_v33  ;;  %10615 = vmatprep.mubr.bf16.mxu0 %v12647_v55  ;;  %v11745_v33 = vld [vmem:[%s14820_s1 + $0x1d8] sm:$0xff]  }
  0xef   : > { %10679 = vmatprep.mubr.bf16.mxu1 %v12649_v61 }
  0xf5   : > { %10616 = vmatmul.mubr.bf16.gmra.mxu0 %v12655_v31 }
  0xf6   : > { %10680 = vmatmul.mubr.bf16.gmra.mxu1 %v12657_v0  ;;  %10619 = vmatprep.mubr.bf16.mxu0 %v12659_v48  ;;  %v11741_v48 = vld [vmem:[%s14820_s1 + $0x1f0] sm:$0xff]  }
  0xf7   : > { %10683 = vmatprep.mubr.bf16.mxu1 %v12661_v49  ;;  %v11739_v0 = vld [vmem:[%s14820_s1 + $0x190] sm:$0xff]  }
  0xfd   : > { %10620 = vmatmul.mubr.bf16.gmra.mxu0 %v12667_v23  ;;  %v11930_v23 = vld [vmem:[#allocation2 + $0x1c] sm:$0xff]  }
  0xfe   : > { %10684 = vmatmul.mubr.bf16.gmra.mxu1 %v12669_v15  ;;  %10703 = vmatprep.mubr.bf16.mxu0 %v11927_v4 }
  0xff   : > { %10767 = vmatprep.mubr.bf16.mxu1 %v12674_v22  ;;  %v11736_v22 = vld [vmem:[%s14820_s1 + $0x1a8] sm:$0xff]  }
 0x105   : > { %v10449_v27 = vpop.f32.mrf.mxu0  ;;  %10704 = vmatmul.mubr.bf16.vlgmr.msra.gmra.mxu0 %v11928_v30  ;;  %v11746_v30 = vld [vmem:[%s14820_s1 + $0x180] sm:$0xff]  }
 0x106   : > { %v10513_v49 = vpop.f32.mrf.mxu1  ;;  %10768 = vmatmul.mubr.bf16.vlgmr.msra.gmra.mxu1 %v11929_v42  ;;  %10816 = vmatpush3.bf16.msra.mxu0 %v11734_v62  ;;  %v11940_v42 = vld [vmem:[#allocation2 + $0x44] sm:$0xff]  }
 0x107   : > { %v1191_v15 = vpop.f32.mrf.mxu0  ;;  %10707 = vmatprep.mubr.bf16.mxu0 %v11930_v23  ;;  %10771 = vmatprep.mubr.bf16.mxu1 %v11931_v44  ;;  %v11941_v44 = vld [vmem:[#allocation2 + $0x38] sm:$0xff]  }
 0x108   : > { %v1592_v47 = vpop.f32.mrf.mxu1  ;;  %10817 = vmatprep.subr.bf16.mxu0 %v11735_v16  ;;  %10880 = vmatpush3.bf16.msra.mxu1 %v11740_v13  ;;  %v11748_v13 = vld [vmem:[%s14820_s1 + $0x1c8] sm:$0xff]  }
 0x109   : > { %v12781_v54 = vadd.f32 %v1592_v47, %v1191_v15  ;;  %v10450_v8 = vpop.f32.mrf.mxu0  ;;  %10881 = vmatprep.subr.bf16.mxu1 %v11741_v48  ;;  %v11749_v15 = vld [vmem:[%s14820_s1 + $0x1c0] sm:$0xff]  }
 0x10a   : > { %v10514_v25 = vpop.f32.mrf.mxu1  ;;  %10818 = vmatpush3.bf16.msra.mxu0 %v11735_v16 }
 0x10b   : > { %v12786_v29 = vadd.f32 %v10514_v25, %v10450_v8  ;;  %v1194_v9 = vpop.f32.mrf.mxu0  ;;  %10819 = vmatprep.subr.bf16.mxu0 %v11736_v22  ;;  %v11943_v8 = vld [vmem:[#allocation2 + $0x40] sm:$0xff]   ;;  %v12833_v25 = vld [vmem:[%s14820_s1 + $0x238] sm:$0xff]  }
 0x10c   : > { %v1595_v36 = vpop.f32.mrf.mxu1  ;;  %10882 = vmatpush3.bf16.msra.mxu1 %v11741_v48 }
 0x10d   : > { %v12791_v7 = vadd.f32 %v1595_v36, %v1194_v9  ;;  %v10453_v5 = vpop.f32.mrf.mxu0  ;;  %10708 = vmatmul.mubr.bf16.gmra.mxu0 %v11932_v50  ;;  %10883 = vmatprep.subr.bf16.mxu1 %v11743_v14 }
 0x10e   : > { %v10517_v10 = vpop.f32.mrf.mxu1  ;;  %10772 = vmatmul.mubr.bf16.gmra.mxu1 %v11933_v3  ;;  %10711 = vmatprep.mubr.bf16.mxu0 %v11934_v32  ;;  %v11944_v32 = vld [vmem:[#allocation2 + $0x54] sm:$0xff]  }
 0x10f   : > { %v12796_v58 = vadd.f32 %v10517_v10, %v10453_v5  ;;  %v1206_v43 = vpop.f32.mrf.mxu0  ;;  %10775 = vmatprep.mubr.bf16.mxu1 %v11935_v17  ;;  %10820 = vmatpush3.bf16.msra.mxu0 %v11736_v22  ;;  %v11942_v22 = vld [vmem:[#allocation2 + $0x4c] sm:$0xff]  }
 0x110   : > { %v1607_v38 = vpop.f32.mrf.mxu1  ;;  %10821 = vmatprep.subr.bf16.mxu0 %v11737_v45  ;;  %10884 = vmatpush3.bf16.msra.mxu1 %v11743_v14  ;;  %v11945_v17 = vld [vmem:[#allocation2 + $0x48] sm:$0xff]  }
 0x111   : > { %v12801_v37 = vadd.f32 %v1607_v38, %v1206_v43  ;;  %v10454_v21 = vpop.f32.mrf.mxu0  ;;  %10885 = vmatprep.subr.bf16.mxu1 %v11744_v57  ;;  %v11946_v38 = vld [vmem:[#allocation2 + $0x5c] sm:$0xff]  }
 0x112   : > { %v10518_v63 = vpop.f32.mrf.mxu1 }
 0x113   : > { %v12806_v55 = vadd.f32 %v10518_v63, %v10454_v21  ;;  %v1209_v61 = vpop.f32.mrf.mxu0  ;;  %10822 = vmatpush3.bf16.msra.mxu0 %v11737_v45 }
 0x114   : > { %v1610_v31 = vpop.f32.mrf.mxu1  ;;  %10823 = vmatprep.subr.bf16.mxu0 %v11738_v6  ;;  %10886 = vmatpush3.bf16.msra.mxu1 %v11744_v57 }
 0x115   : > { %v10457_v24 = vpop.f32.mrf.mxu0  ;;  %10712 = vmatmul.mubr.bf16.gmra.mxu0 %v11936_v34  ;;  %10887 = vmatprep.subr.bf16.mxu1 %v11745_v33 }
 0x116   : > { %v10521_v12 = vpop.f32.mrf.mxu1  ;;  %10776 = vmatmul.mubr.bf16.gmra.mxu1 %v11937_v39  ;;  %10715 = vmatprep.mubr.bf16.mxu0 %v11938_v11  ;;  %v11948_v39 = vld [vmem:[#allocation2 + $0x64] sm:$0xff]  }
 0x117   : > { %v12814_v41 = vadd.f32 %v10521_v12, %v10457_v24  ;;  %v1221_v60 = vpop.f32.mrf.mxu0  ;;  %10779 = vmatprep.mubr.bf16.mxu1 %v11939_v51  ;;  %10824 = vmatpush3.bf16.msra.mxu0 %v11738_v6  ;;  %v11950_v51 = vld [vmem:[#allocation2 + $0x6c] sm:$0xff]  }
 0x118   : > { %v1622_v56 = vpop.f32.mrf.mxu1  ;;  %10825 = vmatprep.subr.bf16.mxu0 %v11739_v0  ;;  %10888 = vmatpush3.bf16.msra.mxu1 %v11745_v33  ;;  %v11947_v33 = vld [vmem:[#allocation2 + $0x50] sm:$0xff]   ;;  %v11949_v60 = vld [vmem:[#allocation2 + $0x58] sm:$0xff]  }
 0x119   : > { %v10458_v62 = vpop.f32.mrf.mxu0  ;;  %10889 = vmatprep.subr.bf16.mxu1 %v11747_v35 }
 0x11a   : > { %v10522_v4 = vpop.f32.mrf.mxu1  ;;  %v11951_v62 = vld [vmem:[#allocation2 + $0x60] sm:$0xff]  }
 0x11b   : > { %v1223_v16 = vpop.f32.mrf.mxu0  ;;  %10826 = vmatpush3.bf16.msra.mxu0 %v11739_v0 }
 0x11c   : > { %v1624_v27 = vpop.f32.mrf.mxu1  ;;  %10827 = vmatprep.subr.bf16.mxu0 %v11742_v59  ;;  %10890 = vmatpush3.bf16.msra.mxu1 %v11747_v35 }
 0x11d   : > { %v12825_v48 = vadd.f32 %v1624_v27, %v1223_v16  ;;  %v10461_v49 = vpop.f32.mrf.mxu0  ;;  %10716 = vmatmul.mubr.bf16.gmra.mxu0 %v11940_v42  ;;  %10891 = vmatprep.subr.bf16.mxu1 %v11748_v13 }
 0x11e   : > { %v10525_v23 = vpop.f32.mrf.mxu1  ;;  %10780 = vmatmul.mubr.bf16.gmra.mxu1 %v11941_v44  ;;  %10719 = vmatprep.mubr.bf16.mxu0 %v11942_v22  ;;  %v11953_v22 = vld [vmem:[#allocation2 + $0x68] sm:$0xff]  }
 0x11f   : > { %v1235_v47 = vpop.f32.mrf.mxu0  ;;  %10783 = vmatprep.mubr.bf16.mxu1 %v11943_v8  ;;  %10828 = vmatpush3.bf16.msra.mxu0 %v11742_v59  ;;  %v11952_v23 = vld [vmem:[#allocation2 + $0x74] sm:$0xff]  }
 0x120   : > { %v1636_v14 = vpop.f32.mrf.mxu1  ;;  %10829 = vmatprep.subr.bf16.mxu0 %v11746_v30  ;;  %10892 = vmatpush3.bf16.msra.mxu1 %v11748_v13 }
 0x121   : > { %v12835_v9 = vadd.f32 %v1636_v14, %v1235_v47  ;;  %v10462_v36 = vpop.f32.mrf.mxu0  ;;  %10893 = vmatprep.subr.bf16.mxu1 %v11749_v15  ;;  %v11954_v47 = vld [vmem:[#allocation2 + $0x7c] sm:$0xff]   ;;  %v11955_v14 = vld [vmem:[#allocation2 + $0x70] sm:$0xff]  }
 0x122   : > { %v10526_v45 = vpop.f32.mrf.mxu1 }
 0x123   : > { %v12837_v5 = vadd.f32 %v10526_v45, %v10462_v36  ;;  %v1238_v50 = vpop.f32.mrf.mxu0  ;;  %10830 = vmatpush3.bf16.msra.mxu0 %v11746_v30  ;;  %v9666_v30 = vpack.c.bf16 %v12256_v18, %v12201_v1 }
 0x124   : > { %v1639_v57 = vpop.f32.mrf.mxu1  ;;  %10894 = vmatpush3.bf16.msra.mxu1 %v11749_v15  ;;  %10943 = vmatprep.subr.bf16.mxu0 %v12833_v25 }
 0x125   : > { %v12840_v10 = vadd.f32 %v1639_v57, %v1238_v50  ;;  %v10465_v3 = vpop.f32.mrf.mxu0  ;;  %10720 = vmatmul.mubr.bf16.gmra.mxu0 %v11944_v32  ;;  %9828 = vst [vmem:[#allocation2 + $0xd0] sm:$0xff] %v9666_v30   ;;  %9854 = vst [vmem:[#allocation3 + $0xd0] sm:$0xff] %v9666_v30  }
 0x126   : > { %v10529_v43 = vpop.f32.mrf.mxu1  ;;  %10784 = vmatmul.mubr.bf16.gmra.mxu1 %v11945_v17  ;;  %10723 = vmatprep.mubr.bf16.mxu0 %v11946_v38  ;;  %v11956_v38 = vld [vmem:[#allocation2 + $0x84] sm:$0xff]  }
 0x127   : > { %14898 = vst [vmem:[#allocation44_spill] sm:$0xff] %v12840_v10  ;;  %v12842_v6 = vadd.f32 %v10529_v43, %v10465_v3  ;;  %v1250_v21 = vpop.f32.mrf.mxu0  ;;  %10787 = vmatprep.mubr.bf16.mxu1 %v11947_v33  ;;  %v11957_v33 = vld [vmem:[#allocation2 + $0x78] sm:$0xff]  }
 0x128   : > { %v1651_v63 = vpop.f32.mrf.mxu1 }
 0x129   : > { %v12844_v61 = vadd.f32 %v1651_v63, %v1250_v21  ;;  %v10466_v31 = vpop.f32.mrf.mxu0  ;;  %v11958_v63 = vld [vmem:[#allocation2 + $0x8c] sm:$0xff]  }
 0x12a   : > { %v10530_v0 = vpop.f32.mrf.mxu1 }
 0x12b   : > { %14899 = vst [vmem:[#allocation45_spill] sm:$0xff] %v12844_v61  ;;  %v12846_v24 = vadd.f32 %v10530_v0, %v10466_v31  ;;  %v1253_v34 = vpop.f32.mrf.mxu0 }
 0x12c   : > { %v1654_v35 = vpop.f32.mrf.mxu1  ;;  %v11959_v34 = vld [vmem:[#allocation2 + $0x80] sm:$0xff]  }
 0x12d   : > { %14900 = vst [vmem:[#allocation46_spill] sm:$0xff] %v12846_v24  ;;  %v10469_v12 = vpop.f32.mrf.mxu0  ;;  %10724 = vmatmul.mubr.bf16.gmra.mxu0 %v11948_v39 }
 0x12e   : > { %v10533_v11 = vpop.f32.mrf.mxu1  ;;  %10788 = vmatmul.mubr.bf16.gmra.mxu1 %v11949_v60  ;;  %10727 = vmatprep.mubr.bf16.mxu0 %v11950_v51 }
 0x12f   : > { %v12848_v56 = vadd.f32 %v10533_v11, %v10469_v12  ;;  %v1265_v59 = vpop.f32.mrf.mxu0  ;;  %10791 = vmatprep.mubr.bf16.mxu1 %v11951_v62 }
 0x130   : > { %v1666_v13 = vpop.f32.mrf.mxu1 }
 0x131   : > { %14901 = vst [vmem:[#allocation47_spill] sm:$0xff] %v12848_v56  ;;  %v10470_v4 = vpop.f32.mrf.mxu0  ;;  %v11960_v13 = vld [vmem:[#allocation2 + $0x94] sm:$0xff]  }
 0x132   : > { %v10534_v16 = vpop.f32.mrf.mxu1 }
 0x133   : > { %v1267_v27 = vpop.f32.mrf.mxu0  ;;  %v11961_v16 = vld [vmem:[#allocation2 + $0x88] sm:$0xff]  }
 0x134   : > { %v1668_v49 = vpop.f32.mrf.mxu1 }
 0x135   : > { %v12852_v42 = vadd.f32 %v1668_v49, %v1267_v27  ;;  %v10473_v15 = vpop.f32.mrf.mxu0  ;;  %10728 = vmatmul.mubr.bf16.gmra.mxu0 %v11952_v23  ;;  %v11962_v27 = vld [vmem:[#allocation2 + $0x9c] sm:$0xff]  }
 0x136   : > { %v10537_v44 = vpop.f32.mrf.mxu1  ;;  %10792 = vmatmul.mubr.bf16.gmra.mxu1 %v11953_v22  ;;  %10731 = vmatprep.mubr.bf16.mxu0 %v11954_v47  ;;  %v11963_v15 = vld [vmem:[#allocation2 + $0x90] sm:$0xff]  }
 0x137   : > { %14902 = vst [vmem:[#allocation48_spill] sm:$0xff] %v12852_v42  ;;  %v1279_v8 = vpop.f32.mrf.mxu0  ;;  %10795 = vmatprep.mubr.bf16.mxu1 %v11955_v14  ;;  %v13020_v42 = vld [vmem:[#allocation2 + $0x90] sm:$0xff]  }
 0x138   : > { %v1680_v36 = vpop.f32.mrf.mxu1 }
 0x139   : > { %v12854_v45 = vadd.f32 %v1680_v36, %v1279_v8  ;;  %v10474_v1 = vpop.f32.mrf.mxu0 }
 0x13a   : > { %v10538_v50 = vpop.f32.mrf.mxu1 }
 0x13b   : > { %14903 = vst [vmem:[#allocation49_spill] sm:$0xff] %v12854_v45  ;;  %v12856_v57 = vadd.f32 %v10538_v50, %v10474_v1  ;;  %v1282_v3 = vpop.f32.mrf.mxu0  ;;  %v11964_v1 = vld [vmem:[#allocation2 + $0xa4] sm:$0xff]  }
 0x13c   : > { %v1683_v32 = vpop.f32.mrf.mxu1 }
 0x13d   : > { %14904 = vst [vmem:[#allocation50_spill] sm:$0xff] %v12856_v57  ;;  %v12858_v43 = vadd.f32 %v1683_v32, %v1282_v3  ;;  %v10477_v17 = vpop.f32.mrf.mxu0  ;;  %10732 = vmatmul.mubr.bf16.gmra.mxu0 %v11956_v38  ;;  %v11965_v3 = vld [vmem:[#allocation2 + $0x98] sm:$0xff]   ;;  %v11966_v32 = vld [vmem:[#allocation2 + $0xac] sm:$0xff]   ;;  %v11967_v38 = vld [vmem:[#allocation2 + $0xa0] sm:$0xff]  }
 0x13e   : > { %v10541_v21 = vpop.f32.mrf.mxu1  ;;  %10796 = vmatmul.mubr.bf16.gmra.mxu1 %v11957_v33  ;;  %10735 = vmatprep.mubr.bf16.mxu0 %v11958_v63 }
 0x13f   : > { %14905 = vst [vmem:[#allocation51_spill] sm:$0xff] %v12858_v43  ;;  %v12860_v31 = vadd.f32 %v10541_v21, %v10477_v17  ;;  %v1294_v0 = vpop.f32.mrf.mxu0  ;;  %10799 = vmatprep.mubr.bf16.mxu1 %v11959_v34 }
 0x140   : > { %v1695_v35 = vpop.f32.mrf.mxu1 }
 0x141   : > { %14906 = vst [vmem:[#allocation52_spill] sm:$0xff] %v12860_v31  ;;  %v12862_v12 = vadd.f32 %v1695_v35, %v1294_v0  ;;  %v10478_v39 = vpop.f32.mrf.mxu0 }
 0x142   : > { %v10542_v11 = vpop.f32.mrf.mxu1 }
 0x143   : > { %14907 = vst [vmem:[#allocation53_spill] sm:$0xff] %v12862_v12  ;;  %v12864_v60 = vadd.f32 %v10542_v11, %v10478_v39  ;;  %v1297_v51 = vpop.f32.mrf.mxu0 }
 0x144   : > { %v1698_v59 = vpop.f32.mrf.mxu1 }
 0x145   : > { %14908 = vst [vmem:[#allocation54_spill] sm:$0xff] %v12864_v60  ;;  %v10481_v62 = vpop.f32.mrf.mxu0  ;;  %10736 = vmatmul.mubr.bf16.gmra.mxu0 %v11960_v13  ;;  %v11968_v59 = vld [vmem:[#allocation2 + $0xb4] sm:$0xff]   ;;  %v11969_v13 = vld [vmem:[#allocation2 + $0xa8] sm:$0xff]   ;;  %v13004_v60 = vld [vmem:[#allocation2 + $0x80] sm:$0xff]  }
 0x146   : > { %v10545_v4 = vpop.f32.mrf.mxu1  ;;  %10800 = vmatmul.mubr.bf16.gmra.mxu1 %v11961_v16  ;;  %10739 = vmatprep.mubr.bf16.mxu0 %v11962_v27 }
 0x147   : > { %v12866_v30 = vadd.f32 %v10545_v4, %v10481_v62  ;;  %v1309_v49 = vpop.f32.mrf.mxu0  ;;  %10803 = vmatprep.mubr.bf16.mxu1 %v11963_v15  ;;  %v11970_v4 = vld [vmem:[#allocation2 + $0xbc] sm:$0xff]  }
 0x148   : > { %v1710_v23 = vpop.f32.mrf.mxu1  ;;  %v11971_v49 = vld [vmem:[#allocation2 + $0xb0] sm:$0xff]  }
 0x149   : > { %14909 = vst [vmem:[#allocation55_spill] sm:$0xff] %v12866_v30  ;;  %v10482_v44 = vpop.f32.mrf.mxu0 }
 0x14a   : > { %v10546_v22 = vpop.f32.mrf.mxu1 }
 0x14b   : > { %v1311_v47 = vpop.f32.mrf.mxu0 }
 0x14c   : > { %v1712_v8 = vpop.f32.mrf.mxu1 }
 0x14d   : > { %v12868_v14 = vadd.f32 %v1712_v8, %v1311_v47  ;;  %v10485_v36 = vpop.f32.mrf.mxu0  ;;  %10740 = vmatmul.mubr.bf16.gmra.mxu0 %v11964_v1  ;;  %v12880_v47 = vld [vmem:[#allocation2 + $0x18] sm:$0xff]  }
 0x14e   : > { %v10549_v50 = vpop.f32.mrf.mxu1  ;;  %10804 = vmatmul.mubr.bf16.gmra.mxu1 %v11965_v3  ;;  %10743 = vmatprep.mubr.bf16.mxu0 %v11966_v32  ;;  %v11972_v3 = vld [vmem:[#allocation2 + $0xc4] sm:$0xff]  }
 0x14f   : > { %14910 = vst [vmem:[#allocation56_spill] sm:$0xff] %v12868_v14  ;;  %v1323_v17 = vpop.f32.mrf.mxu0  ;;  %10807 = vmatprep.mubr.bf16.mxu1 %v11967_v38 }
 0x150   : > { %v1724_v21 = vpop.f32.mrf.mxu1 }
 0x151   : > { %v12870_v33 = vadd.f32 %v1724_v21, %v1323_v17  ;;  %v10486_v63 = vpop.f32.mrf.mxu0  ;;  %v11973_v17 = vld [vmem:[#allocation2 + $0xb8] sm:$0xff]  }
 0x152   : > { %v10550_v0 = vpop.f32.mrf.mxu1 }
 0x153   : > { %14911 = vst [vmem:[#allocation57_spill] sm:$0xff] %v12870_v33  ;;  %v12872_v34 = vadd.f32 %v10550_v0, %v10486_v63  ;;  %v1326_v35 = vpop.f32.mrf.mxu0 }
 0x154   : > { %v1727_v39 = vpop.f32.mrf.mxu1 }
 0x155   : > { %14912 = vst [vmem:[#allocation58_spill] sm:$0xff] %v12872_v34  ;;  %v12874_v11 = vadd.f32 %v1727_v39, %v1326_v35  ;;  %v10489_v51 = vpop.f32.mrf.mxu0  ;;  %10744 = vmatmul.mubr.bf16.gmra.mxu0 %v11968_v59  ;;  %v12888_v35 = vld [vmem:[#allocation2 + $0x20] sm:$0xff]   ;;  %v12890_v59 = vld [vmem:[#allocation2 + $0x28] sm:$0xff]  }
 0x156   : > { %v10553_v62 = vpop.f32.mrf.mxu1  ;;  %10808 = vmatmul.mubr.bf16.gmra.mxu1 %v11969_v13  ;;  %10747 = vmatprep.mubr.bf16.mxu0 %v11970_v4  ;;  %v11755_v13 = vld [vmem:[%s14820_s1 + $0x230] sm:$0xff]  }
 0x157   : > { %14913 = vst [vmem:[#allocation59_spill] sm:$0xff] %v12874_v11  ;;  %v12876_v16 = vadd.f32 %v10553_v62, %v10489_v51  ;;  %v1338_v27 = vpop.f32.mrf.mxu0  ;;  %10811 = vmatprep.mubr.bf16.mxu1 %v11971_v49  ;;  %v12988_v11 = vld [vmem:[#allocation2 + $0x70] sm:$0xff]  }
 0x158   : > { %v1739_v15 = vpop.f32.mrf.mxu1 }
 0x159   : > { %14914 = vst [vmem:[#allocation60_spill] sm:$0xff] %v12876_v16  ;;  %v12878_v23 = vadd.f32 %v1739_v15, %v1338_v27  ;;  %v10490_v44 = vpop.f32.mrf.mxu0 }
 0x15a   : > { %v10554_v22 = vpop.f32.mrf.mxu1 }
 0x15b   : > { %14915 = vst [vmem:[#allocation61_spill] sm:$0xff] %v12878_v23  ;;  %v12882_v8 = vadd.f32 %v10554_v22, %v10490_v44  ;;  %v1341_v36 = vpop.f32.mrf.mxu0  ;;  %v11760_v22 = vld [vmem:[%s14820_s1 + $0x228] sm:$0xff]  }
 0x15c   : > { %v1742_v1 = vpop.f32.mrf.mxu1 }
 0x15d   : > { %14916 = vst [vmem:[#allocation62_spill] sm:$0xff] %v12882_v8  ;;  %v10493_v50 = vpop.f32.mrf.mxu0  ;;  %10748 = vmatmul.mubr.bf16.gmra.mxu0 %v11972_v3  ;;  %v12909_v3 = vld [vmem:[#allocation2 + $0x30] sm:$0xff]  }
 0x15e   : > { %v10557_v32 = vpop.f32.mrf.mxu1  ;;  %10812 = vmatmul.mubr.bf16.gmra.mxu1 %v11973_v17  ;;  %10831 = vmatprep.mubr.bf16.mxu0 %v12880_v47 }
 0x15f   : > { %v12885_v38 = vadd.f32 %v10557_v32, %v10493_v50  ;;  %v1353_v21 = vpop.f32.mrf.mxu0  ;;  %10895 = vmatprep.mubr.bf16.mxu1 %v12880_v47 }
 0x160   : > { %v1754_v63 = vpop.f32.mrf.mxu1 }
 0x161   : > { %14917 = vst [vmem:[#allocation63_spill] sm:$0xff] %v12885_v38  ;;  %v10494_v0 = vpop.f32.mrf.mxu0 }
 0x162   : > { %v10558_v39 = vpop.f32.mrf.mxu1  ;;  %v11763_v0 = vld [vmem:[%s14820_s1 + $0x220] sm:$0xff]  }
 0x163   : > { %v1355_v51 = vpop.f32.mrf.mxu0 }
 0x164   : > { %v1756_v62 = vpop.f32.mrf.mxu1 }
 0x165   : > { %v12895_v4 = vadd.f32 %v1756_v62, %v1355_v51  ;;  %v10577_v27 = vpop.f32.mrf.mxu0  ;;  %10832 = vmatmul.mubr.bf16.vlgmr.msra.gmra.mxu0 %v12888_v35 }
 0x166   : > { %v10641_v49 = vpop.f32.mrf.mxu1  ;;  %10896 = vmatmul.mubr.bf16.vlgmr.msra.gmra.mxu1 %v12888_v35  ;;  %10944 = vmatpush3.bf16.msra.mxu0 %v12833_v25  ;;  %v12911_v25 = vld [vmem:[#allocation2 + $0x38] sm:$0xff]  }
 0x167   : > { %14918 = vst [vmem:[#allocation64_spill] sm:$0xff] %v12895_v4  ;;  %v12900_v15 = vadd.f32 %v10641_v49, %v10577_v27  ;;  %v1866_v44 = vpop.f32.mrf.mxu0  ;;  %10835 = vmatprep.mubr.bf16.mxu0 %v12890_v59  ;;  %10899 = vmatprep.mubr.bf16.mxu1 %v12890_v59  ;;  %v12974_v4 = vld [vmem:[#allocation2 + $0x68] sm:$0xff]  }
 0x168   : > { %v2139_v36 = vpop.f32.mrf.mxu1  ;;  %10945 = vmatprep.subr.bf16.mxu0 %v11755_v13 }
 0x169   : > { %v12907_v1 = vadd.f32 %v2139_v36, %v1866_v44  ;;  %v10578_v50 = vpop.f32.mrf.mxu0  ;;  %v11768_v44 = vld [vmem:[%s14820_s1 + $0x218] sm:$0xff]  }
 0x16a   : > { %v10642_v32 = vpop.f32.mrf.mxu1  ;;  %10946 = vmatpush3.bf16.msra.mxu0 %v11755_v13 }
 0x16b   : > { %v12913_v17 = vadd.f32 %v10642_v32, %v10578_v50  ;;  %v1869_v21 = vpop.f32.mrf.mxu0  ;;  %10947 = vmatprep.subr.bf16.mxu0 %v11760_v22  ;;  %v12931_v32 = vld [vmem:[#allocation2 + $0x40] sm:$0xff]  }
 0x16c   : > { %v2142_v63 = vpop.f32.mrf.mxu1 }
 0x16d   : > { %v12918_v39 = vadd.f32 %v2142_v63, %v1869_v21  ;;  %v10581_v51 = vpop.f32.mrf.mxu0  ;;  %10836 = vmatmul.mubr.bf16.gmra.mxu0 %v12909_v3  ;;  %v12933_v63 = vld [vmem:[#allocation2 + $0x48] sm:$0xff]  }
 0x16e   : > { %v10645_v62 = vpop.f32.mrf.mxu1  ;;  %10900 = vmatmul.mubr.bf16.gmra.mxu1 %v12909_v3  ;;  %10839 = vmatprep.mubr.bf16.mxu0 %v12911_v25 }
 0x16f   : > { %v12923_v13 = vadd.f32 %v10645_v62, %v10581_v51  ;;  %v1882_v27 = vpop.f32.mrf.mxu0  ;;  %10903 = vmatprep.mubr.bf16.mxu1 %v12911_v25  ;;  %10948 = vmatpush3.bf16.msra.mxu0 %v11760_v22  ;;  %v11771_v22 = vld [vmem:[%s14820_s1 + $0x210] sm:$0xff]  }
 0x170   : > { %v2155_v49 = vpop.f32.mrf.mxu1  ;;  %10949 = vmatprep.subr.bf16.mxu0 %v11763_v0 }
 0x171   : > { %v12929_v36 = vadd.f32 %v2155_v49, %v1882_v27  ;;  %v10582_v50 = vpop.f32.mrf.mxu0 }
 0x172   : > { %v10646_v21 = vpop.f32.mrf.mxu1 }
 0x173   : > { %v12935_v51 = vadd.f32 %v10646_v21, %v10582_v50  ;;  %v1885_v62 = vpop.f32.mrf.mxu0  ;;  %10950 = vmatpush3.bf16.msra.mxu0 %v11763_v0 }
 0x174   : > { %v2158_v52 = vpop.f32.mrf.mxu1  ;;  %10951 = vmatprep.subr.bf16.mxu0 %v11768_v44 }
 0x175   : > { %v12940_v53 = vadd.f32 %v2158_v52, %v1885_v62  ;;  %v10585_v27 = vpop.f32.mrf.mxu0  ;;  %10840 = vmatmul.mubr.bf16.gmra.mxu0 %v12931_v32  ;;  %v11776_v52 = vld [vmem:[%s14820_s1 + $0x208] sm:$0xff]  }
 0x176   : > { %v10649_v49 = vpop.f32.mrf.mxu1  ;;  %10904 = vmatmul.mubr.bf16.gmra.mxu1 %v12931_v32  ;;  %10843 = vmatprep.mubr.bf16.mxu0 %v12933_v63 }
 0x177   : > { %v12945_v50 = vadd.f32 %v10649_v49, %v10585_v27  ;;  %v1898_v21 = vpop.f32.mrf.mxu0  ;;  %10907 = vmatprep.mubr.bf16.mxu1 %v12933_v63  ;;  %10952 = vmatpush3.bf16.msra.mxu0 %v11768_v44  ;;  %v11779_v44 = vld [vmem:[%s14820_s1 + $0x200] sm:$0xff]  }
 0x178   : > { %v2171_v0 = vpop.f32.mrf.mxu1  ;;  %10953 = vmatprep.subr.bf16.mxu0 %v11771_v22 }
 0x179   : > { %v12951_v62 = vadd.f32 %v2171_v0, %v1898_v21  ;;  %v10586_v46 = vpop.f32.mrf.mxu0 }
 0x17a   : > { %v10650_v40 = vpop.f32.mrf.mxu1 }
 0x17b   : > { %v12957_v27 = vadd.f32 %v10650_v40, %v10586_v46  ;;  %v1901_v49 = vpop.f32.mrf.mxu0  ;;  %10954 = vmatpush3.bf16.msra.mxu0 %v11771_v22 }
 0x17c   : > { %v2174_v20 = vpop.f32.mrf.mxu1  ;;  %10955 = vmatprep.subr.bf16.mxu0 %v11776_v52 }
 0x17d   : > { %v12962_v19 = vadd.f32 %v2174_v20, %v1901_v49  ;;  %v10589_v21 = vpop.f32.mrf.mxu0  ;;  %10844 = vmatmul.mubr.bf16.gmra.mxu0 %v12953_v28  ;;  %v12972_v49 = vld [vmem:[#allocation2 + $0x60] sm:$0xff]  }
 0x17e   : > { %v10653_v0 = vpop.f32.mrf.mxu1  ;;  %10908 = vmatmul.mubr.bf16.gmra.mxu1 %v12953_v28  ;;  %10847 = vmatprep.mubr.bf16.mxu0 %v12955_v26 }
 0x17f   : > { %v12967_v40 = vadd.f32 %v10653_v0, %v10589_v21  ;;  %v1914_v46 = vpop.f32.mrf.mxu0  ;;  %10911 = vmatprep.mubr.bf16.mxu1 %v12955_v26  ;;  %10956 = vmatpush3.bf16.msra.mxu0 %v11776_v52 }
 0x180   : > { %v2187_v22 = vpop.f32.mrf.mxu1  ;;  %10957 = vmatprep.subr.bf16.mxu0 %v11779_v44 }
 0x181   : > { %v12970_v2 = vadd.f32 %v2187_v22, %v1914_v46  ;;  %v10590_v20 = vpop.f32.mrf.mxu0 }
 0x182   : > { %v10654_v18 = vpop.f32.mrf.mxu1 }
 0x183   : > { %v12976_v38 = vadd.f32 %v10654_v18, %v10590_v20  ;;  %v1917_v8 = vpop.f32.mrf.mxu0  ;;  %10958 = vmatpush3.bf16.msra.mxu0 %v11779_v44 }
 0x184   : > { %v2190_v21 = vpop.f32.mrf.mxu1 }
 0x185   : > { %v12978_v0 = vadd.f32 %v2190_v21, %v1917_v8  ;;  %v10593_v23 = vpop.f32.mrf.mxu0  ;;  %10848 = vmatmul.mubr.bf16.gmra.mxu0 %v12972_v49  ;;  %v12990_v21 = vld [vmem:[#allocation2 + $0x78] sm:$0xff]  }
 0x186   : > { %v10657_v52 = vpop.f32.mrf.mxu1  ;;  %10912 = vmatmul.mubr.bf16.gmra.mxu1 %v12972_v49  ;;  %10851 = vmatprep.mubr.bf16.mxu0 %v12974_v4 }
 0x187   : > { %v12983_v46 = vadd.f32 %v10657_v52, %v10593_v23  ;;  %v1930_v22 = vpop.f32.mrf.mxu0  ;;  %10915 = vmatprep.mubr.bf16.mxu1 %v12974_v4 }
 0x188   : > { %v2203_v18 = vpop.f32.mrf.mxu1 }
 0x189   : > { %14919 = vst [vmem:[#allocation65_spill] sm:$0xff] %v12983_v46  ;;  %v12986_v20 = vadd.f32 %v2203_v18, %v1930_v22  ;;  %v10594_v44 = vpop.f32.mrf.mxu0 }
 0x18a   : > { %v10658_v8 = vpop.f32.mrf.mxu1 }
 0x18b   : > { %14920 = vst [vmem:[#allocation66_spill] sm:$0xff] %v12986_v20  ;;  %v12992_v16 = vadd.f32 %v10658_v8, %v10594_v44  ;;  %v1933_v34 = vpop.f32.mrf.mxu0 }
 0x18c   : > { %v2206_v33 = vpop.f32.mrf.mxu1 }
 0x18d   : > { %14921 = vst [vmem:[#allocation67_spill] sm:$0xff] %v12992_v16  ;;  %v12994_v14 = vadd.f32 %v2206_v33, %v1933_v34  ;;  %v10597_v23 = vpop.f32.mrf.mxu0  ;;  %10852 = vmatmul.mubr.bf16.gmra.mxu0 %v12988_v11  ;;  %v13006_v34 = vld [vmem:[#allocation2 + $0x88] sm:$0xff]  }
 0x18e   : > { %v10661_v52 = vpop.f32.mrf.mxu1  ;;  %10916 = vmatmul.mubr.bf16.gmra.mxu1 %v12988_v11  ;;  %10855 = vmatprep.mubr.bf16.mxu0 %v12990_v21 }
 0x18f   : > { %14922 = vst [vmem:[#allocation68_spill] sm:$0xff] %v12994_v14  ;;  %v12999_v22 = vadd.f32 %v10661_v52, %v10597_v23  ;;  %v1946_v18 = vpop.f32.mrf.mxu0  ;;  %10919 = vmatprep.mubr.bf16.mxu1 %v12990_v21 }
 0x190   : > { %v2219_v30 = vpop.f32.mrf.mxu1 }
 0x191   : > { %14923 = vst [vmem:[#allocation69_spill] sm:$0xff] %v12999_v22  ;;  %v13002_v44 = vadd.f32 %v2219_v30, %v1946_v18  ;;  %v10598_v8 = vpop.f32.mrf.mxu0 }
 0x192   : > { %v10662_v33 = vpop.f32.mrf.mxu1 }
 0x193   : > { %14924 = vst [vmem:[#allocation70_spill] sm:$0xff] %v13002_v44  ;;  %v13008_v12 = vadd.f32 %v10662_v33, %v10598_v8  ;;  %v1949_v43 = vpop.f32.mrf.mxu0 }
 0x194   : > { %v2222_v31 = vpop.f32.mrf.mxu1 }
 0x195   : > { %14925 = vst [vmem:[#allocation71_spill] sm:$0xff] %v13008_v12  ;;  %v13010_v57 = vadd.f32 %v2222_v31, %v1949_v43  ;;  %v10601_v23 = vpop.f32.mrf.mxu0  ;;  %10856 = vmatmul.mubr.bf16.gmra.mxu0 %v13004_v60  ;;  %v13022_v31 = vld [vmem:[#allocation2 + $0x98] sm:$0xff]  }
 0x196   : > { %v10665_v52 = vpop.f32.mrf.mxu1  ;;  %10920 = vmatmul.mubr.bf16.gmra.mxu1 %v13004_v60  ;;  %10859 = vmatprep.mubr.bf16.mxu0 %v13006_v34 }
 0x197   : > { %14926 = vst [vmem:[#allocation72_spill] sm:$0xff] %v13010_v57  ;;  %v13015_v30 = vadd.f32 %v10665_v52, %v10601_v23  ;;  %v1962_v18 = vpop.f32.mrf.mxu0  ;;  %10923 = vmatprep.mubr.bf16.mxu1 %v13006_v34 }
 0x198   : > { %v2235_v45 = vpop.f32.mrf.mxu1 }
 0x199   : > { %14927 = vst [vmem:[#allocation73_spill] sm:$0xff] %v13015_v30  ;;  %v13018_v8 = vadd.f32 %v2235_v45, %v1962_v18  ;;  %v10602_v33 = vpop.f32.mrf.mxu0 }
 0x19a   : > { %v10666_v43 = vpop.f32.mrf.mxu1 }
 0x19b   : > { %14928 = vst [vmem:[#allocation74_spill] sm:$0xff] %v13018_v8  ;;  %v13024_v57 = vadd.f32 %v10666_v43, %v10602_v33  ;;  %v1965_v12 = vpop.f32.mrf.mxu0 }
 0x19c   : > { %v2238_v44 = vpop.f32.mrf.mxu1 }
 0x19d   : > { %14929 = vst [vmem:[#allocation75_spill] sm:$0xff] %v13024_v57  ;;  %v13026_v22 = vadd.f32 %v2238_v44, %v1965_v12  ;;  %v10605_v23 = vpop.f32.mrf.mxu0  ;;  %10860 = vmatmul.mubr.bf16.gmra.mxu0 %v13020_v42  ;;  %v13036_v57 = vld [vmem:[#allocation2 + $0xa0] sm:$0xff]   ;;  %v13038_v44 = vld [vmem:[#allocation2 + $0xa8] sm:$0xff]  }
 0x19e   : > { %v10669_v52 = vpop.f32.mrf.mxu1  ;;  %10924 = vmatmul.mubr.bf16.gmra.mxu1 %v13020_v42  ;;  %10863 = vmatprep.mubr.bf16.mxu0 %v13022_v31 }
 0x19f   : > { %14930 = vst [vmem:[#allocation76_spill] sm:$0xff] %v13026_v22  ;;  %v13031_v45 = vadd.f32 %v10669_v52, %v10605_v23  ;;  %v1978_v18 = vpop.f32.mrf.mxu0  ;;  %10927 = vmatprep.mubr.bf16.mxu1 %v13022_v31 }
 0x1a0   : > { %v2251_v8 = vpop.f32.mrf.mxu1 }
 0x1a1   : > { %14931 = vst [vmem:[#allocation77_spill] sm:$0xff] %v13031_v45  ;;  %v13034_v33 = vadd.f32 %v2251_v8, %v1978_v18  ;;  %v10606_v43 = vpop.f32.mrf.mxu0 }
 0x1a2   : > { %v10670_v12 = vpop.f32.mrf.mxu1 }
 0x1a3   : > { %14932 = vst [vmem:[#allocation78_spill] sm:$0xff] %v13034_v33  ;;  %v13040_v22 = vadd.f32 %v10670_v12, %v10606_v43  ;;  %v1981_v30 = vpop.f32.mrf.mxu0 }
 0x1a4   : > { %v2254_v56 = vpop.f32.mrf.mxu1 }
 0x1a5   : > { %14933 = vst [vmem:[#allocation79_spill] sm:$0xff] %v13040_v22  ;;  %v13042_v14 = vadd.f32 %v2254_v56, %v1981_v30  ;;  %v10609_v23 = vpop.f32.mrf.mxu0  ;;  %10864 = vmatmul.mubr.bf16.gmra.mxu0 %v13036_v57  ;;  %v13052_v22 = vld [vmem:[#allocation2 + $0xb0] sm:$0xff]   ;;  %v13054_v30 = vld [vmem:[#allocation2 + $0xb8] sm:$0xff]  }
 0x1a6   : > { %v10673_v52 = vpop.f32.mrf.mxu1  ;;  %10928 = vmatmul.mubr.bf16.gmra.mxu1 %v13036_v57  ;;  %10867 = vmatprep.mubr.bf16.mxu0 %v13038_v44 }
 0x1a7   : > { %14934 = vst [vmem:[#allocation80_spill] sm:$0xff] %v13042_v14  ;;  %v13047_v8 = vadd.f32 %v10673_v52, %v10609_v23  ;;  %v1994_v18 = vpop.f32.mrf.mxu0  ;;  %10931 = vmatprep.mubr.bf16.mxu1 %v13038_v44 }
 0x1a8   : > { %v2267_v33 = vpop.f32.mrf.mxu1 }
 0x1a9   : > { %14935 = vst [vmem:[#allocation81_spill] sm:$0xff] %v13047_v8  ;;  %v13050_v43 = vadd.f32 %v2267_v33, %v1994_v18  ;;  %v10610_v12 = vpop.f32.mrf.mxu0 }
 0x1aa   : > { %v10674_v56 = vpop.f32.mrf.mxu1 }
 0x1ab   : > { %14936 = vst [vmem:[#allocation82_spill] sm:$0xff] %v13050_v43  ;;  %v13056_v14 = vadd.f32 %v10674_v56, %v10610_v12  ;;  %v13058_v45 = vpop.f32.mrf.mxu0 }
 0x1ac   : > { %14938 = vst [vmem:[#allocation84_spill] sm:$0xff] %v13058_v45  ;;  %v13060_v16 = vpop.f32.mrf.mxu1  ;;  %v13072_v45 = vld [vmem:[#allocation2 + $0xc8] sm:$0xff]  }
 0x1ad   : > { %14937 = vst [vmem:[#allocation83_spill] sm:$0xff] %v13056_v14  ;;  %14939 = vst [vmem:[#allocation85_spill] sm:$0xff] %v13060_v16  ;;  %v10613_v23 = vpop.f32.mrf.mxu0  ;;  %10868 = vmatmul.mubr.bf16.gmra.mxu0 %v13052_v22  ;;  %v13070_v14 = vld [vmem:[#allocation2 + $0xc0] sm:$0xff]  }
 0x1ae   : > { %v10677_v52 = vpop.f32.mrf.mxu1  ;;  %10932 = vmatmul.mubr.bf16.gmra.mxu1 %v13052_v22  ;;  %10871 = vmatprep.mubr.bf16.mxu0 %v13054_v30 }
 0x1af   : > { %v13065_v33 = vadd.f32 %v10677_v52, %v10613_v23  ;;  %v2010_v18 = vpop.f32.mrf.mxu0  ;;  %10935 = vmatprep.mubr.bf16.mxu1 %v13054_v30 }
 0x1b0   : > { %v2283_v43 = vpop.f32.mrf.mxu1 }
 0x1b1   : > { %14940 = vst [vmem:[#allocation86_spill] sm:$0xff] %v13065_v33  ;;  %v13068_v12 = vadd.f32 %v2283_v43, %v2010_v18  ;;  %v10614_v56 = vpop.f32.mrf.mxu0 }
 0x1b2   : > { %v10678_v16 = vpop.f32.mrf.mxu1 }
 0x1b3   : > { %14941 = vst [vmem:[#allocation87_spill] sm:$0xff] %v13068_v12  ;;  %v13074_v8 = vadd.f32 %v10678_v16, %v10614_v56  ;;  %v13076_v24 = vpop.f32.mrf.mxu0 }
 0x1b4   : > { %14943 = vst [vmem:[#allocation89_spill] sm:$0xff] %v13076_v24  ;;  %v13078_v20 = vpop.f32.mrf.mxu1 }
 0x1b5   : > { %14942 = vst [vmem:[#allocation88_spill] sm:$0xff] %v13074_v8  ;;  %14944 = vst [vmem:[#allocation90_spill] sm:$0xff] %v13078_v20  ;;  %v10617_v23 = vpop.f32.mrf.mxu0  ;;  %10872 = vmatmul.mubr.bf16.gmra.mxu0 %v13070_v14  ;;  %v13088_v8 = vld [vmem:[#allocation2 + $0xd0] sm:$0xff]  }
 0x1b6   : > { %v10681_v52 = vpop.f32.mrf.mxu1  ;;  %10936 = vmatmul.mubr.bf16.gmra.mxu1 %v13070_v14  ;;  %10875 = vmatprep.mubr.bf16.mxu0 %v13072_v45 }
 0x1b7   : > { %v13083_v43 = vadd.f32 %v10681_v52, %v10617_v23  ;;  %v2026_v18 = vpop.f32.mrf.mxu0  ;;  %10939 = vmatprep.mubr.bf16.mxu1 %v13072_v45 }
 0x1b8   : > { %v2299_v12 = vpop.f32.mrf.mxu1 }
 0x1b9   : > { %14945 = vst [vmem:[#allocation91_spill] sm:$0xff] %v13083_v43  ;;  %v13086_v16 = vadd.f32 %v2299_v12, %v2026_v18  ;;  %v10618_v56 = vpop.f32.mrf.mxu0 }
 0x1ba   : > { %v10682_v33 = vpop.f32.mrf.mxu1 }
 0x1bb   : > { %14946 = vst [vmem:[#allocation92_spill] sm:$0xff] %v13086_v16  ;;  %v13090_v20 = vadd.f32 %v10682_v33, %v10618_v56  ;;  %v13092_v24 = vpop.f32.mrf.mxu0 }
 0x1bc   : > { %14948 = vst [vmem:[#allocation94_spill] sm:$0xff] %v13092_v24  ;;  %v13094_v46 = vpop.f32.mrf.mxu1 }
 0x1bd   : > { %14947 = vst [vmem:[#allocation93_spill] sm:$0xff] %v13090_v20  ;;  %14949 = vst [vmem:[#allocation95_spill] sm:$0xff] %v13094_v46  ;;  %v10621_v61 = vpop.f32.mrf.mxu0  ;;  %10876 = vmatmul.mubr.bf16.gmra.mxu0 %v13088_v8 }
 0x1be   : > { %v10685_v23 = vpop.f32.mrf.mxu1  ;;  %10940 = vmatmul.mubr.bf16.gmra.mxu1 %v13088_v8  ;;  %10959 = vmatprep.mubr.bf16.mxu0 %v12880_v47 }
 0x1bf   : > { %v13099_v12 = vadd.f32 %v10685_v23, %v10621_v61  ;;  %v2042_v52 = vpop.f32.mrf.mxu0 }
 0x1c0   : > { %v2315_v18 = vpop.f32.mrf.mxu1 }
 0x1c1   : > { %v13101_v16 = vadd.f32 %v2315_v18, %v2042_v52  ;;  %v10622_v33 = vpop.f32.mrf.mxu0 }
 0x1c2   : > { %v10686_v56 = vpop.f32.mrf.mxu1 }
 0x1c3   : > { %14950 = vst [vmem:[#allocation96_spill] sm:$0xff] %v13101_v16  ;;  %v13103_v20 = vadd.f32 %v10686_v56, %v10622_v33  ;;  %v13105_v24 = vpop.f32.mrf.mxu0 }
 0x1c4   : > { %v13107_v46 = vpop.f32.mrf.mxu1 }
 0x1c5   : > { %14951 = vst [vmem:[#allocation97_spill] sm:$0xff] %v13103_v20  ;;  %14952 = vst [vmem:[#allocation98_spill] sm:$0xff] %v13107_v46  ;;  %v10705_v43 = vpop.f32.mrf.mxu0  ;;  %10960 = vmatmul.mubr.bf16.vlgmr.msra.gmra.mxu0 %v12888_v35 }
 0x1c6   : > { %v10769_v10 = vpop.f32.mrf.mxu1  ;;  %10963 = vmatprep.mubr.bf16.mxu0 %v12890_v59 }
 0x1c7   : > { %v13111_v61 = vadd.f32 %v10769_v10, %v10705_v43  ;;  %v2429_v47 = vpop.f32.mrf.mxu0 }
 0x1c8   : > { %v2702_v23 = vpop.f32.mrf.mxu1 }
 0x1c9   : > { %14953 = vst [vmem:[#allocation99_spill] sm:$0xff] %v13111_v61  ;;  %v13113_v52 = vadd.f32 %v2702_v23, %v2429_v47  ;;  %v10706_v18 = vpop.f32.mrf.mxu0 }
 0x1ca   : > { %v10770_v16 = vpop.f32.mrf.mxu1 }
 0x1cb   : > { %14954 = vst [vmem:[#allocation100_spill] sm:$0xff] %v13113_v52  ;;  %v13115_v33 = vadd.f32 %v10770_v16, %v10706_v18  ;;  %v13117_v56 = vpop.f32.mrf.mxu0 }
 0x1cc   : > { %v13119_v20 = vpop.f32.mrf.mxu1 }
 0x1cd   : > { %14955 = vst [vmem:[#allocation101_spill] sm:$0xff] %v13115_v33  ;;  %v10709_v46 = vpop.f32.mrf.mxu0  ;;  %10964 = vmatmul.mubr.bf16.gmra.mxu0 %v12909_v3 }
 0x1ce   : > { %v10773_v35 = vpop.f32.mrf.mxu1  ;;  %10967 = vmatprep.mubr.bf16.mxu0 %v12911_v25  ;;  %v11782_v25 = vld [vmem:[#allocation4 + $0xf8] sm:$0xff]  }
 0x1cf   : > { %v13123_v10 = vadd.f32 %v10773_v35, %v10709_v46  ;;  %v2445_v59 = vpop.f32.mrf.mxu0  ;;  %11007 = vmatprep.subr.bf16.mxu1 %v11782_v25 }
 0x1d0   : > { %v2718_v43 = vpop.f32.mrf.mxu1  ;;  %11008 = vmatpush3.bf16.msra.mxu1 %v11782_v25 }
 0x1d1   : > { %v13125_v47 = vadd.f32 %v2718_v43, %v2445_v59  ;;  %v10710_v23 = vpop.f32.mrf.mxu0 }
 0x1d2   : > { %v10774_v52 = vpop.f32.mrf.mxu1 }
 0x1d3   : > { %v13127_v16 = vadd.f32 %v10774_v52, %v10710_v23  ;;  %v13129_v18 = vpop.f32.mrf.mxu0 }
 0x1d4   : > { %14957 = vst [vmem:[#allocation103_spill] sm:$0xff] %v13129_v18  ;;  %v13131_v33 = vpop.f32.mrf.mxu1 }
 0x1d5   : > { %14956 = vst [vmem:[#allocation102_spill] sm:$0xff] %v13127_v16  ;;  %14958 = vst [vmem:[#allocation104_spill] sm:$0xff] %v13131_v33  ;;  %v10713_v61 = vpop.f32.mrf.mxu0  ;;  %10968 = vmatmul.mubr.bf16.gmra.mxu0 %v12931_v32 }
 0x1d6   : > { %v10777_v3 = vpop.f32.mrf.mxu1  ;;  %10971 = vmatprep.mubr.bf16.mxu0 %v12933_v63 }
 0x1d7   : > { %v13135_v46 = vadd.f32 %v10777_v3, %v10713_v61  ;;  %v2461_v35 = vpop.f32.mrf.mxu0 }
 0x1d8   : > { %v2734_v59 = vpop.f32.mrf.mxu1 }
 0x1d9   : > { %v13137_v43 = vadd.f32 %v2734_v59, %v2461_v35  ;;  %v10714_v52 = vpop.f32.mrf.mxu0 }
 0x1da   : > { %v10778_v23 = vpop.f32.mrf.mxu1 }
 0x1db   : > { %14959 = vst [vmem:[#allocation105_spill] sm:$0xff] %v13137_v43  ;;  %v13139_v16 = vadd.f32 %v10778_v23, %v10714_v52  ;;  %v13141_v33 = vpop.f32.mrf.mxu0  ;;  %v11783_v52 = vld [vmem:[#allocation4 + $0xf0] sm:$0xff]  }
 0x1dc   : > { %v13143_v18 = vpop.f32.mrf.mxu1  ;;  %11009 = vmatprep.subr.bf16.mxu1 %v11783_v52 }
 0x1dd   : > { %14960 = vst [vmem:[#allocation106_spill] sm:$0xff] %v13139_v16  ;;  %14961 = vst [vmem:[#allocation107_spill] sm:$0xff] %v13143_v18  ;;  %v10717_v32 = vpop.f32.mrf.mxu0  ;;  %10972 = vmatmul.mubr.bf16.gmra.mxu0 %v12953_v28  ;;  %11010 = vmatpush3.bf16.msra.mxu1 %v11783_v52 }
 0x1de   : > { %v10781_v63 = vpop.f32.mrf.mxu1  ;;  %10975 = vmatprep.mubr.bf16.mxu0 %v12955_v26 }
 0x1df   : > { %v13147_v61 = vadd.f32 %v10781_v63, %v10717_v32  ;;  %v2477_v3 = vpop.f32.mrf.mxu0 }
 0x1e0   : > { %v2750_v35 = vpop.f32.mrf.mxu1 }
 0x1e1   : > { %v13149_v59 = vadd.f32 %v2750_v35, %v2477_v3  ;;  %v10718_v25 = vpop.f32.mrf.mxu0 }
 0x1e2   : > { %v10782_v43 = vpop.f32.mrf.mxu1 }
 0x1e3   : > { %14962 = vst [vmem:[#allocation108_spill] sm:$0xff] %v13149_v59  ;;  %v13151_v23 = vadd.f32 %v10782_v43, %v10718_v25  ;;  %v13153_v16 = vpop.f32.mrf.mxu0 }
 0x1e4   : > { %14964 = vst [vmem:[#allocation110_spill] sm:$0xff] %v13153_v16  ;;  %v13155_v18 = vpop.f32.mrf.mxu1 }
 0x1e5   : > { %14963 = vst [vmem:[#allocation109_spill] sm:$0xff] %v13151_v23  ;;  %14965 = vst [vmem:[#allocation111_spill] sm:$0xff] %v13155_v18  ;;  %v10721_v28 = vpop.f32.mrf.mxu0  ;;  %10976 = vmatmul.mubr.bf16.gmra.mxu0 %v12972_v49 }
 0x1e6   : > { %v10785_v26 = vpop.f32.mrf.mxu1  ;;  %10979 = vmatprep.mubr.bf16.mxu0 %v12974_v4  ;;  %v11784_v4 = vld [vmem:[#allocation4 + $0xe8] sm:$0xff]  }
 0x1e7   : > { %v13159_v32 = vadd.f32 %v10785_v26, %v10721_v28  ;;  %v2493_v63 = vpop.f32.mrf.mxu0  ;;  %11011 = vmatprep.subr.bf16.mxu1 %v11784_v4 }
 0x1e8   : > { %v2766_v3 = vpop.f32.mrf.mxu1  ;;  %11012 = vmatpush3.bf16.msra.mxu1 %v11784_v4 }
 0x1e9   : > { %v13161_v35 = vadd.f32 %v2766_v3, %v2493_v63  ;;  %v10722_v43 = vpop.f32.mrf.mxu0 }
 0x1ea   : > { %v10786_v25 = vpop.f32.mrf.mxu1 }
 0x1eb   : > { %14966 = vst [vmem:[#allocation112_spill] sm:$0xff] %v13161_v35  ;;  %v13163_v23 = vadd.f32 %v10786_v25, %v10722_v43  ;;  %v13165_v59 = vpop.f32.mrf.mxu0 }
 0x1ec   : > { %v13167_v18 = vpop.f32.mrf.mxu1 }
 0x1ed   : > { %14967 = vst [vmem:[#allocation113_spill] sm:$0xff] %v13163_v23  ;;  %v10725_v16 = vpop.f32.mrf.mxu0  ;;  %10980 = vmatmul.mubr.bf16.gmra.mxu0 %v12988_v11 }
 0x1ee   : > { %v10789_v49 = vpop.f32.mrf.mxu1  ;;  %10983 = vmatprep.mubr.bf16.mxu0 %v12990_v21 }
 0x1ef   : > { %v13171_v52 = vadd.f32 %v10789_v49, %v10725_v16  ;;  %v2509_v28 = vpop.f32.mrf.mxu0 }
 0x1f0   : > { %v2782_v26 = vpop.f32.mrf.mxu1 }
 0x1f1   : > { %14968 = vst [vmem:[#allocation114_spill] sm:$0xff] %v13171_v52  ;;  %v13173_v63 = vadd.f32 %v2782_v26, %v2509_v28  ;;  %v10726_v3 = vpop.f32.mrf.mxu0 }
 0x1f2   : > { %v10790_v43 = vpop.f32.mrf.mxu1 }
 0x1f3   : > { %14969 = vst [vmem:[#allocation115_spill] sm:$0xff] %v13173_v63  ;;  %v13175_v25 = vadd.f32 %v10790_v43, %v10726_v3  ;;  %v13177_v23 = vpop.f32.mrf.mxu0  ;;  %v11785_v3 = vld [vmem:[#allocation4 + $0xe0] sm:$0xff]  }
 0x1f4   : > { %v13179_v35 = vpop.f32.mrf.mxu1  ;;  %11013 = vmatprep.subr.bf16.mxu1 %v11785_v3 }
 0x1f5   : > { %14970 = vst [vmem:[#allocation116_spill] sm:$0xff] %v13175_v25  ;;  %v10729_v11 = vpop.f32.mrf.mxu0  ;;  %10984 = vmatmul.mubr.bf16.gmra.mxu0 %v13004_v60  ;;  %11014 = vmatpush3.bf16.msra.mxu1 %v11785_v3  ;;  %v11787_v3 = vld [vmem:[#allocation4 + $0x38] sm:$0xff]  }
 0x1f6   : > { %v10793_v21 = vpop.f32.mrf.mxu1  ;;  %10987 = vmatprep.mubr.bf16.mxu0 %v13006_v34  ;;  %11071 = vmatprep.subr.bf16.mxu0 %v11787_v3 }
 0x1f7   : > { %v13183_v16 = vadd.f32 %v10793_v21, %v10729_v11  ;;  %v2525_v49 = vpop.f32.mrf.mxu0  ;;  %11072 = vmatpush3.bf16.msra.mxu0 %v11787_v3 }
 0x1f8   : > { %v2798_v28 = vpop.f32.mrf.mxu1 }
 0x1f9   : > { %14971 = vst [vmem:[#allocation117_spill] sm:$0xff] %v13183_v16  ;;  %v13185_v26 = vadd.f32 %v2798_v28, %v2525_v49  ;;  %v10730_v4 = vpop.f32.mrf.mxu0 }
 0x1fa   : > { %v10794_v63 = vpop.f32.mrf.mxu1 }
 0x1fb   : > { %14972 = vst [vmem:[#allocation118_spill] sm:$0xff] %v13185_v26  ;;  %v13187_v43 = vadd.f32 %v10794_v63, %v10730_v4  ;;  %v13189_v25 = vpop.f32.mrf.mxu0 }
 0x1fc   : > { %v13191_v52 = vpop.f32.mrf.mxu1 }
 0x1fd   : > { %14973 = vst [vmem:[#allocation119_spill] sm:$0xff] %v13187_v43  ;;  %14974 = vst [vmem:[#allocation120_spill] sm:$0xff] %v13191_v52  ;;  %v10733_v60 = vpop.f32.mrf.mxu0  ;;  %10988 = vmatmul.mubr.bf16.gmra.mxu0 %v13020_v42 }
 0x1fe   : > { %v10797_v34 = vpop.f32.mrf.mxu1  ;;  %10991 = vmatprep.mubr.bf16.mxu0 %v13022_v31  ;;  %v11786_v31 = vld [vmem:[#allocation4 + $0xd8] sm:$0xff]  }
 0x1ff   : > { %v13195_v11 = vadd.f32 %v10797_v34, %v10733_v60  ;;  %v2541_v21 = vpop.f32.mrf.mxu0  ;;  %11015 = vmatprep.subr.bf16.mxu1 %v11786_v31 }
 0x200   : > { %v2814_v49 = vpop.f32.mrf.mxu1  ;;  %11016 = vmatpush3.bf16.msra.mxu1 %v11786_v31 }
 0x201   : > { %v13197_v28 = vadd.f32 %v2814_v49, %v2541_v21  ;;  %v10734_v63 = vpop.f32.mrf.mxu0 }
 0x202   : > { %v10798_v4 = vpop.f32.mrf.mxu1 }
 0x203   : > { %14975 = vst [vmem:[#allocation121_spill] sm:$0xff] %v13197_v28  ;;  %v13199_v43 = vadd.f32 %v10798_v4, %v10734_v63  ;;  %v13201_v26 = vpop.f32.mrf.mxu0 }
 0x204   : > { %v13203_v16 = vpop.f32.mrf.mxu1 }
 0x205   : > { %14976 = vst [vmem:[#allocation122_spill] sm:$0xff] %v13199_v43  ;;  %14977 = vst [vmem:[#allocation123_spill] sm:$0xff] %v13203_v16  ;;  %v10737_v52 = vpop.f32.mrf.mxu0  ;;  %10992 = vmatmul.mubr.bf16.gmra.mxu0 %v13036_v57  ;;  %v11789_v43 = vld [vmem:[#allocation4 + $0x30] sm:$0xff]  }
 0x206   : > { %v10801_v42 = vpop.f32.mrf.mxu1  ;;  %10995 = vmatprep.mubr.bf16.mxu0 %v13038_v44  ;;  %11073 = vmatprep.subr.bf16.mxu0 %v11789_v43 }
 0x207   : > { %v13207_v60 = vadd.f32 %v10801_v42, %v10737_v52  ;;  %v2557_v34 = vpop.f32.mrf.mxu0  ;;  %11074 = vmatpush3.bf16.msra.mxu0 %v11789_v43 }
 0x208   : > { %v2830_v21 = vpop.f32.mrf.mxu1 }
 0x209   : > { %14978 = vst [vmem:[#allocation124_spill] sm:$0xff] %v13207_v60  ;;  %v13209_v49 = vadd.f32 %v2830_v21, %v2557_v34  ;;  %v10738_v63 = vpop.f32.mrf.mxu0  ;;  %v11790_v34 = vld [vmem:[#allocation4 + $0x28] sm:$0xff]  }
 0x20a   : > { %v10802_v4 = vpop.f32.mrf.mxu1  ;;  %11075 = vmatprep.subr.bf16.mxu0 %v11790_v34 }
 0x20b   : > { %14979 = vst [vmem:[#allocation125_spill] sm:$0xff] %v13209_v49  ;;  %v13211_v28 = vadd.f32 %v10802_v4, %v10738_v63  ;;  %v13213_v57 = vpop.f32.mrf.mxu0  ;;  %11076 = vmatpush3.bf16.msra.mxu0 %v11790_v34  ;;  %v11791_v49 = vld [vmem:[#allocation4 + $0x20] sm:$0xff]  }
 0x20c   : > { %14981 = vst [vmem:[#allocation127_spill] sm:$0xff] %v13213_v57  ;;  %v13215_v44 = vpop.f32.mrf.mxu1  ;;  %11077 = vmatprep.subr.bf16.mxu0 %v11791_v49 }
 0x20d   : > { %14980 = vst [vmem:[#allocation126_spill] sm:$0xff] %v13211_v28  ;;  %14982 = vst [vmem:[#allocation128_spill] sm:$0xff] %v13215_v44  ;;  %v10741_v52 = vpop.f32.mrf.mxu0  ;;  %10996 = vmatmul.mubr.bf16.gmra.mxu0 %v13052_v22 }
 0x20e   : > { %v10805_v42 = vpop.f32.mrf.mxu1  ;;  %10999 = vmatprep.mubr.bf16.mxu0 %v13054_v30 }
 0x20f   : > { %v13219_v21 = vadd.f32 %v10805_v42, %v10741_v52  ;;  %v2573_v31 = vpop.f32.mrf.mxu0  ;;  %11078 = vmatpush3.bf16.msra.mxu0 %v11791_v49  ;;  %v11793_v52 = vld [vmem:[#allocation4 + $0x18] sm:$0xff]  }
 0x210   : > { %v2846_v3 = vpop.f32.mrf.mxu1  ;;  %11079 = vmatprep.subr.bf16.mxu0 %v11793_v52 }
 0x211   : > { %14983 = vst [vmem:[#allocation129_spill] sm:$0xff] %v13219_v21  ;;  %v13221_v63 = vadd.f32 %v2846_v3, %v2573_v31  ;;  %v10742_v4 = vpop.f32.mrf.mxu0 }
 0x212   : > { %v10806_v28 = vpop.f32.mrf.mxu1 }
 0x213   : > { %14984 = vst [vmem:[#allocation130_spill] sm:$0xff] %v13221_v63  ;;  %v13223_v60 = vadd.f32 %v10806_v28, %v10742_v4  ;;  %v13225_v44 = vpop.f32.mrf.mxu0  ;;  %11080 = vmatpush3.bf16.msra.mxu0 %v11793_v52 }
 0x214   : > { %14986 = vst [vmem:[#allocation132_spill] sm:$0xff] %v13225_v44  ;;  %v13227_v22 = vpop.f32.mrf.mxu1 }
 0x215   : > { %14985 = vst [vmem:[#allocation131_spill] sm:$0xff] %v13223_v60  ;;  %14987 = vst [vmem:[#allocation133_spill] sm:$0xff] %v13227_v22  ;;  %v10745_v30 = vpop.f32.mrf.mxu0  ;;  %11000 = vmatmul.mubr.bf16.gmra.mxu0 %v13070_v14  ;;  %v11794_v14 = vld [vmem:[#allocation4 + $0x10] sm:$0xff]  }
 0x216   : > { %v10809_v43 = vpop.f32.mrf.mxu1  ;;  %11003 = vmatprep.mubr.bf16.mxu0 %v13072_v45  ;;  %11081 = vmatprep.subr.bf16.mxu0 %v11794_v14 }
 0x217   : > { %v13231_v42 = vadd.f32 %v10809_v43, %v10745_v30  ;;  %v2589_v31 = vpop.f32.mrf.mxu0  ;;  %v11788_v30 = vld [vmem:[#allocation4 + $0xd0] sm:$0xff]   ;;  %11082 = vmatpush3.bf16.msra.mxu0 %v11794_v14 }
 0x218   : > { %v2862_v34 = vpop.f32.mrf.mxu1  ;;  %11017 = vmatprep.subr.bf16.mxu1 %v11788_v30 }
 0x219   : > { %14988 = vst [vmem:[#allocation134_spill] sm:$0xff] %v13231_v42  ;;  %v13233_v28 = vadd.f32 %v2862_v34, %v2589_v31  ;;  %v10746_v3 = vpop.f32.mrf.mxu0  ;;  %v11795_v34 = vld [vmem:[#allocation4 + $0x8] sm:$0xff]   ;;  %11018 = vmatpush3.bf16.msra.mxu1 %v11788_v30 }
 0x21a   : > { %v10810_v4 = vpop.f32.mrf.mxu1  ;;  %11083 = vmatprep.subr.bf16.mxu0 %v11795_v34 }
 0x21b   : > { %14989 = vst [vmem:[#allocation135_spill] sm:$0xff] %v13233_v28  ;;  %v13235_v60 = vadd.f32 %v10810_v4, %v10746_v3  ;;  %v13237_v63 = vpop.f32.mrf.mxu0  ;;  %11084 = vmatpush3.bf16.msra.mxu0 %v11795_v34 }
 0x21c   : > { %14991 = vst [vmem:[#allocation137_spill] sm:$0xff] %v13237_v63  ;;  %v13239_v22 = vpop.f32.mrf.mxu1 }
 0x21d   : > { %14990 = vst [vmem:[#allocation136_spill] sm:$0xff] %v13235_v60  ;;  %14992 = vst [vmem:[#allocation138_spill] sm:$0xff] %v13239_v22  ;;  %v10749_v45 = vpop.f32.mrf.mxu0  ;;  %11004 = vmatmul.mubr.bf16.gmra.mxu0 %v13088_v8  ;;  %v11797_v22 = vld [vmem:[#allocation4] sm:$0xff]  }
 0x21e   : > { %v10813_v49 = vpop.f32.mrf.mxu1  ;;  %11085 = vmatprep.subr.bf16.mxu0 %v11797_v22 }
 0x21f   : > { %v13242_v43 = vadd.f32 %v10813_v49, %v10749_v45  ;;  %v2605_v31 = vpop.f32.mrf.mxu0  ;;  %v11792_v49 = vld [vmem:[#allocation4 + $0xc8] sm:$0xff]   ;;  %11086 = vmatpush3.bf16.msra.mxu0 %v11797_v22 }
 0x220   : > { %v2878_v28 = vpop.f32.mrf.mxu1  ;;  %11019 = vmatprep.subr.bf16.mxu1 %v11792_v49 }
 0x221   : > { %14993 = vst [vmem:[#allocation139_spill] sm:$0xff] %v13242_v43  ;;  %v13244_v52 = vadd.f32 %v2878_v28, %v2605_v31  ;;  %v10750_v3 = vpop.f32.mrf.mxu0  ;;  %v11798_v43 = vld [vmem:[#allocation3] sm:$0xff]   ;;  %11020 = vmatpush3.bf16.msra.mxu1 %v11792_v49 }
 0x222   : > { %v10814_v4 = vpop.f32.mrf.mxu1  ;;  %11087 = vmatprep.mubr.bf16.mxu0 %v11798_v43 }
 0x223   : > { %14994 = vst [vmem:[#allocation140_spill] sm:$0xff] %v13244_v52  ;;  %v13246_v60 = vadd.f32 %v10814_v4, %v10750_v3  ;;  %v13248_v8 = vpop.f32.mrf.mxu0 }
 0x224   : > { %14996 = vst [vmem:[#allocation142_spill] sm:$0xff] %v13248_v8  ;;  %v13250_v63 = vpop.f32.mrf.mxu1 }
 0x225   : > { %14995 = vst [vmem:[#allocation141_spill] sm:$0xff] %v13246_v60  ;;  %14997 = vst [vmem:[#allocation143_spill] sm:$0xff] %v13250_v63  ;;  %v10833_v14 = vpop.f32.mrf.mxu0  ;;  %v11796_v63 = vld [vmem:[#allocation4 + $0xc0] sm:$0xff]  }
 0x226   : > { %v10897_v45 = vpop.f32.mrf.mxu1  ;;  %11021 = vmatprep.subr.bf16.mxu1 %v11796_v63 }
 0x227   : > { %v3185_v28 = vpop.f32.mrf.mxu0  ;;  %v3684_v60 = vadd.f32 %v10897_v45, %v12900_v15  ;;  %11022 = vmatpush3.bf16.msra.mxu1 %v11796_v63 }
 0x228   : > { %v3360_v31 = vadd.f32 %v3185_v28, %v12781_v54  ;;  %v3491_v30 = vpop.f32.mrf.mxu1 }
 0x229   : > { %v10834_v34 = vpop.f32.mrf.mxu0  ;;  %v3682_v14 = vadd.f32 %v3491_v30, %v12907_v1  ;;  %v4120_v49 = vrot.slane %v3684_v60, 1 }
 0x22a   : > { %v3362_v3 = vadd.f32 %v10834_v34, %v12786_v29  ;;  %v10898_v4 = vpop.f32.mrf.mxu1 }
 0x22b   : > { %v3188_v52 = vpop.f32.mrf.mxu0  ;;  %v4117_v28 = vrot.slane %v3682_v14, 1  ;;  %v3685_v29 = vadd.f32 %v10898_v4, %v12913_v17 }
 0x22c   : > { %v3494_v8 = vpop.f32.mrf.mxu1  ;;  %v3361_v1 = vadd.f32 %v3188_v52, %v12791_v7 }
 0x22d   : > { %v3683_v22 = vadd.f32 %v3494_v8, %v12918_v39  ;;  %v10837_v42 = vpop.f32.mrf.mxu0  ;;  %v4122_v7 = vrot.slane %v3685_v29, 1 }
 0x22e   : > { %v3364_v54 = vadd.f32 %v10837_v42, %v12796_v58  ;;  %v10901_v43 = vpop.f32.mrf.mxu1 }
 0x22f   : > { %v4118_v34 = vrot.slane %v3683_v22, 1  ;;  %v3200_v15 = vpop.f32.mrf.mxu0  ;;  %v3688_v44 = vadd.f32 %v10901_v43, %v12923_v13 }
 0x230   : > { %v3363_v45 = vadd.f32 %v3200_v15, %v12801_v37  ;;  %v3507_v30 = vpop.f32.mrf.mxu1 }
 0x231   : > { %v4119_v39 = vsel %vm4116_vm2, %v4117_v28, %v4118_v34  ;;  %v4121_v8 = vsel %vm4116_vm2, %v4118_v34, %v4120_v49  ;;  %v3686_v58 = vadd.f32 %v3507_v30, %v12929_v36  ;;  %v10838_v63 = vpop.f32.mrf.mxu0  ;;  %v4127_v28 = vrot.slane %v3688_v44, 1 }
 0x232   : > { %v13265_v60 = vadd.f32 %v4119_v39, %v3360_v31  ;;  %v13267_v42 = vadd.f32 %v4121_v8, %v3361_v1  ;;  %v3365_v17 = vadd.f32 %v10838_v63, %v12806_v55  ;;  %v10902_v4 = vpop.f32.mrf.mxu1 }
 0x233   : > { %v4123_v52 = vrot.slane %v3686_v58, 1  ;;  %v3689_v37 = vadd.f32 %v10902_v4, %v12935_v51  ;;  %v3203_v14 = vpop.f32.mrf.mxu0 }
 0x234   : > { %v3510_v22 = vpop.f32.mrf.mxu1 }
 0x235   : > { %v4124_v49 = vsel %vm4116_vm2, %v4122_v7, %v4123_v52  ;;  %v4128_v13 = vrot.slane %v3689_v37, 1  ;;  %v3687_v36 = vadd.f32 %v3510_v22, %v12940_v53  ;;  %v10841_v43 = vpop.f32.mrf.mxu0 }
 0x236   : > { %v13273_v31 = vadd.f32 %v4124_v49, %v3362_v3  ;;  %v3367_v34 = vadd.f32 %v10841_v43, %v12814_v41  ;;  %v10905_v15 = vpop.f32.mrf.mxu1 }
 0x237   : > { %v4129_v55 = vsel %vm4116_vm2, %v4127_v28, %v4128_v13  ;;  %v4125_v29 = vrot.slane %v3687_v36, 1  ;;  %v3215_v1 = vpop.f32.mrf.mxu0  ;;  %v3692_v39 = vadd.f32 %v10905_v15, %v12945_v50 }
 0x238   : > { %v13277_v30 = vadd.f32 %v4129_v55, %v3364_v54  ;;  %v3523_v51 = vpop.f32.mrf.mxu1 }
 0x239   : > { %v4126_v44 = vsel %vm4116_vm2, %v4123_v52, %v4125_v29  ;;  %v3690_v8 = vadd.f32 %v3523_v51, %v12951_v62  ;;  %v10842_v53 = vpop.f32.mrf.mxu0  ;;  %v4133_v37 = vrot.slane %v3692_v39, 1  ;;  %v13300_v39 = vld [vmem:[#allocation4 + $0x138] sm:$0xff]  }
 0x23a   : > { %v13282_v58 = vadd.f32 %v4126_v44, %v3363_v45  ;;  %v10906_v3 = vpop.f32.mrf.mxu1  ;;  %11135 = vmatprep.subr.bf16.mxu1 %v13300_v39 }
 0x23b   : > { %v4130_v63 = vrot.slane %v3690_v8, 1  ;;  %v3693_v41 = vadd.f32 %v10906_v3, %v12957_v27  ;;  %v3217_v4 = vpop.f32.mrf.mxu0 }
 0x23c   : > { %v3526_v7 = vpop.f32.mrf.mxu1  ;;  %v3366_v27 = vadd.f32 %v3217_v4, %v12825_v48  ;;  %v14998_v4 = vld [vmem:[#allocation44_spill] sm:$0xff] }
 0x23d   : > { %v4131_v54 = vsel %vm4116_vm2, %v4128_v13, %v4130_v63  ;;  %v4135_v14 = vrot.slane %v3693_v41, 1  ;;  %v3691_v22 = vadd.f32 %v3526_v7, %v12962_v19  ;;  %v10845_v52 = vpop.f32.mrf.mxu0  ;;  %v14999_v7 = vld [vmem:[#allocation45_spill] sm:$0xff] }
 0x23e   : > { %v13287_v28 = vadd.f32 %v4131_v54, %v3365_v17  ;;  %v10909_v50 = vpop.f32.mrf.mxu1  ;;  %v15001_v52 = vld [vmem:[#allocation66_spill] sm:$0xff] }
 0x23f   : > { %v4136_v62 = vsel %vm4116_vm2, %v4133_v37, %v4135_v14  ;;  %v4132_v45 = vrot.slane %v3691_v22, 1  ;;  %v3229_v49 = vpop.f32.mrf.mxu0  ;;  %v3696_v1 = vadd.f32 %v10909_v50, %v12967_v40  ;;  %v15000_v22 = vld [vmem:[#allocation65_spill] sm:$0xff] }
 0x240   : > { %v13290_v36 = vadd.f32 %v4136_v62, %v3367_v34  ;;  %v3368_v43 = vadd.f32 %v3229_v49, %v12835_v9  ;;  %v3539_v15 = vpop.f32.mrf.mxu1 }
 0x241   : > { %v4134_v13 = vsel %vm4116_vm2, %v4132_v45, %v4133_v37  ;;  %v10846_v55 = vpop.f32.mrf.mxu0  ;;  %v3694_v51 = vadd.f32 %v3539_v15, %v12970_v2  ;;  %v4140_v3 = vrot.slane %v3696_v1, 1 }
 0x242   : > { %v13295_v29 = vadd.f32 %v4134_v13, %v3366_v27  ;;  %v3370_v19 = vadd.f32 %v10846_v55, %v12837_v5  ;;  %v10910_v17 = vpop.f32.mrf.mxu1 }
 0x243   : > { %v3232_v44 = vpop.f32.mrf.mxu0  ;;  %v4137_v63 = vrot.slane %v3694_v51, 1  ;;  %v3697_v5 = vadd.f32 %v10910_v17, %v12976_v38  ;;  %v15002_v38 = vld [vmem:[#allocation46_spill] sm:$0xff]  ;;  %v15003_v17 = vld [vmem:[#allocation67_spill] sm:$0xff] }
 0x244   : > { %v3542_v34 = vpop.f32.mrf.mxu1  ;;  %v3369_v2 = vadd.f32 %v3232_v44, %v14998_v4 }
 0x245   : > { %v3695_v48 = vadd.f32 %v3542_v34, %v12978_v0  ;;  %v10849_v9 = vpop.f32.mrf.mxu0  ;;  %v4142_v13 = vrot.slane %v3697_v5, 1 }
 0x246   : > { %v3372_v8 = vadd.f32 %v10849_v9, %v12842_v6  ;;  %v10913_v53 = vpop.f32.mrf.mxu1 }
 0x247   : > { %v4138_v41 = vrot.slane %v3695_v48, 1  ;;  %v3244_v40 = vpop.f32.mrf.mxu0  ;;  %v3700_v6 = vadd.f32 %v10913_v53, %v15000_v22  ;;  %v15004_v53 = vld [vmem:[#allocation68_spill] sm:$0xff]  ;;  %v15006_v22 = vld [vmem:[#allocation69_spill] sm:$0xff] }
 0x248   : > { %v3371_v37 = vadd.f32 %v3244_v40, %v14999_v7  ;;  %v3555_v54 = vpop.f32.mrf.mxu1 }
 0x249   : > { %v4139_v14 = vsel %vm4116_vm2, %v4137_v63, %v4138_v41  ;;  %v4141_v0 = vsel %vm4116_vm2, %v4138_v41, %v4140_v3  ;;  %v3698_v50 = vadd.f32 %v3555_v54, %v15001_v52  ;;  %v10850_v62 = vpop.f32.mrf.mxu0  ;;  %v4147_v34 = vrot.slane %v3700_v6, 1  ;;  %v15005_v41 = vld [vmem:[#allocation47_spill] sm:$0xff]  ;;  %v15007_v52 = vld [vmem:[#allocation70_spill] sm:$0xff] }
 0x24a   : > { %v13312_v45 = vadd.f32 %v4139_v14, %v3368_v43  ;;  %v13314_v49 = vadd.f32 %v4141_v0, %v3369_v2  ;;  %v3373_v27 = vadd.f32 %v10850_v62, %v15002_v38  ;;  %v10914_v15 = vpop.f32.mrf.mxu1 }
 0x24b   : > { %v4143_v55 = vrot.slane %v3698_v50, 1  ;;  %v3701_v1 = vadd.f32 %v10914_v15, %v15003_v17  ;;  %v3247_v51 = vpop.f32.mrf.mxu0 }
 0x24c   : > { %v3558_v44 = vpop.f32.mrf.mxu1 }
 0x24d   : > { %v4144_v48 = vsel %vm4116_vm2, %v4142_v13, %v4143_v55  ;;  %v4148_v9 = vrot.slane %v3701_v1, 1  ;;  %v3699_v3 = vadd.f32 %v3558_v44, %v15004_v53  ;;  %v10853_v63 = vpop.f32.mrf.mxu0  ;;  %v15008_v13 = vld [vmem:[#allocation71_spill] sm:$0xff] }
 0x24e   : > { %v13320_v43 = vadd.f32 %v4144_v48, %v3370_v19  ;;  %v3375_v40 = vadd.f32 %v10853_v63, %v15005_v41  ;;  %v10917_v4 = vpop.f32.mrf.mxu1  ;;  %v15009_v48 = vld [vmem:[#allocation72_spill] sm:$0xff] }
 0x24f   : > { %v4149_v2 = vsel %vm4116_vm2, %v4147_v34, %v4148_v9  ;;  %v4145_v5 = vrot.slane %v3699_v3, 1  ;;  %v3259_v7 = vpop.f32.mrf.mxu0  ;;  %v3704_v6 = vadd.f32 %v10917_v4, %v15006_v22 }
 0x250   : > { %v13324_v54 = vadd.f32 %v4149_v2, %v3372_v8  ;;  %v3571_v14 = vpop.f32.mrf.mxu1 }
 0x251   : > { %v4146_v0 = vsel %vm4116_vm2, %v4143_v55, %v4145_v5  ;;  %v3702_v50 = vadd.f32 %v3571_v14, %v15007_v52  ;;  %v10854_v62 = vpop.f32.mrf.mxu0  ;;  %v4153_v44 = vrot.slane %v3704_v6, 1  ;;  %v15010_v5 = vld [vmem:[#allocation48_spill] sm:$0xff]  ;;  %v15011_v14 = vld [vmem:[#allocation49_spill] sm:$0xff] }
 0x252   : > { %v13329_v38 = vadd.f32 %v4146_v0, %v3371_v37  ;;  %v10918_v19 = vpop.f32.mrf.mxu1 }
 0x253   : > { %v4150_v15 = vrot.slane %v3702_v50, 1  ;;  %v3705_v17 = vadd.f32 %v10918_v19, %v15008_v13  ;;  %v3261_v1 = vpop.f32.mrf.mxu0  ;;  %v15012_v50 = vld [vmem:[#allocation50_spill] sm:$0xff]  ;;  %v15013_v19 = vld [vmem:[#allocation73_spill] sm:$0xff] }
 0x254   : > { %v3574_v51 = vpop.f32.mrf.mxu1  ;;  %v3374_v7 = vadd.f32 %v3261_v1, %v15010_v5  ;;  %v15014_v13 = vld [vmem:[#allocation74_spill] sm:$0xff] }
 0x255   : > { %v4151_v8 = vsel %vm4116_vm2, %v4148_v9, %v4150_v15  ;;  %v4155_v34 = vrot.slane %v3705_v17, 1  ;;  %v3703_v53 = vadd.f32 %v3574_v51, %v15009_v48  ;;  %v10857_v55 = vpop.f32.mrf.mxu0  ;;  %v15016_v48 = vld [vmem:[#allocation52_spill] sm:$0xff] }
 0x256   : > { %v13334_v3 = vadd.f32 %v4151_v8, %v3373_v27  ;;  %v10921_v63 = vpop.f32.mrf.mxu1  ;;  %v15015_v8 = vld [vmem:[#allocation76_spill] sm:$0xff] }
 0x257   : > { %v4156_v41 = vsel %vm4116_vm2, %v4153_v44, %v4155_v34  ;;  %v4152_v37 = vrot.slane %v3703_v53, 1  ;;  %v3273_v4 = vpop.f32.mrf.mxu0  ;;  %v3708_v15 = vadd.f32 %v10921_v63, %v15013_v19 }
 0x258   : > { %v13337_v2 = vadd.f32 %v4156_v41, %v3375_v40  ;;  %v3376_v0 = vadd.f32 %v3273_v4, %v15011_v14  ;;  %v3587_v22 = vpop.f32.mrf.mxu1  ;;  %v15018_v14 = vld [vmem:[#allocation51_spill] sm:$0xff] }
 0x259   : > { %v4154_v9 = vsel %vm4116_vm2, %v4152_v37, %v4153_v44  ;;  %v10858_v6 = vpop.f32.mrf.mxu0  ;;  %v3706_v17 = vadd.f32 %v3587_v22, %v15014_v13  ;;  %v4160_v41 = vrot.slane %v3708_v15, 1  ;;  %v15017_v37 = vld [vmem:[#allocation75_spill] sm:$0xff]  ;;  %v15020_v13 = vld [vmem:[#allocation77_spill] sm:$0xff] }
 0x25a   : > { %v13342_v52 = vadd.f32 %v4154_v9, %v3374_v7  ;;  %v3378_v27 = vadd.f32 %v10858_v6, %v15012_v50  ;;  %v10922_v62 = vpop.f32.mrf.mxu1  ;;  %v15019_v6 = vld [vmem:[#allocation53_spill] sm:$0xff] }
 0x25b   : > { %v3276_v51 = vpop.f32.mrf.mxu0  ;;  %v4157_v44 = vrot.slane %v3706_v17, 1  ;;  %v3709_v4 = vadd.f32 %v10922_v62, %v15017_v37  ;;  %v15024_v62 = vld [vmem:[#allocation54_spill] sm:$0xff] }
 0x25c   : > { %v3590_v40 = vpop.f32.mrf.mxu1  ;;  %v3377_v9 = vadd.f32 %v3276_v51, %v15018_v14 }
 0x25d   : > { %v3707_v34 = vadd.f32 %v3590_v40, %v15015_v8  ;;  %v10861_v1 = vpop.f32.mrf.mxu0  ;;  %v15021_v8 = vld [vmem:[#allocation78_spill] sm:$0xff]  ;;  %v4162_v51 = vrot.slane %v3709_v4, 1 }
 0x25e   : > { %v3380_v53 = vadd.f32 %v10861_v1, %v15016_v48  ;;  %v10925_v55 = vpop.f32.mrf.mxu1 }
 0x25f   : > { %v4158_v5 = vrot.slane %v3707_v34, 1  ;;  %v3288_v7 = vpop.f32.mrf.mxu0  ;;  %v3712_v40 = vadd.f32 %v10925_v55, %v15020_v13 }
 0x260   : > { %v3379_v63 = vadd.f32 %v3288_v7, %v15019_v6  ;;  %v3603_v50 = vpop.f32.mrf.mxu1  ;;  %v15025_v7 = vld [vmem:[#allocation79_spill] sm:$0xff] }
 0x261   : > { %v4159_v22 = vsel %vm4116_vm2, %v4157_v44, %v4158_v5  ;;  %v4161_v19 = vsel %vm4116_vm2, %v4158_v5, %v4160_v41  ;;  %v3710_v1 = vadd.f32 %v3603_v50, %v15021_v8  ;;  %v10862_v48 = vpop.f32.mrf.mxu0  ;;  %v4167_v57 = vrot.slane %v3712_v40, 1  ;;  %v15026_v5 = vld [vmem:[#allocation80_spill] sm:$0xff] }
 0x262   : > { %v13356_v15 = vadd.f32 %v4159_v22, %v3376_v0  ;;  %v13358_v17 = vadd.f32 %v4161_v19, %v3377_v9  ;;  %v3381_v34 = vadd.f32 %v10862_v48, %v15024_v62  ;;  %v10926_v37 = vpop.f32.mrf.mxu1  ;;  %v15028_v9 = vld [vmem:[#allocation55_spill] sm:$0xff]  ;;  %v15030_v62 = vld [vmem:[#allocation81_spill] sm:$0xff] }
 0x263   : > { %v4163_v14 = vrot.slane %v3710_v1, 1  ;;  %v3713_v6 = vadd.f32 %v10926_v37, %v15025_v7  ;;  %v3291_v21 = vpop.f32.mrf.mxu0 }
 0x264   : > { %15022 = vst [vmem:[#allocation44_spill] sm:$0xff] %v13356_v15  ;;  %15023 = vst [vmem:[#allocation45_spill] sm:$0xff] %v13358_v17  ;;  %v3606_v44 = vpop.f32.mrf.mxu1 }
 0x265   : > { %v4164_v41 = vsel %vm4116_vm2, %v4162_v51, %v4163_v14  ;;  %v4168_v55 = vrot.slane %v3713_v6, 1  ;;  %v3711_v50 = vadd.f32 %v3606_v44, %v15026_v5  ;;  %v10865_v13 = vpop.f32.mrf.mxu0  ;;  %v15031_v51 = vld [vmem:[#allocation82_spill] sm:$0xff]  ;;  %v15034_v5 = vld [vmem:[#allocation85_spill] sm:$0xff] }
 0x266   : > { %v13364_v0 = vadd.f32 %v4164_v41, %v3378_v27  ;;  %v3383_v22 = vadd.f32 %v10865_v13, %v15028_v9  ;;  %v10929_v19 = vpop.f32.mrf.mxu1  ;;  %v15033_v41 = vld [vmem:[#allocation84_spill] sm:$0xff] }
 0x267   : > { %v4169_v8 = vsel %vm4116_vm2, %v4167_v57, %v4168_v55  ;;  %v4165_v4 = vrot.slane %v3711_v50, 1  ;;  %v3303_v1 = vpop.f32.mrf.mxu0  ;;  %v3716_v37 = vadd.f32 %v10929_v19, %v15030_v62  ;;  %v2271_v13 = vadd.f32 %v15034_v5, %v15033_v41  ;;  %v15035_v57 = vld [vmem:[#allocation83_spill] sm:$0xff]  ;;  %v15039_v5 = vld [vmem:[#allocation57_spill] sm:$0xff] }
 0x268   : > { %15027 = vst [vmem:[#allocation65_spill] sm:$0xff] %v13364_v0  ;;  %v13368_v48 = vadd.f32 %v4169_v8, %v3380_v53  ;;  %v3619_v21 = vpop.f32.mrf.mxu1  ;;  %v13378_v53 = vld [vmem:[#allocation4 + $0x78] sm:$0xff]   ;;  %v15048_v0 = vld [vmem:[#allocation59_spill] sm:$0xff] }
 0x269   : > { %v4166_v40 = vsel %vm4116_vm2, %v4163_v14, %v4165_v4  ;;  %v3714_v7 = vadd.f32 %v3619_v21, %v15031_v51  ;;  %v10866_v6 = vpop.f32.mrf.mxu0  ;;  %11199 = vmatprep.subr.bf16.mxu0 %v13378_v53 }
 0x26a   : > { %15029 = vst [vmem:[#allocation66_spill] sm:$0xff] %v13368_v48  ;;  %v13373_v44 = vadd.f32 %v4166_v40, %v3379_v63  ;;  %v10930_v27 = vpop.f32.mrf.mxu1  ;;  %v4173_v48 = vrot.slane %v3716_v37, 1 }
 0x26b   : > { %v4170_v9 = vrot.slane %v3714_v7, 1  ;;  %v3717_v50 = vadd.f32 %v10930_v27, %v15035_v57  ;;  %v3305_v1 = vpop.f32.mrf.mxu0  ;;  %v15038_v27 = vld [vmem:[#allocation56_spill] sm:$0xff] }
 0x26c   : > { %15032 = vst [vmem:[#allocation46_spill] sm:$0xff] %v13373_v44  ;;  %v3622_v8 = vpop.f32.mrf.mxu1  ;;  %v3382_v41 = vadd.f32 %v3305_v1, %v15038_v27 }
 0x26d   : > { %v4171_v14 = vsel %vm4116_vm2, %v4168_v55, %v4170_v9  ;;  %v4175_v19 = vrot.slane %v3717_v50, 1  ;;  %v3715_v4 = vadd.f32 %v3622_v8, %v2271_v13  ;;  %v10869_v21 = vpop.f32.mrf.mxu0  ;;  %v15041_v50 = vld [vmem:[#allocation58_spill] sm:$0xff] }
 0x26e   : > { %v13382_v63 = vadd.f32 %v4171_v14, %v3381_v34  ;;  %v10933_v40 = vpop.f32.mrf.mxu1  ;;  %v15042_v14 = vld [vmem:[#allocation89_spill] sm:$0xff]  ;;  %v15043_v21 = vld [vmem:[#allocation90_spill] sm:$0xff] }
 0x26f   : > { %v4176_v62 = vsel %vm4116_vm2, %v4173_v48, %v4175_v19  ;;  %v4172_v51 = vrot.slane %v3715_v4, 1  ;;  %v3317_v7 = vpop.f32.mrf.mxu0  ;;  %v2287_v19 = vadd.f32 %v15043_v21, %v15042_v14  ;;  %v15044_v4 = vld [vmem:[#allocation86_spill] sm:$0xff]  ;;  %v15049_v14 = vld [vmem:[#allocation61_spill] sm:$0xff] }
 0x270   : > { %15036 = vst [vmem:[#allocation67_spill] sm:$0xff] %v13382_v63  ;;  %v13385_v6 = vadd.f32 %v4176_v62, %v3383_v22  ;;  %v3384_v37 = vadd.f32 %v3317_v7, %v15039_v5  ;;  %v3635_v57 = vpop.f32.mrf.mxu1  ;;  %v3720_v63 = vadd.f32 %v10933_v40, %v15044_v4  ;;  %v15045_v22 = vld [vmem:[#allocation87_spill] sm:$0xff]  ;;  %v15046_v5 = vld [vmem:[#allocation60_spill] sm:$0xff] }
 0x271   : > { %v4174_v55 = vsel %vm4116_vm2, %v4172_v51, %v4173_v48  ;;  %v10870_v13 = vpop.f32.mrf.mxu0  ;;  %v3718_v62 = vadd.f32 %v3635_v57, %v15045_v22 }
 0x272   : > { %15037 = vst [vmem:[#allocation68_spill] sm:$0xff] %v13385_v6  ;;  %v13390_v9 = vadd.f32 %v4174_v55, %v3382_v41  ;;  %v3386_v34 = vadd.f32 %v10870_v13, %v15041_v50  ;;  %v10934_v8 = vpop.f32.mrf.mxu1  ;;  %v4180_v51 = vrot.slane %v3720_v63, 1  ;;  %v15047_v55 = vld [vmem:[#allocation88_spill] sm:$0xff] }
 0x273   : > { %v3320_v6 = vpop.f32.mrf.mxu0  ;;  %v4177_v41 = vrot.slane %v3718_v62, 1 }
 0x274   : > { %15040 = vst [vmem:[#allocation47_spill] sm:$0xff] %v13390_v9  ;;  %v3638_v1 = vpop.f32.mrf.mxu1  ;;  %v3721_v9 = vadd.f32 %v10934_v8, %v15047_v55  ;;  %v3385_v17 = vadd.f32 %v3320_v6, %v15048_v0  ;;  %v15052_v8 = vld [vmem:[#allocation62_spill] sm:$0xff]  ;;  %v15054_v6 = vld [vmem:[#allocation95_spill] sm:$0xff] }
 0x275   : > { %v3719_v27 = vadd.f32 %v3638_v1, %v2287_v19  ;;  %v10873_v7 = vpop.f32.mrf.mxu0  ;;  %v15050_v19 = vld [vmem:[#allocation91_spill] sm:$0xff]  ;;  %v15051_v1 = vld [vmem:[#allocation92_spill] sm:$0xff]  ;;  %v15053_v0 = vld [vmem:[#allocation94_spill] sm:$0xff] }
 0x276   : > { %v3388_v44 = vadd.f32 %v10873_v7, %v15046_v5  ;;  %v10937_v48 = vpop.f32.mrf.mxu1 }
 0x277   : > { %v4178_v13 = vrot.slane %v3719_v27, 1  ;;  %v3332_v50 = vpop.f32.mrf.mxu0  ;;  %v3724_v22 = vadd.f32 %v10937_v48, %v15050_v19 }
 0x278   : > { %v3387_v21 = vadd.f32 %v3332_v50, %v15049_v14  ;;  %v3651_v40 = vpop.f32.mrf.mxu1  ;;  %v2303_v50 = vadd.f32 %v15054_v6, %v15053_v0  ;;  %v4182_v14 = vrot.slane %v3721_v9, 1 }
 0x279   : > { %v4179_v57 = vsel %vm4116_vm2, %v4177_v41, %v4178_v13  ;;  %v4181_v4 = vsel %vm4116_vm2, %v4178_v13, %v4180_v51  ;;  %v3722_v7 = vadd.f32 %v3651_v40, %v15051_v1  ;;  %v10874_v5 = vpop.f32.mrf.mxu0  ;;  %v15055_v41 = vld [vmem:[#allocation93_spill] sm:$0xff]  ;;  %v4187_v48 = vrot.slane %v3724_v22, 1 }
 0x27a   : > { %v13405_v63 = vadd.f32 %v4179_v57, %v3384_v37  ;;  %v13407_v62 = vadd.f32 %v4181_v4, %v3385_v17  ;;  %v3389_v27 = vadd.f32 %v10874_v5, %v15052_v8  ;;  %v10938_v55 = vpop.f32.mrf.mxu1  ;;  %v15056_v4 = vld [vmem:[#allocation63_spill] sm:$0xff] }
 0x27b   : > { %v4183_v15 = vrot.slane %v3722_v7, 1  ;;  %v3725_v16 = vadd.f32 %v10938_v55, %v15055_v41  ;;  %v3335_v51 = vpop.f32.mrf.mxu0 }
 0x27c   : > { %v3654_v13 = vpop.f32.mrf.mxu1  ;;  %v15058_v51 = vld [vmem:[#allocation98_spill] sm:$0xff] }
 0x27d   : > { %v4184_v40 = vsel %vm4116_vm2, %v4182_v14, %v4183_v15  ;;  %v4188_v19 = vrot.slane %v3725_v16, 1  ;;  %v3723_v37 = vadd.f32 %v3654_v13, %v2303_v50  ;;  %v10877_v57 = vpop.f32.mrf.mxu0  ;;  %v15057_v14 = vld [vmem:[#allocation96_spill] sm:$0xff]  ;;  %v2319_v13 = vadd.f32 %v15058_v51, %v13105_v24 }
 0x27e   : > { %v13414_v17 = vadd.f32 %v4184_v40, %v3386_v34  ;;  %v3391_v1 = vadd.f32 %v10877_v57, %v15056_v4  ;;  %v10941_v5 = vpop.f32.mrf.mxu1  ;;  %v15060_v24 = vld [vmem:[#allocation64_spill] sm:$0xff] }
 0x27f   : > { %v4189_v8 = vsel %vm4116_vm2, %v4187_v48, %v4188_v19  ;;  %v4185_v0 = vrot.slane %v3723_v37, 1  ;;  %v3347_v9 = vpop.f32.mrf.mxu0  ;;  %v3728_v22 = vadd.f32 %v10941_v5, %v13099_v12  ;;  %v15059_v48 = vld [vmem:[#allocation97_spill] sm:$0xff] }
 0x280   : > { %v13418_v7 = vadd.f32 %v4189_v8, %v3388_v44  ;;  %v3667_v55 = vpop.f32.mrf.mxu1 }
 0x281   : > { %v4186_v6 = vsel %vm4116_vm2, %v4183_v15, %v4185_v0  ;;  %v3726_v16 = vadd.f32 %v3667_v55, %v15057_v14  ;;  %v10878_v50 = vpop.f32.mrf.mxu0  ;;  %v4193_v4 = vrot.slane %v3728_v22, 1  ;;  %v2706_v22 = vadd.f32 %v13119_v20, %v13117_v56  ;;  %v13448_v56 = vld [vmem:[%s14822_s3] ss:$0 sm:$0xff] }
 0x282   : > { %v13423_v41 = vadd.f32 %v4186_v6, %v3387_v21  ;;  %v10942_v34 = vpop.f32.mrf.mxu1 }
 0x283   : > { %v4190_v40 = vrot.slane %v3726_v16, 1  ;;  %v3729_v37 = vadd.f32 %v10942_v34, %v15059_v48  ;;  %v3349_v57 = vpop.f32.mrf.mxu0  ;;  %v15061_v34 = vld [vmem:[#allocation99_spill] sm:$0xff] }
 0x284   : > { %v3670_v44 = vpop.f32.mrf.mxu1  ;;  %v3390_v14 = vadd.f32 %v3349_v57, %v15060_v24 }
 0x285   : > { %v4191_v8 = vsel %vm4116_vm2, %v4188_v19, %v4190_v40  ;;  %v4195_v15 = vrot.slane %v3729_v37, 1  ;;  %v3727_v0 = vadd.f32 %v3670_v44, %v2319_v13  ;;  %v10961_v12 = vpop.f32.mrf.mxu0 }
 0x286   : > { %v13429_v5 = vadd.f32 %v4191_v8, %v3389_v27  ;;  %v4022_v51 = vadd.f32 %v10961_v12, %v15061_v34  ;;  %v15062_v27 = vld [vmem:[#allocation100_spill] sm:$0xff]  ;;  %v15063_v8 = vld [vmem:[#allocation101_spill] sm:$0xff] }
 0x287   : > { %v4196_v21 = vsel %vm4116_vm2, %v4193_v4, %v4195_v15  ;;  %v4192_v9 = vrot.slane %v3727_v0, 1  ;;  %v3829_v55 = vpop.f32.mrf.mxu0  ;;  %v13459_v34 = vld [vmem:[%s14823_s4] ss:$0 sm:$0xff] }
 0x288   : > { %v13432_v6 = vadd.f32 %v4196_v21, %v3391_v1  ;;  %v4020_v13 = vadd.f32 %v3829_v55, %v15062_v27  ;;  %v4313_v1 = vrot.slane %v4022_v51, 2  ;;  %v15066_v27 = vld [vmem:[#allocation102_spill] sm:$0xff] }
 0x289   : > { %v4194_v16 = vsel %vm4116_vm2, %v4192_v9, %v4193_v4  ;;  %v10962_v50 = vpop.f32.mrf.mxu0 }
 0x28a   : > { %v13438_v19 = vadd.f32 %v4194_v16, %v3390_v14  ;;  %v4310_v44 = vrot.slane %v4020_v13, 2  ;;  %v4023_v57 = vadd.f32 %v10962_v50, %v15063_v8  ;;  %v15064_v14 = vld [vmem:[#allocation103_spill] sm:$0xff]  ;;  %v15065_v16 = vld [vmem:[#allocation104_spill] sm:$0xff] }
 0x28b   : > { %v3832_v40 = vpop.f32.mrf.mxu0  ;;  %v2722_v50 = vadd.f32 %v15065_v16, %v15064_v14  ;;  %v15067_v14 = vld [vmem:[#allocation105_spill] sm:$0xff] }
 0x28c   : > { %v4021_v48 = vadd.f32 %v3832_v40, %v2706_v22  ;;  %v4315_v22 = vrot.slane %v4023_v57, 2 }
 0x28d   : > { %v10965_v37 = vpop.f32.mrf.mxu0 }
 0x28e   : > { %v4311_v15 = vrot.slane %v4021_v48, 2  ;;  %v4026_v12 = vadd.f32 %v10965_v37, %v13123_v10 }
 0x28f   : > { %v3845_v4 = vpop.f32.mrf.mxu0 }
 0x290   : > { %v4312_v0 = vsel %vm4309_vm3, %v4310_v44, %v4311_v15  ;;  %v4314_v20 = vsel %vm4309_vm3, %v4311_v15, %v4313_v1  ;;  %v4024_v21 = vadd.f32 %v3845_v4, %v13125_v47  ;;  %v4320_v40 = vrot.slane %v4026_v12, 2 }
 0x291   : > { %v4422_v9 = vadd.f32 %v4312_v0, %v13265_v60  ;;  %v4423_v55 = vadd.f32 %v4314_v20, %v13267_v42  ;;  %v10966_v24 = vpop.f32.mrf.mxu0 }
 0x292   : > { %v4316_v51 = vrot.slane %v4024_v21, 2  ;;  %v4027_v13 = vadd.f32 %v10966_v24, %v15066_v27 }
 0x293   : > { %v4461_v10 = vmul.f32 %v13448_v56, %v4422_v9  ;;  %v4462_v47 = vmul.f32 %v13448_v56, %v4423_v55  ;;  %v3848_v60 = vpop.f32.mrf.mxu0 }
 0x294   : > { %v4317_v42 = vsel %vm4309_vm3, %v4315_v22, %v4316_v51  ;;  %v4321_v48 = vrot.slane %v4027_v13, 2  ;;  %v4025_v37 = vadd.f32 %v3848_v60, %v2722_v50 }
 0x295   : > { %v4500_v1 = vadd.f32 %v13459_v34, %v4461_v10  ;;  %v4501_v44 = vadd.f32 %v13459_v34, %v4462_v47  ;;  %v4424_v8 = vadd.f32 %v4317_v42, %v13273_v31  ;;  %v10969_v57 = vpop.f32.mrf.mxu0  ;;  %v15068_v10 = vld [vmem:[#allocation107_spill] sm:$0xff] }
 0x296   : > { %v4322_v15 = vsel %vm4309_vm3, %v4320_v40, %v4321_v48  ;;  %v4318_v4 = vrot.slane %v4025_v37, 2  ;;  %v4030_v24 = vadd.f32 %v10969_v57, %v13135_v46  ;;  %v2738_v47 = vadd.f32 %v15068_v10, %v13141_v33  ;;  %v15069_v40 = vld [vmem:[#allocation106_spill] sm:$0xff] }
 0x297   : > { %v4532_v0 = vmax.f32 %v4500_v1, 0.0  ;;  %v4533_v20 = vmax.f32 %v4501_v44, 0.0  ;;  %v4463_v21 = vmul.f32 %v13448_v56, %v4424_v8  ;;  %v4426_v12 = vadd.f32 %v4322_v15, %v13277_v30  ;;  %v3861_v9 = vpop.f32.mrf.mxu0  ;;  %v15070_v8 = vld [vmem:[#allocation11_spill] sm:$0xff] }
 0x298   : > { %v4319_v55 = vsel %vm4309_vm3, %v4316_v51, %v4318_v4  ;;  %v4028_v16 = vadd.f32 %v3861_v9, %v15067_v14 }
 0x299   : > { %v4596_v50 = vrot.slane %v4532_v0, 7  ;;  %v4597_v22 = vrot.slane %v4533_v20, 7  ;;  %v4502_v31 = vadd.f32 %v13459_v34, %v4463_v21  ;;  %v4465_v27 = vmul.f32 %v13448_v56, %v4426_v12  ;;  %v10970_v13 = vpop.f32.mrf.mxu0 }
 0x29a   : > { %v4425_v60 = vadd.f32 %v4319_v55, %v13282_v58  ;;  %v4323_v30 = vrot.slane %v4028_v16, 2  ;;  %v4031_v42 = vadd.f32 %v10970_v13, %v15069_v40  ;;  %v4326_v0 = vrot.slane %v4030_v24, 2  ;;  %v15072_v40 = vld [vmem:[#allocation111_spill] sm:$0xff] }
 0x29b   : > { %v4598_v51 = vsel %vm391_vm0, %v4596_v50, %v4597_v22  ;;  %v4692_v46 = vsel %vm391_vm0, 0.0, %v4596_v50  ;;  %v4708_v37 = vsel %vm391_vm0, %v4597_v22, 0.0  ;;  %v4534_v1 = vmax.f32 %v4502_v31, 0.0  ;;  %v3864_v44 = vpop.f32.mrf.mxu0 }
 0x29c   : > { %v9676_v57 = vpack.c.bf16 %v4692_v46, %v15070_v8  ;;  %v9681_v15 = vpack.c.bf16 %v4708_v37, %v4598_v51  ;;  %v4504_v4 = vadd.f32 %v13459_v34, %v4465_v27  ;;  %v4464_v33 = vmul.f32 %v13448_v56, %v4425_v60 }
 0x29d   : > { %v4324_v58 = vsel %vm4309_vm3, %v4321_v48, %v4323_v30  ;;  %v4328_v20 = vrot.slane %v4031_v42, 2  ;;  %v4029_v21 = vadd.f32 %v3864_v44, %v2738_v47  ;;  %v10973_v12 = vpop.f32.mrf.mxu0  ;;  %v4599_v16 = vrot.slane %v4534_v1, 7  ;;  %v15071_v30 = vld [vmem:[#allocation110_spill] sm:$0xff] }
 0x29e   : > { %9829 = vst [vmem:[#allocation3 + $0x8] sm:$0xff] %v9676_v57   ;;  %9830 = vst [vmem:[#allocation3 + $0x10] sm:$0xff] %v9681_v15   ;;  %v4536_v9 = vmax.f32 %v4504_v4, 0.0  ;;  %v4503_v55 = vadd.f32 %v13459_v34, %v4464_v33  ;;  %v4427_v14 = vadd.f32 %v4324_v58, %v13287_v28  ;;  %v4034_v47 = vadd.f32 %v10973_v12, %v13147_v61 }
 0x29f   : > { %v4329_v50 = vsel %vm4309_vm3, %v4326_v0, %v4328_v20  ;;  %v4325_v22 = vrot.slane %v4029_v21, 2  ;;  %v3877_v31 = vpop.f32.mrf.mxu0  ;;  %v2754_v42 = vadd.f32 %v15072_v40, %v15071_v30  ;;  %v4693_v37 = vsel %vm391_vm0, 0.0, %v4599_v16 }
 0x2a0   : > { %v4602_v27 = vrot.slane %v4536_v9, 7  ;;  %v4535_v13 = vmax.f32 %v4503_v55, 0.0  ;;  %v4466_v24 = vmul.f32 %v13448_v56, %v4427_v14  ;;  %v4429_v48 = vadd.f32 %v4329_v50, %v13290_v36  ;;  %v15073_v36 = vld [vmem:[#allocation108_spill] sm:$0xff] }
 0x2a1   : > { %v4327_v10 = vsel %vm4309_vm3, %v4325_v22, %v4326_v0  ;;  %v10974_v60 = vpop.f32.mrf.mxu0  ;;  %v4032_v8 = vadd.f32 %v3877_v31, %v15073_v36  ;;  %v4333_v21 = vrot.slane %v4034_v47, 2  ;;  %v11841_v55 = vld [vmem:[#allocation4 + $0x70] sm:$0xff]   ;;  %v15077_v36 = vld [vmem:[#allocation113_spill] sm:$0xff] }
 0x2a2   : > { %v4600_v28 = vrot.slane %v4535_v13, 7  ;;  %v4505_v51 = vadd.f32 %v13459_v34, %v4466_v24  ;;  %v4468_v46 = vmul.f32 %v13448_v56, %v4429_v48  ;;  %v4694_v1 = vsel %vm391_vm0, 0.0, %v4602_v27  ;;  %v15074_v24 = vld [vmem:[#allocation109_spill] sm:$0xff] }
 0x2a3   : > { %v4428_v44 = vadd.f32 %v4327_v10, %v13295_v29  ;;  %v3880_v57 = vpop.f32.mrf.mxu0  ;;  %v2770_v29 = vadd.f32 %v13167_v18, %v13165_v59  ;;  %v4330_v13 = vrot.slane %v4032_v8, 2  ;;  %v4035_v48 = vadd.f32 %v10974_v60, %v15074_v24  ;;  %v13537_v24 = vld [vmem:[#allocation4 + $0x60] sm:$0xff]  }
 0x2a4   : > { %v4601_v61 = vsel %vm391_vm0, %v4599_v16, %v4600_v28  ;;  %v4709_v15 = vsel %vm391_vm0, %v4600_v28, 0.0  ;;  %v4537_v4 = vmax.f32 %v4505_v51, 0.0  ;;  %v4507_v33 = vadd.f32 %v13459_v34, %v4468_v46  ;;  %v15076_v46 = vld [vmem:[#allocation112_spill] sm:$0xff] }
 0x2a5   : > { %v9686_v0 = vpack.c.bf16 %v4601_v61, %v4693_v37  ;;  %v9691_v58 = vpack.c.bf16 %v4694_v1, %v4709_v15  ;;  %v4467_v20 = vmul.f32 %v13448_v56, %v4428_v44  ;;  %v10977_v12 = vpop.f32.mrf.mxu0  ;;  %v11799_v9 = vld [vmem:[#allocation3 + $0xc] sm:$0xff]   ;;  %v4033_v22 = vadd.f32 %v3880_v57, %v2754_v42 }
 0x2a6   : > { %v4603_v14 = vrot.slane %v4537_v4, 7  ;;  %v4539_v50 = vmax.f32 %v4507_v33, 0.0  ;;  %v13510_v16 = vadd.f32 %v13179_v35, %v13177_v23  ;;  %11023 = vmatprep.mubr.bf16.mxu1 %v11799_v9  ;;  %v11800_v47 = vld [vmem:[#allocation3 + $0x8] sm:$0xff]   ;;  %v4038_v40 = vadd.f32 %v10977_v12, %v13159_v32  ;;  %v11801_v42 = vld [vmem:[#allocation3 + $0x10] sm:$0xff]   ;;  %v11844_v4 = vld [vmem:[#allocation4 + $0x68] sm:$0xff]  }
 0x2a7   : > { %9831 = vst [vmem:[#allocation3 + $0x18] sm:$0xff] %v9686_v0   ;;  %9832 = vst [vmem:[#allocation3 + $0x20] sm:$0xff] %v9691_v58   ;;  %v4506_v31 = vadd.f32 %v13459_v34, %v4467_v20  ;;  %v3893_v10 = vpop.f32.mrf.mxu0  ;;  %v4331_v59 = vrot.slane %v4033_v22, 2  ;;  %v15075_v23 = vld [vmem:[#allocation120_spill] sm:$0xff]  ;;  %11088 = vmatmul.mubr.bf16.vlgmr.msra.gmra.mxu0 %v11800_v47  ;;  %v4335_v33 = vrot.slane %v4035_v48, 2 }
 0x2a8   : > { %v4604_v30 = vsel %vm391_vm0, %v4602_v27, %v4603_v14  ;;  %v4710_v18 = vsel %vm391_vm0, %v4603_v14, 0.0  ;;  %v13519_v35 = vadd.f32 %v15075_v23, %v13189_v25  ;;  %v4036_v37 = vadd.f32 %v3893_v10, %v15076_v46  ;;  %11091 = vmatprep.mubr.bf16.mxu0 %v11801_v42  ;;  %11200 = vmatpush3.bf16.msra.mxu0 %v13378_v53  ;;  %v11811_v14 = vld [vmem:[#allocation4 + $0x130] sm:$0xff]   ;;  %v15078_v42 = vld [vmem:[#allocation114_spill] sm:$0xff]  ;;  %v15079_v23 = vld [vmem:[#allocation115_spill] sm:$0xff] }
 0x2a9   : > { %v9696_v28 = vpack.c.bf16 %v4710_v18, %v4604_v30  ;;  %v4538_v51 = vmax.f32 %v4506_v31, 0.0  ;;  %v10978_v60 = vpop.f32.mrf.mxu0  ;;  %v4606_v1 = vrot.slane %v4539_v50, 7  ;;  %v4332_v44 = vsel %vm4309_vm3, %v4330_v13, %v4331_v59  ;;  %11201 = vmatprep.subr.bf16.mxu0 %v11841_v55 }
 0x2aa   : > { %v4334_v27 = vsel %vm4309_vm3, %v4331_v59, %v4333_v21  ;;  %v13525_v8 = vadd.f32 %v10978_v60, %v15077_v36  ;;  %v4430_v25 = vadd.f32 %v4332_v44, %v13312_v45  ;;  %v4336_v61 = vrot.slane %v4036_v37, 2 }
 0x2ab   : > { %9833 = vst [vmem:[#allocation3 + $0x28] sm:$0xff] %v9696_v28   ;;  %v4605_v32 = vrot.slane %v4538_v51, 7  ;;  %v4431_v57 = vadd.f32 %v4334_v27, %v13314_v49  ;;  %v3896_v15 = vpop.f32.mrf.mxu0  ;;  %v4340_v0 = vrot.slane %v4038_v40, 2  ;;  %v4711_v59 = vsel %vm391_vm0, %v4606_v1, 0.0 }
 0x2ac   : > { %v4341_v58 = vrot.slane %v13525_v8, 2  ;;  %v4037_v20 = vadd.f32 %v3896_v15, %v2770_v29  ;;  %v4469_v53 = vmul.f32 %v13448_v56, %v4430_v25  ;;  %v4337_v50 = vsel %vm4309_vm3, %v4335_v33, %v4336_v61  ;;  %11202 = vmatpush3.bf16.msra.mxu0 %v11841_v55 }
 0x2ad   : > { %v4607_v21 = vsel %vm391_vm0, %v4605_v32, %v4606_v1  ;;  %v4695_v12 = vsel %vm391_vm0, 0.0, %v4605_v32  ;;  %v4470_v9 = vmul.f32 %v13448_v56, %v4431_v57  ;;  %v10981_v45 = vpop.f32.mrf.mxu0  ;;  %v4432_v10 = vadd.f32 %v4337_v50, %v13320_v43  ;;  %11203 = vmatprep.subr.bf16.mxu0 %v11844_v4  ;;  %v11818_v1 = vld [vmem:[#allocation4 + $0x128] sm:$0xff]   ;;  %v15080_v32 = vld [vmem:[#allocation116_spill] sm:$0xff] }
 0x2ae   : > { %v9701_v49 = vpack.c.bf16 %v4607_v21, %v4695_v12  ;;  %v4342_v22 = vsel %vm4309_vm3, %v4340_v0, %v4341_v58  ;;  %v4338_v31 = vrot.slane %v4037_v20, 2  ;;  %v11802_v13 = vld [vmem:[#allocation3 + $0x14] sm:$0xff]   ;;  %v4508_v29 = vadd.f32 %v13459_v34, %v4469_v53  ;;  %v11805_v51 = vld [vmem:[#allocation3 + $0x1c] sm:$0xff]  }
 0x2af   : > { %v4509_v48 = vadd.f32 %v13459_v34, %v4470_v9  ;;  %v4434_v47 = vadd.f32 %v4342_v22, %v13324_v54  ;;  %v3909_v30 = vpop.f32.mrf.mxu0  ;;  %v11803_v18 = vld [vmem:[#allocation3 + $0x18] sm:$0xff]   ;;  %v13546_v55 = vadd.f32 %v10981_v45, %v15078_v42  ;;  %11024 = vmatmul.mubr.bf16.vlgmr.msra.gmra.mxu1 %v11802_v13  ;;  %v4471_v43 = vmul.f32 %v13448_v56, %v4432_v10  ;;  %v11806_v44 = vld [vmem:[#allocation3 + $0x20] sm:$0xff]   ;;  %v11851_v12 = vld [vmem:[#allocation4 + $0x58] sm:$0xff]  }
 0x2b0   : > { %9834 = vst [vmem:[#allocation3 + $0x30] sm:$0xff] %v9701_v49   ;;  %v4339_v40 = vsel %vm4309_vm3, %v4336_v61, %v4338_v31  ;;  %v4040_v28 = vadd.f32 %v3909_v30, %v15079_v23  ;;  %v4540_v46 = vmax.f32 %v4508_v29, 0.0  ;;  %11092 = vmatmul.mubr.bf16.gmra.mxu0 %v11803_v18  ;;  %11136 = vmatpush3.bf16.msra.mxu1 %v13300_v39 }
 0x2b1   : > { %v4541_v37 = vmax.f32 %v4509_v48, 0.0  ;;  %v4473_v54 = vmul.f32 %v13448_v56, %v4434_v47  ;;  %v10982_v60 = vpop.f32.mrf.mxu0  ;;  %v4433_v27 = vadd.f32 %v4339_v40, %v13329_v38  ;;  %v4346_v36 = vrot.slane %v13546_v55, 2  ;;  %11027 = vmatprep.mubr.bf16.mxu1 %v11805_v51  ;;  %11137 = vmatprep.subr.bf16.mxu1 %v11811_v14  ;;  %v11854_v48 = vld [vmem:[#allocation4 + $0x50] sm:$0xff]  }
 0x2b2   : > { %v4343_v8 = vrot.slane %v4040_v28, 2  ;;  %v4043_v25 = vadd.f32 %v10982_v60, %v15080_v32  ;;  %v4608_v57 = vrot.slane %v4540_v46, 7  ;;  %v4510_v15 = vadd.f32 %v13459_v34, %v4471_v43  ;;  %11095 = vmatprep.mubr.bf16.mxu0 %v11806_v44  ;;  %11204 = vmatpush3.bf16.msra.mxu0 %v11844_v4  ;;  %v11807_v22 = vld [vmem:[#allocation3 + $0x24] sm:$0xff]   ;;  %v11825_v4 = vld [vmem:[#allocation4 + $0x120] sm:$0xff]   ;;  %v15081_v28 = vld [vmem:[#allocation117_spill] sm:$0xff] }
 0x2b3   : > { %v4609_v61 = vrot.slane %v4541_v37, 7  ;;  %v4512_v33 = vadd.f32 %v13459_v34, %v4473_v54  ;;  %v3912_v0 = vpop.f32.mrf.mxu0  ;;  %v4472_v39 = vmul.f32 %v13448_v56, %v4433_v27  ;;  %11205 = vmatprep.subr.bf16.mxu0 %v13537_v24  ;;  %v15082_v37 = vld [vmem:[#allocation118_spill] sm:$0xff] }
 0x2b4   : > { %v4344_v38 = vsel %vm4309_vm3, %v4341_v58, %v4343_v8  ;;  %v4348_v20 = vrot.slane %v4043_v25, 2  ;;  %v4041_v21 = vadd.f32 %v3912_v0, %v13510_v16  ;;  %v4696_v9 = vsel %vm391_vm0, 0.0, %v4608_v57  ;;  %11138 = vmatpush3.bf16.msra.mxu1 %v11811_v14  ;;  %v11808_v16 = vld [vmem:[#allocation3 + $0x28] sm:$0xff]   ;;  %v15083_v25 = vld [vmem:[#allocation119_spill] sm:$0xff] }
 0x2b5   : > { %v4610_v53 = vsel %vm391_vm0, %v4608_v57, %v4609_v61  ;;  %v4712_v45 = vsel %vm391_vm0, %v4609_v61, 0.0  ;;  %v4542_v49 = vmax.f32 %v4510_v15, 0.0  ;;  %v10985_v50 = vpop.f32.mrf.mxu0  ;;  %v9706_v31 = vpack.c.bf16 %v4696_v9, %v4711_v59  ;;  %11139 = vmatprep.subr.bf16.mxu1 %v11818_v1  ;;  %v11857_v0 = vld [vmem:[#allocation4 + $0x48] sm:$0xff]  }
 0x2b6   : > { %v9711_v13 = vpack.c.bf16 %v4712_v45, %v4610_v53  ;;  %v4544_v58 = vmax.f32 %v4512_v33, 0.0  ;;  %v4511_v29 = vadd.f32 %v13459_v34, %v4472_v39  ;;  %v4435_v47 = vadd.f32 %v4344_v38, %v13334_v3  ;;  %11206 = vmatpush3.bf16.msra.mxu0 %v13537_v24  ;;  %v11832_v24 = vld [vmem:[#allocation4 + $0x118] sm:$0xff]  }
 0x2b7   : > { %v4611_v10 = vrot.slane %v4542_v49, 7  ;;  %v4349_v30 = vsel %vm4309_vm3, %v4346_v36, %v4348_v20  ;;  %v4345_v18 = vrot.slane %v4041_v21, 2  ;;  %v3925_v40 = vpop.f32.mrf.mxu0  ;;  %v11809_v42 = vld [vmem:[#allocation3 + $0x2c] sm:$0xff]   ;;  %9835 = vst [vmem:[#allocation3 + $0x38] sm:$0xff] %v9706_v31   ;;  %v13570_v51 = vadd.f32 %v10985_v50, %v15081_v28  ;;  %11028 = vmatmul.mubr.bf16.gmra.mxu1 %v11807_v22  ;;  %11207 = vmatprep.subr.bf16.mxu0 %v11851_v12 }
 0x2b8   : > { %v11810_v55 = vld [vmem:[#allocation3 + $0x30] sm:$0xff]   ;;  %9836 = vst [vmem:[#allocation3 + $0x40] sm:$0xff] %v9711_v13   ;;  %v4614_v14 = vrot.slane %v4544_v58, 7  ;;  %v4543_v59 = vmax.f32 %v4511_v29, 0.0  ;;  %v4437_v23 = vadd.f32 %v4349_v30, %v13337_v2  ;;  %v4474_v3 = vmul.f32 %v13448_v56, %v4435_v47  ;;  %11096 = vmatmul.mubr.bf16.gmra.mxu0 %v11808_v16  ;;  %11031 = vmatprep.mubr.bf16.mxu1 %v11809_v42  ;;  %v11840_v50 = vld [vmem:[#allocation4 + $0x110] sm:$0xff]  }
 0x2b9   : > { %v4347_v46 = vsel %vm4309_vm3, %v4345_v18, %v4346_v36  ;;  %v4044_v43 = vadd.f32 %v3925_v40, %v15082_v37  ;;  %v10986_v54 = vpop.f32.mrf.mxu0  ;;  %v4697_v60 = vsel %vm391_vm0, 0.0, %v4611_v10  ;;  %11099 = vmatprep.mubr.bf16.mxu0 %v11810_v55  ;;  %11140 = vmatpush3.bf16.msra.mxu1 %v11818_v1  ;;  %v4353_v36 = vrot.slane %v13570_v51, 2  ;;  %v15085_v18 = vld [vmem:[#allocation121_spill] sm:$0xff] }
 0x2ba   : > { %v4612_v44 = vrot.slane %v4543_v59, 7  ;;  %v4476_v2 = vmul.f32 %v13448_v56, %v4437_v23  ;;  %v4436_v27 = vadd.f32 %v4347_v46, %v13342_v52  ;;  %v4698_v8 = vsel %vm391_vm0, 0.0, %v4614_v14  ;;  %11141 = vmatprep.subr.bf16.mxu1 %v11825_v4  ;;  %11208 = vmatpush3.bf16.msra.mxu0 %v11851_v12 }
 0x2bb   : > { %v4513_v32 = vadd.f32 %v13459_v34, %v4474_v3  ;;  %v13582_v57 = vadd.f32 %v10986_v54, %v15083_v25  ;;  %v3928_v61 = vpop.f32.mrf.mxu0  ;;  %11209 = vmatprep.subr.bf16.mxu0 %v11854_v48  ;;  %v4350_v21 = vrot.slane %v4044_v43, 2  ;;  %v15086_v3 = vld [vmem:[#allocation44_spill] sm:$0xff]  ;;  %v15087_v43 = vld [vmem:[#allocation122_spill] sm:$0xff] }
 0x2bc   : > { %v4613_v15 = vsel %vm391_vm0, %v4611_v10, %v4612_v44  ;;  %v4713_v33 = vsel %vm391_vm0, %v4612_v44, 0.0  ;;  %v4515_v52 = vadd.f32 %v13459_v34, %v4476_v2  ;;  %v4475_v1 = vmul.f32 %v13448_v56, %v4436_v27  ;;  %v11850_v44 = vld [vmem:[#allocation4 + $0x108] sm:$0xff]  }
 0x2bd   : > { %v9716_v39 = vpack.c.bf16 %v4613_v15, %v4697_v60  ;;  %v9721_v38 = vpack.c.bf16 %v4698_v8, %v4713_v33  ;;  %v4545_v20 = vmax.f32 %v4513_v32, 0.0  ;;  %v10989_v53 = vpop.f32.mrf.mxu0  ;;  %v4045_v12 = vadd.f32 %v3928_v61, %v13519_v35  ;;  %11142 = vmatpush3.bf16.msra.mxu1 %v11825_v4  ;;  %v11860_v35 = vld [vmem:[#allocation4 + $0x40] sm:$0xff]   ;;  %v15088_v8 = vld [vmem:[#allocation45_spill] sm:$0xff] }
 0x2be   : > { %v4547_v9 = vmax.f32 %v4515_v52, 0.0  ;;  %v4514_v45 = vadd.f32 %v13459_v34, %v4475_v1  ;;  %v13591_v49 = vadd.f32 %v10989_v53, %v13195_v11  ;;  %v13593_v13 = vld [vmem:[#allocation3 + $0x34] sm:$0xff]   ;;  %11143 = vmatprep.subr.bf16.mxu1 %v11832_v24  ;;  %11210 = vmatpush3.bf16.msra.mxu0 %v11854_v48  ;;  %v4355_v16 = vrot.slane %v13582_v57, 2  ;;  %v15084_v11 = vld [vmem:[#allocation123_spill] sm:$0xff]  ;;  %v15091_v53 = vld [vmem:[#allocation128_spill] sm:$0xff] }
 0x2bf   : > { %9837 = vst [vmem:[#allocation3 + $0x48] sm:$0xff] %v9716_v39   ;;  %9838 = vst [vmem:[#allocation3 + $0x50] sm:$0xff] %v9721_v38   ;;  %v4615_v22 = vrot.slane %v4545_v20, 7  ;;  %v3941_v31 = vpop.f32.mrf.mxu0  ;;  %v4351_v10 = vrot.slane %v4045_v12, 2  ;;  %11211 = vmatprep.subr.bf16.mxu0 %v11857_v0  ;;  %v2818_v47 = vadd.f32 %v15084_v11, %v13201_v26  ;;  %11032 = vmatmul.mubr.bf16.gmra.mxu1 %v13593_v13  ;;  %v13602_v42 = vld [vmem:[#allocation3 + $0x38] sm:$0xff]   ;;  %v13608_v26 = vld [vmem:[#allocation3 + $0x40] sm:$0xff]  }
 0x2c0   : > { %v4618_v58 = vrot.slane %v4547_v9, 7  ;;  %v4546_v29 = vmax.f32 %v4514_v45, 0.0  ;;  %v4048_v40 = vadd.f32 %v3941_v31, %v15085_v18  ;;  %v4360_v28 = vrot.slane %v13591_v49, 2  ;;  %v13606_v51 = vld [vmem:[#allocation3 + $0x3c] sm:$0xff]   ;;  %11100 = vmatmul.mubr.bf16.gmra.mxu0 %v13602_v42  ;;  %v15089_v1 = vld [vmem:[#allocation65_spill] sm:$0xff]  ;;  %v15092_v49 = vld [vmem:[#allocation124_spill] sm:$0xff] }
 0x2c1   : > { %v4616_v4 = vsel %vm391_vm0, %v4614_v14, %v4615_v22  ;;  %v4714_v30 = vsel %vm391_vm0, %v4615_v22, 0.0  ;;  %v10990_v48 = vpop.f32.mrf.mxu0  ;;  %v4352_v23 = vsel %vm4309_vm3, %v4350_v21, %v4351_v10  ;;  %11144 = vmatpush3.bf16.msra.mxu1 %v11832_v24  ;;  %v4354_v14 = vsel %vm4309_vm3, %v4351_v10, %v4353_v36  ;;  %11035 = vmatprep.mubr.bf16.mxu1 %v13606_v51  ;;  %v11859_v33 = vld [vmem:[#allocation4 + $0x100] sm:$0xff]   ;;  %v15090_v21 = vld [vmem:[#allocation127_spill] sm:$0xff] }
 0x2c2   : > { %v9726_v55 = vpack.c.bf16 %v4714_v30, %v4616_v4  ;;  %v4617_v59 = vrot.slane %v4546_v29, 7  ;;  %v4438_v46 = vadd.f32 %v4352_v23, %v15086_v3  ;;  %v4356_v37 = vrot.slane %v4048_v40, 2  ;;  %11145 = vmatprep.subr.bf16.mxu1 %v11840_v50  ;;  %11103 = vmatprep.mubr.bf16.mxu0 %v13608_v26  ;;  %v15094_v18 = vld [vmem:[#allocation46_spill] sm:$0xff] }
 0x2c3   : > { %v13614_v54 = vadd.f32 %v10990_v48, %v15087_v43  ;;  %v3944_v60 = vpop.f32.mrf.mxu0  ;;  %v4439_v24 = vadd.f32 %v4354_v14, %v15088_v8  ;;  %11212 = vmatpush3.bf16.msra.mxu0 %v11857_v0  ;;  %v2834_v9 = vadd.f32 %v15091_v53, %v15090_v21  ;;  %v4715_v4 = vsel %vm391_vm0, %v4618_v58, 0.0  ;;  %v15095_v48 = vld [vmem:[#allocation125_spill] sm:$0xff] }
 0x2c4   : > { %9839 = vst [vmem:[#allocation3 + $0x58] sm:$0xff] %v9726_v55   ;;  %v4619_v2 = vsel %vm391_vm0, %v4617_v59, %v4618_v58  ;;  %v4699_v27 = vsel %vm391_vm0, 0.0, %v4617_v59  ;;  %v4049_v32 = vadd.f32 %v3944_v60, %v2818_v47  ;;  %v4477_v25 = vmul.f32 %v13448_v56, %v4438_v46  ;;  %11213 = vmatprep.subr.bf16.mxu0 %v11860_v35  ;;  %v15096_v46 = vld [vmem:[#allocation126_spill] sm:$0xff] }
 0x2c5   : > { %v9731_v36 = vpack.c.bf16 %v4619_v2, %v4699_v27  ;;  %v4357_v57 = vsel %vm4309_vm3, %v4355_v16, %v4356_v37  ;;  %v4361_v61 = vrot.slane %v13614_v54, 2  ;;  %v10993_v15 = vpop.f32.mrf.mxu0  ;;  %v4478_v52 = vmul.f32 %v13448_v56, %v4439_v24  ;;  %11146 = vmatpush3.bf16.msra.mxu1 %v11840_v50  ;;  %v15093_v16 = vld [vmem:[#allocation66_spill] sm:$0xff] }
 0x2c6   : > { %v4440_v39 = vadd.f32 %v4357_v57, %v15089_v1  ;;  %v4358_v38 = vrot.slane %v4049_v32, 2  ;;  %v13626_v20 = vld [vmem:[#allocation3 + $0x44] sm:$0xff]   ;;  %v4516_v45 = vadd.f32 %v13459_v34, %v4477_v25  ;;  %v13633_v0 = vadd.f32 %v10993_v15, %v15092_v49  ;;  %11147 = vmatprep.subr.bf16.mxu1 %v11850_v44  ;;  %v13641_v47 = vld [vmem:[#allocation3 + $0x4c] sm:$0xff]  }
 0x2c7   : > { %9840 = vst [vmem:[#allocation3 + $0x60] sm:$0xff] %v9731_v36   ;;  %v4362_v12 = vsel %vm4309_vm3, %v4360_v28, %v4361_v61  ;;  %v3957_v22 = vpop.f32.mrf.mxu0  ;;  %v13635_v31 = vld [vmem:[#allocation3 + $0x48] sm:$0xff]   ;;  %v4517_v29 = vadd.f32 %v13459_v34, %v4478_v52  ;;  %11036 = vmatmul.mubr.bf16.gmra.mxu1 %v13626_v20  ;;  %v13647_v23 = vld [vmem:[#allocation3 + $0x50] sm:$0xff]   ;;  %11214 = vmatpush3.bf16.msra.mxu0 %v11860_v35 }
 0x2c8   : > { %v4479_v50 = vmul.f32 %v13448_v56, %v4440_v39  ;;  %v4442_v10 = vadd.f32 %v4362_v12, %v15093_v16  ;;  %v4359_v11 = vsel %vm4309_vm3, %v4356_v37, %v4358_v38  ;;  %v4548_v30 = vmax.f32 %v4516_v45, 0.0  ;;  %11039 = vmatprep.mubr.bf16.mxu1 %v13641_v47  ;;  %11104 = vmatmul.mubr.bf16.gmra.mxu0 %v13635_v31  ;;  %v13656_v35 = vld [vmem:[#allocation4 + $0x178] sm:$0xff]  }
 0x2c9   : > { %v4441_v40 = vadd.f32 %v4359_v11, %v15094_v18  ;;  %v4052_v55 = vadd.f32 %v3957_v22, %v15095_v48  ;;  %v10994_v59 = vpop.f32.mrf.mxu0  ;;  %v4549_v28 = vmax.f32 %v4517_v29, 0.0  ;;  %11148 = vmatpush3.bf16.msra.mxu1 %v11850_v44  ;;  %v4366_v54 = vrot.slane %v13633_v0, 2  ;;  %11107 = vmatprep.mubr.bf16.mxu0 %v13647_v23  ;;  %v13660_v44 = vld [vmem:[#allocation4 + $0xb8] sm:$0xff]   ;;  %v15097_v22 = vld [vmem:[#allocation67_spill] sm:$0xff] }
 0x2ca   : > { %v4518_v14 = vadd.f32 %v13459_v34, %v4479_v50  ;;  %v4481_v3 = vmul.f32 %v13448_v56, %v4442_v10  ;;  %v4055_v37 = vadd.f32 %v10994_v59, %v15096_v46  ;;  %v4620_v58 = vrot.slane %v4548_v30, 7  ;;  %11149 = vmatprep.subr.bf16.mxu1 %v11859_v33  ;;  %11327 = vmatprep.subr.bf16.mxu0 %v13660_v44  ;;  %v15098_v16 = vld [vmem:[#allocation129_spill] sm:$0xff]  ;;  %v15100_v59 = vld [vmem:[#allocation132_spill] sm:$0xff] }
 0x2cb   : > { %v4480_v43 = vmul.f32 %v13448_v56, %v4441_v40  ;;  %v4363_v60 = vrot.slane %v4052_v55, 2  ;;  %v3960_v2 = vpop.f32.mrf.mxu0  ;;  %v4621_v27 = vrot.slane %v4549_v28, 7  ;;  %v13667_v53 = vld [vmem:[#allocation3 + $0x54] sm:$0xff]   ;;  %v15099_v40 = vld [vmem:[#allocation68_spill] sm:$0xff] }
 0x2cc   : > { %v4550_v8 = vmax.f32 %v4518_v14, 0.0  ;;  %v4520_v24 = vadd.f32 %v13459_v34, %v4481_v3  ;;  %v4368_v32 = vrot.slane %v4055_v37, 2  ;;  %v4700_v36 = vsel %vm391_vm0, 0.0, %v4620_v58  ;;  %v13676_v11 = vld [vmem:[#allocation3 + $0x58] sm:$0xff]   ;;  %v15101_v28 = vld [vmem:[#allocation133_spill] sm:$0xff] }
 0x2cd   : > { %v4519_v25 = vadd.f32 %v13459_v34, %v4480_v43  ;;  %v4364_v57 = vsel %vm4309_vm3, %v4361_v61, %v4363_v60  ;;  %v4053_v15 = vadd.f32 %v3960_v2, %v2834_v9  ;;  %v10997_v52 = vpop.f32.mrf.mxu0  ;;  %v4622_v1 = vsel %vm391_vm0, %v4620_v58, %v4621_v27  ;;  %11150 = vmatpush3.bf16.msra.mxu1 %v11859_v33  ;;  %v15102_v37 = vld [vmem:[#allocation130_spill] sm:$0xff] }
 0x2ce   : > { %v4716_v39 = vsel %vm391_vm0, %v4621_v27, 0.0  ;;  %v9736_v38 = vpack.c.bf16 %v4700_v36, %v4715_v4  ;;  %v4623_v21 = vrot.slane %v4550_v8, 7  ;;  %v13669_v45 = vld [vmem:[#allocation3 + $0x5c] sm:$0xff]   ;;  %v4552_v49 = vmax.f32 %v4520_v24, 0.0  ;;  %11263 = vmatprep.subr.bf16.mxu1 %v13656_v35 }
 0x2cf   : > { %v9741_v12 = vpack.c.bf16 %v4716_v39, %v4622_v1  ;;  %v4551_v0 = vmax.f32 %v4519_v25, 0.0  ;;  %v4443_v61 = vadd.f32 %v4364_v57, %v15097_v22  ;;  %v3973_v9 = vpop.f32.mrf.mxu0  ;;  %v4369_v29 = vsel %vm4309_vm3, %v4366_v54, %v4368_v32  ;;  %v13678_v4 = vld [vmem:[#allocation3 + $0x60] sm:$0xff]   ;;  %11040 = vmatmul.mubr.bf16.gmra.mxu1 %v13667_v53 }
 0x2d0   : > { %9841 = vst [vmem:[#allocation3 + $0x68] sm:$0xff] %v9736_v38   ;;  %v4365_v50 = vrot.slane %v4053_v15, 2  ;;  %v4058_v10 = vadd.f32 %v10997_v52, %v15098_v16  ;;  %v4626_v33 = vrot.slane %v4552_v49, 7  ;;  %v4445_v48 = vadd.f32 %v4369_v29, %v15099_v40  ;;  %11043 = vmatprep.mubr.bf16.mxu1 %v13669_v45  ;;  %11108 = vmatmul.mubr.bf16.gmra.mxu0 %v13676_v11 }
 0x2d1   : > { %9842 = vst [vmem:[#allocation3 + $0x70] sm:$0xff] %v9741_v12   ;;  %v4624_v30 = vrot.slane %v4551_v0, 7  ;;  %v4482_v18 = vmul.f32 %v13448_v56, %v4443_v61  ;;  %v10998_v55 = vpop.f32.mrf.mxu0  ;;  %v2850_v14 = vadd.f32 %v15101_v28, %v15100_v59  ;;  %v4701_v3 = vsel %vm391_vm0, 0.0, %v4623_v21  ;;  %11111 = vmatprep.mubr.bf16.mxu0 %v13678_v4  ;;  %v15104_v12 = vld [vmem:[#allocation131_spill] sm:$0xff]  ;;  %v15105_v61 = vld [vmem:[#allocation134_spill] sm:$0xff] }
 0x2d2   : > { %v4367_v46 = vsel %vm4309_vm3, %v4365_v50, %v4366_v54  ;;  %v4056_v58 = vadd.f32 %v3973_v9, %v15102_v37  ;;  %v4702_v43 = vsel %vm391_vm0, 0.0, %v4626_v33  ;;  %v4484_v36 = vmul.f32 %v13448_v56, %v4445_v48  ;;  %v15103_v54 = vld [vmem:[#allocation47_spill] sm:$0xff] }
 0x2d3   : > { %v4625_v60 = vsel %vm391_vm0, %v4623_v21, %v4624_v30  ;;  %v4717_v2 = vsel %vm391_vm0, %v4624_v30, 0.0  ;;  %v4521_v27 = vadd.f32 %v13459_v34, %v4482_v18  ;;  %v3976_v8 = vpop.f32.mrf.mxu0  ;;  %v4444_v25 = vadd.f32 %v4367_v46, %v15103_v54  ;;  %v15107_v30 = vld [vmem:[#allocation138_spill] sm:$0xff]  ;;  %v15108_v59 = vld [vmem:[#allocation135_spill] sm:$0xff] }
 0x2d4   : > { %v9746_v24 = vpack.c.bf16 %v4625_v60, %v4701_v3  ;;  %v9751_v32 = vpack.c.bf16 %v4702_v43, %v4717_v2  ;;  %v4373_v15 = vrot.slane %v4058_v10, 2  ;;  %v4057_v52 = vadd.f32 %v3976_v8, %v2850_v14  ;;  %v15106_v10 = vld [vmem:[#allocation137_spill] sm:$0xff]  ;;  %v15109_v8 = vld [vmem:[#allocation136_spill] sm:$0xff] }
 0x2d5   : > { %v4553_v57 = vmax.f32 %v4521_v27, 0.0  ;;  %v11001_v1 = vpop.f32.mrf.mxu0  ;;  %v4523_v39 = vadd.f32 %v13459_v34, %v4484_v36  ;;  %v4483_v38 = vmul.f32 %v13448_v56, %v4444_v25  ;;  %v4370_v21 = vrot.slane %v4056_v58, 2 }
 0x2d6   : > { %9843 = vst [vmem:[#allocation3 + $0x78] sm:$0xff] %v9746_v24   ;;  %9844 = vst [vmem:[#allocation3 + $0x80] sm:$0xff] %v9751_v32   ;;  %v4059_v49 = vadd.f32 %v10998_v55, %v15104_v12  ;;  %v4371_v22 = vrot.slane %v4057_v52, 2  ;;  %v4062_v9 = vadd.f32 %v11001_v1, %v15105_v61  ;;  %v2866_v18 = vadd.f32 %v15107_v30, %v15106_v10  ;;  %v15111_v52 = vld [vmem:[#allocation143_spill] sm:$0xff]  ;;  %v13741_v61 = vld [vmem:[%s14823_s4] ss:$0 sm:$0xff] }
 0x2d7   : > { %v4627_v0 = vrot.slane %v4553_v57, 7  ;;  %v3989_v29 = vpop.f32.mrf.mxu0  ;;  %v13701_v50 = vld [vmem:[#allocation3 + $0x64] sm:$0xff]   ;;  %v4555_v40 = vmax.f32 %v4523_v39, 0.0  ;;  %v4522_v48 = vadd.f32 %v13459_v34, %v4483_v38 }
 0x2d8   : > { %v13703_v16 = vld [vmem:[#allocation3 + $0x68] sm:$0xff]   ;;  %v4060_v56 = vadd.f32 %v3989_v29, %v15108_v59  ;;  %v4372_v14 = vsel %vm4309_vm3, %v4370_v21, %v4371_v22  ;;  %v4374_v3 = vsel %vm4309_vm3, %v4371_v22, %v4373_v15  ;;  %11044 = vmatmul.mubr.bf16.gmra.mxu1 %v13701_v50  ;;  %v4375_v60 = vrot.slane %v4059_v49, 2  ;;  %v13721_v32 = vld [vmem:[#allocation3 + $0x70] sm:$0xff]   ;;  %v15110_v15 = vld [vmem:[#allocation142_spill] sm:$0xff] }
 0x2d9   : > { %v4628_v28 = vsel %vm391_vm0, %v4626_v33, %v4627_v0  ;;  %v4718_v55 = vsel %vm391_vm0, %v4627_v0, 0.0  ;;  %v11002_v46 = vpop.f32.mrf.mxu0  ;;  %v13714_v37 = vld [vmem:[#allocation3 + $0x6c] sm:$0xff]   ;;  %v4554_v43 = vmax.f32 %v4522_v48, 0.0  ;;  %v4446_v34 = vadd.f32 %v4372_v14, %v13405_v63  ;;  %11112 = vmatmul.mubr.bf16.gmra.mxu0 %v13703_v16  ;;  %v13726_v63 = vld [vmem:[%s14822_s3] ss:$0 sm:$0xff] }
 0x2da   : > { %v9756_v58 = vpack.c.bf16 %v4718_v55, %v4628_v28  ;;  %v4447_v2 = vadd.f32 %v4374_v3, %v13407_v62  ;;  %v4380_v27 = vrot.slane %v4062_v9, 2  ;;  %v4376_v33 = vrot.slane %v4060_v56, 2  ;;  %11047 = vmatprep.mubr.bf16.mxu1 %v13714_v37  ;;  %11115 = vmatprep.mubr.bf16.mxu0 %v13721_v32  ;;  %v15112_v3 = vld [vmem:[#allocation139_spill] sm:$0xff] }
 0x2db   : > { %v4063_v24 = vadd.f32 %v11002_v46, %v15109_v8  ;;  %v3992_v36 = vpop.f32.mrf.mxu0  ;;  %v4630_v54 = vrot.slane %v4555_v40, 7  ;;  %v4629_v25 = vrot.slane %v4554_v43, 7  ;;  %v4485_v62 = vmul.f32 %v13726_v63, %v4446_v34  ;;  %v15113_v34 = vld [vmem:[#allocation140_spill] sm:$0xff] }
 0x2dc   : > { %9845 = vst [vmem:[#allocation3 + $0x88] sm:$0xff] %v9756_v58   ;;  %v4061_v57 = vadd.f32 %v3992_v36, %v2866_v18  ;;  %v2882_v1 = vadd.f32 %v15111_v52, %v15110_v15  ;;  %v4486_v39 = vmul.f32 %v13726_v63, %v4447_v2  ;;  %v4377_v38 = vsel %vm4309_vm3, %v4375_v60, %v4376_v33 }
 0x2dd   : > { %v4381_v21 = vrot.slane %v4063_v24, 2  ;;  %v11005_v12 = vpop.f32.mrf.mxu0  ;;  %v13734_v49 = vld [vmem:[#allocation3 + $0x74] sm:$0xff]   ;;  %v4631_v0 = vsel %vm391_vm0, %v4629_v25, %v4630_v54  ;;  %v4703_v22 = vsel %vm391_vm0, 0.0, %v4629_v25  ;;  %v4524_v9 = vadd.f32 %v13741_v61, %v4485_v62  ;;  %v13749_v56 = vld [vmem:[#allocation3 + $0x7c] sm:$0xff]  }
 0x2de   : > { %v4448_v29 = vadd.f32 %v4377_v38, %v13414_v17  ;;  %v13745_v10 = vld [vmem:[#allocation3 + $0x78] sm:$0xff]   ;;  %v9761_v30 = vpack.c.bf16 %v4631_v0, %v4703_v22  ;;  %v4525_v18 = vadd.f32 %v13741_v61, %v4486_v39  ;;  %v4378_v48 = vrot.slane %v4061_v57, 2  ;;  %v13754_v58 = vld [vmem:[#allocation3 + $0x80] sm:$0xff]  }
 0x2df   : > { %v4382_v40 = vsel %vm4309_vm3, %v4380_v27, %v4381_v21  ;;  %v4005_v59 = vpop.f32.mrf.mxu0  ;;  %v4556_v28 = vmax.f32 %v4524_v9, 0.0  ;;  %v4066_v46 = vadd.f32 %v11005_v12, %v15112_v3  ;;  %v4719_v17 = vsel %vm391_vm0, %v4630_v54, 0.0 }
 0x2e0   : > { %v4487_v55 = vmul.f32 %v13726_v63, %v4448_v29  ;;  %v4450_v14 = vadd.f32 %v4382_v40, %v13418_v7  ;;  %9846 = vst [vmem:[#allocation3 + $0x90] sm:$0xff] %v9761_v30   ;;  %v4557_v43 = vmax.f32 %v4525_v18, 0.0  ;;  %v4379_v60 = vsel %vm4309_vm3, %v4376_v33, %v4378_v48  ;;  %11048 = vmatmul.mubr.bf16.gmra.mxu1 %v13734_v49  ;;  %v15114_v33 = vld [vmem:[#allocation141_spill] sm:$0xff] }
 0x2e1   : > { %v4064_v2 = vadd.f32 %v4005_v59, %v15113_v34  ;;  %v11006_v27 = vpop.f32.mrf.mxu0  ;;  %v4632_v8 = vrot.slane %v4556_v28, 7  ;;  %v4449_v36 = vadd.f32 %v4379_v60, %v13423_v41  ;;  %11051 = vmatprep.mubr.bf16.mxu1 %v13749_v56  ;;  %v4386_v54 = vrot.slane %v4066_v46, 2  ;;  %11116 = vmatmul.mubr.bf16.gmra.mxu0 %v13745_v10 }
 0x2e2   : > { %v4526_v24 = vadd.f32 %v13741_v61, %v4487_v55  ;;  %v4489_v7 = vmul.f32 %v13726_v63, %v4450_v14  ;;  %v4633_v25 = vrot.slane %v4557_v43, 7  ;;  %v4067_v57 = vadd.f32 %v11006_v27, %v15114_v33  ;;  %11119 = vmatprep.mubr.bf16.mxu0 %v13754_v58 }
 0x2e3   : > { %v4383_v62 = vrot.slane %v4064_v2, 2  ;;  %v4704_v15 = vsel %vm391_vm0, 0.0, %v4632_v8  ;;  %v4488_v38 = vmul.f32 %v13726_v63, %v4449_v36  ;;  %v4008_v12 = vpop.f32.mrf.mxu0  ;;  %v13775_v55 = vld [vmem:[#allocation3 + $0x84] sm:$0xff]  }
 0x2e4   : > { %v4558_v52 = vmax.f32 %v4526_v24, 0.0  ;;  %v4528_v39 = vadd.f32 %v13741_v61, %v4489_v7  ;;  %v4634_v41 = vsel %vm391_vm0, %v4632_v8, %v4633_v25  ;;  %v4720_v0 = vsel %vm391_vm0, %v4633_v25, 0.0  ;;  %v13777_v46 = vld [vmem:[#allocation3 + $0x88] sm:$0xff]  }
 0x2e5   : > { %v9766_v22 = vpack.c.bf16 %v4704_v15, %v4719_v17  ;;  %v4384_v9 = vsel %vm4309_vm3, %v4381_v21, %v4383_v62  ;;  %v9771_v29 = vpack.c.bf16 %v4720_v0, %v4634_v41  ;;  %v4527_v40 = vadd.f32 %v13741_v61, %v4488_v38 }
 0x2e6   : > { %v4635_v30 = vrot.slane %v4558_v52, 7  ;;  %v4560_v18 = vmax.f32 %v4528_v39, 0.0  ;;  %v4451_v48 = vadd.f32 %v4384_v9, %v13429_v5  ;;  %v4388_v59 = vrot.slane %v4067_v57, 2 }
 0x2e7   : > { %9847 = vst [vmem:[#allocation3 + $0x98] sm:$0xff] %v9766_v22   ;;  %v4065_v28 = vadd.f32 %v4008_v12, %v2882_v1  ;;  %9848 = vst [vmem:[#allocation3 + $0xa0] sm:$0xff] %v9771_v29   ;;  %v4559_v3 = vmax.f32 %v4527_v40, 0.0  ;;  %v13779_v17 = vld [vmem:[#allocation3 + $0x8c] sm:$0xff]   ;;  %v15115_v40 = vld [vmem:[#allocation10_spill] sm:$0xff] }
 0x2e8   : > { %v4638_v14 = vrot.slane %v4560_v18, 7  ;;  %v4490_v21 = vmul.f32 %v13726_v63, %v4451_v48  ;;  %v4389_v43 = vsel %vm4309_vm3, %v4386_v54, %v4388_v59  ;;  %11052 = vmatmul.mubr.bf16.gmra.mxu1 %v13775_v55  ;;  %v13784_v34 = vld [vmem:[#allocation3 + $0x90] sm:$0xff]   ;;  %v4705_v5 = vsel %vm391_vm0, 0.0, %v4635_v30 }
 0x2e9   : > { %v4385_v60 = vrot.slane %v4065_v28, 2  ;;  %v4636_v2 = vrot.slane %v4559_v3, 7  ;;  %v4453_v27 = vadd.f32 %v4389_v43, %v13432_v6  ;;  %11055 = vmatprep.mubr.bf16.mxu1 %v13779_v17  ;;  %11120 = vmatmul.mubr.bf16.gmra.mxu0 %v13777_v46 }
 0x2ea   : > { %v4706_v1 = vsel %vm391_vm0, 0.0, %v4638_v14  ;;  %v4529_v8 = vadd.f32 %v13741_v61, %v4490_v21  ;;  %11123 = vmatprep.mubr.bf16.mxu0 %v13784_v34 }
 0x2eb   : > { %v4387_v24 = vsel %vm4309_vm3, %v4385_v60, %v4386_v54  ;;  %v4637_v7 = vsel %vm391_vm0, %v4635_v30, %v4636_v2  ;;  %v4721_v36 = vsel %vm391_vm0, %v4636_v2, 0.0  ;;  %v4492_v25 = vmul.f32 %v13726_v63, %v4453_v27  ;;  %v13840_v27 = vld [vmem:[#allocation3] sm:$0xff]  }
 0x2ec   : > { %v4452_v62 = vadd.f32 %v4387_v24, %v13438_v19  ;;  %v9776_v33 = vpack.c.bf16 %v4637_v7, %v4705_v5  ;;  %v9781_v6 = vpack.c.bf16 %v4706_v1, %v4721_v36  ;;  %v4561_v57 = vmax.f32 %v4529_v8, 0.0  ;;  %v11869_v24 = vld [vmem:[#allocation4 + $0xb0] sm:$0xff]  }
 0x2ed   : > { %v4531_v15 = vadd.f32 %v13741_v61, %v4492_v25  ;;  %v13846_v7 = vld [vmem:[#allocation3 + $0xc] sm:$0xff]  }
 0x2ee   : > { %v4491_v52 = vmul.f32 %v13726_v63, %v4452_v62  ;;  %v13800_v54 = vld [vmem:[#allocation3 + $0x94] sm:$0xff]   ;;  %9849 = vst [vmem:[#allocation3 + $0xa8] sm:$0xff] %v9776_v33   ;;  %9850 = vst [vmem:[#allocation3 + $0xb0] sm:$0xff] %v9781_v6   ;;  %v4639_v39 = vrot.slane %v4561_v57, 7  ;;  %v13805_v19 = vld [vmem:[#allocation3 + $0x9c] sm:$0xff]  }
 0x2ef   : > { %v13802_v38 = vld [vmem:[#allocation3 + $0x98] sm:$0xff]   ;;  %v4563_v12 = vmax.f32 %v4531_v15, 0.0  ;;  %v13810_v9 = vld [vmem:[#allocation3 + $0xa0] sm:$0xff]   ;;  %v13849_v36 = vld [vmem:[#allocation3 + $0x8] sm:$0xff]  }
 0x2f0   : > { %v4530_v41 = vadd.f32 %v13741_v61, %v4491_v52  ;;  %v4640_v0 = vsel %vm391_vm0, %v4638_v14, %v4639_v39  ;;  %v4722_v22 = vsel %vm391_vm0, %v4639_v39, 0.0  ;;  %11056 = vmatmul.mubr.bf16.gmra.mxu1 %v13800_v54  ;;  %v13852_v25 = vld [vmem:[#allocation3 + $0x10] sm:$0xff]   ;;  %v11870_v62 = vld [vmem:[#allocation4 + $0xa8] sm:$0xff]   ;;  %v11863_v33 = vld [vmem:[#allocation4 + $0x170] sm:$0xff]  }
 0x2f1   : > { %v9786_v63 = vpack.c.bf16 %v4722_v22, %v4640_v0  ;;  %v4642_v29 = vrot.slane %v4563_v12, 7  ;;  %11059 = vmatprep.mubr.bf16.mxu1 %v13805_v19  ;;  %11124 = vmatmul.mubr.bf16.gmra.mxu0 %v13802_v38  ;;  %v13856_v6 = vld [vmem:[#allocation3 + $0x14] sm:$0xff]   ;;  %v13859_v15 = vld [vmem:[#allocation3 + $0x1c] sm:$0xff]   ;;  %v13869_v0 = vld [vmem:[#allocation3 + $0x24] sm:$0xff]  }
 0x2f2   : > { %v4562_v30 = vmax.f32 %v4530_v41, 0.0  ;;  %11127 = vmatprep.mubr.bf16.mxu0 %v13810_v9  ;;  %v11871_v57 = vld [vmem:[#allocation4 + $0xa0] sm:$0xff]   ;;  %v13866_v39 = vld [vmem:[#allocation3 + $0x20] sm:$0xff]   ;;  %v11873_v12 = vld [vmem:[#allocation4 + $0x98] sm:$0xff]  }
 0x2f3   : > { %9851 = vst [vmem:[#allocation3 + $0xb8] sm:$0xff] %v9786_v63   ;;  %v4723_v61 = vsel %vm391_vm0, %v4642_v29, 0.0  ;;  %v13863_v52 = vld [vmem:[#allocation3 + $0x18] sm:$0xff]   ;;  %v13872_v22 = vld [vmem:[#allocation3 + $0x2c] sm:$0xff]  }
 0x2f4   : > { %v4641_v18 = vrot.slane %v4562_v30, 7  ;;  %v9796_v48 = vpack.c.bf16 %v15115_v40, %v4723_v61  ;;  %v11865_v41 = vld [vmem:[#allocation4 + $0x160] sm:$0xff]   ;;  %v13875_v63 = vld [vmem:[#allocation3 + $0x28] sm:$0xff]   ;;  %v13878_v30 = vld [vmem:[#allocation3 + $0x30] sm:$0xff]  }
 0x2f5   : > { %v13819_v14 = vld [vmem:[#allocation3 + $0xa4] sm:$0xff]   ;;  %v13823_v43 = vld [vmem:[#allocation3 + $0xac] sm:$0xff]   ;;  %v11877_v40 = vld [vmem:[#allocation4 + $0x80] sm:$0xff]  }
 0x2f6   : > { %v4643_v59 = vsel %vm391_vm0, %v4641_v18, %v4642_v29  ;;  %v4707_v28 = vsel %vm391_vm0, 0.0, %v4641_v18  ;;  %9853 = vst [vmem:[#allocation3 + $0xc8] sm:$0xff] %v9796_v48   ;;  %v13821_v21 = vld [vmem:[#allocation3 + $0xa8] sm:$0xff]   ;;  %v13826_v60 = vld [vmem:[#allocation3 + $0xb0] sm:$0xff]   ;;  %v11875_v61 = vld [vmem:[#allocation4 + $0x88] sm:$0xff]  }
 0x2f7   : > { %v9791_v3 = vpack.c.bf16 %v4643_v59, %v4707_v28  ;;  %v11866_v29 = vld [vmem:[#allocation4 + $0x158] sm:$0xff]   ;;  %v11868_v18 = vld [vmem:[#allocation4 + $0x150] sm:$0xff]   ;;  %v11872_v48 = vld [vmem:[#allocation4 + $0x148] sm:$0xff]  }
 0x2f8   : > { %11060 = vmatmul.mubr.bf16.gmra.mxu1 %v13819_v14  ;;  %v11876_v59 = vld [vmem:[#allocation4 + $0x140] sm:$0xff]   ;;  %v11879_v28 = vld [vmem:[#allocation4 + $0x1b0] sm:$0xff]  }
 0x2f9   : > { %9852 = vst [vmem:[#allocation3 + $0xc0] sm:$0xff] %v9791_v3   ;;  %11063 = vmatprep.mubr.bf16.mxu1 %v13823_v43  ;;  %11128 = vmatmul.mubr.bf16.gmra.mxu0 %v13821_v21 }
 0x2fa   : > { %11131 = vmatprep.mubr.bf16.mxu0 %v13826_v60  ;;  %v13831_v5 = vld [vmem:[#allocation3 + $0xb4] sm:$0xff]  }
 0x2fb   : > { %v13836_v2 = vld [vmem:[#allocation3 + $0xb8] sm:$0xff]  }
 0x300   : > { %v13833_v1 = vld [vmem:[#allocation3 + $0xbc] sm:$0xff]   ;;  %11064 = vmatmul.mubr.bf16.gmra.mxu1 %v13831_v5  ;;  %v13843_v8 = vld [vmem:[#allocation3 + $0xc4] sm:$0xff]  }
 0x301   : > { %11067 = vmatprep.mubr.bf16.mxu1 %v13833_v1  ;;  %11132 = vmatmul.mubr.bf16.gmra.mxu0 %v13836_v2 }
 0x302   : > { %11215 = vmatprep.mubr.bf16.mxu0 %v13840_v27 }
 0x308   : > { %11068 = vmatmul.mubr.bf16.gmra.mxu1 %v13843_v8 }
 0x309   : > { %11151 = vmatprep.mubr.bf16.mxu1 %v13846_v7  ;;  %11216 = vmatmul.mubr.bf16.vlgmr.msra.gmra.mxu0 %v13849_v36 }
 0x30a   : > { %11219 = vmatprep.mubr.bf16.mxu0 %v13852_v25  ;;  %11328 = vmatpush3.bf16.msra.mxu0 %v13660_v44  ;;  %v11864_v44 = vld [vmem:[#allocation4 + $0x168] sm:$0xff]  }
 0x30b   : > { %11329 = vmatprep.subr.bf16.mxu0 %v11869_v24 }
 0x30e   : > { %11330 = vmatpush3.bf16.msra.mxu0 %v11869_v24  ;;  %v11887_v24 = vld [vmem:[#allocation4 + $0x1e0] sm:$0xff]  }
 0x30f   : > { %11331 = vmatprep.subr.bf16.mxu0 %v11870_v62 }
 0x310   : > { %11152 = vmatmul.mubr.bf16.vlgmr.msra.gmra.mxu1 %v13856_v6 }
 0x311   : > { %11155 = vmatprep.mubr.bf16.mxu1 %v13859_v15  ;;  %11264 = vmatpush3.bf16.msra.mxu1 %v13656_v35  ;;  %v11874_v35 = vld [vmem:[#allocation4 + $0x90] sm:$0xff]  }
 0x312   : > { %11220 = vmatmul.mubr.bf16.gmra.mxu0 %v13863_v52  ;;  %11265 = vmatprep.subr.bf16.mxu1 %v11863_v33 }
 0x313   : > { %11223 = vmatprep.mubr.bf16.mxu0 %v13866_v39  ;;  %11332 = vmatpush3.bf16.msra.mxu0 %v11870_v62  ;;  %v11880_v62 = vld [vmem:[#allocation4 + $0x1a8] sm:$0xff]  }
 0x314   : > { %11333 = vmatprep.subr.bf16.mxu0 %v11871_v57 }
 0x315   : > { %11266 = vmatpush3.bf16.msra.mxu1 %v11863_v33 }
 0x316   : > { %11267 = vmatprep.subr.bf16.mxu1 %v11864_v44 }
 0x317   : > { %11334 = vmatpush3.bf16.msra.mxu0 %v11871_v57 }
 0x318   : > { %11156 = vmatmul.mubr.bf16.gmra.mxu1 %v13869_v0  ;;  %11335 = vmatprep.subr.bf16.mxu0 %v11873_v12 }
 0x319   : > { %11159 = vmatprep.mubr.bf16.mxu1 %v13872_v22  ;;  %11268 = vmatpush3.bf16.msra.mxu1 %v11864_v44  ;;  %v11889_v44 = vld [vmem:[#allocation4 + $0x1d8] sm:$0xff]  }
 0x31a   : > { %11224 = vmatmul.mubr.bf16.gmra.mxu0 %v13875_v63  ;;  %11269 = vmatprep.subr.bf16.mxu1 %v11865_v41 }
 0x31b   : > { %11227 = vmatprep.mubr.bf16.mxu0 %v13878_v30  ;;  %11336 = vmatpush3.bf16.msra.mxu0 %v11873_v12 }
 0x31c   : > { %11337 = vmatprep.subr.bf16.mxu0 %v11874_v35 }
 0x31d   : > { %11270 = vmatpush3.bf16.msra.mxu1 %v11865_v41 }
 0x31e   : > { %11271 = vmatprep.subr.bf16.mxu1 %v11866_v29 }
 0x31f   : > { %11338 = vmatpush3.bf16.msra.mxu0 %v11874_v35 }
 0x320   : > { %11160 = vmatmul.mubr.bf16.gmra.mxu1 %v13593_v13  ;;  %11339 = vmatprep.subr.bf16.mxu0 %v11875_v61  ;;  %v11878_v13 = vld [vmem:[#allocation4 + $0x1b8] sm:$0xff]  }
 0x321   : > { %11163 = vmatprep.mubr.bf16.mxu1 %v13606_v51  ;;  %11272 = vmatpush3.bf16.msra.mxu1 %v11866_v29 }
 0x322   : > { %11228 = vmatmul.mubr.bf16.gmra.mxu0 %v13602_v42  ;;  %11273 = vmatprep.subr.bf16.mxu1 %v11868_v18  ;;  %v11883_v42 = vld [vmem:[#allocation4 + $0x1f8] sm:$0xff]  }
 0x323   : > { %11231 = vmatprep.mubr.bf16.mxu0 %v13608_v26  ;;  %11340 = vmatpush3.bf16.msra.mxu0 %v11875_v61  ;;  %v11885_v26 = vld [vmem:[#allocation4 + $0x1f0] sm:$0xff]  }
 0x324   : > { %11341 = vmatprep.subr.bf16.mxu0 %v11877_v40 }
 0x325   : > { %11274 = vmatpush3.bf16.msra.mxu1 %v11868_v18 }
 0x326   : > { %11275 = vmatprep.subr.bf16.mxu1 %v11872_v48 }
 0x327   : > { %11342 = vmatpush3.bf16.msra.mxu0 %v11877_v40 }
 0x328   : > { %11164 = vmatmul.mubr.bf16.gmra.mxu1 %v13626_v20  ;;  %11455 = vmatprep.subr.bf16.mxu0 %v11883_v42 }
 0x329   : > { %11167 = vmatprep.mubr.bf16.mxu1 %v13641_v47  ;;  %11276 = vmatpush3.bf16.msra.mxu1 %v11872_v48  ;;  %v11886_v47 = vld [vmem:[#allocation4 + $0x1e8] sm:$0xff]  }
 0x32a   : > { %11232 = vmatmul.mubr.bf16.gmra.mxu0 %v13635_v31  ;;  %11277 = vmatprep.subr.bf16.mxu1 %v11876_v59 }
 0x32b   : > { %11235 = vmatprep.mubr.bf16.mxu0 %v13647_v23 }
 0x32d   : > { %11278 = vmatpush3.bf16.msra.mxu1 %v11876_v59  ;;  %v11882_v59 = vld [vmem:[#allocation4 + $0x198] sm:$0xff]  }
 0x32e   : > { %11391 = vmatprep.subr.bf16.mxu1 %v11878_v13 }
 0x330   : > { %11168 = vmatmul.mubr.bf16.gmra.mxu1 %v13667_v53 }
 0x331   : > { %11171 = vmatprep.mubr.bf16.mxu1 %v13669_v45 }
 0x332   : > { %11236 = vmatmul.mubr.bf16.gmra.mxu0 %v13676_v11 }
 0x333   : > { %11239 = vmatprep.mubr.bf16.mxu0 %v13678_v4 }
 0x338   : > { %11172 = vmatmul.mubr.bf16.gmra.mxu1 %v13701_v50 }
 0x339   : > { %11175 = vmatprep.mubr.bf16.mxu1 %v13714_v37 }
 0x33a   : > { %11240 = vmatmul.mubr.bf16.gmra.mxu0 %v13703_v16 }
 0x33b   : > { %11243 = vmatprep.mubr.bf16.mxu0 %v13721_v32 }
 0x340   : > { %11176 = vmatmul.mubr.bf16.gmra.mxu1 %v13734_v49 }
 0x341   : > { %11179 = vmatprep.mubr.bf16.mxu1 %v13749_v56 }
 0x342   : > { %11244 = vmatmul.mubr.bf16.gmra.mxu0 %v13745_v10 }
 0x343   : > { %11247 = vmatprep.mubr.bf16.mxu0 %v13754_v58 }
 0x348   : > { %11180 = vmatmul.mubr.bf16.gmra.mxu1 %v13775_v55 }
 0x349   : > { %11183 = vmatprep.mubr.bf16.mxu1 %v13779_v17 }
 0x34a   : > { %11248 = vmatmul.mubr.bf16.gmra.mxu0 %v13777_v46 }
 0x34b   : > { %11251 = vmatprep.mubr.bf16.mxu0 %v13784_v34 }
 0x350   : > { %11184 = vmatmul.mubr.bf16.gmra.mxu1 %v13800_v54 }
 0x351   : > { %11187 = vmatprep.mubr.bf16.mxu1 %v13805_v19 }
 0x352   : > { %11252 = vmatmul.mubr.bf16.gmra.mxu0 %v13802_v38 }
 0x353   : > { %11255 = vmatprep.mubr.bf16.mxu0 %v13810_v9 }
 0x358   : > { %11188 = vmatmul.mubr.bf16.gmra.mxu1 %v13819_v14 }
 0x359   : > { %11191 = vmatprep.mubr.bf16.mxu1 %v13823_v43 }
 0x35a   : > { %11256 = vmatmul.mubr.bf16.gmra.mxu0 %v13821_v21 }
 0x35b   : > { %11259 = vmatprep.mubr.bf16.mxu0 %v13826_v60 }
 0x360   : > { %11192 = vmatmul.mubr.bf16.gmra.mxu1 %v13831_v5 }
 0x361   : > { %11195 = vmatprep.mubr.bf16.mxu1 %v13833_v1 }
 0x362   : > { %11260 = vmatmul.mubr.bf16.gmra.mxu0 %v13836_v2 }
 0x363   : > { %11343 = vmatprep.mubr.bf16.mxu0 %v13840_v27 }
 0x367   : > { %v11089_v51 = vpop.f32.mrf.mxu0 }
 0x368   : > { %11196 = vmatmul.mubr.bf16.gmra.mxu1 %v13843_v8  ;;  %v11891_v51 = vld [vmem:[#allocation4 + $0x1c8] sm:$0xff]  }
 0x369   : > { %11279 = vmatprep.mubr.bf16.mxu1 %v13846_v7  ;;  %v5777_v20 = vpop.f32.mrf.mxu0 }
 0x36a   : > { %11344 = vmatmul.mubr.bf16.vlgmr.msra.gmra.mxu0 %v13849_v36 }
 0x36b   : > { %11347 = vmatprep.mubr.bf16.mxu0 %v13852_v25  ;;  %11456 = vmatpush3.bf16.msra.mxu0 %v11883_v42  ;;  %v11090_v31 = vpop.f32.mrf.mxu0 }
 0x36c   : > { %11457 = vmatprep.subr.bf16.mxu0 %v11885_v26 }
 0x36d   : > { %v5780_v23 = vpop.f32.mrf.mxu0 }
 0x36f   : > { %v11025_v3 = vpop.f32.mrf.mxu1  ;;  %11458 = vmatpush3.bf16.msra.mxu0 %v11885_v26 }
 0x370   : > { %v11093_v27 = vpop.f32.mrf.mxu0  ;;  %11280 = vmatmul.mubr.bf16.vlgmr.msra.gmra.mxu1 %v13856_v6  ;;  %11459 = vmatprep.subr.bf16.mxu0 %v11886_v47  ;;  %v11990_v3 = vld [vmem:[#allocation3 + $0x38] sm:$0xff]  }
 0x371   : > { %11283 = vmatprep.mubr.bf16.mxu1 %v13859_v15  ;;  %11392 = vmatpush3.bf16.msra.mxu1 %v11878_v13  ;;  %v5376_v7 = vpop.f32.mrf.mxu1 }
 0x372   : > { %11348 = vmatmul.mubr.bf16.gmra.mxu0 %v13863_v52  ;;  %v13924_v36 = vadd.f32 %v5777_v20, %v5376_v7  ;;  %v5792_v25 = vpop.f32.mrf.mxu0  ;;  %11393 = vmatprep.subr.bf16.mxu1 %v11879_v28  ;;  %v11881_v52 = vld [vmem:[#allocation4 + $0x1a0] sm:$0xff]   ;;  %v11884_v20 = vld [vmem:[#allocation4 + $0x190] sm:$0xff]   ;;  %v11991_v7 = vld [vmem:[#allocation3 + $0x40] sm:$0xff]  }
 0x373   : > { %11351 = vmatprep.mubr.bf16.mxu0 %v13866_v39  ;;  %v11026_v33 = vpop.f32.mrf.mxu1  ;;  %11460 = vmatpush3.bf16.msra.mxu0 %v11886_v47  ;;  %v11890_v39 = vld [vmem:[#allocation4 + $0x1d0] sm:$0xff]   ;;  %v11894_v47 = vld [vmem:[#allocation4 + $0x1c0] sm:$0xff]  }
 0x374   : > { %v13927_v57 = vadd.f32 %v11090_v31, %v11026_v33  ;;  %v11094_v6 = vpop.f32.mrf.mxu0  ;;  %11461 = vmatprep.subr.bf16.mxu0 %v11887_v24  ;;  %v11988_v31 = vld [vmem:[#allocation3 + $0x34] sm:$0xff]  }
 0x375   : > { %v5379_v12 = vpop.f32.mrf.mxu1  ;;  %11394 = vmatpush3.bf16.msra.mxu1 %v11879_v28 }
 0x376   : > { %v13929_v15 = vadd.f32 %v5780_v23, %v5379_v12  ;;  %v5795_v41 = vpop.f32.mrf.mxu0  ;;  %11395 = vmatprep.subr.bf16.mxu1 %v11880_v62 }
 0x377   : > { %v11029_v35 = vpop.f32.mrf.mxu1  ;;  %11462 = vmatpush3.bf16.msra.mxu0 %v11887_v24  ;;  %v11888_v24 = vld [vmem:[#allocation4 + $0x188] sm:$0xff]  }
 0x378   : > { %v13931_v29 = vadd.f32 %v11093_v27, %v11029_v35  ;;  %v11097_v61 = vpop.f32.mrf.mxu0  ;;  %11284 = vmatmul.mubr.bf16.gmra.mxu1 %v13869_v0  ;;  %11463 = vmatprep.subr.bf16.mxu0 %v11889_v44  ;;  %v11992_v35 = vld [vmem:[#allocation3 + $0x44] sm:$0xff]  }
 0x379   : > { %11287 = vmatprep.mubr.bf16.mxu1 %v13872_v22  ;;  %v5391_v18 = vpop.f32.mrf.mxu1  ;;  %11396 = vmatpush3.bf16.msra.mxu1 %v11880_v62 }
 0x37a   : > { %11352 = vmatmul.mubr.bf16.gmra.mxu0 %v13875_v63  ;;  %v13936_v40 = vadd.f32 %v5792_v25, %v5391_v18  ;;  %v5807_v48 = vpop.f32.mrf.mxu0  ;;  %11397 = vmatprep.subr.bf16.mxu1 %v11881_v52  ;;  %v11994_v18 = vld [vmem:[#allocation3 + $0x48] sm:$0xff]  }
 0x37b   : > { %11355 = vmatprep.mubr.bf16.mxu0 %v13878_v30  ;;  %v11030_v13 = vpop.f32.mrf.mxu1  ;;  %11464 = vmatpush3.bf16.msra.mxu0 %v11889_v44  ;;  %v11989_v30 = vld [vmem:[#allocation3 + $0x3c] sm:$0xff]  }
 0x37c   : > { %v13939_v42 = vadd.f32 %v11094_v6, %v11030_v13  ;;  %v11098_v0 = vpop.f32.mrf.mxu0  ;;  %11465 = vmatprep.subr.bf16.mxu0 %v11890_v39  ;;  %v11893_v44 = vld [vmem:[#allocation4 + $0x180] sm:$0xff]   ;;  %v11995_v13 = vld [vmem:[#allocation3 + $0x50] sm:$0xff]  }
 0x37d   : > { %v5394_v26 = vpop.f32.mrf.mxu1  ;;  %11398 = vmatpush3.bf16.msra.mxu1 %v11881_v52 }
 0x37e   : > { %v5809_v22 = vpop.f32.mrf.mxu0  ;;  %11399 = vmatprep.subr.bf16.mxu1 %v11882_v59 }
 0x37f   : > { %11466 = vmatpush3.bf16.msra.mxu0 %v11890_v39  ;;  %v11033_v63 = vpop.f32.mrf.mxu1 }
 0x380   : > { %11288 = vmatmul.mubr.bf16.gmra.mxu1 %v11988_v31  ;;  %11467 = vmatprep.subr.bf16.mxu0 %v11891_v51  ;;  %v13941_v23 = vadd.f32 %v11097_v61, %v11033_v63  ;;  %v11101_v28 = vpop.f32.mrf.mxu0  ;;  %v11993_v61 = vld [vmem:[#allocation3 + $0x4c] sm:$0xff]  }
 0x381   : > { %11291 = vmatprep.mubr.bf16.mxu1 %v11989_v30  ;;  %11400 = vmatpush3.bf16.msra.mxu1 %v11882_v59  ;;  %v5406_v27 = vpop.f32.mrf.mxu1  ;;  %v13945_v59 = vld [vmem:[#allocation4 + $0x238] sm:$0xff]  }
 0x382   : > { %11356 = vmatmul.mubr.bf16.gmra.mxu0 %v11990_v3  ;;  %11401 = vmatprep.subr.bf16.mxu1 %v11884_v20  ;;  %v5821_v25 = vpop.f32.mrf.mxu0 }
 0x383   : > { %11359 = vmatprep.mubr.bf16.mxu0 %v11991_v7  ;;  %11468 = vmatpush3.bf16.msra.mxu0 %v11891_v51  ;;  %v11034_v62 = vpop.f32.mrf.mxu1 }
 0x384   : > { %11469 = vmatprep.subr.bf16.mxu0 %v11894_v47  ;;  %v11102_v33 = vpop.f32.mrf.mxu0 }
 0x385   : > { %11402 = vmatpush3.bf16.msra.mxu1 %v11884_v20  ;;  %v5408_v6 = vpop.f32.mrf.mxu1 }
 0x386   : > { %11403 = vmatprep.subr.bf16.mxu1 %v11888_v24  ;;  %v13943_v12 = vadd.f32 %v5809_v22, %v5408_v6  ;;  %v5824_v41 = vpop.f32.mrf.mxu0 }
 0x387   : > { %11470 = vmatpush3.bf16.msra.mxu0 %v11894_v47  ;;  %v11037_v52 = vpop.f32.mrf.mxu1 }
 0x388   : > { %11292 = vmatmul.mubr.bf16.gmra.mxu1 %v11992_v35  ;;  %v11105_v39 = vpop.f32.mrf.mxu0 }
 0x389   : > { %11295 = vmatprep.mubr.bf16.mxu1 %v11993_v61  ;;  %11404 = vmatpush3.bf16.msra.mxu1 %v11888_v24  ;;  %v5420_v48 = vpop.f32.mrf.mxu1 }
 0x38a   : > { %11360 = vmatmul.mubr.bf16.gmra.mxu0 %v11994_v18  ;;  %11405 = vmatprep.subr.bf16.mxu1 %v11893_v44  ;;  %v13947_v0 = vadd.f32 %v5821_v25, %v5420_v48  ;;  %v5836_v51 = vpop.f32.mrf.mxu0 }
 0x38b   : > { %11363 = vmatprep.mubr.bf16.mxu0 %v11995_v13  ;;  %v11038_v26 = vpop.f32.mrf.mxu1 }
 0x38c   : > { %15116 = vst [vmem:[#allocation69_spill] sm:$0xff] %v13947_v0  ;;  %v13949_v22 = vadd.f32 %v11102_v33, %v11038_v26  ;;  %v11106_v20 = vpop.f32.mrf.mxu0 }
 0x38d   : > { %11406 = vmatpush3.bf16.msra.mxu1 %v11893_v44  ;;  %v5423_v63 = vpop.f32.mrf.mxu1 }
 0x38e   : > { %15117 = vst [vmem:[#allocation70_spill] sm:$0xff] %v13949_v22  ;;  %11519 = vmatprep.subr.bf16.mxu1 %v13945_v59  ;;  %v13952_v31 = vadd.f32 %v5824_v41, %v5423_v63  ;;  %v5839_v47 = vpop.f32.mrf.mxu0 }
 0x38f   : > { %v11041_v30 = vpop.f32.mrf.mxu1 }
 0x390   : > { %15118 = vst [vmem:[#allocation71_spill] sm:$0xff] %v13952_v31  ;;  %11296 = vmatmul.mubr.bf16.gmra.mxu1 %v13667_v53  ;;  %v13955_v28 = vadd.f32 %v11105_v39, %v11041_v30  ;;  %v11109_v3 = vpop.f32.mrf.mxu0 }
 0x391   : > { %11299 = vmatprep.mubr.bf16.mxu1 %v13669_v45  ;;  %v5435_v27 = vpop.f32.mrf.mxu1 }
 0x392   : > { %15119 = vst [vmem:[#allocation72_spill] sm:$0xff] %v13955_v28  ;;  %11364 = vmatmul.mubr.bf16.gmra.mxu0 %v13676_v11  ;;  %v13960_v24 = vadd.f32 %v5836_v51, %v5435_v27  ;;  %v5851_v7 = vpop.f32.mrf.mxu0 }
 0x393   : > { %11367 = vmatprep.mubr.bf16.mxu0 %v13678_v4  ;;  %v11042_v25 = vpop.f32.mrf.mxu1 }
 0x394   : > { %15120 = vst [vmem:[#allocation48_spill] sm:$0xff] %v13960_v24  ;;  %v13962_v62 = vadd.f32 %v11106_v20, %v11042_v25  ;;  %v11110_v33 = vpop.f32.mrf.mxu0  ;;  %v14148_v24 = vld [vmem:[#allocation3 + $0xa0] sm:$0xff]  }
 0x395   : > { %v5438_v6 = vpop.f32.mrf.mxu1 }
 0x396   : > { %15121 = vst [vmem:[#allocation49_spill] sm:$0xff] %v13962_v62  ;;  %v5853_v44 = vpop.f32.mrf.mxu0  ;;  %v14132_v62 = vld [vmem:[#allocation3 + $0x90] sm:$0xff]  }
 0x398   : > { %v11045_v53 = vpop.f32.mrf.mxu1  ;;  %11300 = vmatmul.mubr.bf16.gmra.mxu1 %v13701_v50 }
 0x399   : > { %v13965_v41 = vadd.f32 %v11109_v3, %v11045_v53  ;;  %11303 = vmatprep.mubr.bf16.mxu1 %v13714_v37  ;;  %v11113_v45 = vpop.f32.mrf.mxu0 }
 0x39a   : > { %11368 = vmatmul.mubr.bf16.gmra.mxu0 %v13703_v16  ;;  %v5450_v11 = vpop.f32.mrf.mxu1 }
 0x39b   : > { %15122 = vst [vmem:[#allocation50_spill] sm:$0xff] %v13965_v41  ;;  %11371 = vmatprep.mubr.bf16.mxu0 %v13721_v32  ;;  %v5865_v4 = vpop.f32.mrf.mxu0 }
 0x39c   : > { %v11046_v52 = vpop.f32.mrf.mxu1 }
 0x39d   : > { %v11114_v35 = vpop.f32.mrf.mxu0 }
 0x39e   : > { %v5452_v61 = vpop.f32.mrf.mxu1 }
 0x39f   : > { %v13970_v39 = vadd.f32 %v5853_v44, %v5452_v61  ;;  %v5868_v18 = vpop.f32.mrf.mxu0 }
 0x3a0   : > { %v11049_v48 = vpop.f32.mrf.mxu1  ;;  %11304 = vmatmul.mubr.bf16.gmra.mxu1 %v13734_v49 }
 0x3a1   : > { %15123 = vst [vmem:[#allocation73_spill] sm:$0xff] %v13970_v39  ;;  %11307 = vmatprep.mubr.bf16.mxu1 %v13749_v56  ;;  %v11117_v50 = vpop.f32.mrf.mxu0 }
 0x3a2   : > { %11372 = vmatmul.mubr.bf16.gmra.mxu0 %v13745_v10  ;;  %v5464_v37 = vpop.f32.mrf.mxu1 }
 0x3a3   : > { %11375 = vmatprep.mubr.bf16.mxu0 %v13754_v58  ;;  %v13976_v16 = vadd.f32 %v5865_v4, %v5464_v37  ;;  %v5880_v32 = vpop.f32.mrf.mxu0 }
 0x3a4   : > { %v11050_v13 = vpop.f32.mrf.mxu1 }
 0x3a5   : > { %15124 = vst [vmem:[#allocation74_spill] sm:$0xff] %v13976_v16  ;;  %v13978_v51 = vadd.f32 %v11114_v35, %v11050_v13  ;;  %v11118_v26 = vpop.f32.mrf.mxu0 }
 0x3a6   : > { %v5467_v20 = vpop.f32.mrf.mxu1 }
 0x3a7   : > { %15125 = vst [vmem:[#allocation76_spill] sm:$0xff] %v13978_v51  ;;  %v13980_v63 = vadd.f32 %v5868_v18, %v5467_v20  ;;  %v5883_v47 = vpop.f32.mrf.mxu0 }
 0x3a8   : > { %v11053_v49 = vpop.f32.mrf.mxu1  ;;  %11308 = vmatmul.mubr.bf16.gmra.mxu1 %v13775_v55 }
 0x3a9   : > { %15126 = vst [vmem:[#allocation52_spill] sm:$0xff] %v13980_v63  ;;  %v13983_v56 = vadd.f32 %v11117_v50, %v11053_v49  ;;  %11311 = vmatprep.mubr.bf16.mxu1 %v13779_v17  ;;  %v11121_v10 = vpop.f32.mrf.mxu0 }
 0x3aa   : > { %11376 = vmatmul.mubr.bf16.gmra.mxu0 %v13777_v46  ;;  %v5479_v58 = vpop.f32.mrf.mxu1 }
 0x3ab   : > { %15127 = vst [vmem:[#allocation75_spill] sm:$0xff] %v13983_v56  ;;  %11379 = vmatprep.mubr.bf16.mxu0 %v13784_v34  ;;  %v13988_v30 = vadd.f32 %v5880_v32, %v5479_v58  ;;  %v5895_v3 = vpop.f32.mrf.mxu0  ;;  %v14116_v56 = vld [vmem:[#allocation3 + $0x80] sm:$0xff]  }
 0x3ac   : > { %v11054_v27 = vpop.f32.mrf.mxu1 }
 0x3ad   : > { %15128 = vst [vmem:[#allocation51_spill] sm:$0xff] %v13988_v30  ;;  %v13990_v7 = vadd.f32 %v11118_v26, %v11054_v27  ;;  %v11122_v25 = vpop.f32.mrf.mxu0 }
 0x3ae   : > { %v5482_v33 = vpop.f32.mrf.mxu1 }
 0x3af   : > { %15129 = vst [vmem:[#allocation53_spill] sm:$0xff] %v13990_v7  ;;  %v5897_v6 = vpop.f32.mrf.mxu0 }
 0x3b0   : > { %v11057_v55 = vpop.f32.mrf.mxu1  ;;  %11312 = vmatmul.mubr.bf16.gmra.mxu1 %v13800_v54 }
 0x3b1   : > { %v13993_v44 = vadd.f32 %v11121_v10, %v11057_v55  ;;  %11315 = vmatprep.mubr.bf16.mxu1 %v13805_v19  ;;  %v11125_v46 = vpop.f32.mrf.mxu0 }
 0x3b2   : > { %11380 = vmatmul.mubr.bf16.gmra.mxu0 %v13802_v38  ;;  %v5494_v17 = vpop.f32.mrf.mxu1 }
 0x3b3   : > { %15130 = vst [vmem:[#allocation77_spill] sm:$0xff] %v13993_v44  ;;  %11383 = vmatprep.mubr.bf16.mxu0 %v13810_v9  ;;  %v5909_v34 = vpop.f32.mrf.mxu0 }
 0x3b4   : > { %v11058_v53 = vpop.f32.mrf.mxu1 }
 0x3b5   : > { %v11126_v45 = vpop.f32.mrf.mxu0 }
 0x3b6   : > { %v5496_v11 = vpop.f32.mrf.mxu1 }
 0x3b7   : > { %v13998_v4 = vadd.f32 %v5897_v6, %v5496_v11  ;;  %v5912_v52 = vpop.f32.mrf.mxu0  ;;  %v14035_v11 = vld [vmem:[#allocation3 + $0x30] sm:$0xff]  }
 0x3b8   : > { %v11061_v35 = vpop.f32.mrf.mxu1  ;;  %11316 = vmatmul.mubr.bf16.gmra.mxu1 %v13819_v14 }
 0x3b9   : > { %15131 = vst [vmem:[#allocation78_spill] sm:$0xff] %v13998_v4  ;;  %11319 = vmatprep.mubr.bf16.mxu1 %v13823_v43  ;;  %v11129_v54 = vpop.f32.mrf.mxu0  ;;  %v14040_v35 = vld [vmem:[#allocation3 + $0x38] sm:$0xff]  }
 0x3ba   : > { %11384 = vmatmul.mubr.bf16.gmra.mxu0 %v13821_v21  ;;  %v5508_v19 = vpop.f32.mrf.mxu1  ;;  %v14014_v21 = vld [vmem:[#allocation3 + $0x18] sm:$0xff]  }
 0x3bb   : > { %11387 = vmatprep.mubr.bf16.mxu0 %v13826_v60  ;;  %v14004_v38 = vadd.f32 %v5909_v34, %v5508_v19  ;;  %v5924_v9 = vpop.f32.mrf.mxu0  ;;  %v11902_v34 = vld [vmem:[#allocation4 + $0x230] sm:$0xff]  }
 0x3bc   : > { %v11062_v61 = vpop.f32.mrf.mxu1 }
 0x3bd   : > { %15132 = vst [vmem:[#allocation54_spill] sm:$0xff] %v14004_v38  ;;  %v14006_v18 = vadd.f32 %v11126_v45, %v11062_v61  ;;  %v11130_v48 = vpop.f32.mrf.mxu0  ;;  %v14100_v38 = vld [vmem:[#allocation3 + $0x70] sm:$0xff]  }
 0x3be   : > { %v5511_v50 = vpop.f32.mrf.mxu1 }
 0x3bf   : > { %15133 = vst [vmem:[#allocation79_spill] sm:$0xff] %v14006_v18  ;;  %v14008_v37 = vadd.f32 %v5912_v52, %v5511_v50  ;;  %v5927_v32 = vpop.f32.mrf.mxu0 }
 0x3c0   : > { %v11065_v14 = vpop.f32.mrf.mxu1  ;;  %11320 = vmatmul.mubr.bf16.gmra.mxu1 %v13831_v5 }
 0x3c1   : > { %15134 = vst [vmem:[#allocation80_spill] sm:$0xff] %v14008_v37  ;;  %v14011_v43 = vadd.f32 %v11129_v54, %v11065_v14  ;;  %11323 = vmatprep.mubr.bf16.mxu1 %v13833_v1  ;;  %v11133_v60 = vpop.f32.mrf.mxu0  ;;  %v14023_v1 = vld [vmem:[#allocation3 + $0x20] sm:$0xff]  }
 0x3c2   : > { %11388 = vmatmul.mubr.bf16.gmra.mxu0 %v13836_v2  ;;  %v5523_v13 = vpop.f32.mrf.mxu1  ;;  %v14028_v2 = vld [vmem:[#allocation3 + $0x28] sm:$0xff]  }
 0x3c3   : > { %15135 = vst [vmem:[#allocation55_spill] sm:$0xff] %v14011_v43  ;;  %11471 = vmatprep.mubr.bf16.mxu0 %v14014_v21  ;;  %v14018_v26 = vadd.f32 %v5924_v9, %v5523_v13  ;;  %v5939_v20 = vpop.f32.mrf.mxu0  ;;  %v11906_v9 = vld [vmem:[#allocation4 + $0x228] sm:$0xff]   ;;  %v11910_v13 = vld [vmem:[#allocation4 + $0x220] sm:$0xff]  }
 0x3c4   : > { %v11066_v47 = vpop.f32.mrf.mxu1 }
 0x3c5   : > { %15136 = vst [vmem:[#allocation81_spill] sm:$0xff] %v14018_v26  ;;  %v14020_v49 = vadd.f32 %v11130_v48, %v11066_v47  ;;  %v11134_v10 = vpop.f32.mrf.mxu0  ;;  %v14084_v26 = vld [vmem:[#allocation3 + $0x60] sm:$0xff]  }
 0x3c6   : > { %v5526_v5 = vpop.f32.mrf.mxu1  ;;  %v14052_v10 = vld [vmem:[#allocation3 + $0x40] sm:$0xff]  }
 0x3c7   : > { %15137 = vst [vmem:[#allocation82_spill] sm:$0xff] %v14020_v49  ;;  %v5941_v58 = vpop.f32.mrf.mxu0 }
 0x3c8   : > { %v11069_v3 = vpop.f32.mrf.mxu1  ;;  %11324 = vmatmul.mubr.bf16.gmra.mxu1 %v13843_v8 }
 0x3c9   : > { %v14025_v27 = vadd.f32 %v11133_v60, %v11069_v3  ;;  %11407 = vmatprep.mubr.bf16.mxu1 %v14014_v21  ;;  %v11217_v25 = vpop.f32.mrf.mxu0 }
 0x3ca   : > { %11472 = vmatmul.mubr.bf16.vlgmr.msra.gmra.mxu0 %v14023_v1  ;;  %v5538_v33 = vpop.f32.mrf.mxu1 }
 0x3cb   : > { %15138 = vst [vmem:[#allocation84_spill] sm:$0xff] %v14025_v27  ;;  %11475 = vmatprep.mubr.bf16.mxu0 %v14028_v2  ;;  %v6324_v6 = vpop.f32.mrf.mxu0  ;;  %v11914_v33 = vld [vmem:[#allocation4 + $0x218] sm:$0xff]  }
 0x3cc   : > { %v11070_v55 = vpop.f32.mrf.mxu1 }
 0x3cd   : > { %v11218_v46 = vpop.f32.mrf.mxu0 }
 0x3ce   : > { %v5540_v17 = vpop.f32.mrf.mxu1 }
 0x3cf   : > { %v14032_v8 = vadd.f32 %v5941_v58, %v5540_v17  ;;  %v6327_v53 = vpop.f32.mrf.mxu0  ;;  %v14057_v58 = vld [vmem:[#allocation3 + $0x48] sm:$0xff]  }
 0x3d0   : > { %v11153_v45 = vpop.f32.mrf.mxu1  ;;  %11408 = vmatmul.mubr.bf16.vlgmr.msra.gmra.mxu1 %v14023_v1 }
 0x3d1   : > { %15139 = vst [vmem:[#allocation85_spill] sm:$0xff] %v14032_v8  ;;  %v14037_v52 = vadd.f32 %v11217_v25, %v11153_v45  ;;  %11411 = vmatprep.mubr.bf16.mxu1 %v14028_v2  ;;  %11520 = vmatpush3.bf16.msra.mxu1 %v13945_v59  ;;  %v11918_v45 = vld [vmem:[#allocation4 + $0x210] sm:$0xff]   ;;  %v11925_v8 = vld [vmem:[#allocation4 + $0x200] sm:$0xff]  }
 0x3d2   : > { %v11221_v54 = vpop.f32.mrf.mxu0  ;;  %11476 = vmatmul.mubr.bf16.gmra.mxu0 %v14035_v11  ;;  %v6051_v19 = vpop.f32.mrf.mxu1  ;;  %11521 = vmatprep.subr.bf16.mxu1 %v11902_v34 }
 0x3d3   : > { %11479 = vmatprep.mubr.bf16.mxu0 %v14040_v35  ;;  %v14045_v61 = vadd.f32 %v6324_v6, %v6051_v19 }
 0x3d4   : > { %v6340_v48 = vpop.f32.mrf.mxu0  ;;  %v11154_v50 = vpop.f32.mrf.mxu1 }
 0x3d5   : > { %v14047_v32 = vadd.f32 %v11218_v46, %v11154_v50  ;;  %11522 = vmatpush3.bf16.msra.mxu1 %v11902_v34  ;;  %v14068_v50 = vld [vmem:[#allocation3 + $0x50] sm:$0xff]  }
 0x3d6   : > { %v11222_v14 = vpop.f32.mrf.mxu0  ;;  %v6054_v60 = vpop.f32.mrf.mxu1  ;;  %11523 = vmatprep.subr.bf16.mxu1 %v11906_v9 }
 0x3d7   : > { %v14049_v59 = vadd.f32 %v6327_v53, %v6054_v60 }
 0x3d8   : > { %v6343_v20 = vpop.f32.mrf.mxu0  ;;  %v11157_v47 = vpop.f32.mrf.mxu1  ;;  %11412 = vmatmul.mubr.bf16.gmra.mxu1 %v14035_v11 }
 0x3d9   : > { %v14054_v5 = vadd.f32 %v11221_v54, %v11157_v47  ;;  %11415 = vmatprep.mubr.bf16.mxu1 %v14040_v35  ;;  %11524 = vmatpush3.bf16.msra.mxu1 %v11906_v9 }
 0x3da   : > { %v11225_v3 = vpop.f32.mrf.mxu0  ;;  %11480 = vmatmul.mubr.bf16.gmra.mxu0 %v14052_v10  ;;  %v6067_v25 = vpop.f32.mrf.mxu1  ;;  %11525 = vmatprep.subr.bf16.mxu1 %v11910_v13 }
 0x3db   : > { %11483 = vmatprep.mubr.bf16.mxu0 %v14057_v58  ;;  %v14061_v6 = vadd.f32 %v6340_v48, %v6067_v25  ;;  %v14073_v48 = vld [vmem:[#allocation3 + $0x58] sm:$0xff]  }
 0x3dc   : > { %v6356_v55 = vpop.f32.mrf.mxu0  ;;  %v11158_v46 = vpop.f32.mrf.mxu1 }
 0x3dd   : > { %v14063_v17 = vadd.f32 %v11222_v14, %v11158_v46  ;;  %11526 = vmatpush3.bf16.msra.mxu1 %v11910_v13 }
 0x3de   : > { %v11226_v34 = vpop.f32.mrf.mxu0  ;;  %v6070_v53 = vpop.f32.mrf.mxu1  ;;  %11527 = vmatprep.subr.bf16.mxu1 %v11914_v33 }
 0x3df   : > { %v14065_v54 = vadd.f32 %v6343_v20, %v6070_v53  ;;  %v11922_v20 = vld [vmem:[#allocation4 + $0x208] sm:$0xff]  }
 0x3e0   : > { %v6359_v19 = vpop.f32.mrf.mxu0  ;;  %v11161_v9 = vpop.f32.mrf.mxu1  ;;  %11416 = vmatmul.mubr.bf16.gmra.mxu1 %v14052_v10 }
 0x3e1   : > { %v14070_v60 = vadd.f32 %v11225_v3, %v11161_v9  ;;  %11419 = vmatprep.mubr.bf16.mxu1 %v14057_v58  ;;  %11528 = vmatpush3.bf16.msra.mxu1 %v11914_v33 }
 0x3e2   : > { %v11229_v14 = vpop.f32.mrf.mxu0  ;;  %11484 = vmatmul.mubr.bf16.gmra.mxu0 %v14068_v50  ;;  %v6083_v13 = vpop.f32.mrf.mxu1  ;;  %11529 = vmatprep.subr.bf16.mxu1 %v11918_v45 }
 0x3e3   : > { %11487 = vmatprep.mubr.bf16.mxu0 %v14073_v48  ;;  %v14077_v47 = vadd.f32 %v6356_v55, %v6083_v13  ;;  %v14089_v55 = vld [vmem:[#allocation3 + $0x68] sm:$0xff]  }
 0x3e4   : > { %v6372_v25 = vpop.f32.mrf.mxu0  ;;  %v11162_v46 = vpop.f32.mrf.mxu1 }
 0x3e5   : > { %v14079_v53 = vadd.f32 %v11226_v34, %v11162_v46  ;;  %11530 = vmatpush3.bf16.msra.mxu1 %v11918_v45 }
 0x3e6   : > { %v11230_v3 = vpop.f32.mrf.mxu0  ;;  %v6086_v9 = vpop.f32.mrf.mxu1  ;;  %11531 = vmatprep.subr.bf16.mxu1 %v11922_v20 }
 0x3e7   : > { %v14081_v33 = vadd.f32 %v6359_v19, %v6086_v9 }
 0x3e8   : > { %v6375_v27 = vpop.f32.mrf.mxu0  ;;  %v11165_v49 = vpop.f32.mrf.mxu1  ;;  %11420 = vmatmul.mubr.bf16.gmra.mxu1 %v14068_v50 }
 0x3e9   : > { %v14086_v43 = vadd.f32 %v11229_v14, %v11165_v49  ;;  %11423 = vmatprep.mubr.bf16.mxu1 %v14073_v48  ;;  %11532 = vmatpush3.bf16.msra.mxu1 %v11922_v20 }
 0x3ea   : > { %v11233_v34 = vpop.f32.mrf.mxu0  ;;  %11488 = vmatmul.mubr.bf16.gmra.mxu0 %v14084_v26  ;;  %v6099_v45 = vpop.f32.mrf.mxu1  ;;  %11533 = vmatprep.subr.bf16.mxu1 %v11925_v8 }
 0x3eb   : > { %11491 = vmatprep.mubr.bf16.mxu0 %v14089_v55  ;;  %v14093_v19 = vadd.f32 %v6372_v25, %v6099_v45  ;;  %v14105_v25 = vld [vmem:[#allocation3 + $0x78] sm:$0xff]  }
 0x3ec   : > { %v6388_v13 = vpop.f32.mrf.mxu0  ;;  %v11166_v46 = vpop.f32.mrf.mxu1 }
 0x3ed   : > { %v14095_v9 = vadd.f32 %v11230_v3, %v11166_v46  ;;  %11534 = vmatpush3.bf16.msra.mxu1 %v11925_v8 }
 0x3ee   : > { %v11234_v49 = vpop.f32.mrf.mxu0  ;;  %v6102_v14 = vpop.f32.mrf.mxu1 }
 0x3ef   : > { %15140 = vst [vmem:[#allocation83_spill] sm:$0xff] %v14095_v9  ;;  %v14097_v37 = vadd.f32 %v6375_v27, %v6102_v14 }
 0x3f0   : > { %v6391_v18 = vpop.f32.mrf.mxu0  ;;  %v11169_v20 = vpop.f32.mrf.mxu1  ;;  %11424 = vmatmul.mubr.bf16.gmra.mxu1 %v14084_v26 }
 0x3f1   : > { %v14102_v4 = vadd.f32 %v11233_v34, %v11169_v20  ;;  %11427 = vmatprep.mubr.bf16.mxu1 %v14089_v55 }
 0x3f2   : > { %v11237_v45 = vpop.f32.mrf.mxu0  ;;  %11492 = vmatmul.mubr.bf16.gmra.mxu0 %v14100_v38  ;;  %v6115_v8 = vpop.f32.mrf.mxu1 }
 0x3f3   : > { %15141 = vst [vmem:[#allocation56_spill] sm:$0xff] %v14102_v4  ;;  %11495 = vmatprep.mubr.bf16.mxu0 %v14105_v25  ;;  %v14109_v27 = vadd.f32 %v6388_v13, %v6115_v8  ;;  %v14121_v13 = vld [vmem:[#allocation3 + $0x88] sm:$0xff]  }
 0x3f4   : > { %v6404_v3 = vpop.f32.mrf.mxu0  ;;  %v11170_v46 = vpop.f32.mrf.mxu1 }
 0x3f5   : > { %15142 = vst [vmem:[#allocation57_spill] sm:$0xff] %v14109_v27  ;;  %v14111_v14 = vadd.f32 %v11234_v49, %v11170_v46 }
 0x3f6   : > { %v11238_v44 = vpop.f32.mrf.mxu0  ;;  %v6118_v7 = vpop.f32.mrf.mxu1 }
 0x3f7   : > { %15143 = vst [vmem:[#allocation58_spill] sm:$0xff] %v14111_v14  ;;  %v14113_v34 = vadd.f32 %v6391_v18, %v6118_v7  ;;  %v14180_v14 = vld [vmem:[#allocation3 + $0xc0] sm:$0xff]  }
 0x3f8   : > { %v6407_v20 = vpop.f32.mrf.mxu0  ;;  %v11173_v30 = vpop.f32.mrf.mxu1  ;;  %11428 = vmatmul.mubr.bf16.gmra.mxu1 %v14100_v38 }
 0x3f9   : > { %15144 = vst [vmem:[#allocation89_spill] sm:$0xff] %v14113_v34  ;;  %v14118_v63 = vadd.f32 %v11237_v45, %v11173_v30  ;;  %11431 = vmatprep.mubr.bf16.mxu1 %v14105_v25  ;;  %v14164_v34 = vld [vmem:[#allocation3 + $0xb0] sm:$0xff]  }
 0x3fa   : > { %v11241_v8 = vpop.f32.mrf.mxu0  ;;  %11496 = vmatmul.mubr.bf16.gmra.mxu0 %v14116_v56  ;;  %v6131_v49 = vpop.f32.mrf.mxu1 }
 0x3fb   : > { %15145 = vst [vmem:[#allocation90_spill] sm:$0xff] %v14118_v63  ;;  %11499 = vmatprep.mubr.bf16.mxu0 %v14121_v13  ;;  %v14125_v7 = vadd.f32 %v6404_v3, %v6131_v49  ;;  %v14137_v3 = vld [vmem:[#allocation3 + $0x98] sm:$0xff]  }
 0x3fc   : > { %v6420_v18 = vpop.f32.mrf.mxu0  ;;  %v11174_v46 = vpop.f32.mrf.mxu1 }
 0x3fd   : > { %15146 = vst [vmem:[#allocation86_spill] sm:$0xff] %v14125_v7  ;;  %v14127_v51 = vadd.f32 %v11238_v44, %v11174_v46 }
 0x3fe   : > { %v11242_v16 = vpop.f32.mrf.mxu0  ;;  %v6134_v39 = vpop.f32.mrf.mxu1 }
 0x3ff   : > { %15147 = vst [vmem:[#allocation87_spill] sm:$0xff] %v14127_v51  ;;  %v14129_v30 = vadd.f32 %v6407_v20, %v6134_v39 }
 0x400   : > { %v6423_v45 = vpop.f32.mrf.mxu0  ;;  %v11177_v41 = vpop.f32.mrf.mxu1  ;;  %11432 = vmatmul.mubr.bf16.gmra.mxu1 %v14116_v56 }
 0x401   : > { %15148 = vst [vmem:[#allocation60_spill] sm:$0xff] %v14129_v30  ;;  %v14134_v63 = vadd.f32 %v11241_v8, %v11177_v41  ;;  %11435 = vmatprep.mubr.bf16.mxu1 %v14121_v13 }
 0x402   : > { %v11245_v49 = vpop.f32.mrf.mxu0  ;;  %11500 = vmatmul.mubr.bf16.gmra.mxu0 %v14132_v62  ;;  %v6147_v44 = vpop.f32.mrf.mxu1 }
 0x403   : > { %15149 = vst [vmem:[#allocation88_spill] sm:$0xff] %v14134_v63  ;;  %11503 = vmatprep.mubr.bf16.mxu0 %v14137_v3  ;;  %v14141_v39 = vadd.f32 %v6420_v18, %v6147_v44  ;;  %v14153_v18 = vld [vmem:[#allocation3 + $0xa8] sm:$0xff]  }
 0x404   : > { %v6436_v20 = vpop.f32.mrf.mxu0  ;;  %v11178_v46 = vpop.f32.mrf.mxu1 }
 0x405   : > { %15150 = vst [vmem:[#allocation59_spill] sm:$0xff] %v14141_v39  ;;  %v14143_v30 = vadd.f32 %v11242_v16, %v11178_v46 }
 0x406   : > { %v11246_v51 = vpop.f32.mrf.mxu0  ;;  %v6150_v7 = vpop.f32.mrf.mxu1 }
 0x407   : > { %15151 = vst [vmem:[#allocation61_spill] sm:$0xff] %v14143_v30  ;;  %v14145_v41 = vadd.f32 %v6423_v45, %v6150_v7 }
 0x408   : > { %v6439_v8 = vpop.f32.mrf.mxu0  ;;  %v11181_v63 = vpop.f32.mrf.mxu1  ;;  %11436 = vmatmul.mubr.bf16.gmra.mxu1 %v14132_v62 }
 0x409   : > { %15152 = vst [vmem:[#allocation91_spill] sm:$0xff] %v14145_v41  ;;  %v14150_v28 = vadd.f32 %v11245_v49, %v11181_v63  ;;  %11439 = vmatprep.mubr.bf16.mxu1 %v14137_v3 }
 0x40a   : > { %v11249_v44 = vpop.f32.mrf.mxu0  ;;  %11504 = vmatmul.mubr.bf16.gmra.mxu0 %v14148_v24  ;;  %v6163_v16 = vpop.f32.mrf.mxu1 }
 0x40b   : > { %15153 = vst [vmem:[#allocation92_spill] sm:$0xff] %v14150_v28  ;;  %11507 = vmatprep.mubr.bf16.mxu0 %v14153_v18  ;;  %v14157_v7 = vadd.f32 %v6436_v20, %v6163_v16  ;;  %v14169_v20 = vld [vmem:[#allocation3 + $0xb8] sm:$0xff]  }
 0x40c   : > { %v6452_v45 = vpop.f32.mrf.mxu0  ;;  %v11182_v46 = vpop.f32.mrf.mxu1 }
 0x40d   : > { %15154 = vst [vmem:[#allocation62_spill] sm:$0xff] %v14157_v7  ;;  %v14159_v30 = vadd.f32 %v11246_v51, %v11182_v46 }
 0x40e   : > { %v11250_v41 = vpop.f32.mrf.mxu0  ;;  %v6166_v39 = vpop.f32.mrf.mxu1 }
 0x40f   : > { %15155 = vst [vmem:[#allocation94_spill] sm:$0xff] %v14159_v30  ;;  %v14161_v63 = vadd.f32 %v6439_v8, %v6166_v39 }
 0x410   : > { %v6455_v49 = vpop.f32.mrf.mxu0  ;;  %v11185_v28 = vpop.f32.mrf.mxu1  ;;  %11440 = vmatmul.mubr.bf16.gmra.mxu1 %v14148_v24 }
 0x411   : > { %15156 = vst [vmem:[#allocation95_spill] sm:$0xff] %v14161_v63  ;;  %v14166_v31 = vadd.f32 %v11249_v44, %v11185_v28  ;;  %11443 = vmatprep.mubr.bf16.mxu1 %v14153_v18 }
 0x412   : > { %v11253_v16 = vpop.f32.mrf.mxu0  ;;  %11508 = vmatmul.mubr.bf16.gmra.mxu0 %v14164_v34  ;;  %v6179_v51 = vpop.f32.mrf.mxu1 }
 0x413   : > { %15157 = vst [vmem:[#allocation93_spill] sm:$0xff] %v14166_v31  ;;  %11511 = vmatprep.mubr.bf16.mxu0 %v14169_v20  ;;  %v14173_v39 = vadd.f32 %v6452_v45, %v6179_v51  ;;  %v14185_v45 = vld [vmem:[#allocation3 + $0xc8] sm:$0xff]  }
 0x414   : > { %v6468_v8 = vpop.f32.mrf.mxu0  ;;  %v11186_v46 = vpop.f32.mrf.mxu1 }
 0x415   : > { %15158 = vst [vmem:[#allocation63_spill] sm:$0xff] %v14173_v39  ;;  %v14175_v63 = vadd.f32 %v11250_v41, %v11186_v46 }
 0x416   : > { %v11254_v30 = vpop.f32.mrf.mxu0  ;;  %v6182_v7 = vpop.f32.mrf.mxu1 }
 0x417   : > { %15159 = vst [vmem:[#allocation96_spill] sm:$0xff] %v14175_v63  ;;  %v14177_v28 = vadd.f32 %v6455_v49, %v6182_v7 }
 0x418   : > { %v6471_v44 = vpop.f32.mrf.mxu0  ;;  %v11189_v31 = vpop.f32.mrf.mxu1  ;;  %11444 = vmatmul.mubr.bf16.gmra.mxu1 %v14164_v34 }
 0x419   : > { %15160 = vst [vmem:[#allocation98_spill] sm:$0xff] %v14177_v28  ;;  %v14182_v22 = vadd.f32 %v11253_v16, %v11189_v31  ;;  %11447 = vmatprep.mubr.bf16.mxu1 %v14169_v20  ;;  %v14193_v31 = vld [vmem:[#allocation3 + $0xd0] sm:$0xff]  }
 0x41a   : > { %v11257_v51 = vpop.f32.mrf.mxu0  ;;  %11512 = vmatmul.mubr.bf16.gmra.mxu0 %v14180_v14  ;;  %v6195_v41 = vpop.f32.mrf.mxu1 }
 0x41b   : > { %15161 = vst [vmem:[#allocation97_spill] sm:$0xff] %v14182_v22  ;;  %11515 = vmatprep.mubr.bf16.mxu0 %v14185_v45  ;;  %v14189_v7 = vadd.f32 %v6468_v8, %v6195_v41 }
 0x41c   : > { %v6484_v49 = vpop.f32.mrf.mxu0  ;;  %v11190_v46 = vpop.f32.mrf.mxu1 }
 0x41d   : > { %15162 = vst [vmem:[#allocation64_spill] sm:$0xff] %v14189_v7  ;;  %v14191_v28 = vadd.f32 %v11254_v30, %v11190_v46 }
 0x41e   : > { %v11258_v63 = vpop.f32.mrf.mxu0  ;;  %v6198_v39 = vpop.f32.mrf.mxu1 }
 0x41f   : > { %15163 = vst [vmem:[#allocation99_spill] sm:$0xff] %v14191_v28  ;;  %v14195_v16 = vadd.f32 %v6471_v44, %v6198_v39 }
 0x420   : > { %v6487_v22 = vpop.f32.mrf.mxu0  ;;  %v11193_v27 = vpop.f32.mrf.mxu1  ;;  %11448 = vmatmul.mubr.bf16.gmra.mxu1 %v14180_v14 }
 0x421   : > { %15164 = vst [vmem:[#allocation100_spill] sm:$0xff] %v14195_v16  ;;  %v14198_v4 = vadd.f32 %v11257_v51, %v11193_v27  ;;  %11451 = vmatprep.mubr.bf16.mxu1 %v14185_v45 }
 0x422   : > { %v11261_v8 = vpop.f32.mrf.mxu0  ;;  %11516 = vmatmul.mubr.bf16.gmra.mxu0 %v14193_v31  ;;  %v6211_v41 = vpop.f32.mrf.mxu1 }
 0x423   : > { %15165 = vst [vmem:[#allocation101_spill] sm:$0xff] %v14198_v4  ;;  %v14202_v30 = vadd.f32 %v6484_v49, %v6211_v41 }
 0x424   : > { %v6500_v46 = vpop.f32.mrf.mxu0  ;;  %v11194_v28 = vpop.f32.mrf.mxu1 }
 0x425   : > { %15166 = vst [vmem:[#allocation103_spill] sm:$0xff] %v14202_v30  ;;  %v14204_v7 = vadd.f32 %v11258_v63, %v11194_v28 }
 0x426   : > { %v11262_v39 = vpop.f32.mrf.mxu0  ;;  %v6214_v44 = vpop.f32.mrf.mxu1 }
 0x427   : > { %15167 = vst [vmem:[#allocation104_spill] sm:$0xff] %v14204_v7  ;;  %v14206_v16 = vadd.f32 %v6487_v22, %v6214_v44 }
 0x428   : > { %v6503_v0 = vpop.f32.mrf.mxu0  ;;  %v11197_v9 = vpop.f32.mrf.mxu1  ;;  %11452 = vmatmul.mubr.bf16.gmra.mxu1 %v14193_v31 }
 0x429   : > { %15168 = vst [vmem:[#allocation102_spill] sm:$0xff] %v14206_v16  ;;  %v14209_v27 = vadd.f32 %v11261_v8, %v11197_v9  ;;  %11535 = vmatprep.mubr.bf16.mxu1 %v14014_v21 }
 0x42a   : > { %v11345_v51 = vpop.f32.mrf.mxu0  ;;  %v6227_v4 = vpop.f32.mrf.mxu1 }
 0x42b   : > { %v14212_v49 = vadd.f32 %v6500_v46, %v6227_v4 }
 0x42c   : > { %v6887_v41 = vpop.f32.mrf.mxu0  ;;  %v11198_v30 = vpop.f32.mrf.mxu1 }
 0x42d   : > { %15169 = vst [vmem:[#allocation105_spill] sm:$0xff] %v14212_v49  ;;  %v14214_v63 = vadd.f32 %v11262_v39, %v11198_v30 }
 0x42e   : > { %v11346_v28 = vpop.f32.mrf.mxu0  ;;  %v6230_v7 = vpop.f32.mrf.mxu1 }
 0x42f   : > { %15170 = vst [vmem:[#allocation107_spill] sm:$0xff] %v14214_v63  ;;  %v14216_v22 = vadd.f32 %v6503_v0, %v6230_v7 }
 0x430   : > { %v6890_v44 = vpop.f32.mrf.mxu0  ;;  %v11281_v16 = vpop.f32.mrf.mxu1  ;;  %11536 = vmatmul.mubr.bf16.vlgmr.msra.gmra.mxu1 %v14023_v1 }
 0x431   : > { %15171 = vst [vmem:[#allocation106_spill] sm:$0xff] %v14216_v22  ;;  %v14219_v9 = vadd.f32 %v11345_v51, %v11281_v16  ;;  %11539 = vmatprep.mubr.bf16.mxu1 %v14028_v2 }
 0x432   : > { %v11349_v21 = vpop.f32.mrf.mxu0  ;;  %v6614_v8 = vpop.f32.mrf.mxu1 }
 0x433   : > { %v14222_v4 = vadd.f32 %v6887_v41, %v6614_v8 }
 0x434   : > { %v6903_v46 = vpop.f32.mrf.mxu0  ;;  %v11282_v49 = vpop.f32.mrf.mxu1 }
 0x435   : > { %v14224_v30 = vadd.f32 %v11346_v28, %v11282_v49 }
 0x436   : > { %v11350_v39 = vpop.f32.mrf.mxu0  ;;  %v6617_v63 = vpop.f32.mrf.mxu1 }
 0x437   : > { %15172 = vst [vmem:[#allocation11_spill] sm:$0xff] %v14224_v30  ;;  %v14226_v0 = vadd.f32 %v6890_v44, %v6617_v63 }
 0x438   : > { %v6906_v7 = vpop.f32.mrf.mxu0  ;;  %v11285_v22 = vpop.f32.mrf.mxu1  ;;  %11540 = vmatmul.mubr.bf16.gmra.mxu1 %v14035_v11 }
 0x439   : > { %15173 = vst [vmem:[#allocation110_spill] sm:$0xff] %v14226_v0  ;;  %v14229_v1 = vadd.f32 %v11349_v21, %v11285_v22  ;;  %11543 = vmatprep.mubr.bf16.mxu1 %v14040_v35 }
 0x43a   : > { %v11353_v2 = vpop.f32.mrf.mxu0  ;;  %v6630_v16 = vpop.f32.mrf.mxu1 }
 0x43b   : > { %v14232_v51 = vadd.f32 %v6903_v46, %v6630_v16 }
 0x43c   : > { %v6919_v41 = vpop.f32.mrf.mxu0  ;;  %v11286_v8 = vpop.f32.mrf.mxu1 }
 0x43d   : > { %v14234_v49 = vadd.f32 %v11350_v39, %v11286_v8 }
 0x43e   : > { %v11354_v28 = vpop.f32.mrf.mxu0  ;;  %v6633_v30 = vpop.f32.mrf.mxu1 }
 0x43f   : > { %15174 = vst [vmem:[#allocation111_spill] sm:$0xff] %v14234_v49  ;;  %v14236_v63 = vadd.f32 %v6906_v7, %v6633_v30 }
 0x440   : > { %v6922_v44 = vpop.f32.mrf.mxu0  ;;  %v11289_v0 = vpop.f32.mrf.mxu1  ;;  %11544 = vmatmul.mubr.bf16.gmra.mxu1 %v14052_v10 }
 0x441   : > { %15175 = vst [vmem:[#allocation108_spill] sm:$0xff] %v14236_v63  ;;  %v14239_v11 = vadd.f32 %v11353_v2, %v11289_v0  ;;  %11547 = vmatprep.mubr.bf16.mxu1 %v14057_v58 }
 0x442   : > { %v11357_v35 = vpop.f32.mrf.mxu0  ;;  %v6646_v22 = vpop.f32.mrf.mxu1 }
 0x443   : > { %v14242_v21 = vadd.f32 %v6919_v41, %v6646_v22 }
 0x444   : > { %v6935_v46 = vpop.f32.mrf.mxu0  ;;  %v11290_v16 = vpop.f32.mrf.mxu1 }
 0x445   : > { %v14244_v39 = vadd.f32 %v11354_v28, %v11290_v16 }
 0x446   : > { %v11358_v8 = vpop.f32.mrf.mxu0  ;;  %v6649_v49 = vpop.f32.mrf.mxu1 }
 0x447   : > { %15176 = vst [vmem:[#allocation109_spill] sm:$0xff] %v14244_v39  ;;  %v14246_v30 = vadd.f32 %v6922_v44, %v6649_v49 }
 0x448   : > { %v6938_v7 = vpop.f32.mrf.mxu0  ;;  %v11293_v63 = vpop.f32.mrf.mxu1  ;;  %11548 = vmatmul.mubr.bf16.gmra.mxu1 %v14068_v50 }
 0x449   : > { %15177 = vst [vmem:[#allocation120_spill] sm:$0xff] %v14246_v30  ;;  %v14249_v10 = vadd.f32 %v11357_v35, %v11293_v63  ;;  %11551 = vmatprep.mubr.bf16.mxu1 %v14073_v48 }
 0x44a   : > { %v11361_v58 = vpop.f32.mrf.mxu0  ;;  %v6662_v0 = vpop.f32.mrf.mxu1 }
 0x44b   : > { %v14252_v2 = vadd.f32 %v6935_v46, %v6662_v0 }
 0x44c   : > { %v6951_v41 = vpop.f32.mrf.mxu0  ;;  %v11294_v22 = vpop.f32.mrf.mxu1 }
 0x44d   : > { %v14254_v28 = vadd.f32 %v11358_v8, %v11294_v22 }
 0x44e   : > { %v11362_v16 = vpop.f32.mrf.mxu0  ;;  %v6665_v39 = vpop.f32.mrf.mxu1 }
 0x44f   : > { %15178 = vst [vmem:[#allocation112_spill] sm:$0xff] %v14254_v28  ;;  %v14256_v49 = vadd.f32 %v6938_v7, %v6665_v39 }
 0x450   : > { %v6954_v44 = vpop.f32.mrf.mxu0  ;;  %v11297_v30 = vpop.f32.mrf.mxu1  ;;  %11552 = vmatmul.mubr.bf16.gmra.mxu1 %v14084_v26 }
 0x451   : > { %15179 = vst [vmem:[#allocation113_spill] sm:$0xff] %v14256_v49  ;;  %v14259_v50 = vadd.f32 %v11361_v58, %v11297_v30  ;;  %11555 = vmatprep.mubr.bf16.mxu1 %v14089_v55 }
 0x452   : > { %v11365_v48 = vpop.f32.mrf.mxu0  ;;  %v6678_v63 = vpop.f32.mrf.mxu1 }
 0x453   : > { %v14262_v35 = vadd.f32 %v6951_v41, %v6678_v63 }
 0x454   : > { %v6967_v46 = vpop.f32.mrf.mxu0  ;;  %v11298_v0 = vpop.f32.mrf.mxu1 }
 0x455   : > { %v14264_v8 = vadd.f32 %v11362_v16, %v11298_v0 }
 0x456   : > { %v11366_v22 = vpop.f32.mrf.mxu0  ;;  %v6681_v28 = vpop.f32.mrf.mxu1 }
 0x457   : > { %15180 = vst [vmem:[#allocation114_spill] sm:$0xff] %v14264_v8  ;;  %v14266_v39 = vadd.f32 %v6954_v44, %v6681_v28 }
 0x458   : > { %v6970_v7 = vpop.f32.mrf.mxu0  ;;  %v11301_v49 = vpop.f32.mrf.mxu1  ;;  %11556 = vmatmul.mubr.bf16.gmra.mxu1 %v14100_v38 }
 0x459   : > { %15181 = vst [vmem:[#allocation115_spill] sm:$0xff] %v14266_v39  ;;  %v14269_v26 = vadd.f32 %v11365_v48, %v11301_v49  ;;  %11559 = vmatprep.mubr.bf16.mxu1 %v14105_v25 }
 0x45a   : > { %v11369_v55 = vpop.f32.mrf.mxu0  ;;  %v6694_v30 = vpop.f32.mrf.mxu1 }
 0x45b   : > { %v14272_v58 = vadd.f32 %v6967_v46, %v6694_v30 }
 0x45c   : > { %v6983_v41 = vpop.f32.mrf.mxu0  ;;  %v11302_v63 = vpop.f32.mrf.mxu1 }
 0x45d   : > { %v14274_v16 = vadd.f32 %v11366_v22, %v11302_v63 }
 0x45e   : > { %v11370_v0 = vpop.f32.mrf.mxu0  ;;  %v6697_v8 = vpop.f32.mrf.mxu1 }
 0x45f   : > { %15182 = vst [vmem:[#allocation116_spill] sm:$0xff] %v14274_v16  ;;  %v14276_v28 = vadd.f32 %v6970_v7, %v6697_v8 }
 0x460   : > { %v6986_v44 = vpop.f32.mrf.mxu0  ;;  %v11305_v39 = vpop.f32.mrf.mxu1  ;;  %11560 = vmatmul.mubr.bf16.gmra.mxu1 %v14116_v56 }
 0x461   : > { %15183 = vst [vmem:[#allocation117_spill] sm:$0xff] %v14276_v28  ;;  %v14279_v38 = vadd.f32 %v11369_v55, %v11305_v39  ;;  %11563 = vmatprep.mubr.bf16.mxu1 %v14121_v13 }
 0x462   : > { %v11373_v25 = vpop.f32.mrf.mxu0  ;;  %v6710_v49 = vpop.f32.mrf.mxu1 }
 0x463   : > { %v14282_v48 = vadd.f32 %v6983_v41, %v6710_v49 }
 0x464   : > { %v6999_v46 = vpop.f32.mrf.mxu0  ;;  %v11306_v30 = vpop.f32.mrf.mxu1 }
 0x465   : > { %v14284_v22 = vadd.f32 %v11370_v0, %v11306_v30 }
 0x466   : > { %v11374_v63 = vpop.f32.mrf.mxu0  ;;  %v6713_v16 = vpop.f32.mrf.mxu1 }
 0x467   : > { %15184 = vst [vmem:[#allocation118_spill] sm:$0xff] %v14284_v22  ;;  %v14286_v8 = vadd.f32 %v6986_v44, %v6713_v16 }
 0x468   : > { %v7002_v7 = vpop.f32.mrf.mxu0  ;;  %v11309_v28 = vpop.f32.mrf.mxu1  ;;  %11564 = vmatmul.mubr.bf16.gmra.mxu1 %v14132_v62 }
 0x469   : > { %15185 = vst [vmem:[#allocation119_spill] sm:$0xff] %v14286_v8  ;;  %v14289_v56 = vadd.f32 %v11373_v25, %v11309_v28  ;;  %11567 = vmatprep.mubr.bf16.mxu1 %v14137_v3 }
 0x46a   : > { %v11377_v13 = vpop.f32.mrf.mxu0  ;;  %v6726_v39 = vpop.f32.mrf.mxu1 }
 0x46b   : > { %v14292_v55 = vadd.f32 %v6999_v46, %v6726_v39 }
 0x46c   : > { %v7015_v41 = vpop.f32.mrf.mxu0  ;;  %v11310_v49 = vpop.f32.mrf.mxu1 }
 0x46d   : > { %v14294_v0 = vadd.f32 %v11374_v63, %v11310_v49 }
 0x46e   : > { %v11378_v30 = vpop.f32.mrf.mxu0  ;;  %v6729_v22 = vpop.f32.mrf.mxu1 }
 0x46f   : > { %15186 = vst [vmem:[#allocation123_spill] sm:$0xff] %v14294_v0  ;;  %v14296_v16 = vadd.f32 %v7002_v7, %v6729_v22 }
 0x470   : > { %v7018_v44 = vpop.f32.mrf.mxu0  ;;  %v11313_v8 = vpop.f32.mrf.mxu1  ;;  %11568 = vmatmul.mubr.bf16.gmra.mxu1 %v14148_v24 }
 0x471   : > { %15187 = vst [vmem:[#allocation121_spill] sm:$0xff] %v14296_v16  ;;  %v14299_v62 = vadd.f32 %v11377_v13, %v11313_v8  ;;  %11571 = vmatprep.mubr.bf16.mxu1 %v14153_v18 }
 0x472   : > { %v11381_v3 = vpop.f32.mrf.mxu0  ;;  %v6742_v28 = vpop.f32.mrf.mxu1 }
 0x473   : > { %v14302_v25 = vadd.f32 %v7015_v41, %v6742_v28 }
 0x474   : > { %v7031_v46 = vpop.f32.mrf.mxu0  ;;  %v11314_v39 = vpop.f32.mrf.mxu1 }
 0x475   : > { %15188 = vst [vmem:[#allocation44_spill] sm:$0xff] %v14302_v25  ;;  %v14304_v63 = vadd.f32 %v11378_v30, %v11314_v39 }
 0x476   : > { %v11382_v49 = vpop.f32.mrf.mxu0  ;;  %v6745_v0 = vpop.f32.mrf.mxu1 }
 0x477   : > { %15189 = vst [vmem:[#allocation122_spill] sm:$0xff] %v14304_v63  ;;  %v14306_v22 = vadd.f32 %v7018_v44, %v6745_v0 }
 0x478   : > { %v7034_v7 = vpop.f32.mrf.mxu0  ;;  %v11317_v16 = vpop.f32.mrf.mxu1  ;;  %11572 = vmatmul.mubr.bf16.gmra.mxu1 %v14164_v34 }
 0x479   : > { %15190 = vst [vmem:[#allocation45_spill] sm:$0xff] %v14306_v22  ;;  %v14309_v24 = vadd.f32 %v11381_v3, %v11317_v16  ;;  %11575 = vmatprep.mubr.bf16.mxu1 %v14169_v20 }
 0x47a   : > { %v11385_v18 = vpop.f32.mrf.mxu0  ;;  %v6758_v8 = vpop.f32.mrf.mxu1 }
 0x47b   : > { %15191 = vst [vmem:[#allocation65_spill] sm:$0xff] %v14309_v24  ;;  %v14312_v13 = vadd.f32 %v7031_v46, %v6758_v8 }
 0x47c   : > { %v7047_v41 = vpop.f32.mrf.mxu0  ;;  %v11318_v28 = vpop.f32.mrf.mxu1 }
 0x47d   : > { %15192 = vst [vmem:[#allocation127_spill] sm:$0xff] %v14312_v13  ;;  %v14314_v30 = vadd.f32 %v11382_v49, %v11318_v28 }
 0x47e   : > { %v11386_v39 = vpop.f32.mrf.mxu0  ;;  %v6761_v63 = vpop.f32.mrf.mxu1 }
 0x47f   : > { %15193 = vst [vmem:[#allocation128_spill] sm:$0xff] %v14314_v30  ;;  %v14316_v0 = vadd.f32 %v7034_v7, %v6761_v63 }
 0x480   : > { %v7050_v44 = vpop.f32.mrf.mxu0  ;;  %v11321_v22 = vpop.f32.mrf.mxu1  ;;  %11576 = vmatmul.mubr.bf16.gmra.mxu1 %v14180_v14 }
 0x481   : > { %15194 = vst [vmem:[#allocation124_spill] sm:$0xff] %v14316_v0  ;;  %v14319_v34 = vadd.f32 %v11385_v18, %v11321_v22  ;;  %11579 = vmatprep.mubr.bf16.mxu1 %v14185_v45 }
 0x482   : > { %v11389_v20 = vpop.f32.mrf.mxu0  ;;  %v6774_v16 = vpop.f32.mrf.mxu1 }
 0x483   : > { %15195 = vst [vmem:[#allocation66_spill] sm:$0xff] %v14319_v34  ;;  %v14322_v3 = vadd.f32 %v7047_v41, %v6774_v16 }
 0x484   : > { %v7063_v46 = vpop.f32.mrf.mxu0  ;;  %v11322_v8 = vpop.f32.mrf.mxu1 }
 0x485   : > { %15196 = vst [vmem:[#allocation46_spill] sm:$0xff] %v14322_v3  ;;  %v14324_v49 = vadd.f32 %v11386_v39, %v11322_v8 }
 0x486   : > { %v11390_v28 = vpop.f32.mrf.mxu0  ;;  %v6777_v30 = vpop.f32.mrf.mxu1 }
 0x487   : > { %15197 = vst [vmem:[#allocation125_spill] sm:$0xff] %v14324_v49  ;;  %v14326_v63 = vadd.f32 %v7050_v44, %v6777_v30 }
 0x488   : > { %v7066_v7 = vpop.f32.mrf.mxu0  ;;  %v11325_v0 = vpop.f32.mrf.mxu1  ;;  %11580 = vmatmul.mubr.bf16.gmra.mxu1 %v14193_v31 }
 0x489   : > { %15198 = vst [vmem:[#allocation126_spill] sm:$0xff] %v14326_v63  ;;  %v14329_v14 = vadd.f32 %v11389_v20, %v11325_v0 }
 0x48a   : > { %v11473_v22 = vpop.f32.mrf.mxu0  ;;  %v6790_v45 = vpop.f32.mrf.mxu1 }
 0x48b   : > { %15199 = vst [vmem:[#allocation67_spill] sm:$0xff] %v14329_v14  ;;  %v14331_v18 = vadd.f32 %v7063_v46, %v6790_v45  ;;  %v7869_v44 = vadd.f32 %v11473_v22, %v14037_v52 }
 0x48c   : > { %v7676_v41 = vpop.f32.mrf.mxu0  ;;  %v11326_v16 = vpop.f32.mrf.mxu1 }
 0x48d   : > { %15200 = vst [vmem:[#allocation129_spill] sm:$0xff] %v14331_v18  ;;  %v14333_v3 = vadd.f32 %v11390_v28, %v11326_v16  ;;  %v7867_v49 = vadd.f32 %v7676_v41, %v14045_v61  ;;  %v8304_v16 = vrot.slane %v7869_v44, 1 }
 0x48e   : > { %v11474_v39 = vpop.f32.mrf.mxu0  ;;  %v6793_v8 = vpop.f32.mrf.mxu1 }
 0x48f   : > { %15201 = vst [vmem:[#allocation68_spill] sm:$0xff] %v14333_v3  ;;  %v14336_v30 = vadd.f32 %v7066_v7, %v6793_v8  ;;  %v8301_v46 = vrot.slane %v7867_v49, 1  ;;  %v7870_v45 = vadd.f32 %v11474_v39, %v14047_v32 }
 0x490   : > { %v7679_v63 = vpop.f32.mrf.mxu0  ;;  %v11409_v31 = vpop.f32.mrf.mxu1 }
 0x491   : > { %15202 = vst [vmem:[#allocation132_spill] sm:$0xff] %v14336_v30  ;;  %v7868_v0 = vadd.f32 %v7679_v63, %v14049_v59  ;;  %v8306_v39 = vrot.slane %v7870_v45, 1 }
 0x492   : > { %v11477_v20 = vpop.f32.mrf.mxu0  ;;  %v7370_v14 = vpop.f32.mrf.mxu1 }
 0x493   : > { %v8302_v18 = vrot.slane %v7868_v0, 1  ;;  %v7545_v28 = vadd.f32 %v7370_v14, %v13924_v36  ;;  %v7873_v3 = vadd.f32 %v11477_v20, %v14054_v5 }
 0x494   : > { %v7692_v61 = vpop.f32.mrf.mxu0  ;;  %v11410_v7 = vpop.f32.mrf.mxu1 }
 0x495   : > { %v8303_v41 = vsel %vm4116_vm2, %v8301_v46, %v8302_v18  ;;  %v7871_v52 = vadd.f32 %v7692_v61, %v14061_v6  ;;  %v7547_v22 = vadd.f32 %v11410_v7, %v13927_v57  ;;  %v8305_v32 = vsel %vm4116_vm2, %v8302_v18, %v8304_v16 }
 0x496   : > { %v14346_v59 = vadd.f32 %v8303_v41, %v7545_v28  ;;  %v11478_v63 = vpop.f32.mrf.mxu0  ;;  %v7373_v49 = vpop.f32.mrf.mxu1  ;;  %v8311_v14 = vrot.slane %v7873_v3, 1 }
 0x497   : > { %v8307_v8 = vrot.slane %v7871_v52, 1  ;;  %v7874_v36 = vadd.f32 %v11478_v63, %v14063_v17  ;;  %v7546_v5 = vadd.f32 %v7373_v49, %v13929_v15 }
 0x498   : > { %v7695_v44 = vpop.f32.mrf.mxu0  ;;  %v11413_v31 = vpop.f32.mrf.mxu1 }
 0x499   : > { %v8308_v0 = vsel %vm4116_vm2, %v8306_v39, %v8307_v8  ;;  %v8312_v6 = vrot.slane %v7874_v36, 1  ;;  %v14352_v20 = vadd.f32 %v8305_v32, %v7546_v5  ;;  %v7872_v57 = vadd.f32 %v7695_v44, %v14065_v54 }
 0x49a   : > { %v14355_v46 = vadd.f32 %v8308_v0, %v7547_v22  ;;  %v7549_v18 = vadd.f32 %v11413_v31, %v13931_v29  ;;  %v11481_v45 = vpop.f32.mrf.mxu0  ;;  %v7385_v28 = vpop.f32.mrf.mxu1 }
 0x49b   : > { %v8309_v16 = vrot.slane %v7872_v57, 1  ;;  %v8313_v17 = vsel %vm4116_vm2, %v8311_v14, %v8312_v6  ;;  %v7548_v15 = vadd.f32 %v7385_v28, %v13936_v40  ;;  %v7877_v61 = vadd.f32 %v11481_v45, %v14070_v60 }
 0x49c   : > { %v14360_v3 = vadd.f32 %v8313_v17, %v7549_v18  ;;  %v7708_v7 = vpop.f32.mrf.mxu0  ;;  %v11414_v41 = vpop.f32.mrf.mxu1 }
 0x49d   : > { %v8310_v52 = vsel %vm4116_vm2, %v8307_v8, %v8309_v16  ;;  %v7875_v54 = vadd.f32 %v7708_v7, %v14077_v47  ;;  %v7550_v22 = vadd.f32 %v11414_v41, %v13939_v42  ;;  %v8317_v40 = vrot.slane %v7877_v61, 1 }
 0x49e   : > { %v14366_v29 = vadd.f32 %v8310_v52, %v7548_v15  ;;  %v11482_v63 = vpop.f32.mrf.mxu0  ;;  %v7388_v49 = vpop.f32.mrf.mxu1 }
 0x49f   : > { %v8314_v32 = vrot.slane %v7875_v54, 1  ;;  %v7878_v39 = vadd.f32 %v11482_v63, %v14079_v53  ;;  %v15203_v63 = vld [vmem:[#allocation83_spill] sm:$0xff] }
 0x4a0   : > { %v7711_v36 = vpop.f32.mrf.mxu0  ;;  %v11417_v5 = vpop.f32.mrf.mxu1 }
 0x4a1   : > { %v8315_v60 = vsel %vm4116_vm2, %v8312_v6, %v8314_v32  ;;  %v8319_v14 = vrot.slane %v7878_v39, 1  ;;  %v7876_v44 = vadd.f32 %v7711_v36, %v14081_v33  ;;  %v7552_v8 = vadd.f32 %v11417_v5, %v13941_v23  ;;  %v15204_v39 = vld [vmem:[#allocation69_spill] sm:$0xff] }
 0x4a2   : > { %v14372_v47 = vadd.f32 %v8315_v60, %v7550_v22  ;;  %v11485_v42 = vpop.f32.mrf.mxu0  ;;  %v7400_v31 = vpop.f32.mrf.mxu1 }
 0x4a3   : > { %v8316_v0 = vrot.slane %v7876_v44, 1  ;;  %v8320_v57 = vsel %vm4116_vm2, %v8317_v40, %v8319_v14  ;;  %v7881_v23 = vadd.f32 %v11485_v42, %v14086_v43  ;;  %v15206_v14 = vld [vmem:[#allocation57_spill] sm:$0xff] }
 0x4a4   : > { %v14375_v18 = vadd.f32 %v8320_v57, %v7552_v8  ;;  %v7724_v53 = vpop.f32.mrf.mxu0  ;;  %v11418_v45 = vpop.f32.mrf.mxu1  ;;  %v15207_v8 = vld [vmem:[#allocation70_spill] sm:$0xff] }
 0x4a5   : > { %v8318_v28 = vsel %vm4116_vm2, %v8316_v0, %v8317_v40  ;;  %v7879_v17 = vadd.f32 %v7724_v53, %v14093_v19  ;;  %v8324_v36 = vrot.slane %v7881_v23, 1  ;;  %v15205_v19 = vld [vmem:[#allocation56_spill] sm:$0xff] }
 0x4a6   : > { %v11486_v16 = vpop.f32.mrf.mxu0  ;;  %v7402_v6 = vpop.f32.mrf.mxu1 }
 0x4a7   : > { %v7551_v33 = vadd.f32 %v7402_v6, %v13943_v12  ;;  %v8321_v22 = vrot.slane %v7879_v17, 1  ;;  %v7882_v49 = vadd.f32 %v11486_v16, %v15203_v63  ;;  %v15209_v6 = vld [vmem:[#allocation71_spill] sm:$0xff] }
 0x4a8   : > { %v7727_v15 = vpop.f32.mrf.mxu0  ;;  %v11421_v61 = vpop.f32.mrf.mxu1 }
 0x4a9   : > { %v14381_v7 = vadd.f32 %v8318_v28, %v7551_v33  ;;  %v7880_v41 = vadd.f32 %v7727_v15, %v14097_v37  ;;  %v8326_v53 = vrot.slane %v7882_v49, 1  ;;  %v15208_v28 = vld [vmem:[#allocation58_spill] sm:$0xff] }
 0x4aa   : > { %v11489_v52 = vpop.f32.mrf.mxu0  ;;  %v7414_v54 = vpop.f32.mrf.mxu1 }
 0x4ab   : > { %v8322_v32 = vrot.slane %v7880_v41, 1  ;;  %v7553_v40 = vadd.f32 %v7414_v54, %v15204_v39  ;;  %v7885_v5 = vadd.f32 %v11489_v52, %v15205_v19  ;;  %v15210_v54 = vld [vmem:[#allocation89_spill] sm:$0xff]  ;;  %v15211_v39 = vld [vmem:[#allocation72_spill] sm:$0xff] }
 0x4ac   : > { %v7740_v12 = vpop.f32.mrf.mxu0  ;;  %v11422_v60 = vpop.f32.mrf.mxu1 }
 0x4ad   : > { %v8323_v43 = vsel %vm4116_vm2, %v8321_v22, %v8322_v32  ;;  %v7883_v44 = vadd.f32 %v7740_v12, %v15206_v14  ;;  %v7555_v42 = vadd.f32 %v11422_v60, %v15207_v8  ;;  %v8325_v57 = vsel %vm4116_vm2, %v8322_v32, %v8324_v36  ;;  %v15212_v12 = vld [vmem:[#allocation48_spill] sm:$0xff] }
 0x4ae   : > { %v14390_v37 = vadd.f32 %v8323_v43, %v7553_v40  ;;  %v11490_v31 = vpop.f32.mrf.mxu0  ;;  %v7417_v0 = vpop.f32.mrf.mxu1  ;;  %v8331_v33 = vrot.slane %v7885_v5, 1  ;;  %v15213_v43 = vld [vmem:[#allocation90_spill] sm:$0xff] }
 0x4af   : > { %v8327_v45 = vrot.slane %v7883_v44, 1  ;;  %v7886_v16 = vadd.f32 %v11490_v31, %v15208_v28  ;;  %v7554_v17 = vadd.f32 %v7417_v0, %v15209_v6  ;;  %v15214_v0 = vld [vmem:[#allocation86_spill] sm:$0xff] }
 0x4b0   : > { %v7743_v23 = vpop.f32.mrf.mxu0  ;;  %v11425_v15 = vpop.f32.mrf.mxu1 }
 0x4b1   : > { %v8328_v61 = vsel %vm4116_vm2, %v8326_v53, %v8327_v45  ;;  %v8332_v41 = vrot.slane %v7886_v16, 1  ;;  %v14396_v52 = vadd.f32 %v8325_v57, %v7554_v17  ;;  %v7884_v22 = vadd.f32 %v7743_v23, %v15210_v54  ;;  %v15215_v57 = vld [vmem:[#allocation49_spill] sm:$0xff] }
 0x4b2   : > { %v14399_v63 = vadd.f32 %v8328_v61, %v7555_v42  ;;  %v7557_v32 = vadd.f32 %v11425_v15, %v15211_v39  ;;  %v11493_v49 = vpop.f32.mrf.mxu0  ;;  %v7429_v40 = vpop.f32.mrf.mxu1 }
 0x4b3   : > { %v8329_v36 = vrot.slane %v7884_v22, 1  ;;  %v8333_v19 = vsel %vm4116_vm2, %v8331_v33, %v8332_v41  ;;  %v7556_v5 = vadd.f32 %v7429_v40, %v15212_v12  ;;  %v7889_v14 = vadd.f32 %v11493_v49, %v15213_v43  ;;  %v15216_v33 = vld [vmem:[#allocation87_spill] sm:$0xff] }
 0x4b4   : > { %v14404_v60 = vadd.f32 %v8333_v19, %v7557_v32  ;;  %v7756_v44 = vpop.f32.mrf.mxu0  ;;  %v11426_v8 = vpop.f32.mrf.mxu1  ;;  %v15217_v32 = vld [vmem:[#allocation60_spill] sm:$0xff] }
 0x4b5   : > { %v8330_v31 = vsel %vm4116_vm2, %v8327_v45, %v8329_v36  ;;  %v7887_v42 = vadd.f32 %v7756_v44, %v15214_v0  ;;  %v7558_v53 = vadd.f32 %v11426_v8, %v15215_v57  ;;  %v8337_v15 = vrot.slane %v7889_v14, 1  ;;  %v15218_v45 = vld [vmem:[#allocation50_spill] sm:$0xff] }
 0x4b6   : > { %v14410_v28 = vadd.f32 %v8330_v31, %v7556_v5  ;;  %v11494_v16 = vpop.f32.mrf.mxu0  ;;  %v7432_v6 = vpop.f32.mrf.mxu1 }
 0x4b7   : > { %v8334_v17 = vrot.slane %v7887_v42, 1  ;;  %v7890_v23 = vadd.f32 %v11494_v16, %v15216_v33  ;;  %v15219_v42 = vld [vmem:[#allocation59_spill] sm:$0xff]  ;;  %v15220_v16 = vld [vmem:[#allocation73_spill] sm:$0xff] }
 0x4b8   : > { %v7759_v61 = vpop.f32.mrf.mxu0  ;;  %v11429_v54 = vpop.f32.mrf.mxu1 }
 0x4b9   : > { %v8335_v22 = vsel %vm4116_vm2, %v8332_v41, %v8334_v17  ;;  %v8339_v39 = vrot.slane %v7890_v23, 1  ;;  %v7888_v49 = vadd.f32 %v7759_v61, %v15217_v32  ;;  %v7560_v40 = vadd.f32 %v11429_v54, %v15218_v45  ;;  %v15221_v17 = vld [vmem:[#allocation88_spill] sm:$0xff]  ;;  %v15222_v54 = vld [vmem:[#allocation91_spill] sm:$0xff]  ;;  %v15223_v45 = vld [vmem:[#allocation61_spill] sm:$0xff] }
 0x4ba   : > { %v14416_v36 = vadd.f32 %v8335_v22, %v7558_v53  ;;  %v11497_v19 = vpop.f32.mrf.mxu0  ;;  %v7444_v12 = vpop.f32.mrf.mxu1 }
 0x4bb   : > { %v8336_v5 = vrot.slane %v7888_v49, 1  ;;  %v8340_v43 = vsel %vm4116_vm2, %v8337_v15, %v8339_v39  ;;  %v7893_v53 = vadd.f32 %v11497_v19, %v15221_v17  ;;  %v15224_v12 = vld [vmem:[#allocation74_spill] sm:$0xff] }
 0x4bc   : > { %v14419_v44 = vadd.f32 %v8340_v43, %v7560_v40  ;;  %v7772_v8 = vpop.f32.mrf.mxu0  ;;  %v11430_v14 = vpop.f32.mrf.mxu1 }
 0x4bd   : > { %v8338_v31 = vsel %vm4116_vm2, %v8336_v5, %v8337_v15  ;;  %v7891_v57 = vadd.f32 %v7772_v8, %v15219_v42  ;;  %v8344_v43 = vrot.slane %v7893_v53, 1  ;;  %v15225_v8 = vld [vmem:[#allocation92_spill] sm:$0xff] }
 0x4be   : > { %v11498_v0 = vpop.f32.mrf.mxu0  ;;  %v7446_v41 = vpop.f32.mrf.mxu1 }
 0x4bf   : > { %v7559_v6 = vadd.f32 %v7446_v41, %v15220_v16  ;;  %v8341_v49 = vrot.slane %v7891_v57, 1  ;;  %v7894_v40 = vadd.f32 %v11498_v0, %v15223_v45  ;;  %v15226_v16 = vld [vmem:[#allocation62_spill] sm:$0xff]  ;;  %v15229_v45 = vld [vmem:[#allocation52_spill] sm:$0xff] }
 0x4c0   : > { %v7775_v33 = vpop.f32.mrf.mxu0  ;;  %v11433_v23 = vpop.f32.mrf.mxu1 }
 0x4c1   : > { %v14425_v61 = vadd.f32 %v8338_v31, %v7559_v6  ;;  %v7892_v22 = vadd.f32 %v7775_v33, %v15222_v54  ;;  %v15227_v6 = vld [vmem:[#allocation76_spill] sm:$0xff]  ;;  %v8346_v54 = vrot.slane %v7894_v40, 1 }
 0x4c2   : > { %v11501_v39 = vpop.f32.mrf.mxu0  ;;  %v7458_v32 = vpop.f32.mrf.mxu1 }
 0x4c3   : > { %v8342_v15 = vrot.slane %v7892_v22, 1  ;;  %v7561_v5 = vadd.f32 %v7458_v32, %v15224_v12  ;;  %v7897_v14 = vadd.f32 %v11501_v39, %v15225_v8  ;;  %v15228_v32 = vld [vmem:[#allocation94_spill] sm:$0xff] }
 0x4c4   : > { %v7788_v41 = vpop.f32.mrf.mxu0  ;;  %v11434_v42 = vpop.f32.mrf.mxu1 }
 0x4c5   : > { %v8343_v19 = vsel %vm4116_vm2, %v8341_v49, %v8342_v15  ;;  %v7895_v31 = vadd.f32 %v7788_v41, %v15226_v16  ;;  %v7563_v17 = vadd.f32 %v11434_v42, %v15227_v6  ;;  %v8345_v0 = vsel %vm4116_vm2, %v8342_v15, %v8344_v43  ;;  %v15231_v6 = vld [vmem:[#allocation75_spill] sm:$0xff] }
 0x4c6   : > { %v14434_v33 = vadd.f32 %v8343_v19, %v7561_v5  ;;  %v11502_v23 = vpop.f32.mrf.mxu0  ;;  %v7461_v57 = vpop.f32.mrf.mxu1  ;;  %v8351_v12 = vrot.slane %v7897_v14, 1  ;;  %v15230_v5 = vld [vmem:[#allocation95_spill] sm:$0xff] }
 0x4c7   : > { %v8347_v22 = vrot.slane %v7895_v31, 1  ;;  %v7898_v53 = vadd.f32 %v11502_v23, %v15228_v32  ;;  %v7562_v39 = vadd.f32 %v7461_v57, %v15229_v45  ;;  %v15232_v57 = vld [vmem:[#allocation51_spill] sm:$0xff]  ;;  %v15233_v45 = vld [vmem:[#allocation93_spill] sm:$0xff] }
 0x4c8   : > { %v7791_v8 = vpop.f32.mrf.mxu0  ;;  %v11437_v30 = vpop.f32.mrf.mxu1 }
 0x4c9   : > { %v8348_v49 = vsel %vm4116_vm2, %v8346_v54, %v8347_v22  ;;  %v8352_v41 = vrot.slane %v7898_v53, 1  ;;  %v14440_v16 = vadd.f32 %v8345_v0, %v7562_v39  ;;  %v7896_v42 = vadd.f32 %v7791_v8, %v15230_v5  ;;  %v15234_v8 = vld [vmem:[#allocation63_spill] sm:$0xff] }
 0x4ca   : > { %v14443_v19 = vadd.f32 %v8348_v49, %v7563_v17  ;;  %v7565_v15 = vadd.f32 %v11437_v30, %v15231_v6  ;;  %v11505_v40 = vpop.f32.mrf.mxu0  ;;  %v7473_v43 = vpop.f32.mrf.mxu1  ;;  %v15235_v49 = vld [vmem:[#allocation53_spill] sm:$0xff] }
 0x4cb   : > { %v8349_v31 = vrot.slane %v7896_v42, 1  ;;  %v8353_v23 = vsel %vm4116_vm2, %v8351_v12, %v8352_v41  ;;  %v7564_v14 = vadd.f32 %v7473_v43, %v15232_v57  ;;  %v7901_v54 = vadd.f32 %v11505_v40, %v15233_v45  ;;  %v15237_v12 = vld [vmem:[#allocation96_spill] sm:$0xff]  ;;  %v15238_v45 = vld [vmem:[#allocation98_spill] sm:$0xff] }
 0x4cc   : > { %v14448_v32 = vadd.f32 %v8353_v23, %v7565_v15  ;;  %v7804_v53 = vpop.f32.mrf.mxu0  ;;  %v11438_v0 = vpop.f32.mrf.mxu1 }
 0x4cd   : > { %v8350_v39 = vsel %vm4116_vm2, %v8347_v22, %v8349_v31  ;;  %v7899_v17 = vadd.f32 %v7804_v53, %v15234_v8  ;;  %v7566_v5 = vadd.f32 %v11438_v0, %v15235_v49  ;;  %v8357_v43 = vrot.slane %v7901_v54, 1  ;;  %v15239_v22 = vld [vmem:[#allocation77_spill] sm:$0xff] }
 0x4ce   : > { %v14454_v30 = vadd.f32 %v8350_v39, %v7564_v14  ;;  %v11506_v6 = vpop.f32.mrf.mxu0  ;;  %v7476_v42 = vpop.f32.mrf.mxu1 }
 0x4cf   : > { %v8354_v34 = vrot.slane %v7899_v17, 1  ;;  %v7902_v13 = vadd.f32 %v11506_v6, %v15237_v12  ;;  %v15243_v12 = vld [vmem:[#allocation78_spill] sm:$0xff] }
 0x4d0   : > { %15236 = vst [vmem:[#allocation133_spill] sm:$0xff] %v14454_v30  ;;  %v7807_v15 = vpop.f32.mrf.mxu0  ;;  %v11441_v23 = vpop.f32.mrf.mxu1 }
 0x4d1   : > { %v8355_v40 = vsel %vm4116_vm2, %v8352_v41, %v8354_v34  ;;  %v8359_v57 = vrot.slane %v7902_v13, 1  ;;  %v7900_v24 = vadd.f32 %v7807_v15, %v15238_v45  ;;  %v7568_v31 = vadd.f32 %v11441_v23, %v15239_v22  ;;  %v15242_v13 = vld [vmem:[#allocation64_spill] sm:$0xff]  ;;  %v15244_v23 = vld [vmem:[#allocation97_spill] sm:$0xff] }
 0x4d2   : > { %v14460_v53 = vadd.f32 %v8355_v40, %v7566_v5  ;;  %v11509_v0 = vpop.f32.mrf.mxu0  ;;  %v7488_v14 = vpop.f32.mrf.mxu1 }
 0x4d3   : > { %v8356_v39 = vrot.slane %v7900_v24, 1  ;;  %v8360_v8 = vsel %vm4116_vm2, %v8357_v43, %v8359_v57  ;;  %v7905_v5 = vadd.f32 %v11509_v0, %v15244_v23  ;;  %v15246_v24 = vld [vmem:[#allocation100_spill] sm:$0xff]  ;;  %v15250_v23 = vld [vmem:[#allocation103_spill] sm:$0xff] }
 0x4d4   : > { %15240 = vst [vmem:[#allocation130_spill] sm:$0xff] %v14460_v53  ;;  %v14463_v17 = vadd.f32 %v8360_v8, %v7568_v31  ;;  %v7820_v49 = vpop.f32.mrf.mxu0  ;;  %v11442_v54 = vpop.f32.mrf.mxu1 }
 0x4d5   : > { %v8358_v6 = vsel %vm4116_vm2, %v8356_v39, %v8357_v43  ;;  %v7903_v41 = vadd.f32 %v7820_v49, %v15242_v13  ;;  %v15247_v54 = vld [vmem:[#allocation99_spill] sm:$0xff]  ;;  %v15248_v39 = vld [vmem:[#allocation54_spill] sm:$0xff]  ;;  %v8364_v30 = vrot.slane %v7905_v5, 1  ;;  %v15249_v49 = vld [vmem:[#allocation101_spill] sm:$0xff] }
 0x4d6   : > { %15241 = vst [vmem:[#allocation47_spill] sm:$0xff] %v14463_v17  ;;  %v11510_v42 = vpop.f32.mrf.mxu0  ;;  %v7490_v34 = vpop.f32.mrf.mxu1 }
 0x4d7   : > { %v7567_v15 = vadd.f32 %v7490_v34, %v15243_v12  ;;  %v8361_v8 = vrot.slane %v7903_v41, 1  ;;  %v7906_v17 = vadd.f32 %v11510_v42, %v15247_v54 }
 0x4d8   : > { %v7823_v40 = vpop.f32.mrf.mxu0  ;;  %v11445_v45 = vpop.f32.mrf.mxu1 }
 0x4d9   : > { %v14469_v22 = vadd.f32 %v8358_v6, %v7567_v15  ;;  %v7904_v57 = vadd.f32 %v7823_v40, %v15246_v24  ;;  %v15251_v15 = vld [vmem:[#allocation79_spill] sm:$0xff] }
 0x4da   : > { %v11513_v31 = vpop.f32.mrf.mxu0  ;;  %v7502_v14 = vpop.f32.mrf.mxu1 }
 0x4db   : > { %15245 = vst [vmem:[#allocation131_spill] sm:$0xff] %v14469_v22  ;;  %v8362_v43 = vrot.slane %v7904_v57, 1  ;;  %v7569_v53 = vadd.f32 %v7502_v14, %v15248_v39  ;;  %v7909_v13 = vadd.f32 %v11513_v31, %v15249_v49  ;;  %v8366_v57 = vrot.slane %v7906_v17, 1  ;;  %v15252_v14 = vld [vmem:[#allocation104_spill] sm:$0xff] }
 0x4dc   : > { %v7836_v34 = vpop.f32.mrf.mxu0  ;;  %v11446_v12 = vpop.f32.mrf.mxu1  ;;  %v15253_v39 = vld [vmem:[#allocation80_spill] sm:$0xff] }
 0x4dd   : > { %v8363_v0 = vsel %vm4116_vm2, %v8361_v8, %v8362_v43  ;;  %v7907_v6 = vadd.f32 %v7836_v34, %v15250_v23  ;;  %v7571_v45 = vadd.f32 %v11446_v12, %v15251_v15  ;;  %v8365_v42 = vsel %vm4116_vm2, %v8362_v43, %v8364_v30  ;;  %v15256_v15 = vld [vmem:[#allocation55_spill] sm:$0xff] }
 0x4de   : > { %v14478_v40 = vadd.f32 %v8363_v0, %v7569_v53  ;;  %v11514_v24 = vpop.f32.mrf.mxu0  ;;  %v7505_v41 = vpop.f32.mrf.mxu1  ;;  %v8371_v49 = vrot.slane %v7909_v13, 1  ;;  %v15254_v53 = vld [vmem:[#allocation102_spill] sm:$0xff] }
 0x4df   : > { %v8367_v54 = vrot.slane %v7907_v6, 1  ;;  %v7910_v5 = vadd.f32 %v11514_v24, %v15252_v14  ;;  %v7570_v31 = vadd.f32 %v7505_v41, %v15253_v39  ;;  %v15257_v41 = vld [vmem:[#allocation81_spill] sm:$0xff] }
 0x4e0   : > { %v7839_v22 = vpop.f32.mrf.mxu0  ;;  %v11449_v25 = vpop.f32.mrf.mxu1 }
 0x4e1   : > { %v8368_v8 = vsel %vm4116_vm2, %v8366_v57, %v8367_v54  ;;  %v8372_v34 = vrot.slane %v7910_v5, 1  ;;  %v14484_v23 = vadd.f32 %v8365_v42, %v7570_v31  ;;  %v7908_v12 = vadd.f32 %v7839_v22, %v15254_v53  ;;  %v15259_v22 = vld [vmem:[#allocation105_spill] sm:$0xff]  ;;  %v15260_v31 = vld [vmem:[#allocation82_spill] sm:$0xff] }
 0x4e2   : > { %v14487_v0 = vadd.f32 %v8368_v8, %v7571_v45  ;;  %v7573_v30 = vadd.f32 %v11449_v25, %v15256_v15  ;;  %v11517_v17 = vpop.f32.mrf.mxu0  ;;  %v7517_v43 = vpop.f32.mrf.mxu1 }
 0x4e3   : > { %v8369_v6 = vrot.slane %v7908_v12, 1  ;;  %v8373_v24 = vsel %vm4116_vm2, %v8371_v49, %v8372_v34  ;;  %v7572_v13 = vadd.f32 %v7517_v43, %v15257_v41  ;;  %v7913_v57 = vadd.f32 %v11517_v17, %v14209_v27  ;;  %v15261_v49 = vld [vmem:[#allocation107_spill] sm:$0xff]  ;;  %v15262_v41 = vld [vmem:[#allocation106_spill] sm:$0xff] }
 0x4e4   : > { %15255 = vst [vmem:[#allocation134_spill] sm:$0xff] %v14487_v0  ;;  %v14492_v14 = vadd.f32 %v8373_v24, %v7573_v30  ;;  %v7852_v5 = vpop.f32.mrf.mxu0  ;;  %v11450_v42 = vpop.f32.mrf.mxu1 }
 0x4e5   : > { %v8370_v39 = vsel %vm4116_vm2, %v8367_v54, %v8369_v6  ;;  %v7911_v45 = vadd.f32 %v7852_v5, %v15259_v22  ;;  %v7574_v8 = vadd.f32 %v11450_v42, %v15260_v31  ;;  %v8377_v43 = vrot.slane %v7913_v57, 1  ;;  %v15263_v54 = vld [vmem:[#allocation84_spill] sm:$0xff] }
 0x4e6   : > { %15258 = vst [vmem:[#allocation137_spill] sm:$0xff] %v14492_v14  ;;  %v14498_v25 = vadd.f32 %v8370_v39, %v7572_v13  ;;  %v11518_v53 = vpop.f32.mrf.mxu0  ;;  %v7520_v12 = vpop.f32.mrf.mxu1 }
 0x4e7   : > { %v8374_v15 = vrot.slane %v7911_v45, 1  ;;  %v7914_v0 = vadd.f32 %v11518_v53, %v15261_v49  ;;  %v15264_v53 = vld [vmem:[#allocation85_spill] sm:$0xff] }
 0x4e8   : > { %v7855_v30 = vpop.f32.mrf.mxu0  ;;  %v11453_v24 = vpop.f32.mrf.mxu1 }
 0x4e9   : > { %v8375_v27 = vsel %vm4116_vm2, %v8372_v34, %v8374_v15  ;;  %v8379_v17 = vrot.slane %v7914_v0, 1  ;;  %v7912_v14 = vadd.f32 %v7855_v30, %v15262_v41  ;;  %v7576_v6 = vadd.f32 %v11453_v24, %v15263_v54  ;;  %v15265_v24 = vld [vmem:[#allocation110_spill] sm:$0xff] }
 0x4ea   : > { %v14504_v5 = vadd.f32 %v8375_v27, %v7574_v8  ;;  %v7532_v42 = vpop.f32.mrf.mxu1 }
 0x4eb   : > { %v8376_v13 = vrot.slane %v7912_v14, 1  ;;  %v8380_v39 = vsel %vm4116_vm2, %v8377_v43, %v8379_v17 }
 0x4ec   : > { %v14507_v22 = vadd.f32 %v8380_v39, %v7576_v6  ;;  %v11454_v45 = vpop.f32.mrf.mxu1 }
 0x4ed   : > { %v8378_v57 = vsel %vm4116_vm2, %v8376_v13, %v8377_v43  ;;  %v15266_v43 = vld [vmem:[#allocation11_spill] sm:$0xff] }
 0x4ee   : > { %v7534_v31 = vpop.f32.mrf.mxu1 }
 0x4ef   : > { %v7575_v12 = vadd.f32 %v7534_v31, %v15264_v53 }
 0x4f0   : > { %v11537_v34 = vpop.f32.mrf.mxu1 }
 0x4f1   : > { %v14511_v0 = vadd.f32 %v8378_v57, %v7575_v12  ;;  %v8207_v8 = vadd.f32 %v11537_v34, %v14219_v9  ;;  %v14522_v9 = vld [vmem:[%s14824_s5] ss:$0 sm:$0xff] }
 0x4f2   : > { %v8014_v15 = vpop.f32.mrf.mxu1 }
 0x4f3   : > { %v8205_v30 = vadd.f32 %v8014_v15, %v14222_v4  ;;  %v8496_v41 = vrot.slane %v8207_v8, 2  ;;  %v14532_v15 = vld [vmem:[%s14825_s6] ss:$0 sm:$0xff]  ;;  %v15267_v8 = vld [vmem:[#allocation111_spill] sm:$0xff] }
 0x4f4   : > { %v11538_v49 = vpop.f32.mrf.mxu1 }
 0x4f5   : > { %v8493_v54 = vrot.slane %v8205_v30, 2  ;;  %v8208_v6 = vadd.f32 %v11538_v49, %v15266_v43 }
 0x4f6   : > { %v8017_v14 = vpop.f32.mrf.mxu1 }
 0x4f7   : > { %v8206_v27 = vadd.f32 %v8017_v14, %v15265_v24  ;;  %v8498_v34 = vrot.slane %v8208_v6, 2 }
 0x4f8   : > { %v11541_v17 = vpop.f32.mrf.mxu1 }
 0x4f9   : > { %v8494_v42 = vrot.slane %v8206_v27, 2  ;;  %v8211_v4 = vadd.f32 %v11541_v17, %v14229_v1  ;;  %v15268_v27 = vld [vmem:[#allocation108_spill] sm:$0xff] }
 0x4fa   : > { %v8030_v13 = vpop.f32.mrf.mxu1 }
 0x4fb   : > { %v8495_v39 = vsel %vm4309_vm3, %v8493_v54, %v8494_v42  ;;  %v8497_v45 = vsel %vm4309_vm3, %v8494_v42, %v8496_v41  ;;  %v8209_v57 = vadd.f32 %v8030_v13, %v14232_v51  ;;  %v8503_v24 = vrot.slane %v8211_v4, 2 }
 0x4fc   : > { %v8605_v31 = vadd.f32 %v8495_v39, %v14346_v59  ;;  %v8606_v53 = vadd.f32 %v8497_v45, %v14352_v20  ;;  %v11542_v12 = vpop.f32.mrf.mxu1  ;;  %v15269_v45 = vld [vmem:[#allocation12_spill] sm:$0xff] }
 0x4fd   : > { %v8499_v49 = vrot.slane %v8209_v57, 2  ;;  %v8212_v30 = vadd.f32 %v11542_v12, %v15267_v8  ;;  %v15270_v57 = vld [vmem:[#allocation13_spill] sm:$0xff] }
 0x4fe   : > { %v8644_v1 = vmul.f32 %v14522_v9, %v8605_v31  ;;  %v8645_v51 = vmul.f32 %v14522_v9, %v8606_v53  ;;  %v8033_v14 = vpop.f32.mrf.mxu1 }
 0x4ff   : > { %v8500_v59 = vsel %vm4309_vm3, %v8498_v34, %v8499_v49  ;;  %v8504_v20 = vrot.slane %v8212_v30, 2  ;;  %v8210_v17 = vadd.f32 %v8033_v14, %v15268_v27  ;;  %v15271_v27 = vld [vmem:[#allocation109_spill] sm:$0xff] }
 0x500   : > { %v8683_v41 = vadd.f32 %v14532_v15, %v8644_v1  ;;  %v8684_v54 = vadd.f32 %v14532_v15, %v8645_v51  ;;  %v8607_v43 = vadd.f32 %v8500_v59, %v14355_v46  ;;  %v11545_v6 = vpop.f32.mrf.mxu1 }
 0x501   : > { %v8505_v42 = vsel %vm4309_vm3, %v8503_v24, %v8504_v20  ;;  %v8501_v13 = vrot.slane %v8210_v17, 2  ;;  %v8215_v39 = vadd.f32 %v11545_v6, %v14239_v11 }
 0x502   : > { %v8715_v4 = vadd.f32 %v8683_v41, %v15269_v45  ;;  %v8716_v31 = vadd.f32 %v8684_v54, %v15270_v57  ;;  %v8646_v53 = vmul.f32 %v14522_v9, %v8607_v43  ;;  %v8609_v12 = vadd.f32 %v8505_v42, %v14360_v3  ;;  %v8046_v34 = vpop.f32.mrf.mxu1  ;;  %v15272_v3 = vld [vmem:[#allocation14_spill] sm:$0xff]  ;;  %v15273_v42 = vld [vmem:[#allocation120_spill] sm:$0xff] }
 0x503   : > { %v8502_v8 = vsel %vm4309_vm3, %v8499_v49, %v8501_v13  ;;  %v8213_v30 = vadd.f32 %v8046_v34, %v14242_v21  ;;  %v8509_v41 = vrot.slane %v8215_v39, 2 }
 0x504   : > { %v8747_v46 = vmax.f32 %v8715_v4, 0.0  ;;  %v8748_v1 = vmax.f32 %v8716_v31, 0.0  ;;  %v8685_v51 = vadd.f32 %v14532_v15, %v8646_v53  ;;  %v8648_v14 = vmul.f32 %v14522_v9, %v8609_v12  ;;  %v11546_v11 = vpop.f32.mrf.mxu1  ;;  %v15274_v4 = vld [vmem:[#allocation16_spill] sm:$0xff] }
 0x505   : > { %v8608_v24 = vadd.f32 %v8502_v8, %v14366_v29  ;;  %v8506_v59 = vrot.slane %v8213_v30, 2  ;;  %v8216_v17 = vadd.f32 %v11546_v11, %v15271_v27 }
 0x506   : > { %8779 = vst [vmem:[%s14556_s20] sm:$0xff] %v8747_v46  ;;  %8780 = vst [vmem:[%s14556_s20 + $0x8] sm:$0xff] %v8748_v1  ;;  %v8717_v21 = vadd.f32 %v8685_v51, %v15272_v3  ;;  %v8687_v49 = vadd.f32 %v14532_v15, %v8648_v14  ;;  %v8049_v54 = vpop.f32.mrf.mxu1  ;;  %v15275_v1 = vld [vmem:[#allocation15_spill] sm:$0xff]  ;;  %v15276_v3 = vld [vmem:[#allocation17_spill] sm:$0xff] }
 0x507   : > { %v8647_v43 = vmul.f32 %v14522_v9, %v8608_v24  ;;  %v8507_v29 = vsel %vm4309_vm3, %v8504_v20, %v8506_v59  ;;  %v8511_v6 = vrot.slane %v8216_v17, 2  ;;  %v8214_v13 = vadd.f32 %v8049_v54, %v15273_v42  ;;  %v15278_v42 = vld [vmem:[#allocation19_spill] sm:$0xff] }
 0x508   : > { %v8749_v45 = vmax.f32 %v8717_v21, 0.0  ;;  %v8719_v57 = vadd.f32 %v8687_v49, %v15274_v4  ;;  %v8610_v31 = vadd.f32 %v8507_v29, %v14372_v47  ;;  %v11549_v53 = vpop.f32.mrf.mxu1 }
 0x509   : > { %v8686_v12 = vadd.f32 %v14532_v15, %v8647_v43  ;;  %v8512_v34 = vsel %vm4309_vm3, %v8509_v41, %v8511_v6  ;;  %v8508_v39 = vrot.slane %v8214_v13, 2  ;;  %v8219_v17 = vadd.f32 %v11549_v53, %v14249_v10  ;;  %v15277_v43 = vld [vmem:[#allocation113_spill] sm:$0xff] }
 0x50a   : > { %8781 = vst [vmem:[%s14556_s20 + $0x10] sm:$0xff] %v8749_v45  ;;  %v8751_v8 = vmax.f32 %v8719_v57, 0.0  ;;  %v8649_v30 = vmul.f32 %v14522_v9, %v8610_v31  ;;  %v8612_v20 = vadd.f32 %v8512_v34, %v14375_v18  ;;  %v8062_v46 = vpop.f32.mrf.mxu1 }
 0x50b   : > { %v8718_v51 = vadd.f32 %v8686_v12, %v15275_v1  ;;  %v8510_v14 = vsel %vm4309_vm3, %v8508_v39, %v8509_v41  ;;  %v8217_v18 = vadd.f32 %v8062_v46, %v14252_v2  ;;  %v8516_v45 = vrot.slane %v8219_v17, 2  ;;  %v15279_v2 = vld [vmem:[#allocation112_spill] sm:$0xff]  ;;  %v15280_v12 = vld [vmem:[#allocation18_spill] sm:$0xff] }
 0x50c   : > { %8783 = vst [vmem:[%s14556_s20 + $0x20] sm:$0xff] %v8751_v8  ;;  %v8688_v47 = vadd.f32 %v14532_v15, %v8649_v30  ;;  %v8651_v11 = vmul.f32 %v14522_v9, %v8612_v20  ;;  %v8611_v24 = vadd.f32 %v8510_v14, %v14381_v7  ;;  %v11550_v59 = vpop.f32.mrf.mxu1 }
 0x50d   : > { %v8750_v27 = vmax.f32 %v8718_v51, 0.0  ;;  %v8513_v4 = vrot.slane %v8217_v18, 2  ;;  %v8220_v57 = vadd.f32 %v11550_v59, %v15279_v2  ;;  %v15281_v59 = vld [vmem:[#allocation114_spill] sm:$0xff] }
 0x50e   : > { %v8720_v21 = vadd.f32 %v8688_v47, %v15276_v3  ;;  %v8690_v49 = vadd.f32 %v14532_v15, %v8651_v11  ;;  %v8650_v41 = vmul.f32 %v14522_v9, %v8611_v24  ;;  %v8065_v54 = vpop.f32.mrf.mxu1 }
 0x50f   : > { %8782 = vst [vmem:[%s14556_s20 + $0x18] sm:$0xff] %v8750_v27  ;;  %v8218_v29 = vadd.f32 %v8065_v54, %v15277_v43  ;;  %v8518_v11 = vrot.slane %v8220_v57, 2 }
 0x510   : > { %v8752_v6 = vmax.f32 %v8720_v21, 0.0  ;;  %v8722_v7 = vadd.f32 %v8690_v49, %v15278_v42  ;;  %v8689_v13 = vadd.f32 %v14532_v15, %v8650_v41  ;;  %v11553_v10 = vpop.f32.mrf.mxu1  ;;  %v15282_v49 = vld [vmem:[#allocation115_spill] sm:$0xff] }
 0x511   : > { %v8514_v31 = vrot.slane %v8218_v29, 2  ;;  %v8223_v20 = vadd.f32 %v11553_v10, %v14259_v50  ;;  %v15284_v10 = vld [vmem:[#allocation21_spill] sm:$0xff] }
 0x512   : > { %8784 = vst [vmem:[%s14556_s20 + $0x28] sm:$0xff] %v8752_v6  ;;  %v8754_v53 = vmax.f32 %v8722_v7, 0.0  ;;  %v8721_v34 = vadd.f32 %v8689_v13, %v15280_v12  ;;  %v8078_v39 = vpop.f32.mrf.mxu1  ;;  %v15283_v7 = vld [vmem:[#allocation20_spill] sm:$0xff] }
 0x513   : > { %v8515_v8 = vsel %vm4309_vm3, %v8513_v4, %v8514_v31  ;;  %v8517_v30 = vsel %vm4309_vm3, %v8514_v31, %v8516_v45  ;;  %v8221_v46 = vadd.f32 %v8078_v39, %v14262_v35  ;;  %v8523_v50 = vrot.slane %v8223_v20, 2  ;;  %v15285_v20 = vld [vmem:[#allocation116_spill] sm:$0xff] }
 0x514   : > { %8786 = vst [vmem:[%s14556_s20 + $0x38] sm:$0xff] %v8754_v53  ;;  %v8753_v1 = vmax.f32 %v8721_v34, 0.0  ;;  %v8613_v51 = vadd.f32 %v8515_v8, %v14390_v37  ;;  %v8614_v14 = vadd.f32 %v8517_v30, %v14396_v52  ;;  %v11554_v47 = vpop.f32.mrf.mxu1 }
 0x515   : > { %v8519_v24 = vrot.slane %v8221_v46, 2  ;;  %v8224_v27 = vadd.f32 %v11554_v47, %v15281_v59  ;;  %v15287_v59 = vld [vmem:[#allocation117_spill] sm:$0xff] }
 0x516   : > { %8785 = vst [vmem:[%s14556_s20 + $0x30] sm:$0xff] %v8753_v1  ;;  %v8652_v17 = vmul.f32 %v14522_v9, %v8613_v51  ;;  %v8653_v18 = vmul.f32 %v14522_v9, %v8614_v14  ;;  %v8081_v3 = vpop.f32.mrf.mxu1 }
 0x517   : > { %v8520_v35 = vsel %vm4309_vm3, %v8518_v11, %v8519_v24  ;;  %v8524_v21 = vrot.slane %v8224_v27, 2  ;;  %v8222_v41 = vadd.f32 %v8081_v3, %v15282_v49 }
 0x518   : > { %v8691_v37 = vadd.f32 %v14532_v15, %v8652_v17  ;;  %v8692_v52 = vadd.f32 %v14532_v15, %v8653_v18  ;;  %v8615_v54 = vadd.f32 %v8520_v35, %v14399_v63  ;;  %v11557_v43 = vpop.f32.mrf.mxu1  ;;  %v15288_v17 = vld [vmem:[#allocation24_spill] sm:$0xff] }
 0x519   : > { %v8525_v29 = vsel %vm4309_vm3, %v8523_v50, %v8524_v21  ;;  %v8521_v6 = vrot.slane %v8222_v41, 2  ;;  %v8227_v42 = vadd.f32 %v11557_v43, %v14269_v26  ;;  %v15289_v43 = vld [vmem:[#allocation23_spill] sm:$0xff] }
 0x51a   : > { %v8723_v13 = vadd.f32 %v8691_v37, %v15283_v7  ;;  %v8724_v45 = vadd.f32 %v8692_v52, %v15284_v10  ;;  %v8654_v4 = vmul.f32 %v14522_v9, %v8615_v54  ;;  %v8617_v2 = vadd.f32 %v8525_v29, %v14404_v60  ;;  %v8094_v57 = vpop.f32.mrf.mxu1  ;;  %v15286_v60 = vld [vmem:[#allocation22_spill] sm:$0xff] }
 0x51b   : > { %v8522_v31 = vsel %vm4309_vm3, %v8519_v24, %v8521_v6  ;;  %v8225_v63 = vadd.f32 %v8094_v57, %v14272_v58  ;;  %v8529_v58 = vrot.slane %v8227_v42, 2 }
 0x51c   : > { %v8755_v53 = vmax.f32 %v8723_v13, 0.0  ;;  %v8756_v12 = vmax.f32 %v8724_v45, 0.0  ;;  %v8693_v34 = vadd.f32 %v14532_v15, %v8654_v4  ;;  %v8656_v26 = vmul.f32 %v14522_v9, %v8617_v2  ;;  %v11558_v39 = vpop.f32.mrf.mxu1  ;;  %v15290_v4 = vld [vmem:[#allocation25_spill] sm:$0xff] }
 0x51d   : > { %v8616_v8 = vadd.f32 %v8522_v31, %v14410_v28  ;;  %v8526_v30 = vrot.slane %v8225_v63, 2  ;;  %v8228_v46 = vadd.f32 %v11558_v39, %v15285_v20 }
 0x51e   : > { %8787 = vst [vmem:[%s14556_s20 + $0x40] sm:$0xff] %v8755_v53  ;;  %8788 = vst [vmem:[%s14556_s20 + $0x48] sm:$0xff] %v8756_v12  ;;  %v8725_v1 = vadd.f32 %v8693_v34, %v15286_v60  ;;  %v8695_v51 = vadd.f32 %v14532_v15, %v8656_v26  ;;  %v8097_v14 = vpop.f32.mrf.mxu1  ;;  %v15291_v53 = vld [vmem:[#allocation119_spill] sm:$0xff] }
 0x51f   : > { %v8655_v47 = vmul.f32 %v14522_v9, %v8616_v8  ;;  %v8527_v11 = vsel %vm4309_vm3, %v8524_v21, %v8526_v30  ;;  %v8531_v24 = vrot.slane %v8228_v46, 2  ;;  %v8226_v28 = vadd.f32 %v8097_v14, %v15287_v59  ;;  %v15292_v26 = vld [vmem:[#allocation27_spill] sm:$0xff] }
 0x520   : > { %v8757_v27 = vmax.f32 %v8725_v1, 0.0  ;;  %v8727_v18 = vadd.f32 %v8695_v51, %v15288_v17  ;;  %v8618_v3 = vadd.f32 %v8527_v11, %v14416_v36  ;;  %v11561_v50 = vpop.f32.mrf.mxu1  ;;  %v15294_v1 = vld [vmem:[#allocation26_spill] sm:$0xff] }
 0x521   : > { %v8694_v35 = vadd.f32 %v14532_v15, %v8655_v47  ;;  %v8532_v49 = vsel %vm4309_vm3, %v8529_v58, %v8531_v24  ;;  %v8528_v41 = vrot.slane %v8226_v28, 2  ;;  %v8231_v45 = vadd.f32 %v11561_v50, %v14279_v38  ;;  %v15295_v50 = vld [vmem:[#allocation123_spill] sm:$0xff] }
 0x522   : > { %8789 = vst [vmem:[%s14556_s20 + $0x50] sm:$0xff] %v8757_v27  ;;  %v8759_v37 = vmax.f32 %v8727_v18, 0.0  ;;  %v8657_v52 = vmul.f32 %v14522_v9, %v8618_v3  ;;  %v8620_v21 = vadd.f32 %v8532_v49, %v14419_v44  ;;  %v8110_v54 = vpop.f32.mrf.mxu1 }
 0x523   : > { %v8726_v29 = vadd.f32 %v8694_v35, %v15289_v43  ;;  %v8530_v6 = vsel %vm4309_vm3, %v8528_v41, %v8529_v58  ;;  %v8229_v44 = vadd.f32 %v8110_v54, %v14282_v48  ;;  %v8536_v8 = vrot.slane %v8231_v45, 2  ;;  %v15293_v48 = vld [vmem:[#allocation118_spill] sm:$0xff] }
 0x524   : > { %8791 = vst [vmem:[%s14556_s20 + $0x60] sm:$0xff] %v8759_v37  ;;  %v8696_v36 = vadd.f32 %v14532_v15, %v8657_v52  ;;  %v8659_v42 = vmul.f32 %v14522_v9, %v8620_v21  ;;  %v8619_v7 = vadd.f32 %v8530_v6, %v14425_v61  ;;  %v11562_v13 = vpop.f32.mrf.mxu1  ;;  %v15296_v21 = vld [vmem:[#allocation121_spill] sm:$0xff] }
 0x525   : > { %v8758_v10 = vmax.f32 %v8726_v29, 0.0  ;;  %v8533_v30 = vrot.slane %v8229_v44, 2  ;;  %v8232_v20 = vadd.f32 %v11562_v13, %v15293_v48 }
 0x526   : > { %v8728_v2 = vadd.f32 %v8696_v36, %v15290_v4  ;;  %v8698_v57 = vadd.f32 %v14532_v15, %v8659_v42  ;;  %v8658_v31 = vmul.f32 %v14522_v9, %v8619_v7  ;;  %v8113_v63 = vpop.f32.mrf.mxu1  ;;  %v15297_v7 = vld [vmem:[#allocation28_spill] sm:$0xff] }
 0x527   : > { %8790 = vst [vmem:[%s14556_s20 + $0x58] sm:$0xff] %v8758_v10  ;;  %v8230_v12 = vadd.f32 %v8113_v63, %v15291_v53  ;;  %v8538_v18 = vrot.slane %v8232_v20, 2  ;;  %v15298_v10 = vld [vmem:[#allocation29_spill] sm:$0xff] }
 0x528   : > { %v8760_v34 = vmax.f32 %v8728_v2, 0.0  ;;  %v8730_v61 = vadd.f32 %v8698_v57, %v15292_v26  ;;  %v8697_v39 = vadd.f32 %v14532_v15, %v8658_v31  ;;  %v11565_v38 = vpop.f32.mrf.mxu1  ;;  %v15300_v26 = vld [vmem:[#allocation133_spill] sm:$0xff] }
 0x529   : > { %v8534_v46 = vrot.slane %v8230_v12, 2  ;;  %v8235_v11 = vadd.f32 %v11565_v38, %v14289_v56  ;;  %v15301_v38 = vld [vmem:[#allocation122_spill] sm:$0xff] }
 0x52a   : > { %8792 = vst [vmem:[%s14556_s20 + $0x68] sm:$0xff] %v8760_v34  ;;  %v8762_v60 = vmax.f32 %v8730_v61, 0.0  ;;  %v8729_v51 = vadd.f32 %v8697_v39, %v15294_v1  ;;  %v8126_v58 = vpop.f32.mrf.mxu1 }
 0x52b   : > { %v8535_v14 = vsel %vm4309_vm3, %v8533_v30, %v8534_v46  ;;  %v8537_v47 = vsel %vm4309_vm3, %v8534_v46, %v8536_v8  ;;  %v8233_v24 = vadd.f32 %v8126_v58, %v14292_v55  ;;  %v8543_v56 = vrot.slane %v8235_v11, 2  ;;  %v15303_v58 = vld [vmem:[#allocation45_spill] sm:$0xff]  ;;  %v15304_v11 = vld [vmem:[#allocation32_spill] sm:$0xff] }
 0x52c   : > { %8794 = vst [vmem:[%s14556_s20 + $0x78] sm:$0xff] %v8762_v60  ;;  %v8761_v59 = vmax.f32 %v8729_v51, 0.0  ;;  %v8621_v28 = vadd.f32 %v8535_v14, %v14434_v33  ;;  %v8622_v27 = vadd.f32 %v8537_v47, %v14440_v16  ;;  %v11566_v17 = vpop.f32.mrf.mxu1 }
 0x52d   : > { %v8539_v3 = vrot.slane %v8233_v24, 2  ;;  %v8236_v35 = vadd.f32 %v11566_v17, %v15295_v50 }
 0x52e   : > { %8793 = vst [vmem:[%s14556_s20 + $0x70] sm:$0xff] %v8761_v59  ;;  %v8660_v49 = vmul.f32 %v14522_v9, %v8621_v28  ;;  %v8661_v41 = vmul.f32 %v14522_v9, %v8622_v27  ;;  %v8129_v37 = vpop.f32.mrf.mxu1  ;;  %v15305_v59 = vld [vmem:[#allocation130_spill] sm:$0xff] }
 0x52f   : > { %v8540_v55 = vsel %vm4309_vm3, %v8538_v18, %v8539_v3  ;;  %v8544_v52 = vrot.slane %v8236_v35, 2  ;;  %v8234_v54 = vadd.f32 %v8129_v37, %v15296_v21 }
 0x530   : > { %v8699_v33 = vadd.f32 %v14532_v15, %v8660_v49  ;;  %v8700_v16 = vadd.f32 %v14532_v15, %v8661_v41  ;;  %v8623_v43 = vadd.f32 %v8540_v55, %v14443_v19  ;;  %v11569_v29 = vpop.f32.mrf.mxu1  ;;  %v15299_v19 = vld [vmem:[#allocation44_spill] sm:$0xff]  ;;  %v15306_v49 = vld [vmem:[#allocation47_spill] sm:$0xff] }
 0x531   : > { %v8545_v6 = vsel %vm4309_vm3, %v8543_v56, %v8544_v52  ;;  %v8541_v36 = vrot.slane %v8234_v54, 2  ;;  %v8239_v42 = vadd.f32 %v11569_v29, %v14299_v62  ;;  %v15307_v56 = vld [vmem:[#allocation31_spill] sm:$0xff] }
 0x532   : > { %v8731_v13 = vadd.f32 %v8699_v33, %v15297_v7  ;;  %v8732_v45 = vadd.f32 %v8700_v16, %v15298_v10  ;;  %v8662_v44 = vmul.f32 %v14522_v9, %v8623_v43  ;;  %v8625_v4 = vadd.f32 %v8545_v6, %v14448_v32  ;;  %v8142_v2 = vpop.f32.mrf.mxu1  ;;  %v15302_v32 = vld [vmem:[#allocation30_spill] sm:$0xff]  ;;  %v15308_v33 = vld [vmem:[#allocation131_spill] sm:$0xff]  ;;  %v15309_v6 = vld [vmem:[#allocation65_spill] sm:$0xff] }
 0x533   : > { %v8542_v57 = vsel %vm4309_vm3, %v8539_v3, %v8541_v36  ;;  %v8237_v31 = vadd.f32 %v8142_v2, %v15299_v19  ;;  %v8549_v20 = vrot.slane %v8239_v42, 2  ;;  %v15310_v42 = vld [vmem:[#allocation127_spill] sm:$0xff]  ;;  %v15312_v2 = vld [vmem:[#allocation124_spill] sm:$0xff] }
 0x534   : > { %v8763_v63 = vmax.f32 %v8731_v13, 0.0  ;;  %v8764_v53 = vmax.f32 %v8732_v45, 0.0  ;;  %v8701_v12 = vadd.f32 %v14532_v15, %v8662_v44  ;;  %v8664_v62 = vmul.f32 %v14522_v9, %v8625_v4  ;;  %v11570_v34 = vpop.f32.mrf.mxu1  ;;  %v15311_v13 = vld [vmem:[#allocation33_spill] sm:$0xff] }
 0x535   : > { %v8624_v61 = vadd.f32 %v8542_v57, %v15300_v26  ;;  %v8546_v39 = vrot.slane %v8237_v31, 2  ;;  %v8240_v8 = vadd.f32 %v11570_v34, %v15301_v38  ;;  %v15313_v31 = vld [vmem:[#allocation35_spill] sm:$0xff]  ;;  %v15314_v26 = vld [vmem:[#allocation128_spill] sm:$0xff] }
 0x536   : > { %8795 = vst [vmem:[%s14556_s20 + $0x80] sm:$0xff] %v8763_v63  ;;  %8796 = vst [vmem:[%s14556_s20 + $0x88] sm:$0xff] %v8764_v53  ;;  %v8733_v30 = vadd.f32 %v8701_v12, %v15302_v32  ;;  %v8703_v48 = vadd.f32 %v14532_v15, %v8664_v62  ;;  %v8145_v46 = vpop.f32.mrf.mxu1 }
 0x537   : > { %v8663_v60 = vmul.f32 %v14522_v9, %v8624_v61  ;;  %v8547_v1 = vsel %vm4309_vm3, %v8544_v52, %v8546_v39  ;;  %v8551_v51 = vrot.slane %v8240_v8, 2  ;;  %v8238_v14 = vadd.f32 %v8145_v46, %v15303_v58  ;;  %v15315_v8 = vld [vmem:[#allocation34_spill] sm:$0xff] }
 0x538   : > { %v8765_v47 = vmax.f32 %v8733_v30, 0.0  ;;  %v8735_v24 = vadd.f32 %v8703_v48, %v15304_v11  ;;  %v8626_v28 = vadd.f32 %v8547_v1, %v15305_v59  ;;  %v11573_v27 = vpop.f32.mrf.mxu1  ;;  %v15316_v46 = vld [vmem:[#allocation66_spill] sm:$0xff] }
 0x539   : > { %v8702_v17 = vadd.f32 %v14532_v15, %v8663_v60  ;;  %v8552_v18 = vsel %vm4309_vm3, %v8549_v20, %v8551_v51  ;;  %v8548_v3 = vrot.slane %v8238_v14, 2  ;;  %v8243_v36 = vadd.f32 %v11573_v27, %v15309_v6  ;;  %v15317_v1 = vld [vmem:[#allocation46_spill] sm:$0xff]  ;;  %v15323_v6 = vld [vmem:[#allocation37_spill] sm:$0xff] }
 0x53a   : > { %8797 = vst [vmem:[%s14556_s20 + $0x90] sm:$0xff] %v8765_v47  ;;  %v8767_v50 = vmax.f32 %v8735_v24, 0.0  ;;  %v8665_v35 = vmul.f32 %v14522_v9, %v8626_v28  ;;  %v8628_v41 = vadd.f32 %v8552_v18, %v15306_v49  ;;  %v8158_v37 = vpop.f32.mrf.mxu1  ;;  %v15318_v28 = vld [vmem:[#allocation125_spill] sm:$0xff] }
 0x53b   : > { %v8734_v55 = vadd.f32 %v8702_v17, %v15307_v56  ;;  %v8550_v52 = vsel %vm4309_vm3, %v8548_v3, %v8549_v20  ;;  %v8241_v7 = vadd.f32 %v8158_v37, %v15310_v42  ;;  %v8556_v62 = vrot.slane %v8243_v36, 2  ;;  %v15320_v56 = vld [vmem:[#allocation134_spill] sm:$0xff] }
 0x53c   : > { %8799 = vst [vmem:[%s14556_s20 + $0xa0] sm:$0xff] %v8767_v50  ;;  %v8704_v21 = vadd.f32 %v14532_v15, %v8665_v35  ;;  %v8667_v54 = vmul.f32 %v14522_v9, %v8628_v41  ;;  %v8627_v16 = vadd.f32 %v8550_v52, %v15308_v33  ;;  %v11574_v43 = vpop.f32.mrf.mxu1  ;;  %v15319_v41 = vld [vmem:[#allocation126_spill] sm:$0xff]  ;;  %v15321_v33 = vld [vmem:[#allocation67_spill] sm:$0xff] }
 0x53d   : > { %v8766_v29 = vmax.f32 %v8734_v55, 0.0  ;;  %v8553_v34 = vrot.slane %v8241_v7, 2  ;;  %v8244_v61 = vadd.f32 %v11574_v43, %v15314_v26  ;;  %v15322_v43 = vld [vmem:[#allocation36_spill] sm:$0xff]  ;;  %v15324_v7 = vld [vmem:[#allocation137_spill] sm:$0xff]  ;;  %v15327_v26 = vld [vmem:[#allocation38_spill] sm:$0xff] }
 0x53e   : > { %v8736_v10 = vadd.f32 %v8704_v21, %v15311_v13  ;;  %v8706_v45 = vadd.f32 %v14532_v15, %v8667_v54  ;;  %v8666_v44 = vmul.f32 %v14522_v9, %v8627_v16  ;;  %v8161_v4 = vpop.f32.mrf.mxu1 }
 0x53f   : > { %8798 = vst [vmem:[%s14556_s20 + $0x98] sm:$0xff] %v8766_v29  ;;  %v8242_v57 = vadd.f32 %v8161_v4, %v15312_v2  ;;  %v8558_v24 = vrot.slane %v8244_v61, 2 }
 0x540   : > { %v8768_v19 = vmax.f32 %v8736_v10, 0.0  ;;  %v8738_v63 = vadd.f32 %v8706_v45, %v15313_v31  ;;  %v8705_v53 = vadd.f32 %v14532_v15, %v8666_v44  ;;  %v11577_v12 = vpop.f32.mrf.mxu1  ;;  %v15325_v44 = vld [vmem:[#allocation129_spill] sm:$0xff] }
 0x541   : > { %v8554_v39 = vrot.slane %v8242_v57, 2  ;;  %v8247_v60 = vadd.f32 %v11577_v12, %v15316_v46 }
 0x542   : > { %8800 = vst [vmem:[%s14556_s20 + $0xa8] sm:$0xff] %v8768_v19  ;;  %v8770_v38 = vmax.f32 %v8738_v63, 0.0  ;;  %v8737_v32 = vadd.f32 %v8705_v53, %v15315_v8  ;;  %v8174_v30 = vpop.f32.mrf.mxu1 }
 0x543   : > { %v8555_v48 = vsel %vm4309_vm3, %v8553_v34, %v8554_v39  ;;  %v8557_v20 = vsel %vm4309_vm3, %v8554_v39, %v8556_v62  ;;  %v8245_v51 = vadd.f32 %v8174_v30, %v15317_v1  ;;  %v8563_v50 = vrot.slane %v8247_v60, 2  ;;  %v15326_v62 = vld [vmem:[#allocation68_spill] sm:$0xff] }
 0x544   : > { %8802 = vst [vmem:[%s14556_s20 + $0xb8] sm:$0xff] %v8770_v38  ;;  %v8769_v58 = vmax.f32 %v8737_v32, 0.0  ;;  %v8629_v14 = vadd.f32 %v8555_v48, %v14478_v40  ;;  %v8630_v47 = vadd.f32 %v8557_v20, %v14484_v23  ;;  %v11578_v11 = vpop.f32.mrf.mxu1  ;;  %v15328_v20 = vld [vmem:[#allocation132_spill] sm:$0xff] }
 0x545   : > { %v8559_v59 = vrot.slane %v8245_v51, 2  ;;  %v8248_v27 = vadd.f32 %v11578_v11, %v15318_v28  ;;  %v15329_v60 = vld [vmem:[#allocation40_spill] sm:$0xff]  ;;  %v15330_v28 = vld [vmem:[#allocation39_spill] sm:$0xff] }
 0x546   : > { %8801 = vst [vmem:[%s14556_s20 + $0xb0] sm:$0xff] %v8769_v58  ;;  %v8668_v17 = vmul.f32 %v14522_v9, %v8629_v14  ;;  %v8669_v18 = vmul.f32 %v14522_v9, %v8630_v47  ;;  %v8177_v3 = vpop.f32.mrf.mxu1 }
 0x547   : > { %v8560_v35 = vsel %vm4309_vm3, %v8558_v24, %v8559_v59  ;;  %v8564_v49 = vrot.slane %v8248_v27, 2  ;;  %v8246_v37 = vadd.f32 %v8177_v3, %v15319_v41 }
 0x548   : > { %v8707_v40 = vadd.f32 %v14532_v15, %v8668_v17  ;;  %v8708_v23 = vadd.f32 %v14532_v15, %v8669_v18  ;;  %v8631_v55 = vadd.f32 %v8560_v35, %v15320_v56  ;;  %v11581_v52 = vpop.f32.mrf.mxu1  ;;  %v15331_v35 = vld [vmem:[#allocation41_spill] sm:$0xff] }
 0x549   : > { %v8565_v21 = vsel %vm4309_vm3, %v8563_v50, %v8564_v49  ;;  %v8561_v54 = vrot.slane %v8246_v37, 2  ;;  %v8251_v16 = vadd.f32 %v11581_v52, %v15321_v33 }
 0x54a   : > { %v8739_v29 = vadd.f32 %v8707_v40, %v15322_v43  ;;  %v8740_v36 = vadd.f32 %v8708_v23, %v15323_v6  ;;  %v8670_v42 = vmul.f32 %v14522_v9, %v8631_v55  ;;  %v8633_v13 = vadd.f32 %v8565_v21, %v15324_v7  ;;  %v8190_v10 = vpop.f32.mrf.mxu1  ;;  %v15332_v40 = vld [vmem:[#allocation43_spill] sm:$0xff]  ;;  %v15333_v55 = vld [vmem:[#allocation42_spill] sm:$0xff] }
 0x54b   : > { %v8562_v45 = vsel %vm4309_vm3, %v8559_v59, %v8561_v54  ;;  %v8249_v4 = vadd.f32 %v8190_v10, %v15325_v44  ;;  %v8569_v38 = vrot.slane %v8251_v16, 2 }
 0x54c   : > { %v8771_v2 = vmax.f32 %v8739_v29, 0.0  ;;  %v8772_v57 = vmax.f32 %v8740_v36, 0.0  ;;  %v8709_v19 = vadd.f32 %v14532_v15, %v8670_v42  ;;  %v8672_v31 = vmul.f32 %v14522_v9, %v8633_v13  ;;  %v11582_v63 = vpop.f32.mrf.mxu1 }
 0x54d   : > { %v8632_v53 = vadd.f32 %v8562_v45, %v14498_v25  ;;  %v8566_v12 = vrot.slane %v8249_v4, 2  ;;  %v8252_v34 = vadd.f32 %v11582_v63, %v15326_v62 }
 0x54e   : > { %8803 = vst [vmem:[%s14556_s20 + $0xc0] sm:$0xff] %v8771_v2  ;;  %8804 = vst [vmem:[%s14556_s20 + $0xc8] sm:$0xff] %v8772_v57  ;;  %v8741_v61 = vadd.f32 %v8709_v19, %v15327_v26  ;;  %v8711_v39 = vadd.f32 %v14532_v15, %v8672_v31  ;;  %v8193_v8 = vpop.f32.mrf.mxu1 }
 0x54f   : > { %v8671_v32 = vmul.f32 %v14522_v9, %v8632_v53  ;;  %v8567_v30 = vsel %vm4309_vm3, %v8564_v49, %v8566_v12  ;;  %v8571_v48 = vrot.slane %v8252_v34, 2  ;;  %v8250_v25 = vadd.f32 %v8193_v8, %v15328_v20 }
 0x550   : > { %v8773_v46 = vmax.f32 %v8741_v61, 0.0  ;;  %v8743_v1 = vadd.f32 %v8711_v39, %v15329_v60  ;;  %v8634_v51 = vadd.f32 %v8567_v30, %v14504_v5 }
 0x551   : > { %v8710_v58 = vadd.f32 %v14532_v15, %v8671_v32  ;;  %v8572_v14 = vsel %vm4309_vm3, %v8569_v38, %v8571_v48  ;;  %v8568_v47 = vrot.slane %v8250_v25, 2 }
 0x552   : > { %8805 = vst [vmem:[%s14556_s20 + $0xd0] sm:$0xff] %v8773_v46  ;;  %v8775_v11 = vmax.f32 %v8743_v1, 0.0  ;;  %v8673_v24 = vmul.f32 %v14522_v9, %v8634_v51  ;;  %v8636_v59 = vadd.f32 %v8572_v14, %v14507_v22 }
 0x553   : > { %v8742_v27 = vadd.f32 %v8710_v58, %v15330_v28  ;;  %v8570_v17 = vsel %vm4309_vm3, %v8568_v47, %v8569_v38 }
 0x554   : > { %8807 = vst [vmem:[%s14556_s20 + $0xe0] sm:$0xff] %v8775_v11  ;;  %v8712_v5 = vadd.f32 %v14532_v15, %v8673_v24  ;;  %v8675_v18 = vmul.f32 %v14522_v9, %v8636_v59  ;;  %v8635_v3 = vadd.f32 %v8570_v17, %v14511_v0 }
 0x555   : > { %v8774_v50 = vmax.f32 %v8742_v27, 0.0 }
 0x556   : > { %v8744_v49 = vadd.f32 %v8712_v5, %v15331_v35  ;;  %v8714_v22 = vadd.f32 %v14532_v15, %v8675_v18  ;;  %v8674_v41 = vmul.f32 %v14522_v9, %v8635_v3 }
 0x557   : > { %8806 = vst [vmem:[%s14556_s20 + $0xd8] sm:$0xff] %v8774_v50 }
 0x558   : > { %v8776_v37 = vmax.f32 %v8744_v49, 0.0  ;;  %v8746_v23 = vadd.f32 %v8714_v22, %v15332_v40  ;;  %v8713_v56 = vadd.f32 %v14532_v15, %v8674_v41 }
 0x55a   : > { %8808 = vst [vmem:[%s14556_s20 + $0xe8] sm:$0xff] %v8776_v37  ;;  %v8778_v0 = vmax.f32 %v8746_v23, 0.0  ;;  %v8745_v52 = vadd.f32 %v8713_v56, %v15333_v55 }
 0x55c   : > { %8810 = vst [vmem:[%s14556_s20 + $0xf8] sm:$0xff] %v8778_v0  ;;  %v8777_v9 = vmax.f32 %v8745_v52, 0.0 }
 0x55e   : > { %8809 = vst [vmem:[%s14556_s20 + $0xf0] sm:$0xff] %v8777_v9 }
 0x55f   : > { %12035 = shalt.err (!%p12032_p0)
}
 0x560   : > { %s12036_s14 = scalar_lea.hbm %s14771_s23, 4096  ;;  %s12040_s18 = scalar_lea.hbm %s14826_s7, 8192 }
 0x561   : > { %p12037_p1 = scmp.ne.s32.totalorder %s14771_s23, %s12036_s14  ;;  %p12041_p4 = scmp.lt.s32.totalorder %s14771_s23, %s14826_s7 }
 0x562   : > { %p12042_p7 = scmp.lt.s32.totalorder %s12040_s18, %s12036_s14 }
 0x563   : > { %p12038_p2 = pnand %p12037_p1, %p12173_p5 }
 0x564   : > { %p12043_p6 = por %p12042_p7, %p12041_p4 }
 0x565   : > { %p12039_p3 = pneg %p12038_p2 }
 0x567   : > { %p12044_p8 = pnand %p12043_p6, %p12039_p3 }
 0x569   : > { %12047 = shalt.err (!%p12044_p8)
}
 0x56a   : > { %s12093_s21 = smov 128   ;;  %s12094_s22 = smov 8  }
 0x56b   : > { %11587 = dma.vmem_to_hbm [thread:$0]  (%p12173_p5), %s14773_s17, 4096, %s14771_s23, %s14779_s28, %s12093_s21, %s12093_s21, %s12094_s22  }
 0x56c PF: > { %p11599_p9 = scmp.ge.s32.totalorder %s12086_s27, 2  ;;  %s8840_s29 = sand.u32 1, %s12074_s24  }
 0x56d   : > { %p15334_p10 = scmp.ne.s32.totalorder %s14862_s12, 0  ;;  %s8841_s8 = scalar_lea.sflag [#allocation6], %s8840_s29 }
 0x56f   : > { %p11594_p11 = pnand %p11599_p9, %p15334_p10 }
 0x571   : > { %p11595_p12 = pneg %p11594_p11 }
 0x573   : > { %12069 = dma.done.wait (%p11595_p12), %s8841_s8, 4096  }
 0x574   : > { %12071 = vsyncadd (%p11595_p12), %s8841_s8, 4294963200  ;;  %p18_p13 = scmp.ge.s32.totalorder %s12160_s30, 4   ;;  %s15335_s24 = smov %s12078_s25 }
 0x575   : > { %s15336_s25 = smov %s12082_s26  ;;  %s15337_s26 = smov %s12171_s10 }
 0x576   : > { %s15338_s27 = smov %s12160_s30  ;;  %20 = sbr.rel (!%p18_p13) target bundleno = 4 (0x4), region = 108 }
 0x57b   :  { %8846 = vsyncpa [#allocation5], 1 }
 0x57c   :  { %8848 = vsyncpa [#allocation5 + $0x1], 1 }
 0x57d   :  { %8849 = vsyncpa [#allocation6], 1 }
 0x57e   :  { %8851 = vsyncpa [#allocation6 + $0x1], 1 }

</bundles_post_ra>
